<compile_context>
chip_gen: v7x
topology: tpu7x:2x2x1
jax: 0.10.0
libtpu: 0.0.40
codegen_flags: <defaults>
</compile_context>

<pallas_src>
import functools
import math

import jax
import jax.numpy as jnp
from jax.experimental import pallas as pl
from jax.experimental.pallas import tpu as pltpu

LEAKY_SLOPE = 0.01   # F.leaky_relu default negative_slope
BN_EPS = 1e-5


def _round_up(x, m):
    return (x + m - 1) // m * m


# ----------------------------------------------------------------------------
# Fused BasicBlock kernel (one grid step == one image)
# ----------------------------------------------------------------------------
def _basic_block_kernel(*refs, G, PAD, Wp, STRIP, has_down):
    if has_down:
        (x_ref, w1_ref, b1_ref, w2_ref, b2_ref, wd_ref, bd_ref, mask_ref,
         o_ref, h_ref) = refs
    else:
        x_ref, w1_ref, b1_ref, w2_ref, b2_ref, mask_ref, o_ref, h_ref = refs
        wd_ref = bd_ref = None

    R = h_ref.shape[0]
    planes = h_ref.shape[1]

    # Static row-strip schedule over the flat (G, C) image slab.
    strips = []
    r0 = 0
    while r0 < G:
        strips.append((r0, min(STRIP, G - r0)))
        r0 += STRIP

    def conv3x3(src_ref, w_ref, row0, rows):
        # 3x3 / stride-1 / pad-1 conv over one row strip: 9 shifted GEMMs.
        acc = None
        for t in range(9):
            i, j = divmod(t, 3)
            delta = (i - 1) * Wp + (j - 1)
            base = PAD + row0 + delta
            lhs = src_ref[base:base + rows, :]                 # (rows, C) bf16
            p = jnp.dot(lhs, w_ref[t], preferred_element_type=jnp.float32)
            acc = p if acc is None else acc + p
        return acc                                             # (rows, Cout) f32

    # Zero ONLY the halo rows of the hidden scratch (cheap, ~2*PAD rows); the
    # interior G rows are fully overwritten below and the in-image border rows
    # are zero because of the y1 mask.  Done every step (megacore-safe).
    h_ref[0:PAD, :] = jnp.zeros((PAD, planes), h_ref.dtype)
    h_ref[PAD + G:R, :] = jnp.zeros((R - PAD - G, planes), h_ref.dtype)

    b1 = b1_ref[...]                                           # (1, planes) f32
    b2 = b2_ref[...]

    # ---- phase 1: conv1 + folded BN1 + leaky_relu (masked) -> h (bf16) -----
    for row0, rows in strips:
        y1 = conv3x3(x_ref, w1_ref, row0, rows) + b1
        y1 = jnp.maximum(y1, LEAKY_SLOPE * y1)                 # leaky_relu
        y1 = y1 * mask_ref[PAD + row0:PAD + row0 + rows, :]    # keep border = 0
        h_ref[PAD + row0:PAD + row0 + rows, :] = y1.astype(h_ref.dtype)

    # ---- phase 2: conv2 + folded BN2 + residual + leaky_relu -> o ----------
    for row0, rows in strips:
        y2 = conv3x3(h_ref, w2_ref, row0, rows) + b2
        xin = x_ref[PAD + row0:PAD + row0 + rows, :]           # (rows, Cin) bf16
        if has_down:
            idn = jnp.dot(xin, wd_ref[...],
                          preferred_element_type=jnp.float32) + bd_ref[...]
        else:
            idn = xin.astype(jnp.float32)
        y2 = y2 + idn
        y2 = jnp.maximum(y2, LEAKY_SLOPE * y2)                 # leaky_relu
        o_ref[row0:row0 + rows, :] = y2.astype(o_ref.dtype)


# ----------------------------------------------------------------------------
# Host wrapper
# ----------------------------------------------------------------------------
def basic_block_forward(x_nchw, params, stride=1, out_dtype=jnp.float32,
                        row_strip=256):
    """Fused BasicBlock forward.  x_nchw: (N, Cin, H, W) f32 -> (N, Cout, H, W)."""
    if stride != 1:
        # TODO(synk): strided conv path not implemented in the fused kernel.
        raise NotImplementedError("fused BasicBlock kernel supports stride=1 only")

    N, Cin, H, W = x_nchw.shape
    planes = params['w1'].shape[-1]
    has_down = 'wd' in params
    if not has_down:
        assert Cin == planes, "identity residual requires inplanes == planes"

    Hp, Wp = H + 2, W + 2
    G = Hp * Wp
    PAD = _round_up(Wp + 1, 8)
    R = _round_up(PAD + G + (Wp + 1), 8)

    # NCHW -> NHWC, bf16 MXU feed, zero 1-px border + halo rows, flat per image.
    x = jnp.transpose(x_nchw, (0, 2, 3, 1)).astype(jnp.bfloat16)
    xp = jnp.pad(x, ((0, 0), (1, 1), (1, 1), (0, 0)))            # (N, Hp, Wp, Cin)
    buf = jnp.pad(xp.reshape(N, G, Cin),
                  ((0, 0), (PAD, R - PAD - G), (0, 0)))          # (N, R, Cin)

    # interior mask: 1 inside the H x W image, 0 on the padded border rows/cols
    a = jnp.arange(G) // Wp
    b = jnp.arange(G) % Wp
    m = ((a >= 1) & (a <= H) & (b >= 1) & (b <= W)).astype(jnp.float32)
    mask = jnp.pad(m, (PAD, R - PAD - G)).reshape(R, 1)

    w1k = params['w1'].reshape(9, Cin, planes)
    w2k = params['w2'].reshape(9, planes, planes)

    args = [buf, w1k, params['b1'], w2k, params['b2']]
    const_specs = [
        pl.BlockSpec((9, Cin, planes), lambda n: (0, 0, 0)),
        pl.BlockSpec((1, planes), lambda n: (0, 0)),
        pl.BlockSpec((9, planes, planes), lambda n: (0, 0, 0)),
        pl.BlockSpec((1, planes), lambda n: (0, 0)),
    ]
    if has_down:
        args += [params['wd'], params['bd']]
        const_specs += [
            pl.BlockSpec((Cin, planes), lambda n: (0, 0)),
            pl.BlockSpec((1, planes), lambda n: (0, 0)),
        ]
    args.append(mask)
    const_specs.append(pl.BlockSpec((R, 1), lambda n: (0, 0)))

    kernel = functools.partial(_basic_block_kernel, G=G, PAD=PAD, Wp=Wp,
                               STRIP=int(row_strip), has_down=has_down)

    out_itemsize = jnp.dtype(out_dtype).itemsize
    flops = N * (2 * 9 * G * Cin * planes + 2 * 9 * G * planes * planes
                 + (2 * G * Cin * planes if has_down else 0))
    bytes_accessed = (N * R * Cin * 2                     # input slab (bf16)
                      + 9 * Cin * planes * 2 + 9 * planes * planes * 2
                      + 2 * planes * 4
                      + (Cin * planes * 2 + planes * 4 if has_down else 0)
                      + R * 4                              # mask
                      + N * G * planes * out_itemsize)     # output
    cost = pl.CostEstimate(flops=int(flops), transcendentals=0,
                           bytes_accessed=int(bytes_accessed))

    out = pl.pallas_call(
        kernel,
        out_shape=jax.ShapeDtypeStruct((N, G, planes), out_dtype),
        grid=(N,),
        in_specs=[pl.BlockSpec((None, R, Cin), lambda n: (n, 0, 0))] + const_specs,
        out_specs=pl.BlockSpec((None, G, planes), lambda n: (n, 0, 0)),
        scratch_shapes=[pltpu.VMEM((R, planes), jnp.bfloat16)],
        compiler_params=pltpu.CompilerParams(
            dimension_semantics=("parallel",),
            vmem_limit_bytes=32 * 1024 * 1024),
        cost_estimate=cost,
    )(*args)

    # Interior-only output slab -> NHWC -> NCHW.
    out = out.reshape(N, Hp, Wp, planes)[:, 1:H + 1, 1:W + 1, :]
    return jnp.transpose(out, (0, 3, 1, 2))


# ----------------------------------------------------------------------------
# Parameters (inference BN folded into the conv weights)
# ----------------------------------------------------------------------------
def _fold_bn(w_hwio, gamma, beta, mean, var):
    scale = gamma / jnp.sqrt(var + BN_EPS)          # (Cout,)
    return w_hwio * scale, (beta - mean * scale)


def init_basic_block_params(key, inplanes, planes, downsample=False):
    k1, k2, k3 = jax.random.split(key, 3)

    def kaiming(k, kh, kw, cin, cout):
        std = math.sqrt(2.0 / (cout * kh * kw))
        return jax.random.normal(k, (kh, kw, cin, cout), jnp.float32) * std

    ones = jnp.ones((planes,), jnp.float32)
    zeros = jnp.zeros((planes,), jnp.float32)       # fresh BN: gamma=1, beta=0, mean=0, var=1

    w1, b1 = _fold_bn(kaiming(k1, 3, 3, inplanes, planes), ones, zeros, zeros, ones)
    w2, b2 = _fold_bn(kaiming(k2, 3, 3, planes, planes), ones, zeros, zeros, ones)

    P = {
        'w1': w1.astype(jnp.bfloat16),              # (3,3,Cin,Cout) HWIO, BN-folded
        'b1': b1.reshape(1, planes),
        'w2': w2.astype(jnp.bfloat16),
        'b2': b2.reshape(1, planes),
    }
    if downsample:
        wd, bd = _fold_bn(kaiming(k3, 1, 1, inplanes, planes), ones, zeros, zeros, ones)
        P['wd'] = wd.reshape(inplanes, planes).astype(jnp.bfloat16)
        P['bd'] = bd.reshape(1, planes)
    return P


# ----------------------------------------------------------------------------
# Pure-XLA reference (same bf16-rounded operands) for a correctness check
# ----------------------------------------------------------------------------
def basic_block_reference(x_nchw, params):
    x = jnp.transpose(x_nchw, (0, 2, 3, 1)).astype(jnp.bfloat16).astype(jnp.float32)
    dn = ('NHWC', 'HWIO', 'NHWC')

    def conv(h, w):
        return jax.lax.conv_general_dilated(
            h, w.astype(jnp.float32), window_strides=(1, 1), padding='SAME',
            dimension_numbers=dn, precision=jax.lax.Precision.HIGHEST)

    y = conv(x, params['w1']) + params['b1'].reshape(1, 1, 1, -1)
    y = jnp.where(y >= 0, y, LEAKY_SLOPE * y)
    y = y.astype(jnp.bfloat16).astype(jnp.float32)      # match kernel's bf16 hand-off
    y = conv(y, params['w2']) + params['b2'].reshape(1, 1, 1, -1)
    if 'wd' in params:
        idn = jnp.einsum('nhwc,cd->nhwd', x, params['wd'].astype(jnp.float32),
                         precision=jax.lax.Precision.HIGHEST)
        idn = idn + params['bd'].reshape(1, 1, 1, -1)
    else:
        idn = x
    y = y + idn
    y = jnp.where(y >= 0, y, LEAKY_SLOPE * y)
    return jnp.transpose(y, (0, 3, 1, 2))


# ----------------------------------------------------------------------------
if __name__ == "__main__":
    key = jax.random.PRNGKey(0)
    kx, kp1, kp2 = jax.random.split(key, 3)

    batch, inplanes, spatial = 2, 64, 16
    x = jax.random.normal(kx, (batch, inplanes, spatial, spatial), jnp.float32)

    fwd = jax.jit(basic_block_forward)

    # Default BasicBlock: stride=1, downsample=None (identity residual).
    p_id = init_basic_block_params(kp1, inplanes, inplanes, downsample=False)
    y_id = jax.block_until_ready(fwd(x, p_id))
    y_id_ref = basic_block_reference(x, p_id)
    assert y_id.shape == (batch, inplanes, spatial, spatial)
    assert bool(jnp.all(jnp.isfinite(y_id)))
    assert bool(jnp.allclose(y_id, y_id_ref, rtol=5e-3, atol=5e-3))

    # Channel-expanding block with 1x1-conv + BN downsample on the identity.
    planes2 = 128
    p_dn = init_basic_block_params(kp2, inplanes, planes2, downsample=True)
    y_dn = jax.block_until_ready(fwd(x, p_dn))
    y_dn_ref = basic_block_reference(x, p_dn)
    assert y_dn.shape == (batch, planes2, spatial, spatial)
    assert bool(jnp.all(jnp.isfinite(y_dn)))
    assert bool(jnp.allclose(y_dn, y_dn_ref, rtol=5e-3, atol=5e-3))

    print("KERNEL_OK")
</pallas_src>

<mosaic_0001>
module attributes {stable_mosaic.version = 11 : i64} {
  func.func @_basic_block_kernel(%arg0: i32, %arg1: memref<1x368x64xbf16, #tpu.memory_space<vmem>>, %arg2: memref<9x64x64xbf16, #tpu.memory_space<vmem>>, %arg3: memref<1x64xf32, #tpu.memory_space<vmem>>, %arg4: memref<9x64x64xbf16, #tpu.memory_space<vmem>>, %arg5: memref<1x64xf32, #tpu.memory_space<vmem>>, %arg6: memref<368x1xf32, #tpu.memory_space<vmem>>, %arg7: memref<1x324x64xf32, #tpu.memory_space<vmem>>, %arg8: memref<368x64xbf16, #tpu.memory_space<vmem>>) attributes {dimension_semantics = [#tpu.dimension_semantics<parallel>], iteration_bounds = array<i64: 2>, scalar_prefetch = 0 : i64, scratch_operands = 1 : i64, tpu.core_type = #tpu.core_type<tc>, window_params = [{transform_indices = @transform_0, window_bounds = array<i64: 1, 368, 64>}, {pipeline_mode = #tpu.pipeline_mode<synchronous>, transform_indices = @transform_1, window_bounds = array<i64: 9, 64, 64>}, {pipeline_mode = #tpu.pipeline_mode<synchronous>, transform_indices = @transform_2, window_bounds = array<i64: 1, 64>}, {pipeline_mode = #tpu.pipeline_mode<synchronous>, transform_indices = @transform_3, window_bounds = array<i64: 9, 64, 64>}, {pipeline_mode = #tpu.pipeline_mode<synchronous>, transform_indices = @transform_4, window_bounds = array<i64: 1, 64>}, {pipeline_mode = #tpu.pipeline_mode<synchronous>, transform_indices = @transform_5, window_bounds = array<i64: 368, 1>}, {transform_indices = @transform_6, window_bounds = array<i64: 1, 324, 64>}]} {
    %cst = arith.constant 0.000000e+00 : bf16
    %0 = vector.broadcast %cst : bf16 to vector<24x64xbf16>
    %c0 = arith.constant 0 : index
    %c0_0 = arith.constant 0 : index
    %1 = vector.load %arg8[%c0, %c0_0] : memref<368x64xbf16, #tpu.memory_space<vmem>>, vector<24x64xbf16>
    tpu.vector_store %arg8[%c0, %c0_0], %0 {strides = array<i32>} : memref<368x64xbf16, #tpu.memory_space<vmem>>, vector<24x64xbf16>,
    %cst_1 = arith.constant 0.000000e+00 : bf16
    %2 = vector.broadcast %cst_1 : bf16 to vector<20x64xbf16>
    %c348 = arith.constant 348 : index
    %c0_2 = arith.constant 0 : index
    %3 = vector.load %arg8[%c348, %c0_2] : memref<368x64xbf16, #tpu.memory_space<vmem>>, vector<20x64xbf16>
    tpu.vector_store %arg8[%c348, %c0_2], %2 {strides = array<i32>} : memref<368x64xbf16, #tpu.memory_space<vmem>>, vector<20x64xbf16>,
    %c0_3 = arith.constant 0 : index
    %c0_4 = arith.constant 0 : index
    %4 = vector.load %arg3[%c0_3, %c0_4] : memref<1x64xf32, #tpu.memory_space<vmem>>, vector<1x64xf32>
    %c0_5 = arith.constant 0 : index
    %c0_6 = arith.constant 0 : index
    %5 = vector.load %arg5[%c0_5, %c0_6] : memref<1x64xf32, #tpu.memory_space<vmem>>, vector<1x64xf32>
    %c0_7 = arith.constant 0 : index
    %c5 = arith.constant 5 : index
    %c0_8 = arith.constant 0 : index
    %6 = vector.load %arg1[%c0_7, %c5, %c0_8] : memref<1x368x64xbf16, #tpu.memory_space<vmem>>, vector<1x256x64xbf16>
    %7 = vector.shape_cast %6 : vector<1x256x64xbf16> to vector<256x64xbf16>
    %c0_9 = arith.constant 0 : index
    %c0_10 = arith.constant 0 : index
    %c0_11 = arith.constant 0 : index
    %8 = vector.load %arg2[%c0_9, %c0_10, %c0_11] : memref<9x64x64xbf16, #tpu.memory_space<vmem>>, vector<1x64x64xbf16>
    %9 = vector.shape_cast %8 : vector<1x64x64xbf16> to vector<64x64xbf16>
    %cst_12 = arith.constant dense<0.000000e+00> : vector<256x64xf32>
    %10 = tpu.matmul %7, %9, %cst_12 {dimension_numbers = #tpu.dot_dimension_numbers<[1], [0], [0], [1], [0, 0, 1, 1], [], []>} : vector<256x64xbf16>, vector<64x64xbf16>, vector<256x64xf32> -> vector<256x64xf32>
    %c0_13 = arith.constant 0 : index
    %c6 = arith.constant 6 : index
    %c0_14 = arith.constant 0 : index
    %11 = vector.load %arg1[%c0_13, %c6, %c0_14] : memref<1x368x64xbf16, #tpu.memory_space<vmem>>, vector<1x256x64xbf16>
    %12 = vector.shape_cast %11 : vector<1x256x64xbf16> to vector<256x64xbf16>
    %c1 = arith.constant 1 : index
    %c0_15 = arith.constant 0 : index
    %c0_16 = arith.constant 0 : index
    %13 = vector.load %arg2[%c1, %c0_15, %c0_16] : memref<9x64x64xbf16, #tpu.memory_space<vmem>>, vector<1x64x64xbf16>
    %14 = vector.shape_cast %13 : vector<1x64x64xbf16> to vector<64x64xbf16>
    %cst_17 = arith.constant dense<0.000000e+00> : vector<256x64xf32>
    %15 = tpu.matmul %12, %14, %cst_17 {dimension_numbers = #tpu.dot_dimension_numbers<[1], [0], [0], [1], [0, 0, 1, 1], [], []>} : vector<256x64xbf16>, vector<64x64xbf16>, vector<256x64xf32> -> vector<256x64xf32>
    %16 = arith.addf %10, %15 : vector<256x64xf32>
    %c0_18 = arith.constant 0 : index
    %c7 = arith.constant 7 : index
    %c0_19 = arith.constant 0 : index
    %17 = vector.load %arg1[%c0_18, %c7, %c0_19] : memref<1x368x64xbf16, #tpu.memory_space<vmem>>, vector<1x256x64xbf16>
    %18 = vector.shape_cast %17 : vector<1x256x64xbf16> to vector<256x64xbf16>
    %c2 = arith.constant 2 : index
    %c0_20 = arith.constant 0 : index
    %c0_21 = arith.constant 0 : index
    %19 = vector.load %arg2[%c2, %c0_20, %c0_21] : memref<9x64x64xbf16, #tpu.memory_space<vmem>>, vector<1x64x64xbf16>
    %20 = vector.shape_cast %19 : vector<1x64x64xbf16> to vector<64x64xbf16>
    %cst_22 = arith.constant dense<0.000000e+00> : vector<256x64xf32>
    %21 = tpu.matmul %18, %20, %cst_22 {dimension_numbers = #tpu.dot_dimension_numbers<[1], [0], [0], [1], [0, 0, 1, 1], [], []>} : vector<256x64xbf16>, vector<64x64xbf16>, vector<256x64xf32> -> vector<256x64xf32>
    %22 = arith.addf %16, %21 : vector<256x64xf32>
    %c0_23 = arith.constant 0 : index
    %c23 = arith.constant 23 : index
    %c0_24 = arith.constant 0 : index
    %23 = vector.load %arg1[%c0_23, %c23, %c0_24] : memref<1x368x64xbf16, #tpu.memory_space<vmem>>, vector<1x256x64xbf16>
    %24 = vector.shape_cast %23 : vector<1x256x64xbf16> to vector<256x64xbf16>
    %c3 = arith.constant 3 : index
    %c0_25 = arith.constant 0 : index
    %c0_26 = arith.constant 0 : index
    %25 = vector.load %arg2[%c3, %c0_25, %c0_26] : memref<9x64x64xbf16, #tpu.memory_space<vmem>>, vector<1x64x64xbf16>
    %26 = vector.shape_cast %25 : vector<1x64x64xbf16> to vector<64x64xbf16>
    %cst_27 = arith.constant dense<0.000000e+00> : vector<256x64xf32>
    %27 = tpu.matmul %24, %26, %cst_27 {dimension_numbers = #tpu.dot_dimension_numbers<[1], [0], [0], [1], [0, 0, 1, 1], [], []>} : vector<256x64xbf16>, vector<64x64xbf16>, vector<256x64xf32> -> vector<256x64xf32>
    %28 = arith.addf %22, %27 : vector<256x64xf32>
    %c0_28 = arith.constant 0 : index
    %c24 = arith.constant 24 : index
    %c0_29 = arith.constant 0 : index
    %29 = vector.load %arg1[%c0_28, %c24, %c0_29] : memref<1x368x64xbf16, #tpu.memory_space<vmem>>, vector<1x256x64xbf16>
    %30 = vector.shape_cast %29 : vector<1x256x64xbf16> to vector<256x64xbf16>
    %c4 = arith.constant 4 : index
    %c0_30 = arith.constant 0 : index
    %c0_31 = arith.constant 0 : index
    %31 = vector.load %arg2[%c4, %c0_30, %c0_31] : memref<9x64x64xbf16, #tpu.memory_space<vmem>>, vector<1x64x64xbf16>
    %32 = vector.shape_cast %31 : vector<1x64x64xbf16> to vector<64x64xbf16>
    %cst_32 = arith.constant dense<0.000000e+00> : vector<256x64xf32>
    %33 = tpu.matmul %30, %32, %cst_32 {dimension_numbers = #tpu.dot_dimension_numbers<[1], [0], [0], [1], [0, 0, 1, 1], [], []>} : vector<256x64xbf16>, vector<64x64xbf16>, vector<256x64xf32> -> vector<256x64xf32>
    %34 = arith.addf %28, %33 : vector<256x64xf32>
    %c0_33 = arith.constant 0 : index
    %c25 = arith.constant 25 : index
    %c0_34 = arith.constant 0 : index
    %35 = vector.load %arg1[%c0_33, %c25, %c0_34] : memref<1x368x64xbf16, #tpu.memory_space<vmem>>, vector<1x256x64xbf16>
    %36 = vector.shape_cast %35 : vector<1x256x64xbf16> to vector<256x64xbf16>
    %c5_35 = arith.constant 5 : index
    %c0_36 = arith.constant 0 : index
    %c0_37 = arith.constant 0 : index
    %37 = vector.load %arg2[%c5_35, %c0_36, %c0_37] : memref<9x64x64xbf16, #tpu.memory_space<vmem>>, vector<1x64x64xbf16>
    %38 = vector.shape_cast %37 : vector<1x64x64xbf16> to vector<64x64xbf16>
    %cst_38 = arith.constant dense<0.000000e+00> : vector<256x64xf32>
    %39 = tpu.matmul %36, %38, %cst_38 {dimension_numbers = #tpu.dot_dimension_numbers<[1], [0], [0], [1], [0, 0, 1, 1], [], []>} : vector<256x64xbf16>, vector<64x64xbf16>, vector<256x64xf32> -> vector<256x64xf32>
    %40 = arith.addf %34, %39 : vector<256x64xf32>
    %c0_39 = arith.constant 0 : index
    %c41 = arith.constant 41 : index
    %c0_40 = arith.constant 0 : index
    %41 = vector.load %arg1[%c0_39, %c41, %c0_40] : memref<1x368x64xbf16, #tpu.memory_space<vmem>>, vector<1x256x64xbf16>
    %42 = vector.shape_cast %41 : vector<1x256x64xbf16> to vector<256x64xbf16>
    %c6_41 = arith.constant 6 : index
    %c0_42 = arith.constant 0 : index
    %c0_43 = arith.constant 0 : index
    %43 = vector.load %arg2[%c6_41, %c0_42, %c0_43] : memref<9x64x64xbf16, #tpu.memory_space<vmem>>, vector<1x64x64xbf16>
    %44 = vector.shape_cast %43 : vector<1x64x64xbf16> to vector<64x64xbf16>
    %cst_44 = arith.constant dense<0.000000e+00> : vector<256x64xf32>
    %45 = tpu.matmul %42, %44, %cst_44 {dimension_numbers = #tpu.dot_dimension_numbers<[1], [0], [0], [1], [0, 0, 1, 1], [], []>} : vector<256x64xbf16>, vector<64x64xbf16>, vector<256x64xf32> -> vector<256x64xf32>
    %46 = arith.addf %40, %45 : vector<256x64xf32>
    %c0_45 = arith.constant 0 : index
    %c42 = arith.constant 42 : index
    %c0_46 = arith.constant 0 : index
    %47 = vector.load %arg1[%c0_45, %c42, %c0_46] : memref<1x368x64xbf16, #tpu.memory_space<vmem>>, vector<1x256x64xbf16>
    %48 = vector.shape_cast %47 : vector<1x256x64xbf16> to vector<256x64xbf16>
    %c7_47 = arith.constant 7 : index
    %c0_48 = arith.constant 0 : index
    %c0_49 = arith.constant 0 : index
    %49 = vector.load %arg2[%c7_47, %c0_48, %c0_49] : memref<9x64x64xbf16, #tpu.memory_space<vmem>>, vector<1x64x64xbf16>
    %50 = vector.shape_cast %49 : vector<1x64x64xbf16> to vector<64x64xbf16>
    %cst_50 = arith.constant dense<0.000000e+00> : vector<256x64xf32>
    %51 = tpu.matmul %48, %50, %cst_50 {dimension_numbers = #tpu.dot_dimension_numbers<[1], [0], [0], [1], [0, 0, 1, 1], [], []>} : vector<256x64xbf16>, vector<64x64xbf16>, vector<256x64xf32> -> vector<256x64xf32>
    %52 = arith.addf %46, %51 : vector<256x64xf32>
    %c0_51 = arith.constant 0 : index
    %c43 = arith.constant 43 : index
    %c0_52 = arith.constant 0 : index
    %53 = vector.load %arg1[%c0_51, %c43, %c0_52] : memref<1x368x64xbf16, #tpu.memory_space<vmem>>, vector<1x256x64xbf16>
    %54 = vector.shape_cast %53 : vector<1x256x64xbf16> to vector<256x64xbf16>
    %c8 = arith.constant 8 : index
    %c0_53 = arith.constant 0 : index
    %c0_54 = arith.constant 0 : index
    %55 = vector.load %arg2[%c8, %c0_53, %c0_54] : memref<9x64x64xbf16, #tpu.memory_space<vmem>>, vector<1x64x64xbf16>
    %56 = vector.shape_cast %55 : vector<1x64x64xbf16> to vector<64x64xbf16>
    %cst_55 = arith.constant dense<0.000000e+00> : vector<256x64xf32>
    %57 = tpu.matmul %54, %56, %cst_55 {dimension_numbers = #tpu.dot_dimension_numbers<[1], [0], [0], [1], [0, 0, 1, 1], [], []>} : vector<256x64xbf16>, vector<64x64xbf16>, vector<256x64xf32> -> vector<256x64xf32>
    %58 = arith.addf %52, %57 : vector<256x64xf32>
    %59 = vector.broadcast %4 : vector<1x64xf32> to vector<256x64xf32>
    %60 = arith.addf %58, %59 : vector<256x64xf32>
    %cst_56 = arith.constant 0.00999999977 : f32
    %61 = vector.broadcast %cst_56 : f32 to vector<256x64xf32>
    %62 = arith.mulf %61, %60 : vector<256x64xf32>
    %63 = arith.maximumf %60, %62 : vector<256x64xf32>
    %c24_57 = arith.constant 24 : index
    %c0_58 = arith.constant 0 : index
    %64 = vector.load %arg6[%c24_57, %c0_58] : memref<368x1xf32, #tpu.memory_space<vmem>>, vector<256x1xf32>
    %65 = vector.broadcast %64 : vector<256x1xf32> to vector<256x64xf32>
    %66 = arith.mulf %63, %65 : vector<256x64xf32>
    %67 = arith.truncf %66 : vector<256x64xf32> to vector<256x64xbf16>
    %c24_59 = arith.constant 24 : index
    %c0_60 = arith.constant 0 : index
    %68 = vector.load %arg8[%c24_59, %c0_60] : memref<368x64xbf16, #tpu.memory_space<vmem>>, vector<256x64xbf16>
    tpu.vector_store %arg8[%c24_59, %c0_60], %67 {strides = array<i32>} : memref<368x64xbf16, #tpu.memory_space<vmem>>, vector<256x64xbf16>,
    %c0_61 = arith.constant 0 : index
    %c261 = arith.constant 261 : index
    %c0_62 = arith.constant 0 : index
    %69 = vector.load %arg1[%c0_61, %c261, %c0_62] : memref<1x368x64xbf16, #tpu.memory_space<vmem>>, vector<1x68x64xbf16>
    %70 = vector.shape_cast %69 : vector<1x68x64xbf16> to vector<68x64xbf16>
    %c0_63 = arith.constant 0 : index
    %c0_64 = arith.constant 0 : index
    %c0_65 = arith.constant 0 : index
    %71 = vector.load %arg2[%c0_63, %c0_64, %c0_65] : memref<9x64x64xbf16, #tpu.memory_space<vmem>>, vector<1x64x64xbf16>
    %72 = vector.shape_cast %71 : vector<1x64x64xbf16> to vector<64x64xbf16>
    %cst_66 = arith.constant dense<0.000000e+00> : vector<68x64xf32>
    %73 = tpu.matmul %70, %72, %cst_66 {dimension_numbers = #tpu.dot_dimension_numbers<[1], [0], [0], [1], [0, 0, 1, 1], [], []>} : vector<68x64xbf16>, vector<64x64xbf16>, vector<68x64xf32> -> vector<68x64xf32>
    %c0_67 = arith.constant 0 : index
    %c262 = arith.constant 262 : index
    %c0_68 = arith.constant 0 : index
    %74 = vector.load %arg1[%c0_67, %c262, %c0_68] : memref<1x368x64xbf16, #tpu.memory_space<vmem>>, vector<1x68x64xbf16>
    %75 = vector.shape_cast %74 : vector<1x68x64xbf16> to vector<68x64xbf16>
    %c1_69 = arith.constant 1 : index
    %c0_70 = arith.constant 0 : index
    %c0_71 = arith.constant 0 : index
    %76 = vector.load %arg2[%c1_69, %c0_70, %c0_71] : memref<9x64x64xbf16, #tpu.memory_space<vmem>>, vector<1x64x64xbf16>
    %77 = vector.shape_cast %76 : vector<1x64x64xbf16> to vector<64x64xbf16>
    %cst_72 = arith.constant dense<0.000000e+00> : vector<68x64xf32>
    %78 = tpu.matmul %75, %77, %cst_72 {dimension_numbers = #tpu.dot_dimension_numbers<[1], [0], [0], [1], [0, 0, 1, 1], [], []>} : vector<68x64xbf16>, vector<64x64xbf16>, vector<68x64xf32> -> vector<68x64xf32>
    %79 = arith.addf %73, %78 : vector<68x64xf32>
    %c0_73 = arith.constant 0 : index
    %c263 = arith.constant 263 : index
    %c0_74 = arith.constant 0 : index
    %80 = vector.load %arg1[%c0_73, %c263, %c0_74] : memref<1x368x64xbf16, #tpu.memory_space<vmem>>, vector<1x68x64xbf16>
    %81 = vector.shape_cast %80 : vector<1x68x64xbf16> to vector<68x64xbf16>
    %c2_75 = arith.constant 2 : index
    %c0_76 = arith.constant 0 : index
    %c0_77 = arith.constant 0 : index
    %82 = vector.load %arg2[%c2_75, %c0_76, %c0_77] : memref<9x64x64xbf16, #tpu.memory_space<vmem>>, vector<1x64x64xbf16>
    %83 = vector.shape_cast %82 : vector<1x64x64xbf16> to vector<64x64xbf16>
    %cst_78 = arith.constant dense<0.000000e+00> : vector<68x64xf32>
    %84 = tpu.matmul %81, %83, %cst_78 {dimension_numbers = #tpu.dot_dimension_numbers<[1], [0], [0], [1], [0, 0, 1, 1], [], []>} : vector<68x64xbf16>, vector<64x64xbf16>, vector<68x64xf32> -> vector<68x64xf32>
    %85 = arith.addf %79, %84 : vector<68x64xf32>
    %c0_79 = arith.constant 0 : index
    %c279 = arith.constant 279 : index
    %c0_80 = arith.constant 0 : index
    %86 = vector.load %arg1[%c0_79, %c279, %c0_80] : memref<1x368x64xbf16, #tpu.memory_space<vmem>>, vector<1x68x64xbf16>
    %87 = vector.shape_cast %86 : vector<1x68x64xbf16> to vector<68x64xbf16>
    %c3_81 = arith.constant 3 : index
    %c0_82 = arith.constant 0 : index
    %c0_83 = arith.constant 0 : index
    %88 = vector.load %arg2[%c3_81, %c0_82, %c0_83] : memref<9x64x64xbf16, #tpu.memory_space<vmem>>, vector<1x64x64xbf16>
    %89 = vector.shape_cast %88 : vector<1x64x64xbf16> to vector<64x64xbf16>
    %cst_84 = arith.constant dense<0.000000e+00> : vector<68x64xf32>
    %90 = tpu.matmul %87, %89, %cst_84 {dimension_numbers = #tpu.dot_dimension_numbers<[1], [0], [0], [1], [0, 0, 1, 1], [], []>} : vector<68x64xbf16>, vector<64x64xbf16>, vector<68x64xf32> -> vector<68x64xf32>
    %91 = arith.addf %85, %90 : vector<68x64xf32>
    %c0_85 = arith.constant 0 : index
    %c280 = arith.constant 280 : index
    %c0_86 = arith.constant 0 : index
    %92 = vector.load %arg1[%c0_85, %c280, %c0_86] : memref<1x368x64xbf16, #tpu.memory_space<vmem>>, vector<1x68x64xbf16>
    %93 = vector.shape_cast %92 : vector<1x68x64xbf16> to vector<68x64xbf16>
    %c4_87 = arith.constant 4 : index
    %c0_88 = arith.constant 0 : index
    %c0_89 = arith.constant 0 : index
    %94 = vector.load %arg2[%c4_87, %c0_88, %c0_89] : memref<9x64x64xbf16, #tpu.memory_space<vmem>>, vector<1x64x64xbf16>
    %95 = vector.shape_cast %94 : vector<1x64x64xbf16> to vector<64x64xbf16>
    %cst_90 = arith.constant dense<0.000000e+00> : vector<68x64xf32>
    %96 = tpu.matmul %93, %95, %cst_90 {dimension_numbers = #tpu.dot_dimension_numbers<[1], [0], [0], [1], [0, 0, 1, 1], [], []>} : vector<68x64xbf16>, vector<64x64xbf16>, vector<68x64xf32> -> vector<68x64xf32>
    %97 = arith.addf %91, %96 : vector<68x64xf32>
    %c0_91 = arith.constant 0 : index
    %c281 = arith.constant 281 : index
    %c0_92 = arith.constant 0 : index
    %98 = vector.load %arg1[%c0_91, %c281, %c0_92] : memref<1x368x64xbf16, #tpu.memory_space<vmem>>, vector<1x68x64xbf16>
    %99 = vector.shape_cast %98 : vector<1x68x64xbf16> to vector<68x64xbf16>
    %c5_93 = arith.constant 5 : index
    %c0_94 = arith.constant 0 : index
    %c0_95 = arith.constant 0 : index
    %100 = vector.load %arg2[%c5_93, %c0_94, %c0_95] : memref<9x64x64xbf16, #tpu.memory_space<vmem>>, vector<1x64x64xbf16>
    %101 = vector.shape_cast %100 : vector<1x64x64xbf16> to vector<64x64xbf16>
    %cst_96 = arith.constant dense<0.000000e+00> : vector<68x64xf32>
    %102 = tpu.matmul %99, %101, %cst_96 {dimension_numbers = #tpu.dot_dimension_numbers<[1], [0], [0], [1], [0, 0, 1, 1], [], []>} : vector<68x64xbf16>, vector<64x64xbf16>, vector<68x64xf32> -> vector<68x64xf32>
    %103 = arith.addf %97, %102 : vector<68x64xf32>
    %c0_97 = arith.constant 0 : index
    %c297 = arith.constant 297 : index
    %c0_98 = arith.constant 0 : index
    %104 = vector.load %arg1[%c0_97, %c297, %c0_98] : memref<1x368x64xbf16, #tpu.memory_space<vmem>>, vector<1x68x64xbf16>
    %105 = vector.shape_cast %104 : vector<1x68x64xbf16> to vector<68x64xbf16>
    %c6_99 = arith.constant 6 : index
    %c0_100 = arith.constant 0 : index
    %c0_101 = arith.constant 0 : index
    %106 = vector.load %arg2[%c6_99, %c0_100, %c0_101] : memref<9x64x64xbf16, #tpu.memory_space<vmem>>, vector<1x64x64xbf16>
    %107 = vector.shape_cast %106 : vector<1x64x64xbf16> to vector<64x64xbf16>
    %cst_102 = arith.constant dense<0.000000e+00> : vector<68x64xf32>
    %108 = tpu.matmul %105, %107, %cst_102 {dimension_numbers = #tpu.dot_dimension_numbers<[1], [0], [0], [1], [0, 0, 1, 1], [], []>} : vector<68x64xbf16>, vector<64x64xbf16>, vector<68x64xf32> -> vector<68x64xf32>
    %109 = arith.addf %103, %108 : vector<68x64xf32>
    %c0_103 = arith.constant 0 : index
    %c298 = arith.constant 298 : index
    %c0_104 = arith.constant 0 : index
    %110 = vector.load %arg1[%c0_103, %c298, %c0_104] : memref<1x368x64xbf16, #tpu.memory_space<vmem>>, vector<1x68x64xbf16>
    %111 = vector.shape_cast %110 : vector<1x68x64xbf16> to vector<68x64xbf16>
    %c7_105 = arith.constant 7 : index
    %c0_106 = arith.constant 0 : index
    %c0_107 = arith.constant 0 : index
    %112 = vector.load %arg2[%c7_105, %c0_106, %c0_107] : memref<9x64x64xbf16, #tpu.memory_space<vmem>>, vector<1x64x64xbf16>
    %113 = vector.shape_cast %112 : vector<1x64x64xbf16> to vector<64x64xbf16>
    %cst_108 = arith.constant dense<0.000000e+00> : vector<68x64xf32>
    %114 = tpu.matmul %111, %113, %cst_108 {dimension_numbers = #tpu.dot_dimension_numbers<[1], [0], [0], [1], [0, 0, 1, 1], [], []>} : vector<68x64xbf16>, vector<64x64xbf16>, vector<68x64xf32> -> vector<68x64xf32>
    %115 = arith.addf %109, %114 : vector<68x64xf32>
    %c0_109 = arith.constant 0 : index
    %c299 = arith.constant 299 : index
    %c0_110 = arith.constant 0 : index
    %116 = vector.load %arg1[%c0_109, %c299, %c0_110] : memref<1x368x64xbf16, #tpu.memory_space<vmem>>, vector<1x68x64xbf16>
    %117 = vector.shape_cast %116 : vector<1x68x64xbf16> to vector<68x64xbf16>
    %c8_111 = arith.constant 8 : index
    %c0_112 = arith.constant 0 : index
    %c0_113 = arith.constant 0 : index
    %118 = vector.load %arg2[%c8_111, %c0_112, %c0_113] : memref<9x64x64xbf16, #tpu.memory_space<vmem>>, vector<1x64x64xbf16>
    %119 = vector.shape_cast %118 : vector<1x64x64xbf16> to vector<64x64xbf16>
    %cst_114 = arith.constant dense<0.000000e+00> : vector<68x64xf32>
    %120 = tpu.matmul %117, %119, %cst_114 {dimension_numbers = #tpu.dot_dimension_numbers<[1], [0], [0], [1], [0, 0, 1, 1], [], []>} : vector<68x64xbf16>, vector<64x64xbf16>, vector<68x64xf32> -> vector<68x64xf32>
    %121 = arith.addf %115, %120 : vector<68x64xf32>
    %122 = vector.broadcast %4 : vector<1x64xf32> to vector<68x64xf32>
    %123 = arith.addf %121, %122 : vector<68x64xf32>
    %cst_115 = arith.constant 0.00999999977 : f32
    %124 = vector.broadcast %cst_115 : f32 to vector<68x64xf32>
    %125 = arith.mulf %124, %123 : vector<68x64xf32>
    %126 = arith.maximumf %123, %125 : vector<68x64xf32>
    %c280_116 = arith.constant 280 : index
    %c0_117 = arith.constant 0 : index
    %127 = vector.load %arg6[%c280_116, %c0_117] : memref<368x1xf32, #tpu.memory_space<vmem>>, vector<68x1xf32>
    %128 = vector.broadcast %127 : vector<68x1xf32> to vector<68x64xf32>
    %129 = arith.mulf %126, %128 : vector<68x64xf32>
    %130 = arith.truncf %129 : vector<68x64xf32> to vector<68x64xbf16>
    %c280_118 = arith.constant 280 : index
    %c0_119 = arith.constant 0 : index
    %131 = vector.load %arg8[%c280_118, %c0_119] : memref<368x64xbf16, #tpu.memory_space<vmem>>, vector<68x64xbf16>
    tpu.vector_store %arg8[%c280_118, %c0_119], %130 {strides = array<i32>} : memref<368x64xbf16, #tpu.memory_space<vmem>>, vector<68x64xbf16>,
    %c5_120 = arith.constant 5 : index
    %c0_121 = arith.constant 0 : index
    %132 = vector.load %arg8[%c5_120, %c0_121] : memref<368x64xbf16, #tpu.memory_space<vmem>>, vector<256x64xbf16>
    %c0_122 = arith.constant 0 : index
    %c0_123 = arith.constant 0 : index
    %c0_124 = arith.constant 0 : index
    %133 = vector.load %arg4[%c0_122, %c0_123, %c0_124] : memref<9x64x64xbf16, #tpu.memory_space<vmem>>, vector<1x64x64xbf16>
    %134 = vector.shape_cast %133 : vector<1x64x64xbf16> to vector<64x64xbf16>
    %cst_125 = arith.constant dense<0.000000e+00> : vector<256x64xf32>
    %135 = tpu.matmul %132, %134, %cst_125 {dimension_numbers = #tpu.dot_dimension_numbers<[1], [0], [0], [1], [0, 0, 1, 1], [], []>} : vector<256x64xbf16>, vector<64x64xbf16>, vector<256x64xf32> -> vector<256x64xf32>
    %c6_126 = arith.constant 6 : index
    %c0_127 = arith.constant 0 : index
    %136 = vector.load %arg8[%c6_126, %c0_127] : memref<368x64xbf16, #tpu.memory_space<vmem>>, vector<256x64xbf16>
    %c1_128 = arith.constant 1 : index
    %c0_129 = arith.constant 0 : index
    %c0_130 = arith.constant 0 : index
    %137 = vector.load %arg4[%c1_128, %c0_129, %c0_130] : memref<9x64x64xbf16, #tpu.memory_space<vmem>>, vector<1x64x64xbf16>
    %138 = vector.shape_cast %137 : vector<1x64x64xbf16> to vector<64x64xbf16>
    %cst_131 = arith.constant dense<0.000000e+00> : vector<256x64xf32>
    %139 = tpu.matmul %136, %138, %cst_131 {dimension_numbers = #tpu.dot_dimension_numbers<[1], [0], [0], [1], [0, 0, 1, 1], [], []>} : vector<256x64xbf16>, vector<64x64xbf16>, vector<256x64xf32> -> vector<256x64xf32>
    %140 = arith.addf %135, %139 : vector<256x64xf32>
    %c7_132 = arith.constant 7 : index
    %c0_133 = arith.constant 0 : index
    %141 = vector.load %arg8[%c7_132, %c0_133] : memref<368x64xbf16, #tpu.memory_space<vmem>>, vector<256x64xbf16>
    %c2_134 = arith.constant 2 : index
    %c0_135 = arith.constant 0 : index
    %c0_136 = arith.constant 0 : index
    %142 = vector.load %arg4[%c2_134, %c0_135, %c0_136] : memref<9x64x64xbf16, #tpu.memory_space<vmem>>, vector<1x64x64xbf16>
    %143 = vector.shape_cast %142 : vector<1x64x64xbf16> to vector<64x64xbf16>
    %cst_137 = arith.constant dense<0.000000e+00> : vector<256x64xf32>
    %144 = tpu.matmul %141, %143, %cst_137 {dimension_numbers = #tpu.dot_dimension_numbers<[1], [0], [0], [1], [0, 0, 1, 1], [], []>} : vector<256x64xbf16>, vector<64x64xbf16>, vector<256x64xf32> -> vector<256x64xf32>
    %145 = arith.addf %140, %144 : vector<256x64xf32>
    %c23_138 = arith.constant 23 : index
    %c0_139 = arith.constant 0 : index
    %146 = vector.load %arg8[%c23_138, %c0_139] : memref<368x64xbf16, #tpu.memory_space<vmem>>, vector<256x64xbf16>
    %c3_140 = arith.constant 3 : index
    %c0_141 = arith.constant 0 : index
    %c0_142 = arith.constant 0 : index
    %147 = vector.load %arg4[%c3_140, %c0_141, %c0_142] : memref<9x64x64xbf16, #tpu.memory_space<vmem>>, vector<1x64x64xbf16>
    %148 = vector.shape_cast %147 : vector<1x64x64xbf16> to vector<64x64xbf16>
    %cst_143 = arith.constant dense<0.000000e+00> : vector<256x64xf32>
    %149 = tpu.matmul %146, %148, %cst_143 {dimension_numbers = #tpu.dot_dimension_numbers<[1], [0], [0], [1], [0, 0, 1, 1], [], []>} : vector<256x64xbf16>, vector<64x64xbf16>, vector<256x64xf32> -> vector<256x64xf32>
    %150 = arith.addf %145, %149 : vector<256x64xf32>
    %c24_144 = arith.constant 24 : index
    %c0_145 = arith.constant 0 : index
    %151 = vector.load %arg8[%c24_144, %c0_145] : memref<368x64xbf16, #tpu.memory_space<vmem>>, vector<256x64xbf16>
    %c4_146 = arith.constant 4 : index
    %c0_147 = arith.constant 0 : index
    %c0_148 = arith.constant 0 : index
    %152 = vector.load %arg4[%c4_146, %c0_147, %c0_148] : memref<9x64x64xbf16, #tpu.memory_space<vmem>>, vector<1x64x64xbf16>
    %153 = vector.shape_cast %152 : vector<1x64x64xbf16> to vector<64x64xbf16>
    %cst_149 = arith.constant dense<0.000000e+00> : vector<256x64xf32>
    %154 = tpu.matmul %151, %153, %cst_149 {dimension_numbers = #tpu.dot_dimension_numbers<[1], [0], [0], [1], [0, 0, 1, 1], [], []>} : vector<256x64xbf16>, vector<64x64xbf16>, vector<256x64xf32> -> vector<256x64xf32>
    %155 = arith.addf %150, %154 : vector<256x64xf32>
    %c25_150 = arith.constant 25 : index
    %c0_151 = arith.constant 0 : index
    %156 = vector.load %arg8[%c25_150, %c0_151] : memref<368x64xbf16, #tpu.memory_space<vmem>>, vector<256x64xbf16>
    %c5_152 = arith.constant 5 : index
    %c0_153 = arith.constant 0 : index
    %c0_154 = arith.constant 0 : index
    %157 = vector.load %arg4[%c5_152, %c0_153, %c0_154] : memref<9x64x64xbf16, #tpu.memory_space<vmem>>, vector<1x64x64xbf16>
    %158 = vector.shape_cast %157 : vector<1x64x64xbf16> to vector<64x64xbf16>
    %cst_155 = arith.constant dense<0.000000e+00> : vector<256x64xf32>
    %159 = tpu.matmul %156, %158, %cst_155 {dimension_numbers = #tpu.dot_dimension_numbers<[1], [0], [0], [1], [0, 0, 1, 1], [], []>} : vector<256x64xbf16>, vector<64x64xbf16>, vector<256x64xf32> -> vector<256x64xf32>
    %160 = arith.addf %155, %159 : vector<256x64xf32>
    %c41_156 = arith.constant 41 : index
    %c0_157 = arith.constant 0 : index
    %161 = vector.load %arg8[%c41_156, %c0_157] : memref<368x64xbf16, #tpu.memory_space<vmem>>, vector<256x64xbf16>
    %c6_158 = arith.constant 6 : index
    %c0_159 = arith.constant 0 : index
    %c0_160 = arith.constant 0 : index
    %162 = vector.load %arg4[%c6_158, %c0_159, %c0_160] : memref<9x64x64xbf16, #tpu.memory_space<vmem>>, vector<1x64x64xbf16>
    %163 = vector.shape_cast %162 : vector<1x64x64xbf16> to vector<64x64xbf16>
    %cst_161 = arith.constant dense<0.000000e+00> : vector<256x64xf32>
    %164 = tpu.matmul %161, %163, %cst_161 {dimension_numbers = #tpu.dot_dimension_numbers<[1], [0], [0], [1], [0, 0, 1, 1], [], []>} : vector<256x64xbf16>, vector<64x64xbf16>, vector<256x64xf32> -> vector<256x64xf32>
    %165 = arith.addf %160, %164 : vector<256x64xf32>
    %c42_162 = arith.constant 42 : index
    %c0_163 = arith.constant 0 : index
    %166 = vector.load %arg8[%c42_162, %c0_163] : memref<368x64xbf16, #tpu.memory_space<vmem>>, vector<256x64xbf16>
    %c7_164 = arith.constant 7 : index
    %c0_165 = arith.constant 0 : index
    %c0_166 = arith.constant 0 : index
    %167 = vector.load %arg4[%c7_164, %c0_165, %c0_166] : memref<9x64x64xbf16, #tpu.memory_space<vmem>>, vector<1x64x64xbf16>
    %168 = vector.shape_cast %167 : vector<1x64x64xbf16> to vector<64x64xbf16>
    %cst_167 = arith.constant dense<0.000000e+00> : vector<256x64xf32>
    %169 = tpu.matmul %166, %168, %cst_167 {dimension_numbers = #tpu.dot_dimension_numbers<[1], [0], [0], [1], [0, 0, 1, 1], [], []>} : vector<256x64xbf16>, vector<64x64xbf16>, vector<256x64xf32> -> vector<256x64xf32>
    %170 = arith.addf %165, %169 : vector<256x64xf32>
    %c43_168 = arith.constant 43 : index
    %c0_169 = arith.constant 0 : index
    %171 = vector.load %arg8[%c43_168, %c0_169] : memref<368x64xbf16, #tpu.memory_space<vmem>>, vector<256x64xbf16>
    %c8_170 = arith.constant 8 : index
    %c0_171 = arith.constant 0 : index
    %c0_172 = arith.constant 0 : index
    %172 = vector.load %arg4[%c8_170, %c0_171, %c0_172] : memref<9x64x64xbf16, #tpu.memory_space<vmem>>, vector<1x64x64xbf16>
    %173 = vector.shape_cast %172 : vector<1x64x64xbf16> to vector<64x64xbf16>
    %cst_173 = arith.constant dense<0.000000e+00> : vector<256x64xf32>
    %174 = tpu.matmul %171, %173, %cst_173 {dimension_numbers = #tpu.dot_dimension_numbers<[1], [0], [0], [1], [0, 0, 1, 1], [], []>} : vector<256x64xbf16>, vector<64x64xbf16>, vector<256x64xf32> -> vector<256x64xf32>
    %175 = arith.addf %170, %174 : vector<256x64xf32>
    %176 = vector.broadcast %5 : vector<1x64xf32> to vector<256x64xf32>
    %177 = arith.addf %175, %176 : vector<256x64xf32>
    %c0_174 = arith.constant 0 : index
    %c24_175 = arith.constant 24 : index
    %c0_176 = arith.constant 0 : index
    %178 = vector.load %arg1[%c0_174, %c24_175, %c0_176] : memref<1x368x64xbf16, #tpu.memory_space<vmem>>, vector<1x256x64xbf16>
    %179 = vector.shape_cast %178 : vector<1x256x64xbf16> to vector<256x64xbf16>
    %180 = arith.extf %179 : vector<256x64xbf16> to vector<256x64xf32>
    %181 = arith.addf %177, %180 : vector<256x64xf32>
    %cst_177 = arith.constant 0.00999999977 : f32
    %182 = vector.broadcast %cst_177 : f32 to vector<256x64xf32>
    %183 = arith.mulf %182, %181 : vector<256x64xf32>
    %184 = arith.maximumf %181, %183 : vector<256x64xf32>
    %c0_178 = arith.constant 0 : index
    %c0_179 = arith.constant 0 : index
    %c0_180 = arith.constant 0 : index
    %185 = vector.load %arg7[%c0_178, %c0_179, %c0_180] : memref<1x324x64xf32, #tpu.memory_space<vmem>>, vector<1x256x64xf32>
    %186 = vector.shape_cast %185 : vector<1x256x64xf32> to vector<256x64xf32>
    %187 = vector.shape_cast %184 : vector<256x64xf32> to vector<1x256x64xf32>
    tpu.vector_store %arg7[%c0_178, %c0_179, %c0_180], %187 {strides = array<i32>} : memref<1x324x64xf32, #tpu.memory_space<vmem>>, vector<1x256x64xf32>,
    %c261_181 = arith.constant 261 : index
    %c0_182 = arith.constant 0 : index
    %188 = vector.load %arg8[%c261_181, %c0_182] : memref<368x64xbf16, #tpu.memory_space<vmem>>, vector<68x64xbf16>
    %c0_183 = arith.constant 0 : index
    %c0_184 = arith.constant 0 : index
    %c0_185 = arith.constant 0 : index
    %189 = vector.load %arg4[%c0_183, %c0_184, %c0_185] : memref<9x64x64xbf16, #tpu.memory_space<vmem>>, vector<1x64x64xbf16>
    %190 = vector.shape_cast %189 : vector<1x64x64xbf16> to vector<64x64xbf16>
    %cst_186 = arith.constant dense<0.000000e+00> : vector<68x64xf32>
    %191 = tpu.matmul %188, %190, %cst_186 {dimension_numbers = #tpu.dot_dimension_numbers<[1], [0], [0], [1], [0, 0, 1, 1], [], []>} : vector<68x64xbf16>, vector<64x64xbf16>, vector<68x64xf32> -> vector<68x64xf32>
    %c262_187 = arith.constant 262 : index
    %c0_188 = arith.constant 0 : index
    %192 = vector.load %arg8[%c262_187, %c0_188] : memref<368x64xbf16, #tpu.memory_space<vmem>>, vector<68x64xbf16>
    %c1_189 = arith.constant 1 : index
    %c0_190 = arith.constant 0 : index
    %c0_191 = arith.constant 0 : index
    %193 = vector.load %arg4[%c1_189, %c0_190, %c0_191] : memref<9x64x64xbf16, #tpu.memory_space<vmem>>, vector<1x64x64xbf16>
    %194 = vector.shape_cast %193 : vector<1x64x64xbf16> to vector<64x64xbf16>
    %cst_192 = arith.constant dense<0.000000e+00> : vector<68x64xf32>
    %195 = tpu.matmul %192, %194, %cst_192 {dimension_numbers = #tpu.dot_dimension_numbers<[1], [0], [0], [1], [0, 0, 1, 1], [], []>} : vector<68x64xbf16>, vector<64x64xbf16>, vector<68x64xf32> -> vector<68x64xf32>
    %196 = arith.addf %191, %195 : vector<68x64xf32>
    %c263_193 = arith.constant 263 : index
    %c0_194 = arith.constant 0 : index
    %197 = vector.load %arg8[%c263_193, %c0_194] : memref<368x64xbf16, #tpu.memory_space<vmem>>, vector<68x64xbf16>
    %c2_195 = arith.constant 2 : index
    %c0_196 = arith.constant 0 : index
    %c0_197 = arith.constant 0 : index
    %198 = vector.load %arg4[%c2_195, %c0_196, %c0_197] : memref<9x64x64xbf16, #tpu.memory_space<vmem>>, vector<1x64x64xbf16>
    %199 = vector.shape_cast %198 : vector<1x64x64xbf16> to vector<64x64xbf16>
    %cst_198 = arith.constant dense<0.000000e+00> : vector<68x64xf32>
    %200 = tpu.matmul %197, %199, %cst_198 {dimension_numbers = #tpu.dot_dimension_numbers<[1], [0], [0], [1], [0, 0, 1, 1], [], []>} : vector<68x64xbf16>, vector<64x64xbf16>, vector<68x64xf32> -> vector<68x64xf32>
    %201 = arith.addf %196, %200 : vector<68x64xf32>
    %c279_199 = arith.constant 279 : index
    %c0_200 = arith.constant 0 : index
    %202 = vector.load %arg8[%c279_199, %c0_200] : memref<368x64xbf16, #tpu.memory_space<vmem>>, vector<68x64xbf16>
    %c3_201 = arith.constant 3 : index
    %c0_202 = arith.constant 0 : index
    %c0_203 = arith.constant 0 : index
    %203 = vector.load %arg4[%c3_201, %c0_202, %c0_203] : memref<9x64x64xbf16, #tpu.memory_space<vmem>>, vector<1x64x64xbf16>
    %204 = vector.shape_cast %203 : vector<1x64x64xbf16> to vector<64x64xbf16>
    %cst_204 = arith.constant dense<0.000000e+00> : vector<68x64xf32>
    %205 = tpu.matmul %202, %204, %cst_204 {dimension_numbers = #tpu.dot_dimension_numbers<[1], [0], [0], [1], [0, 0, 1, 1], [], []>} : vector<68x64xbf16>, vector<64x64xbf16>, vector<68x64xf32> -> vector<68x64xf32>
    %206 = arith.addf %201, %205 : vector<68x64xf32>
    %c280_205 = arith.constant 280 : index
    %c0_206 = arith.constant 0 : index
    %207 = vector.load %arg8[%c280_205, %c0_206] : memref<368x64xbf16, #tpu.memory_space<vmem>>, vector<68x64xbf16>
    %c4_207 = arith.constant 4 : index
    %c0_208 = arith.constant 0 : index
    %c0_209 = arith.constant 0 : index
    %208 = vector.load %arg4[%c4_207, %c0_208, %c0_209] : memref<9x64x64xbf16, #tpu.memory_space<vmem>>, vector<1x64x64xbf16>
    %209 = vector.shape_cast %208 : vector<1x64x64xbf16> to vector<64x64xbf16>
    %cst_210 = arith.constant dense<0.000000e+00> : vector<68x64xf32>
    %210 = tpu.matmul %207, %209, %cst_210 {dimension_numbers = #tpu.dot_dimension_numbers<[1], [0], [0], [1], [0, 0, 1, 1], [], []>} : vector<68x64xbf16>, vector<64x64xbf16>, vector<68x64xf32> -> vector<68x64xf32>
    %211 = arith.addf %206, %210 : vector<68x64xf32>
    %c281_211 = arith.constant 281 : index
    %c0_212 = arith.constant 0 : index
    %212 = vector.load %arg8[%c281_211, %c0_212] : memref<368x64xbf16, #tpu.memory_space<vmem>>, vector<68x64xbf16>
    %c5_213 = arith.constant 5 : index
    %c0_214 = arith.constant 0 : index
    %c0_215 = arith.constant 0 : index
    %213 = vector.load %arg4[%c5_213, %c0_214, %c0_215] : memref<9x64x64xbf16, #tpu.memory_space<vmem>>, vector<1x64x64xbf16>
    %214 = vector.shape_cast %213 : vector<1x64x64xbf16> to vector<64x64xbf16>
    %cst_216 = arith.constant dense<0.000000e+00> : vector<68x64xf32>
    %215 = tpu.matmul %212, %214, %cst_216 {dimension_numbers = #tpu.dot_dimension_numbers<[1], [0], [0], [1], [0, 0, 1, 1], [], []>} : vector<68x64xbf16>, vector<64x64xbf16>, vector<68x64xf32> -> vector<68x64xf32>
    %216 = arith.addf %211, %215 : vector<68x64xf32>
    %c297_217 = arith.constant 297 : index
    %c0_218 = arith.constant 0 : index
    %217 = vector.load %arg8[%c297_217, %c0_218] : memref<368x64xbf16, #tpu.memory_space<vmem>>, vector<68x64xbf16>
    %c6_219 = arith.constant 6 : index
    %c0_220 = arith.constant 0 : index
    %c0_221 = arith.constant 0 : index
    %218 = vector.load %arg4[%c6_219, %c0_220, %c0_221] : memref<9x64x64xbf16, #tpu.memory_space<vmem>>, vector<1x64x64xbf16>
    %219 = vector.shape_cast %218 : vector<1x64x64xbf16> to vector<64x64xbf16>
    %cst_222 = arith.constant dense<0.000000e+00> : vector<68x64xf32>
    %220 = tpu.matmul %217, %219, %cst_222 {dimension_numbers = #tpu.dot_dimension_numbers<[1], [0], [0], [1], [0, 0, 1, 1], [], []>} : vector<68x64xbf16>, vector<64x64xbf16>, vector<68x64xf32> -> vector<68x64xf32>
    %221 = arith.addf %216, %220 : vector<68x64xf32>
    %c298_223 = arith.constant 298 : index
    %c0_224 = arith.constant 0 : index
    %222 = vector.load %arg8[%c298_223, %c0_224] : memref<368x64xbf16, #tpu.memory_space<vmem>>, vector<68x64xbf16>
    %c7_225 = arith.constant 7 : index
    %c0_226 = arith.constant 0 : index
    %c0_227 = arith.constant 0 : index
    %223 = vector.load %arg4[%c7_225, %c0_226, %c0_227] : memref<9x64x64xbf16, #tpu.memory_space<vmem>>, vector<1x64x64xbf16>
    %224 = vector.shape_cast %223 : vector<1x64x64xbf16> to vector<64x64xbf16>
    %cst_228 = arith.constant dense<0.000000e+00> : vector<68x64xf32>
    %225 = tpu.matmul %222, %224, %cst_228 {dimension_numbers = #tpu.dot_dimension_numbers<[1], [0], [0], [1], [0, 0, 1, 1], [], []>} : vector<68x64xbf16>, vector<64x64xbf16>, vector<68x64xf32> -> vector<68x64xf32>
    %226 = arith.addf %221, %225 : vector<68x64xf32>
    %c299_229 = arith.constant 299 : index
    %c0_230 = arith.constant 0 : index
    %227 = vector.load %arg8[%c299_229, %c0_230] : memref<368x64xbf16, #tpu.memory_space<vmem>>, vector<68x64xbf16>
    %c8_231 = arith.constant 8 : index
    %c0_232 = arith.constant 0 : index
    %c0_233 = arith.constant 0 : index
    %228 = vector.load %arg4[%c8_231, %c0_232, %c0_233] : memref<9x64x64xbf16, #tpu.memory_space<vmem>>, vector<1x64x64xbf16>
    %229 = vector.shape_cast %228 : vector<1x64x64xbf16> to vector<64x64xbf16>
    %cst_234 = arith.constant dense<0.000000e+00> : vector<68x64xf32>
    %230 = tpu.matmul %227, %229, %cst_234 {dimension_numbers = #tpu.dot_dimension_numbers<[1], [0], [0], [1], [0, 0, 1, 1], [], []>} : vector<68x64xbf16>, vector<64x64xbf16>, vector<68x64xf32> -> vector<68x64xf32>
    %231 = arith.addf %226, %230 : vector<68x64xf32>
    %232 = vector.broadcast %5 : vector<1x64xf32> to vector<68x64xf32>
    %233 = arith.addf %231, %232 : vector<68x64xf32>
    %c0_235 = arith.constant 0 : index
    %c280_236 = arith.constant 280 : index
    %c0_237 = arith.constant 0 : index
    %234 = vector.load %arg1[%c0_235, %c280_236, %c0_237] : memref<1x368x64xbf16, #tpu.memory_space<vmem>>, vector<1x68x64xbf16>
    %235 = vector.shape_cast %234 : vector<1x68x64xbf16> to vector<68x64xbf16>
    %236 = arith.extf %235 : vector<68x64xbf16> to vector<68x64xf32>
    %237 = arith.addf %233, %236 : vector<68x64xf32>
    %cst_238 = arith.constant 0.00999999977 : f32
    %238 = vector.broadcast %cst_238 : f32 to vector<68x64xf32>
    %239 = arith.mulf %238, %237 : vector<68x64xf32>
    %240 = arith.maximumf %237, %239 : vector<68x64xf32>
    %c0_239 = arith.constant 0 : index
    %c256 = arith.constant 256 : index
    %c0_240 = arith.constant 0 : index
    %241 = vector.load %arg7[%c0_239, %c256, %c0_240] : memref<1x324x64xf32, #tpu.memory_space<vmem>>, vector<1x68x64xf32>
    %242 = vector.shape_cast %241 : vector<1x68x64xf32> to vector<68x64xf32>
    %243 = vector.shape_cast %240 : vector<68x64xf32> to vector<1x68x64xf32>
    tpu.vector_store %arg7[%c0_239, %c256, %c0_240], %243 {strides = array<i32>} : memref<1x324x64xf32, #tpu.memory_space<vmem>>, vector<1x68x64xf32>,
    return
  }
  func.func @transform_0(%arg0: i32) -> (i32, i32, i32) {
    %c0_i32 = arith.constant 0 : i32
    %c0_i32_0 = arith.constant 0 : i32
    %c0_i32_1 = arith.constant 0 : i32
    return %arg0, %c0_i32, %c0_i32_0 : i32, i32, i32
  }
  func.func @transform_1(%arg0: i32) -> (i32, i32, i32) {
    %c0_i32 = arith.constant 0 : i32
    %c0_i32_0 = arith.constant 0 : i32
    %c0_i32_1 = arith.constant 0 : i32
    %c0_i32_2 = arith.constant 0 : i32
    return %c0_i32, %c0_i32_0, %c0_i32_1 : i32, i32, i32
  }
  func.func @transform_2(%arg0: i32) -> (i32, i32) {
    %c0_i32 = arith.constant 0 : i32
    %c0_i32_0 = arith.constant 0 : i32
    %c0_i32_1 = arith.constant 0 : i32
    return %c0_i32, %c0_i32_0 : i32, i32
  }
  func.func @transform_3(%arg0: i32) -> (i32, i32, i32) {
    %c0_i32 = arith.constant 0 : i32
    %c0_i32_0 = arith.constant 0 : i32
    %c0_i32_1 = arith.constant 0 : i32
    %c0_i32_2 = arith.constant 0 : i32
    return %c0_i32, %c0_i32_0, %c0_i32_1 : i32, i32, i32
  }
  func.func @transform_4(%arg0: i32) -> (i32, i32) {
    %c0_i32 = arith.constant 0 : i32
    %c0_i32_0 = arith.constant 0 : i32
    %c0_i32_1 = arith.constant 0 : i32
    return %c0_i32, %c0_i32_0 : i32, i32
  }
  func.func @transform_5(%arg0: i32) -> (i32, i32) {
    %c0_i32 = arith.constant 0 : i32
    %c0_i32_0 = arith.constant 0 : i32
    %c0_i32_1 = arith.constant 0 : i32
    return %c0_i32, %c0_i32_0 : i32, i32
  }
  func.func @transform_6(%arg0: i32) -> (i32, i32, i32) {
    %c0_i32 = arith.constant 0 : i32
    %c0_i32_0 = arith.constant 0 : i32
    %c0_i32_1 = arith.constant 0 : i32
    return %arg0, %c0_i32, %c0_i32_0 : i32, i32, i32
  }
}

</mosaic_0001>

<bundles_post_ra>
// kernel: basic_block_forward.1
= control target key start
LH: loop header
LB: loop body
LE: loop exit
PB: predicated region body
PF: predicated region fallthrough
CT: control target
= control target key end

     0   :  { %s14630_s21 = smov 0   ;;  %s19106_s0 = inlined_call_operand.vmem [shape: bf16[2,368,64], index: 0, kind: input, shape index: {}]   ;;  %s19107_s1 = inlined_call_operand.vmem [shape: bf16[9,64,64], index: 1, kind: input, shape index: {}]   ;;  %s19108_s2 = inlined_call_operand.vmem [shape: f32[1,64], index: 2, kind: input, shape index: {}]   ;;  %s19109_s3 = inlined_call_operand.vmem [shape: bf16[9,64,64], index: 3, kind: input, shape index: {}]   ;;  %s19110_s4 = inlined_call_operand.vmem [shape: f32[1,64], index: 4, kind: input, shape index: {}]   ;;  %s19111_s5 = inlined_call_operand.vmem [shape: f32[368,1], index: 5, kind: input, shape index: {}]   ;;  %s19112_s6 = inlined_call_operand.vmem [shape: f32[2,324,64], index: 6, kind: output, shape index: {}]  }
   0x1 LB: > { %s11059_s22 = sadd.s32 4294967295, %s14590_s21   ;;  %p11063_p0 = scmp.ge.s32.totalorder %s14590_s21, 1  ;;  %s14590_s21 = sphi %s14630_s21, %s16_s21  }
   0x2   : > { %p212_p1 = scmp.lt.s32.totalorder %s14590_s21, 3 }
   0x4   : > { %p213_p2 = pnand %p11063_p0, %p212_p1 }
   0x6   : > { %216 = sbr.rel (%p213_p2) target bundleno = 1578 (0x62a), region = 44 }
   0xd   : > { %v14324_v0 = vld [vmem:[%s19107_s1 + $0x20] sm:$0xff]   ;;  %p242_p3 = scmp.lt.s32.totalorder %s11059_s22, 1  ;;  %v14325_v1 = vld [vmem:[%s19107_s1 + $0x28] sm:$0xff]   ;;  %v14326_v2 = vld [vmem:[%s19107_s1 + $0x30] sm:$0xff]   ;;  %v19155_v3 = vmov 0.0   ;;  %vm14593_vm0 = vmmov 0  }
   0xe   : > { %12573 = vmatprep.subr.bf16.mxu0 %v14324_v0  ;;  %12933 = vmatprep.subr.bf16.mxu1 %v19155_v3  ;;  %v14327_v4 = vld [vmem:[%s19107_s1 + $0x38] sm:$0xff]   ;;  %vm253_vm1 = vcmask 523264   ;;  %vm396_vm2 = vcmask 1044480   ;;  %v14332_v14 = vld [vmem:[%s19107_s1] sm:$0xff]   ;;  %v14337_v17 = vld [vmem:[%s19107_s1 + $0x8] sm:$0xff]   ;;  %vm255_vm6 = vcmask 519168  }
   0xf   : > { %s19532_s22 = smov (!%p242_p3, %s11059_s22), 1  ;;  %12574 = vmatpush3.bf16.msra.mxu0 %v14324_v0  ;;  %12941 = vmatprep.mubr.msk.bf16.mxu1 %vm14593_vm0, %v19155_v3  ;;  %v14342_v24 = vld [vmem:[%s19107_s1 + $0x10] sm:$0xff]   ;;  %v14347_v28 = vld [vmem:[%s19107_s1 + $0x18] sm:$0xff]   ;;  %v14348_v30 = vld [vmem:[%s19107_s1 + $0x20] sm:$0xff]   ;;  %vm666_vm3 = vsmask.f32 5376 }
  0x10   : > { %12575 = vmatprep.subr.bf16.mxu0 %v14325_v1  ;;  %s14309_s29 = smul.u32 184, %s19532_s22  ;;  %12934 = vmatpush3.bf16.msra.mxu1 %v14348_v30  ;;  %v14351_v31 = vld [vmem:[%s19107_s1 + $0x28] sm:$0xff]   ;;  %v14352_v34 = vld [vmem:[%s19107_s1 + $0x30] sm:$0xff]   ;;  %v14732_v35 = vld [vmem:[%s19107_s1 + $0x40] sm:$0xff]   ;;  %vm1065_vm4 = vsmask.f32 4352 }
  0x11   : > { %12935 = vmatprep.subr.bf16.mxu1 %v19155_v3  ;;  %v14354_v44 = vld [vmem:[%s19107_s1 + $0x38] sm:$0xff]   ;;  %v14362_v61 = vld [vmem:[%s19107_s1] sm:$0xff]   ;;  %vm2365_vm5 = vsmask.f32 7424  ;;  %vm257_vm7 = vcmask 523270   ;;  %vm3298_vm8 = vcmask 1046528  }
  0x12   : > { %s14653_s8 = scalar_lea.vmem %s19106_s0, %s14309_s29  ;;  %vm3610_vm9 = vsmask.f32 6400  ;;  %vm4360_vm10 = vcmask 523268   ;;  %vm4311_vm11 = vcmask 1043456   ;;  %vm5995_vm12 = vcmask 521216   ;;  %s14310_s20 = smul.u32 328, %s19532_s22 }
  0x13   : > { %12576 = vmatpush3.bf16.msra.mxu0 %v14325_v1  ;;  %v14660_v5 = vld [vmem:[%s14653_s8 + $0x4] sm:$0xf]  ;;  %v303_v6 = vld [vmem:[%s14653_s8] sm:$0x8]  ;;  %v14666_v7 = vld [vmem:[%s14653_s8 + $0x8] sm:$0xff]   ;;  %vm8643_vm15 = vcmask 1042432  }
  0x14   : > { %12577 = vmatprep.subr.bf16.mxu0 %v14326_v2  ;;  %v14669_v8 = vcombine.low %v303_v6, %v14660_v5  ;;  %v14672_v9 = vld [vmem:[%s14653_s8 + $0x10] sm:$0xff]   ;;  %v398_v10 = vrot.slane %v14666_v7, 3  ;;  %v14676_v11 = vld [vmem:[%s14653_s8 + $0x18] sm:$0xff]   ;;  %v14691_v19 = vld [vmem:[%s14653_s8 + $0x20] sm:$0xff]   ;;  %12936 = vmatpush3.bf16.msra.mxu1 %v14351_v31  ;;  %vm7830_vm13 = vsmask.f32 3328  ;;  %s18952_s25 = scalar_lea.vmem %s19112_s6, %s14310_s20 }
  0x15   : > { %v400_v13 = vrot.slane %v14672_v9, 3  ;;  %v402_v15 = vrot.slane %v14676_v11, 3  ;;  %v14695_v21 = vld [vmem:[%s14653_s8 + $0x28] sm:$0xff]   ;;  %v404_v22 = vrot.slane %v14691_v19, 3  ;;  %v14705_v25 = vld [vmem:[%s14653_s8 + $0x30] sm:$0xff]   ;;  %v14708_v26 = vld [vmem:[%s14653_s8 + $0x38] sm:$0xff]   ;;  %12937 = vmatprep.subr.bf16.mxu1 %v19155_v3 }
  0x16   : > { %v397_v12 = vrot.slane %v14669_v8, 3  ;;  %v406_v23 = vrot.slane %v14695_v21, 3  ;;  %v408_v32 = vrot.slane %v14705_v25, 3  ;;  %v410_v33 = vrot.slane %v14708_v26, 3  ;;  %v14736_v37 = vld [vmem:[%s14653_s8 + $0x40] sm:$0xff]   ;;  %v14740_v38 = vld [vmem:[%s14653_s8 + $0x88] sm:$0xff]  }
  0x17   : > { %12578 = vmatpush3.bf16.msra.mxu0 %v14326_v2  ;;  %v401_v18 = vsel %vm396_vm2, %v398_v10, %v400_v13  ;;  %v403_v20 = vsel %vm396_vm2, %v400_v13, %v402_v15  ;;  %v405_v27 = vsel %vm396_vm2, %v402_v15, %v404_v22  ;;  %v14744_v40 = vld [vmem:[%s14653_s8 + $0x48] sm:$0xff]   ;;  %v14748_v41 = vld [vmem:[%s14653_s8 + $0x84] sm:$0xf]  ;;  %v262_v42 = vld [vmem:[%s14653_s8] sm:$0xc]  ;;  %v4431_v46 = vrot.slane %v14740_v38, 3 }
  0x18   : > { %12579 = vmatprep.subr.bf16.mxu0 %v14327_v4  ;;  %v399_v16 = vsel %vm396_vm2, %v397_v12, %v398_v10  ;;  %v407_v29 = vsel %vm396_vm2, %v404_v22, %v406_v23  ;;  %v409_v36 = vsel %vm396_vm2, %v406_v23, %v408_v32  ;;  %v411_v39 = vsel %vm396_vm2, %v408_v32, %v410_v33  ;;  %v4396_v43 = vld [vmem:[%s14653_s8 + $0x80] sm:$0x8]  ;;  %v14767_v51 = vld [vmem:[%s14653_s8 + $0x50] sm:$0xff]   ;;  %v14775_v55 = vld [vmem:[%s14653_s8 + $0x58] sm:$0xff]  }
  0x19   : > { %12581 = vmatprep.mubr.msk.bf16.mxu0 %vm253_vm1, %v399_v16  ;;  %12938 = vmatpush3.bf16.msra.mxu1 %v14352_v34  ;;  %v14757_v45 = vcombine.low %v4396_v43, %v14748_v41  ;;  %v412_v47 = vrot.slane %v14736_v37, 3  ;;  %v414_v48 = vrot.slane %v14744_v40, 3  ;;  %v11111_v50 = vcombine.low %v262_v42, %v14660_v5  ;;  %v14771_v53 = vld [vmem:[%s14653_s8 + $0x90] sm:$0xff]   ;;  %v14778_v56 = vld [vmem:[%s14653_s8 + $0x60] sm:$0xff]   ;;  %v14781_v57 = vld [vmem:[%s14653_s8 + $0x68] sm:$0xff]  }
  0x1a   : > { %12939 = vmatprep.subr.bf16.mxu1 %v19155_v3  ;;  %v14786_v59 = vld [vmem:[%s14653_s8 + $0x70] sm:$0xff]   ;;  %v14794_v62 = vld [vmem:[%s14653_s8 + $0x78] sm:$0xff]   ;;  %v4433_v63 = vrot.slane %v14771_v53, 3  ;;  %v416_v0 = vrot.slane %v14767_v51, 3  ;;  %v14364_v1 = vld [vmem:[%s19107_s1 + $0x8] sm:$0xff]   ;;  %v418_v2 = vrot.slane %v14775_v55, 3 }
  0x1b   : > { %12580 = vmatpush3.bf16.msra.mxu0 %v14327_v4  ;;  %v4430_v49 = vrot.slane %v14757_v45, 3  ;;  %v413_v54 = vsel %vm396_vm2, %v410_v33, %v412_v47  ;;  %v415_v58 = vsel %vm396_vm2, %v412_v47, %v414_v48  ;;  %v668_v60 = vshrl.u32 %v11111_v50, 16  ;;  %v14810_v10 = vld [vmem:[%s14653_s8 + $0x80] ss:$0 sps:$4 sm:$0x77]   ;;  %v14813_v12 = vld [vmem:[%s14653_s8 + $0x98] sm:$0xff]  }
  0x1c   : > { %12613 = vmatprep.subr.bf16.mxu0 %v14332_v14  ;;  %v420_v4 = vrot.slane %v14778_v56, 3  ;;  %v422_v5 = vrot.slane %v14781_v57, 3  ;;  %v424_v6 = vrot.slane %v14786_v59, 3  ;;  %v426_v13 = vrot.slane %v14794_v62, 3  ;;  %v14837_v31 = vld [vmem:[%s14653_s8 + $0xa0] sm:$0xf] }
  0x1d   : > { %12940 = vmatpush3.bf16.msra.mxu1 %v14354_v44  ;;  %v4432_v52 = vsel %vm396_vm2, %v4430_v49, %v4431_v46  ;;  %v671_v15 = vshll.u32 %v11111_v50, 16  ;;  %v4434_v16 = vsel %vm396_vm2, %v4431_v46, %v4433_v63  ;;  %v419_v22 = vsel %vm396_vm2, %v416_v0, %v418_v2  ;;  %v4387_v32 = vld [vmem:[%s14653_s8 + $0xa4] sm:$0x1]  ;;  %v14366_v34 = vld [vmem:[%s19107_s1 + $0x18] sm:$0xff]  }
  0x1e   : > { %12582 = vmatmul.mubr.msk.bf16.vlgmr.msra.gmra.mrb[0].mxu0 %vm253_vm1, %v401_v18  ;;  %12961 = vmatprep.subr.bf16.mxu1 %v19155_v3  ;;  %v676_v18 = vshrl.u32 %v14666_v7, 16  ;;  %v679_v23 = vshll.u32 %v14666_v7, 16  ;;  %v4435_v30 = vrot.slane %v14813_v12, 3  ;;  %v428_v33 = vrot.slane %v14810_v10, 3 }
  0x1f   : > { %12614 = vmatpush3.bf16.msra.mxu0 %v14332_v14  ;;  %12585 = vmatprep.mubr.msk.bf16.mxu0 %vm253_vm1, %v403_v20  ;;  %v14816_v14 = vrot.slane %v668_v60, 2  ;;  %v14365_v20 = vld [vmem:[%s19107_s1 + $0x10] sm:$0xff]   ;;  %v703_v46 = vshrl.u32 %v14691_v19, 16  ;;  %v706_v47 = vshll.u32 %v14691_v19, 16  ;;  %v423_v60 = vsel %vm396_vm2, %v420_v4, %v422_v5 }
  0x20   : > { %12615 = vmatprep.subr.bf16.mxu0 %v14337_v17  ;;  %12942 = vmatmul.mubr.msk.bf16.vlgmr.msra.gmra.mrb[0].mxu1 %vm253_vm1, %v4432_v52  ;;  %v681_v42 = vrot.slane %v679_v23, 3  ;;  %v712_v52 = vshrl.u32 %v14695_v21, 16  ;;  %vm8952_vm14 = vsmask.f32 2304 }
  0x21   : > { %12945 = vmatprep.mubr.msk.bf16.mxu1 %vm14593_vm0, %v19155_v3  ;;  %12962 = vmatpush3.bf16.msra.mxu1 %v14362_v61  ;;  %v425_v61 = vsel %vm396_vm2, %v422_v5, %v424_v6 }
  0x22   : > { %12963 = vmatprep.subr.bf16.mxu1 %v19155_v3 }
  0x23   : > { %12616 = vmatpush3.bf16.msra.mxu0 %v14337_v17  ;;  %v417_v17 = vsel %vm396_vm2, %v414_v48, %v416_v0  ;;  %v14857_v48 = vcombine.low %v14837_v31, %v4387_v32  ;;  %v4378_v0 = vld [vmem:[%s14653_s8 + $0x80] sm:$0xc] }
  0x24   : > { %12617 = vmatprep.subr.bf16.mxu0 %v14342_v24 }
  0x25   : > { %12964 = vmatpush3.bf16.msra.mxu1 %v14364_v1  ;;  %v715_v1 = vshll.u32 %v14695_v21, 16  ;;  %v4437_v5 = vrot.slane %v14857_v48, 3  ;;  %v19117_v21 = vshrl.u32 %v14778_v56, 16 }
  0x26   : > { %12586 = vmatmul.mubr.msk.bf16.gmra.mrb[4].mxu0 %vm253_vm1, %v405_v27  ;;  %12965 = vmatprep.subr.bf16.mxu1 %v19155_v3  ;;  %v688_v27 = vshll.u32 %v14672_v9, 16 }
  0x27   : > { %12589 = vmatprep.mubr.msk.bf16.mxu0 %vm253_vm1, %v407_v29  ;;  %12618 = vmatpush3.bf16.msra.mxu0 %v14342_v24  ;;  %v685_v24 = vshrl.u32 %v14672_v9, 16  ;;  %v697_v29 = vshll.u32 %v14676_v11, 16  ;;  %v14900_v32 = vrot.slane %v715_v1, 3 }
  0x28   : > { %12619 = vmatprep.subr.bf16.mxu0 %v14347_v28  ;;  %12946 = vmatmul.mubr.msk.bf16.gmra.mrb[4].mxu1 %vm253_vm1, %v4434_v16  ;;  %v690_v44 = vrot.slane %v688_v27, 3  ;;  %v14872_v16 = vsel %vm396_vm2, %v426_v13, %v428_v33  ;;  %v724_v33 = vshll.u32 %v14705_v25, 16 }
  0x29   : > { %12949 = vmatprep.mubr.msk.bf16.mxu1 %vm14593_vm0, %v19155_v3  ;;  %12966 = vmatpush3.bf16.msra.mxu1 %v14365_v20  ;;  %v687_v43 = vrot.slane %v685_v24, 2  ;;  %v699_v50 = vrot.slane %v697_v29, 3  ;;  %v1083_v9 = vrot.slane %v697_v29, 4  ;;  %v1091_v29 = vrot.slane %v715_v1, 4 }
  0x2a   : > { %12967 = vmatprep.subr.bf16.mxu1 %v19155_v3  ;;  %v19116_v1 = vshll.u32 %v14778_v56, 16 }
  0x2b   : > { %12620 = vmatpush3.bf16.msra.mxu0 %v14347_v28  ;;  %v694_v28 = vshrl.u32 %v14676_v11, 16 }
  0x2c   : > { %12653 = vmatprep.subr.bf16.mxu0 %v14732_v35 }
  0x2d   : > { %v696_v49 = vrot.slane %v694_v28, 2  ;;  %12968 = vmatpush3.bf16.msra.mxu1 %v14366_v34  ;;  %v1075_v34 = vrot.slane %v679_v23, 4 }
  0x2e   : > { %12590 = vmatmul.mubr.msk.bf16.gmra.mrb[8].mxu0 %vm253_vm1, %v409_v36  ;;  %v673_v36 = vrot.slane %v671_v15, 3  ;;  %v427_v15 = vsel %vm396_vm2, %v424_v6, %v426_v13  ;;  %12989 = vmatprep.subr.bf16.mxu1 %v19155_v3  ;;  %v11421_v6 = vcombine.low %v4378_v0, %v14748_v41  ;;  %v730_v41 = vshrl.u32 %v14708_v26, 16 }
  0x2f   : > { %12593 = vmatprep.mubr.msk.bf16.mxu0 %vm253_vm1, %v411_v39  ;;  %v678_v39 = vrot.slane %v676_v18, 2  ;;  %v14888_v13 = vor.u32 %v699_v50, %v696_v49  ;;  %v4562_v0 = vshrl.u32 %v14740_v38, 16  ;;  %v766_v49 = vshrl.u32 %v14775_v55, 16 }
  0x31   : > { %v682_v20 = vor.u32 %v681_v42, %v678_v39  ;;  %v1070_v39 = vshll.u32 %v14669_v8, 16 }
  0x33   : > { %v1072_v50 = vrot.slane %v1070_v39, 4  ;;  %v4564_v39 = vrot.slane %v4562_v0, 2 }
  0x36   : > { %12594 = vmatmul.mubr.msk.bf16.gmra.mrb[12].mxu0 %vm253_vm1, %v413_v54  ;;  %v4436_v54 = vsel %vm396_vm2, %v4433_v63, %v4435_v30  ;;  %v691_v63 = vor.u32 %v690_v44, %v687_v43  ;;  %v4438_v44 = vsel %vm396_vm2, %v4435_v30, %v4437_v5  ;;  %v1074_v30 = vrot.slane %v676_v18, 3 }
  0x37   : > { %12597 = vmatprep.mubr.msk.bf16.mxu0 %vm253_vm1, %v415_v58  ;;  %v421_v58 = vsel %vm396_vm2, %v418_v2, %v420_v4  ;;  %v14878_v2 = vrot.slane %v703_v46, 2  ;;  %v14882_v4 = vrot.slane %v706_v47, 3  ;;  %12950 = vmatmul.mubr.msk.bf16.gmra.mrb[8].mxu1 %vm253_vm1, %v4436_v54  ;;  %v1067_v54 = vshrl.u32 %v14669_v8, 16 }
  0x38   : > { %12953 = vmatprep.mubr.msk.bf16.mxu1 %vm14593_vm0, %v19155_v3  ;;  %v14919_v43 = vsel %vm666_vm3, %v682_v20, %v691_v63  ;;  %v14930_v8 = vsel %vm666_vm3, %v691_v63, %v14888_v13  ;;  %v1079_v18 = vrot.slane %v688_v27, 4 }
  0x3e   : > { %12598 = vmatmul.mubr.msk.bf16.gmra.mrb[16].mxu0 %vm253_vm1, %v417_v17  ;;  %v674_v17 = vor.u32 %v673_v36, %v14816_v14  ;;  %v14892_v14 = vrot.slane %v712_v52, 2  ;;  %v1069_v36 = vrot.slane %v1067_v54, 3 }
  0x3f   : > { %12601 = vmatprep.mubr.msk.bf16.mxu0 %vm253_vm1, %v419_v22  ;;  %v721_v22 = vshrl.u32 %v14705_v25, 16  ;;  %12954 = vmatmul.mubr.msk.bf16.gmra.mrb[12].mxu1 %vm253_vm1, %v4438_v44  ;;  %v14367_v25 = vld [vmem:[%s19107_s1 + $0x58] sm:$0xff]  }
  0x40   : > { %v683_v42 = vsel %vm666_vm3, %v674_v17, %v682_v20  ;;  %v19114_v17 = vshll.u32 %v14740_v38, 16  ;;  %12957 = vmatprep.mubr.msk.bf16.mxu1 %vm14593_vm0, %v19155_v3  ;;  %v1073_v23 = vor.u32 %v1072_v50, %v1069_v36  ;;  %v1082_v20 = vrot.slane %v694_v28, 3 }
  0x41   : > { %v1090_v28 = vrot.slane %v712_v52, 3  ;;  %v769_v50 = vshll.u32 %v14775_v55, 16  ;;  %v1094_v19 = vrot.slane %v721_v22, 3  ;;  %v19115_v52 = vshll.u32 %v14771_v53, 16 }
  0x42   : > { %v1084_v11 = vor.u32 %v1083_v9, %v1082_v20  ;;  %v1098_v20 = vrot.slane %v730_v41, 3  ;;  %v19189_v9 = vshll.u32 %v14736_v37, 16  ;;  %v4728_v55 = vrot.slane %v4562_v0, 3 }
  0x46   : > { %12602 = vmatmul.mubr.msk.bf16.gmra.mrb[20].mxu0 %vm253_vm1, %v421_v58  ;;  %v4554_v58 = vshrl.u32 %v11421_v6, 16 }
  0x47   : > { %12605 = vmatprep.mubr.msk.bf16.mxu0 %vm253_vm1, %v423_v60  ;;  %v4557_v60 = vshll.u32 %v11421_v6, 16  ;;  %v1078_v6 = vrot.slane %v685_v24, 3  ;;  %v1076_v24 = vor.u32 %v1075_v34, %v1074_v30  ;;  %v1087_v34 = vrot.slane %v706_v47, 4  ;;  %12958 = vmatmul.mubr.msk.bf16.gmra.mrb[16].mxu1 %vm253_vm1, %v4437_v5 }
  0x48   : > { %v4556_v7 = vrot.slane %v4554_v58, 2  ;;  %v19113_v47 = vshrl.u32 %v14771_v53, 16  ;;  %12969 = vmatprep.mubr.msk.bf16.mxu1 %vm14593_vm0, %v19155_v3  ;;  %v19187_v5 = vshll.u32 %v14708_v26, 16 }
  0x49   : > { %v4559_v63 = vrot.slane %v4557_v60, 3  ;;  %v1080_v44 = vor.u32 %v1079_v18, %v1078_v6  ;;  %v14947_v27 = vsel %vm1065_vm4, %v1073_v23, %v1076_v24  ;;  %v1092_v60 = vor.u32 %v1091_v29, %v1090_v28 }
  0x4a   : > { %v4573_v28 = vrot.slane %v19113_v47, 2  ;;  %v19193_v47 = vshll.u32 %v14767_v51, 16 }
  0x4b   : > { %v14958_v36 = vsel %vm1065_vm4, %v1076_v24, %v1080_v44  ;;  %v14970_v58 = vsel %vm1065_vm4, %v1080_v44, %v1084_v11  ;;  %v4560_v18 = vor.u32 %v4559_v63, %v4556_v7  ;;  %v1099_v7 = vrot.slane %v19187_v5, 4 }
  0x4c   : > { %v19188_v63 = vshrl.u32 %v14736_v37, 16  ;;  %v796_v5 = vshll.u32 %v14786_v59, 16 }
  0x4e   : > { %12606 = vmatmul.mubr.msk.bf16.gmra.mrb[24].mxu0 %vm253_vm1, %v425_v61  ;;  %v1086_v61 = vrot.slane %v703_v46, 3  ;;  %v1095_v46 = vrot.slane %v724_v33, 4 }
  0x4f   : > { %12609 = vmatprep.mubr.msk.bf16.mxu0 %vm253_vm1, %v427_v15  ;;  %v4567_v15 = vrot.slane %v19114_v17, 3  ;;  %v1111_v17 = vrot.slane %v19193_v47, 4  ;;  %v14359_v47 = vld [vmem:[%s19107_s1 + $0x48] sm:$0xff]  }
  0x50   : > { %v1088_v54 = vor.u32 %v1087_v34, %v1086_v61  ;;  %v1096_v6 = vor.u32 %v1095_v46, %v1094_v19  ;;  %v1103_v61 = vrot.slane %v19189_v9, 4  ;;  %v784_v34 = vshrl.u32 %v14781_v57, 16 }
  0x51   : > { %v14980_v23 = vor.u32 %v4567_v15, %v4564_v39  ;;  %v1102_v39 = vrot.slane %v19188_v63, 3  ;;  %v4576_v15 = vrot.slane %v19115_v52, 3  ;;  %v19191_v46 = vshll.u32 %v14744_v40, 16 }
  0x52   : > { %v14975_v30 = vsel %vm1065_vm4, %v1084_v11, %v1088_v54  ;;  %v14983_v24 = vsel %vm1065_vm4, %v1088_v54, %v1092_v60  ;;  %v14992_v44 = vsel %vm1065_vm4, %v1092_v60, %v1096_v6  ;;  %v1100_v11 = vor.u32 %v1099_v7, %v1098_v20 }
  0x53   : > { %v1104_v29 = vor.u32 %v1103_v61, %v1102_v39  ;;  %v19190_v54 = vshrl.u32 %v14744_v40, 16  ;;  %v1107_v60 = vrot.slane %v19191_v46, 4  ;;  %v19192_v63 = vshrl.u32 %v14767_v51, 16 }
  0x54   : > { %v4569_v20 = vsel %vm666_vm3, %v4560_v18, %v14980_v23  ;;  %v15020_v7 = vsel %vm1065_vm4, %v1096_v6, %v1100_v11  ;;  %v802_v46 = vshrl.u32 %v14794_v62, 16  ;;  %v14369_v6 = vld [vmem:[%s19107_s1 + $0x40] sm:$0xff]  }
  0x55   : > { %v1106_v19 = vrot.slane %v19190_v54, 3  ;;  %v1110_v9 = vrot.slane %v19192_v63, 3  ;;  %v15023_v39 = vsel %vm1065_vm4, %v1100_v11, %v1104_v29  ;;  %v15025_v54 = vor.u32 %v4576_v15, %v4573_v28  ;;  %12970 = vmatmul.mubr.msk.bf16.vlgmr.msra.gmra.mrb[20].mxu1 %vm253_vm1, %v4569_v20 }
  0x56   : > { %12610 = vmatmul.mubr.msk.bf16.gmra.mrb[28].mxu0 %vm253_vm1, %v14872_v16  ;;  %v787_v16 = vshll.u32 %v14781_v57, 16  ;;  %v1114_v63 = vrot.slane %v766_v49, 3  ;;  %v1115_v28 = vrot.slane %v769_v50, 4  ;;  %v1119_v15 = vrot.slane %v19116_v1, 4  ;;  %12973 = vmatprep.mubr.msk.bf16.mxu1 %vm14593_vm0, %v19155_v3 }
  0x57   : > { %12621 = vmatprep.mubr.msk.bf16.mxu0 %vm253_vm1, %v683_v42  ;;  %v793_v42 = vshrl.u32 %v14786_v59, 16  ;;  %v1108_v61 = vor.u32 %v1107_v60, %v1106_v19  ;;  %v1112_v52 = vor.u32 %v1111_v17, %v1110_v9  ;;  %v1118_v17 = vrot.slane %v19117_v21, 3  ;;  %12990 = vmatpush3.bf16.msra.mxu1 %v14369_v6 }
  0x58   : > { %v19118_v11 = vshrl.u32 %v14813_v12, 16  ;;  %v19119_v19 = vshll.u32 %v14813_v12, 16  ;;  %v1116_v9 = vor.u32 %v1115_v28, %v1114_v63  ;;  %v1123_v20 = vrot.slane %v787_v16, 4  ;;  %v14363_v63 = vld [vmem:[%s19107_s1 + $0x50] sm:$0xff]   ;;  %12991 = vmatprep.subr.bf16.mxu1 %v19155_v3 }
  0x59   : > { %v15037_v18 = vsel %vm1065_vm4, %v1104_v29, %v1108_v61  ;;  %v15049_v60 = vsel %vm1065_vm4, %v1108_v61, %v1112_v52  ;;  %v1122_v29 = vrot.slane %v784_v34, 3  ;;  %v1120_v1 = vor.u32 %v1119_v15, %v1118_v17 }
  0x5a   : > { %v1126_v21 = vrot.slane %v793_v42, 3  ;;  %v709_v61 = vor.u32 %v14882_v4, %v14878_v2  ;;  %v19120_v28 = vshll.u32 %v14794_v62, 16  ;;  %v1127_v17 = vrot.slane %v796_v5, 4 }
  0x5b   : > { %v15078_v2 = vsel %vm1065_vm4, %v1112_v52, %v1116_v9  ;;  %v15081_v4 = vsel %vm1065_vm4, %v1116_v9, %v1120_v1  ;;  %v4578_v52 = vsel %vm666_vm3, %v14980_v23, %v15025_v54  ;;  %v4582_v9 = vrot.slane %v19118_v11, 2 }
  0x5c   : > { %v1128_v6 = vor.u32 %v1127_v17, %v1126_v21  ;;  %v1131_v15 = vrot.slane %v19120_v28, 4  ;;  %v726_v21 = vrot.slane %v724_v33, 3  ;;  %v789_v0 = vrot.slane %v787_v16, 3 }
  0x5d   : > { %12974 = vmatmul.mubr.msk.bf16.gmra.mrb[24].mxu1 %vm253_vm1, %v4578_v52  ;;  %v19205_v16 = vshll.u32 %v14771_v53, 16 }
  0x5e   : > { %12622 = vmatmul.mubr.msk.bf16.vlgmr.msra.gmra.mrb[0].mxu0 %vm253_vm1, %v14919_v43  ;;  %v718_v43 = vor.u32 %v14900_v32, %v14892_v14  ;;  %v1124_v14 = vor.u32 %v1123_v20, %v1122_v29  ;;  %v1130_v32 = vrot.slane %v802_v46, 3  ;;  %v4585_v29 = vrot.slane %v19119_v19, 3  ;;  %12977 = vmatprep.mubr.msk.bf16.mxu1 %vm14593_vm0, %v19155_v3 }
  0x5f   : > { %12654 = vmatpush3.bf16.msra.mxu0 %v14732_v35  ;;  %12625 = vmatprep.mubr.msk.bf16.mxu0 %vm253_vm1, %v14930_v8  ;;  %v14370_v35 = vld [vmem:[%s19107_s1 + $0x48] sm:$0xff]   ;;  %v723_v8 = vrot.slane %v721_v22, 2  ;;  %v710_v22 = vsel %vm666_vm3, %v14888_v13, %v709_v61  ;;  %v732_v19 = vrot.slane %v730_v41, 2  ;;  %v14371_v13 = vld [vmem:[%s19107_s1 + $0x50] sm:$0xff]   ;;  %v15132_v41 = vld [vmem:[%s19107_s1 + $0x60] sm:$0xff]  }
  0x60   : > { %12655 = vmatprep.subr.bf16.mxu0 %v14359_v47  ;;  %v15098_v20 = vsel %vm1065_vm4, %v1120_v1, %v1124_v14  ;;  %v15105_v17 = vsel %vm1065_vm4, %v1124_v14, %v1128_v6  ;;  %v15107_v23 = vor.u32 %v1131_v15, %v1130_v32  ;;  %v719_v11 = vsel %vm666_vm3, %v709_v61, %v718_v43  ;;  %v15141_v32 = vld [vmem:[%s14653_s8 + $0x14] sm:$0xf]  ;;  %v15144_v15 = vld [vmem:[%s14653_s8 + $0x18] sm:$0xf] }
  0x61   : > { %v19194_v1 = vshll.u32 %v14708_v26, 16  ;;  %12992 = vmatpush3.bf16.msra.mxu1 %v14370_v35  ;;  %v4586_v33 = vor.u32 %v4585_v29, %v4582_v9  ;;  %v4592_v61 = vshll.u32 %v14857_v48, 16  ;;  %v14373_v35 = vld [vmem:[%s19107_s1 + $0x58] sm:$0xff]   ;;  %v727_v14 = vor.u32 %v726_v21, %v723_v8 }
  0x62   : > { %12993 = vmatprep.subr.bf16.mxu1 %v19155_v3  ;;  %v15124_v26 = vsel %vm1065_vm4, %v1128_v6, %v15107_v23  ;;  %v19197_v21 = vshrl.u32 %v14744_v40, 16 }
  0x63   : > { %12656 = vmatpush3.bf16.msra.mxu0 %v14359_v47  ;;  %v735_v28 = vrot.slane %v19194_v1, 3  ;;  %v4589_v47 = vshrl.u32 %v14857_v48, 16  ;;  %v4587_v52 = vsel %vm666_vm3, %v15025_v54, %v4586_v33  ;;  %v4594_v29 = vrot.slane %v4592_v61, 3 }
  0x64   : > { %12657 = vmatprep.subr.bf16.mxu0 %v14363_v63  ;;  %v750_v1 = vrot.slane %v19197_v21, 2 }
  0x65   : > { %v736_v6 = vor.u32 %v735_v28, %v732_v19  ;;  %12994 = vmatpush3.bf16.msra.mxu1 %v14371_v13  ;;  %v4591_v9 = vrot.slane %v4589_v47, 2  ;;  %v19196_v19 = vshll.u32 %v14736_v37, 16  ;;  %v19198_v13 = vshll.u32 %v14744_v40, 16 }
  0x66   : > { %12626 = vmatmul.mubr.msk.bf16.gmra.mrb[4].mxu0 %vm253_vm1, %v710_v22  ;;  %12995 = vmatprep.subr.bf16.mxu1 %v19155_v3  ;;  %v19199_v47 = vshrl.u32 %v14767_v51, 16 }
  0x67   : > { %12629 = vmatprep.mubr.msk.bf16.mxu0 %vm253_vm1, %v719_v11  ;;  %12658 = vmatpush3.bf16.msra.mxu0 %v14363_v63  ;;  %v728_v11 = vsel %vm666_vm3, %v718_v43, %v727_v14  ;;  %v19195_v63 = vshrl.u32 %v14736_v37, 16  ;;  %v744_v28 = vrot.slane %v19196_v19, 3  ;;  %v737_v22 = vsel %vm666_vm3, %v727_v14, %v736_v6 }
  0x68   : > { %12659 = vmatprep.subr.bf16.mxu0 %v14367_v25  ;;  %v753_v48 = vrot.slane %v19198_v13, 3  ;;  %12978 = vmatmul.mubr.msk.bf16.gmra.mrb[28].mxu1 %vm253_vm1, %v4587_v52  ;;  %v4595_v37 = vor.u32 %v4594_v29, %v4591_v9  ;;  %v759_v61 = vrot.slane %v19199_v47, 2  ;;  %v771_v9 = vrot.slane %v769_v50, 3 }
  0x69   : > { %v741_v8 = vrot.slane %v19195_v63, 2  ;;  %12996 = vmatpush3.bf16.msra.mxu1 %v14373_v35  ;;  %12981 = vmatprep.mubr.msk.bf16.mxu1 %vm14593_vm0, %v19155_v3  ;;  %v19200_v35 = vshll.u32 %v14767_v51, 16  ;;  %v4724_v51 = vshll.u32 %v14757_v45, 16  ;;  %v19201_v50 = vshll.u32 %v14740_v38, 16 }
  0x6a   : > { %13017 = vmatprep.subr.bf16.mxu1 %v19155_v3  ;;  %v754_v43 = vor.u32 %v753_v48, %v750_v1  ;;  %v4596_v40 = vsel %vm666_vm3, %v4586_v33, %v4595_v37  ;;  %v4721_v48 = vshrl.u32 %v14757_v45, 16  ;;  %v19202_v19 = vshrl.u32 %v14778_v56, 16 }
  0x6b   : > { %12660 = vmatpush3.bf16.msra.mxu0 %v14367_v25  ;;  %v745_v54 = vor.u32 %v744_v28, %v741_v8  ;;  %v762_v14 = vrot.slane %v19200_v35, 3  ;;  %v4729_v63 = vrot.slane %v19201_v50, 4  ;;  %v786_v1 = vrot.slane %v784_v34, 2 }
  0x6c   : > { %12693 = vmatprep.subr.bf16.mxu0 %v15132_v41  ;;  %v4723_v29 = vrot.slane %v4721_v48, 3  ;;  %v777_v28 = vrot.slane %v19202_v19, 2  ;;  %v19204_v34 = vshrl.u32 %v14771_v53, 16  ;;  %v798_v47 = vrot.slane %v796_v5, 3 }
  0x6d   : > { %v746_v25 = vsel %vm666_vm3, %v736_v6, %v745_v54  ;;  %v755_v52 = vsel %vm666_vm3, %v745_v54, %v754_v43  ;;  %v763_v33 = vor.u32 %v762_v14, %v759_v61  ;;  %v4730_v13 = vor.u32 %v4729_v63, %v4728_v55  ;;  %v14376_v61 = vld [vmem:[%s19107_s1 + $0x60] sm:$0xff]  }
  0x6e   : > { %12630 = vmatmul.mubr.msk.bf16.gmra.mrb[8].mxu0 %vm253_vm1, %v728_v11  ;;  %v768_v11 = vrot.slane %v766_v49, 2  ;;  %v4726_v49 = vrot.slane %v4724_v51, 4  ;;  %v790_v54 = vor.u32 %v789_v0, %v786_v1  ;;  %v4732_v57 = vrot.slane %v19204_v34, 3  ;;  %v15270_v34 = vld [vmem:[%s14653_s8 + $0xc] sm:$0xf] }
  0x6f   : > { %12633 = vmatprep.mubr.msk.bf16.mxu0 %vm253_vm1, %v737_v22  ;;  %v764_v8 = vsel %vm666_vm3, %v754_v43, %v763_v33  ;;  %v19203_v22 = vshll.u32 %v14778_v56, 16  ;;  %v804_v14 = vrot.slane %v802_v46, 2  ;;  %v19206_v53 = vshll.u32 %v14794_v62, 16  ;;  %v14378_v62 = vld [vmem:[%s19107_s1 + $0x68] sm:$0xff]  }
  0x70   : > { %12982 = vmatmul.mubr.msk.bf16.gmra.mrb[32].mxu1 %vm253_vm1, %v4596_v40  ;;  %v772_v6 = vor.u32 %v771_v9, %v768_v11  ;;  %v4727_v38 = vor.u32 %v4726_v49, %v4723_v29  ;;  %v811_v11 = vshrl.u32 %v14810_v10, 16  ;;  %v814_v9 = vshll.u32 %v14810_v10, 16 }
  0x71   : > { %12985 = vmatprep.mubr.msk.bf16.mxu1 %vm14593_vm0, %v19155_v3  ;;  %v780_v45 = vrot.slane %v19203_v22, 3  ;;  %v19208_v29 = vshll.u32 %v14813_v12, 16  ;;  %v4869_v22 = vld [vmem:[%s14653_s8 + $0x88] sm:$0x8] }
  0x72   : > { %v773_v21 = vsel %vm666_vm3, %v763_v33, %v772_v6  ;;  %v4731_v43 = vsel %vm1065_vm4, %v4727_v38, %v4730_v13  ;;  %v19207_v33 = vshrl.u32 %v14813_v12, 16  ;;  %v813_v49 = vrot.slane %v811_v11, 2 }
  0x73   : > { %v781_v56 = vor.u32 %v780_v45, %v777_v28  ;;  %v4737_v55 = vrot.slane %v19208_v29, 4  ;;  %v816_v50 = vrot.slane %v814_v9, 3  ;;  %v14381_v28 = vld [vmem:[%s19107_s1 + $0x78] sm:$0xff]   ;;  %v15305_v9 = vld [vmem:[%s14653_s8 + $0x24] sm:$0xf] }
  0x75   : > { %v782_v40 = vsel %vm666_vm3, %v772_v6, %v781_v56  ;;  %v791_v35 = vsel %vm666_vm3, %v781_v56, %v790_v54  ;;  %v4736_v6 = vrot.slane %v19207_v33, 3  ;;  %v817_v45 = vor.u32 %v816_v50, %v813_v49  ;;  %v15265_v56 = vld [vmem:[%s14653_s8 + $0x94] sm:$0xf] }
  0x76   : > { %12634 = vmatmul.mubr.msk.bf16.gmra.mrb[12].mxu0 %vm253_vm1, %v746_v25  ;;  %v795_v25 = vrot.slane %v793_v42, 2  ;;  %v4708_v42 = vld [vmem:[%s14653_s8 + $0xa4] sm:$0x3] }
  0x77   : > { %12637 = vmatprep.mubr.msk.bf16.mxu0 %vm253_vm1, %v755_v52  ;;  %v807_v52 = vrot.slane %v19206_v53, 3  ;;  %v11439_v48 = vcombine.low %v14837_v31, %v4708_v42  ;;  %v14379_v31 = vld [vmem:[%s19107_s1 + $0x70] sm:$0xff]   ;;  %v4738_v12 = vor.u32 %v4737_v55, %v4736_v6 }
  0x78   : > { %12986 = vmatmul.mubr.msk.bf16.gmra.mrb[36].mxu1 %vm253_vm1, %v4595_v37  ;;  %v4733_v37 = vrot.slane %v19205_v16, 4  ;;  %v799_v5 = vor.u32 %v798_v47, %v795_v25  ;;  %v15281_v25 = vld [vmem:[%s14653_s8 + $0x98] sm:$0xf]  ;;  %v15284_v47 = vld [vmem:[%s14653_s8 + $0x9c] sm:$0xf] }
  0x79   : > { %12997 = vmatprep.mubr.msk.bf16.mxu1 %vm14593_vm0, %v19155_v3  ;;  %v808_v46 = vor.u32 %v807_v52, %v804_v14  ;;  %v4744_v19 = vshll.u32 %v11439_v48, 16  ;;  %v14372_v14 = vld [vmem:[%s19107_s1 + $0x68] sm:$0xff]   ;;  %v11459_v42 = vcombine.low %v15281_v25, %v15284_v47 }
  0x7a   : > { %v4734_v59 = vor.u32 %v4733_v37, %v4732_v57  ;;  %v800_v10 = vsel %vm666_vm3, %v790_v54, %v799_v5  ;;  %v15273_v57 = vld [vmem:[%s14653_s8 + $0x10] sm:$0xf] }
  0x7b   : > { %v809_v63 = vsel %vm666_vm3, %v799_v5, %v808_v46  ;;  %v4746_v0 = vrot.slane %v4744_v19, 4  ;;  %v15302_v5 = vld [vmem:[%s14653_s8 + $0x20] sm:$0xf]  ;;  %v4930_v6 = vshrl.u32 %v11459_v42, 16  ;;  %v15343_v19 = vld [vmem:[%s14653_s8 + $0x34] sm:$0xf] }
  0x7c   : > { %v4735_v51 = vsel %vm1065_vm4, %v4730_v13, %v4734_v59  ;;  %v4739_v38 = vsel %vm1065_vm4, %v4734_v59, %v4738_v12  ;;  %v15262_v13 = vld [vmem:[%s14653_s8 + $0x90] sm:$0xf]  ;;  %v15299_v59 = vld [vmem:[%s14653_s8 + $0x1c] sm:$0xf] }
  0x7d   : > { %v11216_v29 = vcombine.low %v15299_v59, %v15302_v5  ;;  %v4932_v50 = vrot.slane %v4930_v6, 3 }
  0x7e   : > { %12638 = vmatmul.mubr.msk.bf16.gmra.mrb[16].mxu0 %vm253_vm1, %v764_v8  ;;  %v4741_v8 = vshrl.u32 %v11439_v48, 16  ;;  %v14374_v48 = vld [vmem:[%s19107_s1 + $0x70] sm:$0xff]  }
  0x7f   : > { %12641 = vmatprep.mubr.msk.bf16.mxu0 %vm253_vm1, %v773_v21  ;;  %v15257_v21 = vld [vmem:[%s14653_s8 + $0x8c] sm:$0xf] }
  0x80   : > { %12998 = vmatmul.mubr.msk.bf16.vlgmr.msra.gmra.mrb[40].mxu1 %vm253_vm1, %v4731_v43  ;;  %v4743_v1 = vrot.slane %v4741_v8, 3  ;;  %v11457_v54 = vcombine.low %v4869_v22, %v15257_v21  ;;  %v818_v43 = vsel %vm666_vm3, %v808_v46, %v817_v45  ;;  %v15315_v46 = vld [vmem:[%s14653_s8 + $0xa4] sm:$0xf]  ;;  %v15340_v8 = vld [vmem:[%s14653_s8 + $0x30] sm:$0xf] }
  0x81   : > { %13001 = vmatprep.mubr.msk.bf16.mxu1 %vm14593_vm0, %v19155_v3  ;;  %13018 = vmatpush3.bf16.msra.mxu1 %v14376_v61  ;;  %v11214_v61 = vcombine.low %v15270_v34, %v15273_v57  ;;  %v15356_v45 = vld [vmem:[%s19107_s1 + $0x80] sm:$0xff]  }
  0x82   : > { %13019 = vmatprep.subr.bf16.mxu1 %v19155_v3  ;;  %v4747_v16 = vor.u32 %v4746_v0, %v4743_v1  ;;  %v4913_v37 = vshrl.u32 %v11457_v54, 16 }
  0x84   : > { %v4748_v53 = vsel %vm1065_vm4, %v4738_v12, %v4747_v16  ;;  %v15346_v12 = vld [vmem:[%s14653_s8 + $0x38] sm:$0xf] }
  0x85   : > { %13020 = vmatpush3.bf16.msra.mxu1 %v14378_v62  ;;  %v15312_v62 = vld [vmem:[%s14653_s8 + $0xa0] sm:$0xf] }
  0x86   : > { %12642 = vmatmul.mubr.msk.bf16.gmra.mrb[20].mxu0 %vm253_vm1, %v782_v40  ;;  %13021 = vmatprep.subr.bf16.mxu1 %v19155_v3  ;;  %v4916_v40 = vshll.u32 %v11457_v54, 16 }
  0x87   : > { %12645 = vmatprep.mubr.msk.bf16.mxu0 %vm253_vm1, %v791_v35  ;;  %v11458_v35 = vcombine.low %v15262_v13, %v15265_v56 }
  0x88   : > { %13002 = vmatmul.mubr.msk.bf16.gmra.mrb[44].mxu1 %vm253_vm1, %v4735_v51  ;;  %v4915_v51 = vrot.slane %v4913_v37, 3  ;;  %v4918_v33 = vrot.slane %v4916_v40, 4  ;;  %v15372_v37 = vld [vmem:[%s14653_s8 + $0x3c] sm:$0xf]  ;;  %v14397_v40 = vld [vmem:[%s19107_s1 + $0x80] sm:$0xff]  }
  0x89   : > { %13005 = vmatprep.mubr.msk.bf16.mxu1 %vm14593_vm0, %v19155_v3  ;;  %13022 = vmatpush3.bf16.msra.mxu1 %v14379_v31  ;;  %v4921_v52 = vshrl.u32 %v11458_v35, 16  ;;  %v4924_v11 = vshll.u32 %v11458_v35, 16  ;;  %v15378_v35 = vld [vmem:[%s14653_s8 + $0x40] sm:$0xf] }
  0x8a   : > { %13023 = vmatprep.subr.bf16.mxu1 %v19155_v3 }
  0x8b   : > { %v4926_v49 = vrot.slane %v4924_v11, 4 }
  0x8d   : > { %13024 = vmatpush3.bf16.msra.mxu1 %v14381_v28  ;;  %v4919_v28 = vor.u32 %v4918_v33, %v4915_v51  ;;  %v15638_v51 = vld [vmem:[%s14653_s8 + $0x88] sm:$0xf] }
  0x8e   : > { %12646 = vmatmul.mubr.msk.bf16.gmra.mrb[24].mxu0 %vm253_vm1, %v800_v10  ;;  %13045 = vmatprep.subr.bf16.mxu1 %v19155_v3  ;;  %v4923_v10 = vrot.slane %v4921_v52, 3 }
  0x8f   : > { %12649 = vmatprep.mubr.msk.bf16.mxu0 %vm253_vm1, %v809_v63  ;;  %v15337_v63 = vld [vmem:[%s14653_s8 + $0x2c] sm:$0xf] }
  0x90   : > { %13006 = vmatmul.mubr.msk.bf16.gmra.mrb[48].mxu1 %vm253_vm1, %v4739_v38  ;;  %v4927_v22 = vor.u32 %v4926_v49, %v4923_v10  ;;  %v11218_v38 = vcombine.low %v15337_v63, %v15340_v8  ;;  %v14401_v10 = vld [vmem:[%s19107_s1 + $0x90] sm:$0xff]  }
  0x91   : > { %13009 = vmatprep.mubr.msk.bf16.mxu1 %vm14593_vm0, %v19155_v3  ;;  %v15416_v49 = vld [vmem:[%s14653_s8 + $0x54] sm:$0xf] }
  0x92   : > { %v4928_v54 = vsel %vm1065_vm4, %v4919_v28, %v4927_v22 }
  0x96   : > { %12650 = vmatmul.mubr.msk.bf16.gmra.mrb[28].mxu0 %vm253_vm1, %v818_v43  ;;  %v15366_v43 = vld [vmem:[%s14653_s8 + $0xa8] sm:$0xf] }
  0x97   : > { %12661 = vmatprep.mubr.msk.bf16.mxu0 %vm253_vm1, %v14947_v27  ;;  %v15308_v27 = vld [vmem:[%s14653_s8 + $0x28] sm:$0xf] }
  0x98   : > { %13010 = vmatmul.mubr.msk.bf16.gmra.mrb[52].mxu1 %vm253_vm1, %v4748_v53  ;;  %v11217_v55 = vcombine.low %v15305_v9, %v15308_v27 }
  0x99   : > { %13013 = vmatprep.mubr.msk.bf16.mxu1 %vm14593_vm0, %v19155_v3 }
  0x9e   : > { %12662 = vmatmul.mubr.msk.bf16.vlgmr.msra.gmra.mrb[0].mxu0 %vm253_vm1, %v14958_v36  ;;  %v4933_v36 = vshll.u32 %v11459_v42, 16  ;;  %v14400_v42 = vld [vmem:[%s19107_s1 + $0x88] sm:$0xff]  }
  0x9f   : > { %12694 = vmatpush3.bf16.msra.mxu0 %v15132_v41  ;;  %12665 = vmatprep.mubr.msk.bf16.mxu0 %vm253_vm1, %v14970_v58  ;;  %v14377_v41 = vld [vmem:[%s19107_s1 + $0x78] sm:$0xff]   ;;  %v11460_v58 = vcombine.low %v15312_v62, %v15315_v46 }
  0xa0   : > { %12695 = vmatprep.subr.bf16.mxu0 %v14372_v14  ;;  %v4935_v31 = vrot.slane %v4933_v36, 4  ;;  %13014 = vmatmul.mubr.msk.bf16.gmra.mrb[56].mxu1 %vm253_vm1, %v4747_v16  ;;  %v15369_v16 = vld [vmem:[%s14653_s8 + $0xac] sm:$0x3] }
  0xa1   : > { %13025 = vmatprep.mubr.msk.bf16.mxu1 %vm14593_vm0, %v19155_v3  ;;  %v4939_v1 = vshrl.u32 %v11460_v58, 16  ;;  %v4942_v0 = vshll.u32 %v11460_v58, 16  ;;  %v15406_v36 = vld [vmem:[%s14653_s8 + $0x4c] sm:$0xf] }
  0xa2   : > { %v4936_v52 = vor.u32 %v4935_v31, %v4932_v50  ;;  %v14405_v50 = vld [vmem:[%s19107_s1 + $0x98] sm:$0xff]  }
  0xa3   : > { %12696 = vmatpush3.bf16.msra.mxu0 %v14372_v14  ;;  %v15385_v14 = vld [vmem:[%s14653_s8 + $0x48] sm:$0xf]  ;;  %v4941_v53 = vrot.slane %v4939_v1, 3  ;;  %v4944_v11 = vrot.slane %v4942_v0, 4 }
  0xa4   : > { %12697 = vmatprep.subr.bf16.mxu0 %v14374_v48  ;;  %v4937_v33 = vsel %vm1065_vm4, %v4927_v22, %v4936_v52 }
  0xa5   : > { %v4945_v31 = vor.u32 %v4944_v11, %v4941_v53  ;;  %v15446_v53 = vld [vmem:[%s14653_s8 + $0x64] sm:$0xf]  ;;  %v15449_v11 = vld [vmem:[%s14653_s8 + $0x68] sm:$0xf] }
  0xa6   : > { %12666 = vmatmul.mubr.msk.bf16.gmra.mrb[4].mxu0 %vm253_vm1, %v14975_v30  ;;  %v11219_v30 = vcombine.low %v15343_v19, %v15346_v12 }
  0xa7   : > { %12669 = vmatprep.mubr.msk.bf16.mxu0 %vm253_vm1, %v14983_v24  ;;  %12698 = vmatpush3.bf16.msra.mxu0 %v14374_v48  ;;  %v15382_v24 = vld [vmem:[%s14653_s8 + $0x44] sm:$0xf]  ;;  %v11220_v48 = vcombine.low %v15372_v37, %v15378_v35  ;;  %v4946_v0 = vsel %vm1065_vm4, %v4936_v52, %v4945_v31 }
  0xa8   : > { %12699 = vmatprep.subr.bf16.mxu0 %v14377_v41  ;;  %13026 = vmatmul.mubr.msk.bf16.vlgmr.msra.gmra.mrb[60].mxu1 %vm253_vm1, %v4928_v54  ;;  %v1408_v54 = vld [vmem:[%s14653_s8 + $0x8] sm:$0x8] }
  0xa9   : > { %13029 = vmatprep.mubr.msk.bf16.mxu1 %vm14593_vm0, %v19155_v3  ;;  %13046 = vmatpush3.bf16.msra.mxu1 %v14397_v40 }
  0xaa   : > { %13047 = vmatprep.subr.bf16.mxu1 %v19155_v3 }
  0xab   : > { %12700 = vmatpush3.bf16.msra.mxu0 %v14377_v41  ;;  %v15419_v41 = vld [vmem:[%s14653_s8 + $0x58] sm:$0xf] }
  0xac   : > { %12733 = vmatprep.subr.bf16.mxu0 %v15356_v45 }
  0xad   : > { %13048 = vmatpush3.bf16.msra.mxu1 %v14400_v42  ;;  %v11169_v42 = vcombine.low %v1408_v54, %v15270_v34 }
  0xae   : > { %12670 = vmatmul.mubr.msk.bf16.gmra.mrb[8].mxu0 %vm253_vm1, %v14992_v44  ;;  %v11461_v44 = vcombine.low %v15366_v43, %v15369_v16  ;;  %13049 = vmatprep.subr.bf16.mxu1 %v19155_v3 }
  0xaf   : > { %12673 = vmatprep.mubr.msk.bf16.mxu0 %vm253_vm1, %v15020_v7  ;;  %v15412_v7 = vld [vmem:[%s14653_s8 + $0x50] sm:$0xf] }
  0xb0   : > { %v4948_v6 = vshrl.u32 %v11461_v44, 16  ;;  %13030 = vmatmul.mubr.msk.bf16.gmra.mrb[64].mxu1 %vm253_vm1, %v4937_v33  ;;  %v4951_v58 = vshll.u32 %v11461_v44, 16 }
  0xb1   : > { %13033 = vmatprep.mubr.msk.bf16.mxu1 %vm14593_vm0, %v19155_v3  ;;  %13050 = vmatpush3.bf16.msra.mxu1 %v14401_v10  ;;  %v1534_v10 = vshrl.u32 %v11169_v42, 16 }
  0xb2   : > { %13051 = vmatprep.subr.bf16.mxu1 %v19155_v3  ;;  %v4953_v1 = vrot.slane %v4951_v58, 4  ;;  %v1537_v58 = vshll.u32 %v11169_v42, 16 }
  0xb3   : > { %v1536_v54 = vrot.slane %v1534_v10, 3 }
  0xb5   : > { %13052 = vmatpush3.bf16.msra.mxu1 %v14405_v50 }
  0xb6   : > { %12674 = vmatmul.mubr.msk.bf16.gmra.mrb[12].mxu0 %vm253_vm1, %v15023_v39  ;;  %v4950_v39 = vrot.slane %v4948_v6, 3  ;;  %13073 = vmatprep.subr.bf16.mxu1 %v19155_v3 }
  0xb7   : > { %12677 = vmatprep.mubr.msk.bf16.mxu0 %vm253_vm1, %v15037_v18  ;;  %v14380_v18 = vld [vmem:[%s14653_s8 + $0x80] ss:$0 sps:$4 sm:$0xff]  }
  0xb8   : > { %13034 = vmatmul.mubr.msk.bf16.gmra.mrb[68].mxu1 %vm253_vm1, %v4946_v0  ;;  %v4954_v40 = vor.u32 %v4953_v1, %v4950_v39  ;;  %v1135_v33 = vshrl.u32 %v14380_v18, 16  ;;  %v1138_v6 = vshll.u32 %v14380_v18, 16  ;;  %v11172_v0 = vcombine.low %v15302_v5, %v15305_v9  ;;  %v14457_v5 = vld [vmem:[%s19107_s1 + $0xe0] sm:$0xff]  }
  0xb9   : > { %13037 = vmatprep.mubr.msk.bf16.mxu1 %vm14593_vm0, %v19155_v3  ;;  %v15744_v9 = vld [vmem:[%s19107_s1 + $0xc0] sm:$0xff]  }
  0xba   : > { %v4955_v44 = vsel %vm1065_vm4, %v4945_v31, %v4954_v40  ;;  %v1137_v39 = vrot.slane %v1135_v33, 3  ;;  %v1140_v1 = vrot.slane %v1138_v6, 4  ;;  %v11171_v31 = vcombine.low %v15144_v15, %v15299_v59  ;;  %v14442_v59 = vld [vmem:[%s19107_s1 + $0xb8] sm:$0xff]  }
  0xbb   : > { %v1563_v33 = vshll.u32 %v11172_v0, 16 }
  0xbc   : > { %v1141_v6 = vor.u32 %v1140_v1, %v1137_v39 }
  0xbe   : > { %12678 = vmatmul.mubr.msk.bf16.gmra.mrb[16].mxu0 %vm253_vm1, %v15049_v60  ;;  %v11170_v60 = vcombine.low %v15273_v57, %v15141_v32 }
  0xbf   : > { %12681 = vmatprep.mubr.msk.bf16.mxu0 %vm253_vm1, %v15078_v2 }
  0xc0   : > { %13038 = vmatmul.mubr.msk.bf16.gmra.mrb[72].mxu1 %vm253_vm1, %v4955_v44  ;;  %v1542_v2 = vshrl.u32 %v11170_v60, 16  ;;  %v1545_v50 = vshll.u32 %v11170_v60, 16  ;;  %v1551_v44 = vshrl.u32 %v11171_v31, 16  ;;  %v1554_v60 = vshll.u32 %v11171_v31, 16 }
  0xc1   : > { %13041 = vmatprep.mubr.msk.bf16.mxu1 %vm14593_vm0, %v19155_v3  ;;  %v11173_v31 = vcombine.low %v15308_v27, %v15337_v63  ;;  %v14461_v27 = vld [vmem:[%s19107_s1 + $0xe8] sm:$0xff]  }
  0xc2   : > { %v1544_v18 = vrot.slane %v1542_v2, 3  ;;  %v1547_v42 = vrot.slane %v1545_v50, 4  ;;  %v1553_v2 = vrot.slane %v1551_v44, 3  ;;  %v1556_v50 = vrot.slane %v1554_v60, 4 }
  0xc6   : > { %12682 = vmatmul.mubr.msk.bf16.gmra.mrb[20].mxu0 %vm253_vm1, %v15081_v4  ;;  %v1539_v4 = vrot.slane %v1537_v58, 4  ;;  %v1548_v58 = vor.u32 %v1547_v42, %v1544_v18  ;;  %v14420_v42 = vld [vmem:[%s19107_s1 + $0xa8] sm:$0xff]  }
  0xc7   : > { %12685 = vmatprep.mubr.msk.bf16.mxu0 %vm253_vm1, %v15098_v20  ;;  %v1560_v20 = vshrl.u32 %v11172_v0, 16  ;;  %v11174_v0 = vcombine.low %v15340_v8, %v15343_v19  ;;  %v14465_v19 = vld [vmem:[%s19107_s1 + $0xf8] sm:$0xff]  }
  0xc8   : > { %13042 = vmatmul.mubr.msk.bf16.gmra.mrb[76].mxu1 %vm253_vm1, %v4954_v40  ;;  %v1540_v10 = vor.u32 %v1539_v4, %v1536_v54  ;;  %v15481_v40 = vcombine.low %v15257_v21, %v15262_v13  ;;  %v1565_v54 = vrot.slane %v1563_v33, 4  ;;  %v1569_v4 = vshrl.u32 %v11173_v31, 16 }
  0xc9   : > { %13053 = vmatprep.mubr.msk.bf16.mxu1 %vm14593_vm0, %v19155_v3  ;;  %v1562_v1 = vrot.slane %v1560_v20, 3  ;;  %v1557_v21 = vor.u32 %v1556_v50, %v1553_v2  ;;  %v1578_v13 = vshrl.u32 %v11174_v0, 16  ;;  %v1581_v18 = vshll.u32 %v11174_v0, 16  ;;  %v14422_v0 = vld [vmem:[%s19107_s1 + $0xb0] sm:$0xff]  }
  0xca   : > { %v1549_v39 = vsel %vm1065_vm4, %v1540_v10, %v1548_v58  ;;  %v1571_v60 = vrot.slane %v1569_v4, 3  ;;  %v11175_v20 = vcombine.low %v15346_v12, %v15372_v37  ;;  %v15505_v33 = vcombine.low %v15265_v56, %v15281_v25  ;;  %v14395_v10 = vld [vmem:[%s19107_s1 + $0x88] sm:$0xff]   ;;  %v14425_v4 = vld [vmem:[%s19107_s1 + $0xb8] sm:$0xff]  }
  0xcb   : > { %v1566_v44 = vor.u32 %v1565_v54, %v1562_v1  ;;  %v1580_v50 = vrot.slane %v1578_v13, 3  ;;  %v14404_v54 = vld [vmem:[%s19107_s1 + $0x90] sm:$0xff]   ;;  %v15532_v13 = vld [vmem:[%s14653_s8 + $0x5c] sm:$0xf]  ;;  %v19210_v37 = vcombine.low %v15382_v24, %v15385_v14 }
  0xcc   : > { %v1587_v25 = vshrl.u32 %v11175_v20, 16 }
  0xcd   : > { %v1567_v56 = vsel %vm1065_vm4, %v1557_v21, %v1566_v44 }
  0xce   : > { %12686 = vmatmul.mubr.msk.bf16.gmra.mrb[24].mxu0 %vm253_vm1, %v15105_v17  ;;  %v1142_v17 = vsel %vm1065_vm4, %v15107_v23, %v1141_v6  ;;  %v1572_v23 = vshll.u32 %v11173_v31, 16  ;;  %v1558_v6 = vsel %vm1065_vm4, %v1548_v58, %v1557_v21  ;;  %v1583_v31 = vrot.slane %v1581_v18, 4 }
  0xcf   : > { %12689 = vmatprep.mubr.msk.bf16.mxu0 %vm253_vm1, %v15124_v26  ;;  %v14417_v26 = vld [vmem:[%s19107_s1 + $0xa0] sm:$0xff]   ;;  %v1590_v58 = vshll.u32 %v11175_v20, 16  ;;  %v11177_v18 = vcombine.low %v15385_v14, %v15406_v36  ;;  %v19212_v14 = vcombine.low %v15416_v49, %v15419_v41 }
  0xd0   : > { %13054 = vmatmul.mubr.msk.bf16.vlgmr.msra.gmra.mrb[80].mxu1 %vm253_vm1, %v15481_v40  ;;  %v1574_v2 = vrot.slane %v1572_v23, 4  ;;  %v1584_v21 = vor.u32 %v1583_v31, %v1580_v50  ;;  %v1589_v23 = vrot.slane %v1587_v25, 3  ;;  %v15563_v25 = vld [vmem:[%s19107_s1 + $0xa0] sm:$0xff]  }
  0xd1   : > { %13057 = vmatprep.mubr.msk.bf16.mxu1 %vm14593_vm0, %v19155_v3  ;;  %13074 = vmatpush3.bf16.msra.mxu1 %v14417_v26  ;;  %v1592_v20 = vrot.slane %v1590_v58, 4 }
  0xd2   : > { %13075 = vmatprep.subr.bf16.mxu1 %v19155_v3  ;;  %v1575_v26 = vor.u32 %v1574_v2, %v1571_v60 }
  0xd4   : > { %v1576_v60 = vsel %vm1065_vm4, %v1566_v44, %v1575_v26  ;;  %v1585_v2 = vsel %vm1065_vm4, %v1575_v26, %v1584_v21  ;;  %v1605_v44 = vshrl.u32 %v11177_v18, 16 }
  0xd5   : > { %13076 = vmatpush3.bf16.msra.mxu1 %v14420_v42  ;;  %v11178_v42 = vcombine.low %v15412_v7, %v15416_v49 }
  0xd6   : > { %12690 = vmatmul.mubr.msk.bf16.gmra.mrb[28].mxu0 %vm253_vm1, %v1142_v17  ;;  %v11176_v17 = vcombine.low %v15378_v35, %v15382_v24  ;;  %13077 = vmatprep.subr.bf16.mxu1 %v19155_v3 }
  0xd7   : > { %12701 = vmatprep.mubr.msk.bf16.mxu0 %vm253_vm1, %v1549_v39  ;;  %v1614_v31 = vshrl.u32 %v11178_v42, 16 }
  0xd8   : > { %13058 = vmatmul.mubr.msk.bf16.gmra.mrb[84].mxu1 %vm253_vm1, %v15505_v33  ;;  %v1596_v39 = vshrl.u32 %v11176_v17, 16  ;;  %v1599_v1 = vshll.u32 %v11176_v17, 16  ;;  %v1593_v17 = vor.u32 %v1592_v20, %v1589_v23 }
  0xd9   : > { %13061 = vmatprep.mubr.msk.bf16.mxu1 %vm14593_vm0, %v19155_v3  ;;  %13078 = vmatpush3.bf16.msra.mxu1 %v14422_v0  ;;  %v1617_v0 = vshll.u32 %v11178_v42, 16  ;;  %v1616_v42 = vrot.slane %v1614_v31, 3  ;;  %v5227_v31 = vshll.u32 %v15505_v33, 16 }
  0xda   : > { %13079 = vmatprep.subr.bf16.mxu1 %v19155_v3  ;;  %v1601_v50 = vrot.slane %v1599_v1, 4 }
  0xdd   : > { %13080 = vmatpush3.bf16.msra.mxu1 %v14425_v4  ;;  %v1607_v4 = vrot.slane %v1605_v44, 3 }
  0xde   : > { %12702 = vmatmul.mubr.msk.bf16.vlgmr.msra.gmra.mrb[0].mxu0 %vm253_vm1, %v1558_v6  ;;  %v1598_v6 = vrot.slane %v1596_v39, 3  ;;  %13101 = vmatprep.subr.bf16.mxu1 %v19155_v3  ;;  %v15567_v39 = vcombine.low %v15315_v46, %v15366_v43 }
  0xdf   : > { %12734 = vmatpush3.bf16.msra.mxu0 %v15356_v45  ;;  %12705 = vmatprep.mubr.msk.bf16.mxu0 %vm253_vm1, %v1567_v56  ;;  %v15536_v45 = vcombine.low %v15284_v47, %v15312_v62  ;;  %v14412_v47 = vld [vmem:[%s19107_s1 + $0x98] sm:$0xff]   ;;  %v11179_v62 = vcombine.low %v15419_v41, %v15532_v13  ;;  %v15558_v56 = vld [vmem:[%s14653_s8 + $0x60] sm:$0xf] }
  0xe0   : > { %12735 = vmatprep.subr.bf16.mxu0 %v14395_v10  ;;  %v1602_v58 = vor.u32 %v1601_v50, %v1598_v6  ;;  %v11180_v1 = vcombine.low %v15558_v56, %v15446_v53  ;;  %v15578_v6 = vld [vmem:[%s14653_s8 + $0x6c] sm:$0xf] }
  0xe1   : > { %13062 = vmatmul.mubr.msk.bf16.gmra.mrb[88].mxu1 %vm253_vm1, %v15536_v45  ;;  %v1623_v26 = vshrl.u32 %v11179_v62, 16  ;;  %v1626_v20 = vshll.u32 %v11179_v62, 16  ;;  %v15588_v62 = vld [vmem:[%s14653_s8 + $0x74] sm:$0xf] }
  0xe2   : > { %13065 = vmatprep.mubr.msk.bf16.mxu1 %vm14593_vm0, %v19155_v3  ;;  %v1632_v43 = vshrl.u32 %v11180_v1, 16 }
  0xe3   : > { %12736 = vmatpush3.bf16.msra.mxu0 %v14395_v10  ;;  %v1608_v10 = vshll.u32 %v11177_v18, 16  ;;  %v1603_v18 = vsel %vm1065_vm4, %v1593_v17, %v1602_v58  ;;  %v1625_v46 = vrot.slane %v1623_v26, 3 }
  0xe4   : > { %12737 = vmatprep.subr.bf16.mxu0 %v14404_v54 }
  0xe5   : > { %v1610_v23 = vrot.slane %v1608_v10, 4  ;;  %v1628_v10 = vrot.slane %v1626_v20, 4 }
  0xe6   : > { %12706 = vmatmul.mubr.msk.bf16.gmra.mrb[4].mxu0 %vm253_vm1, %v1576_v60  ;;  %v1619_v60 = vrot.slane %v1617_v0, 4  ;;  %v5221_v0 = vshrl.u32 %v15481_v40, 16 }
  0xe7   : > { %12709 = vmatprep.mubr.msk.bf16.mxu0 %vm253_vm1, %v1585_v2  ;;  %12738 = vmatpush3.bf16.msra.mxu0 %v14404_v54  ;;  %v1594_v54 = vsel %vm1065_vm4, %v1584_v21, %v1593_v17  ;;  %v1635_v21 = vshll.u32 %v11180_v1, 16  ;;  %v5223_v2 = vshll.u32 %v15481_v40, 16  ;;  %v1611_v50 = vor.u32 %v1610_v23, %v1607_v4 }
  0xe8   : > { %12739 = vmatprep.subr.bf16.mxu0 %v14412_v47  ;;  %v1620_v44 = vor.u32 %v1619_v60, %v1616_v42  ;;  %v11483_v17 = vcombine.low %v15369_v16, %v15369_v16  ;;  %v11181_v4 = vcombine.low %v15449_v11, %v15578_v6  ;;  %v5229_v16 = vrot.slane %v5227_v31, 1  ;;  %v15615_v31 = vld [vmem:[%s14653_s8 + $0x84] sm:$0xf] }
  0xe9   : > { %13066 = vmatmul.mubr.msk.bf16.gmra.mrb[92].mxu1 %vm253_vm1, %v15567_v39  ;;  %v5225_v26 = vrot.slane %v5223_v2, 1  ;;  %v1612_v1 = vsel %vm1065_vm4, %v1602_v58, %v1611_v50  ;;  %v1637_v52 = vrot.slane %v1635_v21, 4  ;;  %v1629_v58 = vor.u32 %v1628_v10, %v1625_v46  ;;  %v15606_v2 = vld [vmem:[%s14653_s8 + $0x78] sm:$0xf] }
  0xea   : > { %13069 = vmatprep.mubr.msk.bf16.mxu1 %vm14593_vm0, %v19155_v3  ;;  %v1621_v23 = vsel %vm1065_vm4, %v1611_v50, %v1620_v44  ;;  %v1641_v42 = vshrl.u32 %v11181_v4, 16  ;;  %v1644_v60 = vshll.u32 %v11181_v4, 16  ;;  %v15609_v50 = vld [vmem:[%s14653_s8 + $0x7c] sm:$0xf]  ;;  %v5234_v46 = vshll.u32 %v15536_v45, 16  ;;  %v14435_v4 = vld [vmem:[%s19107_s1 + $0xc0] sm:$0xff]  }
  0xeb   : > { %12740 = vmatpush3.bf16.msra.mxu0 %v14412_v47  ;;  %v15585_v47 = vld [vmem:[%s14653_s8 + $0x70] sm:$0xf]  ;;  %v5226_v40 = vor.u32 %v5225_v26, %v5221_v0  ;;  %v5231_v0 = vshrl.u32 %v15505_v33, 16  ;;  %v1630_v10 = vsel %vm1065_vm4, %v1620_v44, %v1629_v58 }
  0xec   : > { %12773 = vmatprep.subr.bf16.mxu0 %v15563_v25  ;;  %v1643_v26 = vrot.slane %v1641_v42, 3 }
  0xed   : > { %v5233_v44 = vor.u32 %v5231_v0, %v5229_v16  ;;  %v5238_v0 = vshrl.u32 %v15536_v45, 16 }
  0xee   : > { %12710 = vmatmul.mubr.msk.bf16.gmra.mrb[8].mxu0 %vm253_vm1, %v1594_v54  ;;  %v1634_v54 = vrot.slane %v1632_v43, 3 }
  0xef   : > { %12713 = vmatprep.mubr.msk.bf16.mxu0 %vm253_vm1, %v1603_v18  ;;  %v11182_v18 = vcombine.low %v15585_v47, %v15588_v62 }
  0xf0   : > { %v1638_v20 = vor.u32 %v1637_v52, %v1634_v54  ;;  %v1646_v52 = vrot.slane %v1644_v60, 4  ;;  %v11183_v54 = vcombine.low %v15606_v2, %v15609_v50 }
  0xf1   : > { %13070 = vmatmul.mubr.msk.bf16.gmra.mrb[96].mxu1 %vm253_vm1, %v11483_v17  ;;  %v1650_v43 = vshrl.u32 %v11182_v18, 16  ;;  %v1653_v21 = vshll.u32 %v11182_v18, 16  ;;  %v15612_v17 = vld [vmem:[%s14653_s8 + $0x80] sm:$0xf] }
  0xf2   : > { %13081 = vmatprep.mubr.msk.bf16.mxu1 %vm14593_vm0, %v19155_v3  ;;  %v11184_v33 = vcombine.low %v15612_v17, %v15615_v31  ;;  %v1647_v42 = vor.u32 %v1646_v52, %v1643_v26  ;;  %v1659_v60 = vshrl.u32 %v11183_v54, 16 }
  0xf3   : > { %v1652_v18 = vrot.slane %v1650_v43, 3  ;;  %v1655_v22 = vrot.slane %v1653_v21, 4  ;;  %v14438_v43 = vld [vmem:[%s19107_s1 + $0xc8] sm:$0xff]  }
  0xf4   : > { %v1668_v28 = vshrl.u32 %v11184_v33, 16  ;;  %v1661_v26 = vrot.slane %v1659_v60, 3 }
  0xf5   : > { %v1656_v21 = vor.u32 %v1655_v22, %v1652_v18  ;;  %v11185_v22 = vcombine.low %v15638_v51, %v15638_v51 }
  0xf6   : > { %12714 = vmatmul.mubr.msk.bf16.gmra.mrb[12].mxu0 %vm253_vm1, %v1612_v1  ;;  %v5230_v1 = vsel %vm2365_vm5, %v5226_v40, %v5229_v16  ;;  %v5236_v40 = vrot.slane %v5234_v46, 1  ;;  %v5241_v46 = vshll.u32 %v15567_v39, 16 }
  0xf7   : > { %12717 = vmatprep.mubr.msk.bf16.mxu0 %vm253_vm1, %v1621_v23  ;;  %v1639_v23 = vsel %vm1065_vm4, %v1629_v58, %v1638_v20  ;;  %v1662_v58 = vshll.u32 %v11183_v54, 16  ;;  %v14439_v54 = vld [vmem:[%s19107_s1 + $0xd0] sm:$0xff]   ;;  %v1677_v60 = vshrl.u32 %v11185_v22, 16 }
  0xf8   : > { %v5237_v16 = vsel %vm2365_vm5, %v5233_v44, %v5236_v40  ;;  %v5240_v45 = vor.u32 %v5238_v0, %v5236_v40  ;;  %v5245_v40 = vshrl.u32 %v15567_v39, 16 }
  0xf9   : > { %13082 = vmatmul.mubr.msk.bf16.vlgmr.msra.gmra.mrb[100].mxu1 %vm253_vm1, %v5230_v1  ;;  %v1671_v1 = vshll.u32 %v11184_v33, 16  ;;  %v1664_v52 = vrot.slane %v1662_v58, 4  ;;  %v14434_v33 = vld [vmem:[%s14653_s8 + $0xac] ss:$0 sps:$4 sm:$0x77]   ;;  %v1680_v58 = vshll.u32 %v11185_v22, 16 }
  0xfa   : > { %13085 = vmatprep.mubr.msk.bf16.mxu1 %vm14593_vm0, %v19155_v3  ;;  %13102 = vmatpush3.bf16.msra.mxu1 %v14435_v4  ;;  %v1657_v4 = vsel %vm1065_vm4, %v1647_v42, %v1656_v21  ;;  %v1679_v0 = vrot.slane %v1677_v60, 3  ;;  %v15674_v22 = vld [vmem:[%s14653_s8 + $0x98] sm:$0xf] }
  0xfb   : > { %13103 = vmatprep.subr.bf16.mxu1 %v19155_v3  ;;  %v1673_v18 = vrot.slane %v1671_v1, 4  ;;  %v1665_v44 = vor.u32 %v1664_v52, %v1661_v26  ;;  %v5249_v1 = vshll.u32 %v14434_v33, 16  ;;  %v5376_v52 = vld [vmem:[%s14653_s8 + $0x94] sm:$0xf] }
  0xfd   : > { %v5251_v26 = vrot.slane %v5249_v1, 1  ;;  %v15735_v1 = vld [vmem:[%s14653_s8 + $0xac] sm:$0xff]  }
  0xfe   : > { %12718 = vmatmul.mubr.msk.bf16.gmra.mrb[16].mxu0 %vm253_vm1, %v1630_v10  ;;  %v1648_v10 = vsel %vm1065_vm4, %v1638_v20, %v1647_v42  ;;  %13104 = vmatpush3.bf16.msra.mxu1 %v14438_v43  ;;  %v5243_v20 = vrot.slane %v5241_v46, 1  ;;  %v1682_v46 = vrot.slane %v1680_v58, 4  ;;  %v5440_v8 = vshll.u32 %v15735_v1, 16 }
  0xff   : > { %12721 = vmatprep.mubr.msk.bf16.mxu0 %vm253_vm1, %v1639_v23  ;;  %v1670_v23 = vrot.slane %v1668_v28, 3  ;;  %13105 = vmatprep.subr.bf16.mxu1 %v19155_v3  ;;  %v14443_v28 = vld [vmem:[%s19107_s1 + $0xd8] sm:$0xff]  }
 0x100   : > { %v5244_v43 = vsel %vm2365_vm5, %v5240_v45, %v5243_v20  ;;  %v5247_v39 = vor.u32 %v5245_v40, %v5243_v20  ;;  %v15684_v45 = vld [vmem:[%s14653_s8 + $0x9c] sm:$0xff]  }
 0x101   : > { %13086 = vmatmul.mubr.msk.bf16.gmra.mrb[104].mxu1 %vm253_vm1, %v5237_v16  ;;  %v1674_v42 = vor.u32 %v1673_v18, %v1670_v23  ;;  %v1666_v16 = vsel %vm1065_vm4, %v1656_v21, %v1665_v44  ;;  %v1683_v21 = vor.u32 %v1682_v46, %v1679_v0  ;;  %v5253_v18 = vshrl.u32 %v14434_v33, 16  ;;  %v14428_v33 = vld [vmem:[%s19107_s1 + $0xa8] sm:$0xff]   ;;  %v15770_v46 = vld [vmem:[%s14653_s8 + $0xb4] ss:$0 sps:$4 sm:$0x77]  }
 0x102   : > { %13089 = vmatprep.mubr.msk.bf16.mxu1 %vm14593_vm0, %v19155_v3  ;;  %13106 = vmatpush3.bf16.msra.mxu1 %v14439_v54  ;;  %v5252_v54 = vsel %vm2365_vm5, %v5247_v39, %v5251_v26  ;;  %v5442_v0 = vrot.slane %v5440_v8, 1  ;;  %v19211_v39 = vcombine.low %v15406_v36, %v15412_v7  ;;  %v5452_v24 = vshrl.u32 %v15770_v46, 16  ;;  %v5575_v36 = vld [vmem:[%s14653_s8 + $0x94] sm:$0xe] }
 0x103   : > { %13107 = vmatprep.subr.bf16.mxu1 %v19155_v3  ;;  %v1684_v23 = vsel %vm1065_vm4, %v1674_v42, %v1683_v21  ;;  %v11224_v21 = vcombine.low %v15532_v13, %v15558_v56  ;;  %v14594_v7 = vmov 0   ;;  %v15814_v41 = vcombine.low %v5575_v36, %v15674_v22  ;;  %v14449_v56 = vld [vmem:[%s14653_s8 + $0xc] sm:$0xff]  }
 0x104   : > { %14323 = vset.pattern.permute.xlu1 %v14594_v7  ;;  %254 = vst.msk [vmem:[#allocation2] sm:$0xff] %vm253_vm1, %v14594_v7  ;;  %259 = vst.msk [vmem:[#allocation2 + $0xb0] sm:$0xff] %vm253_vm1, %v14594_v7  ;;  %14322 = vset.pattern.permute.xlu0 %v14594_v7  ;;  %v11226_v13 = vcombine.low %v15578_v6, %v15585_v47  ;;  %v5588_v47 = vrot.slane %v15684_v45, 1 }
 0x105   : > { %256 = vst.msk [vmem:[#allocation2 + $0x8] sm:$0xf] %vm255_vm6, %v14594_v7  ;;  %v5587_v6 = vrot.slane %v15814_v41, 1 }
 0x106   : > { %12722 = vmatmul.mubr.msk.bf16.gmra.mrb[20].mxu0 %vm253_vm1, %v1648_v10  ;;  %13108 = vmatpush3.bf16.msra.mxu1 %v14443_v28  ;;  %v1675_v10 = vsel %vm1065_vm4, %v1665_v44, %v1674_v42  ;;  %v5255_v44 = vor.u32 %v5253_v18, %v5251_v26  ;;  %v5424_v28 = vshll.u32 %v15684_v45, 16  ;;  %v19209_v42 = vcombine.low %v15141_v32, %v15144_v15  ;;  %v14433_v32 = vld [vmem:[%s19107_s1 + $0xb0] sm:$0xff]  }
 0x107   : > { %12725 = vmatprep.mubr.msk.bf16.mxu0 %vm253_vm1, %v1657_v4  ;;  %13129 = vmatprep.subr.bf16.mxu1 %v19155_v3  ;;  %v11519_v4 = vcombine.low %v5376_v52, %v15674_v22  ;;  %258 = vst.msk [vmem:[#allocation2 + $0xa8] sm:$0xc0] %vm257_vm7, %v14594_v7  ;;  %v4057_v52 = vld [vmem:[%s19111_s5 + $0x28] sm:$0xff]  ;;  %v14450_v22 = vld [vmem:[%s14653_s8 + $0x14] sm:$0xff]   ;;  %v11227_v18 = vcombine.low %v15588_v62, %v15606_v2  ;;  %v4060_v62 = vld [vmem:[%s19111_s5 + $0x40] sm:$0xff] }
 0x108   : > { %v5426_v57 = vrot.slane %v5424_v28, 1  ;;  %4099 = vperm.xlu1 %14323, %v4057_v52   ;;  %v14451_v2 = vld [vmem:[%s14653_s8 + $0x1c] sm:$0xff]  }
 0x109   : > { %13090 = vmatmul.mubr.msk.bf16.gmra.mrb[108].mxu1 %vm253_vm1, %v5244_v43  ;;  %v5419_v20 = vshll.u32 %v11519_v4, 16  ;;  %v5417_v60 = vshrl.u32 %v11519_v4, 16  ;;  %v5428_v43 = vshrl.u32 %v15684_v45, 16  ;;  %v19213_v4 = vcombine.low %v15446_v53, %v15449_v11  ;;  %v4058_v53 = vld [vmem:[%s19111_s5 + $0x30] sm:$0xff]  ;;  %v4056_v11 = vld [vmem:[%s19111_s5 + $0x20] sm:$0xff] }
 0x10a   : > { %13093 = vmatprep.mubr.msk.bf16.mxu1 %vm14593_vm0, %v19155_v3  ;;  %v16056_v45 = vld [vmem:[%s14653_s8 + $0x4c] sm:$0xff]  }
 0x10b   : > { %v5421_v58 = vrot.slane %v5419_v20, 1  ;;  %v5589_v20 = vsel %vm3298_vm8, %v5587_v6, %v5588_v47  ;;  %v4065_v6 = vld [vmem:[%s19111_s5 + $0x68] sm:$0xff] }
 0x10c   : > { %4104 = vperm.xlu1 %14323, %v4058_v53  }
 0x10d   : > { %v5422_v34 = vor.u32 %v5421_v58, %v5417_v60  ;;  %v14475_v60 = vld [vmem:[%s19107_s1 + $0x100] sm:$0xff]   ;;  %v2367_v58 = vshrl.u32 %v14449_v56, 16 }
 0x10e   : > { %12726 = vmatmul.mubr.msk.bf16.gmra.mrb[24].mxu0 %vm253_vm1, %v1666_v16 }
 0x10f   : > { %12729 = vmatprep.mubr.msk.bf16.mxu0 %vm253_vm1, %v1675_v10  ;;  %v5427_v15 = vsel %vm2365_vm5, %v5422_v34, %v5426_v57  ;;  %v5448_v10 = vshll.u32 %v15770_v46, 16  ;;  %v14478_v34 = vld [vmem:[%s19107_s1 + $0x108] sm:$0xff]  }
 0x110   : > { %4114 = vperm.xlu1 %14323, %v4060_v62   ;;  %v5594_v62 = vrot.slane %v15770_v46, 1  ;;  %v4075_v46 = vld [vmem:[%s19111_s5 + $0xb8] sm:$0xff] }
 0x111   : > { %13094 = vmatmul.mubr.msk.bf16.gmra.mrb[112].mxu1 %vm253_vm1, %v5252_v54  ;;  %v4055_v54 = vld [vmem:[%s19111_s5 + $0x18] sm:$0xff] }
 0x112   : > { %13097 = vmatprep.mubr.msk.bf16.mxu1 %vm14593_vm0, %v19155_v3  ;;  %4089 = vperm.xlu0 %14322, %v4055_v54  }
 0x116   : > { %12730 = vmatmul.mubr.msk.bf16.gmra.mrb[28].mxu0 %vm253_vm1, %v1684_v23  ;;  %v2369_v23 = vshll.u32 %v14449_v56, 16  ;;  %4094 = vperm.xlu0 %14322, %v4056_v11   ;;  %v4066_v56 = vld [vmem:[%s19111_s5 + $0x70] sm:$0xff] }
 0x117   : > { %12741 = vmatprep.mubr.msk.bf16.mxu0 %vm253_vm1, %v11214_v61  ;;  %v15704_v61 = vld [vmem:[%s14653_s8 + $0xa4] sm:$0xff]  }
 0x118   : > { %v5432_v40 = vshll.u32 %v15704_v61, 16  ;;  %v5436_v63 = vshrl.u32 %v15704_v61, 16 }
 0x119   : > { %13098 = vmatmul.mubr.msk.bf16.gmra.mrb[116].mxu1 %vm253_vm1, %v5255_v44  ;;  %v11228_v44 = vcombine.low %v15609_v50, %v15612_v17  ;;  %v5590_v50 = vrot.slane %v15704_v61, 1  ;;  %v4059_v17 = vld [vmem:[%s19111_s5 + $0x38] sm:$0xff] }
 0x11a   : > { %13109 = vmatprep.mubr.msk.bf16.mxu1 %vm14593_vm0, %v19155_v3  ;;  %4109 = vperm.xlu0 %14322, %v4059_v17  }
 0x11e   : > { %12742 = vmatmul.mubr.msk.bf16.vlgmr.msra.gmra.mrb[0].mxu0 %vm253_vm1, %v19209_v42  ;;  %v2374_v42 = vshll.u32 %v14450_v22, 16 }
 0x11f   : > { %12774 = vmatpush3.bf16.msra.mxu0 %v15563_v25  ;;  %12745 = vmatprep.mubr.msk.bf16.mxu0 %vm253_vm1, %v11216_v29  ;;  %v5430_v29 = vor.u32 %v5428_v43, %v5426_v57  ;;  %v5434_v25 = vrot.slane %v5432_v40, 1 }
 0x120   : > { %12775 = vmatprep.subr.bf16.mxu0 %v14428_v33 }
 0x121   : > { %13110 = vmatmul.mubr.msk.bf16.vlgmr.msra.gmra.mrb[120].mxu1 %vm253_vm1, %v5427_v15  ;;  %v5438_v16 = vor.u32 %v5436_v63, %v5434_v25  ;;  %v15867_v15 = vld [vmem:[%s14653_s8 + $0x24] sm:$0xff]  }
 0x122   : > { %13113 = vmatprep.mubr.msk.bf16.mxu1 %vm14593_vm0, %v19155_v3  ;;  %13130 = vmatpush3.bf16.msra.mxu1 %v14457_v5  ;;  %v11229_v5 = vcombine.low %v15615_v31, %v15638_v51  ;;  %v15886_v51 = vld [vmem:[%s14653_s8 + $0x1c] sm:$0xff]   ;;  %v15890_v31 = vld [vmem:[%s14653_s8 + $0x24] sm:$0xff]  }
 0x123   : > { %12776 = vmatpush3.bf16.msra.mxu0 %v14428_v33  ;;  %13131 = vmatprep.subr.bf16.mxu1 %v19155_v3  ;;  %v5443_v12 = vsel %vm2365_vm5, %v5438_v16, %v5442_v0  ;;  %v2371_v33 = vrot.slane %v2369_v23, 1  ;;  %v3302_v36 = vrot.slane %v15890_v31, 1 }
 0x124   : > { %12777 = vmatprep.subr.bf16.mxu0 %v14433_v32 }
 0x125   : > { %v2372_v57 = vor.u32 %v2371_v33, %v2367_v58  ;;  %v4068_v33 = vld [vmem:[%s19111_s5 + $0x80] sm:$0xff] }
 0x126   : > { %12746 = vmatmul.mubr.msk.bf16.gmra.mrb[4].mxu0 %vm253_vm1, %v11217_v55  ;;  %v5435_v55 = vsel %vm2365_vm5, %v5430_v29, %v5434_v25  ;;  %13132 = vmatpush3.bf16.msra.mxu1 %v14461_v27  ;;  %v2382_v29 = vshll.u32 %v14451_v2, 16  ;;  %v5591_v25 = vsel %vm3298_vm8, %v5588_v47, %v5590_v50  ;;  %v4061_v27 = vld [vmem:[%s19111_s5 + $0x48] sm:$0xff] }
 0x127   : > { %12749 = vmatprep.mubr.msk.bf16.mxu0 %vm253_vm1, %v11218_v38  ;;  %12778 = vmatpush3.bf16.msra.mxu0 %v14433_v32  ;;  %v14462_v38 = vld [vmem:[%s19107_s1 + $0xf0] sm:$0xff]   ;;  %v2376_v32 = vrot.slane %v2374_v42, 1 }
 0x128   : > { %12779 = vmatprep.subr.bf16.mxu0 %v14442_v59  ;;  %13133 = vmatprep.subr.bf16.mxu1 %v19155_v3 }
 0x129   : > { %13114 = vmatmul.mubr.msk.bf16.gmra.mrb[124].mxu1 %vm253_vm1, %v5435_v55  ;;  %v2378_v55 = vshrl.u32 %v14450_v22, 16  ;;  %v2377_v16 = vsel %vm2365_vm5, %v2372_v57, %v2376_v32  ;;  %4119 = vperm.xlu0 %14322, %v4061_v27   ;;  %v2394_v22 = vshrl.u32 %v15867_v15, 16 }
 0x12a   : > { %13117 = vmatprep.mubr.msk.bf16.mxu1 %vm14593_vm0, %v19155_v3  ;;  %13134 = vmatpush3.bf16.msra.mxu1 %v14462_v38  ;;  %v14479_v38 = vld [vmem:[%s19107_s1 + $0x110] sm:$0xff]  }
 0x12b   : > { %12780 = vmatpush3.bf16.msra.mxu0 %v14442_v59  ;;  %13135 = vmatprep.subr.bf16.mxu1 %v19155_v3  ;;  %v4062_v59 = vld [vmem:[%s19111_s5 + $0x50] sm:$0xff] }
 0x12c   : > { %12813 = vmatprep.subr.bf16.mxu0 %v15744_v9  ;;  %4124 = vperm.xlu1 %14323, %v4062_v59  }
 0x12e   : > { %12750 = vmatmul.mubr.msk.bf16.gmra.mrb[8].mxu0 %vm253_vm1, %v11219_v30  ;;  %v5444_v30 = vshrl.u32 %v15735_v1, 16  ;;  %13136 = vmatpush3.bf16.msra.mxu1 %v14465_v19  ;;  %v2390_v19 = vshll.u32 %v15867_v15, 16 }
 0x12f   : > { %12753 = vmatprep.mubr.msk.bf16.mxu0 %vm253_vm1, %v11220_v48  ;;  %13157 = vmatprep.subr.bf16.mxu1 %v19155_v3  ;;  %v5450_v48 = vrot.slane %v5448_v10, 1  ;;  %v2384_v10 = vrot.slane %v2382_v29, 1  ;;  %v14469_v29 = vld [vmem:[%s19107_s1 + $0xd0] sm:$0xff]  }
 0x130   : > { %v5446_v35 = vor.u32 %v5444_v30, %v5442_v0  ;;  %v2386_v0 = vshrl.u32 %v14451_v2, 16  ;;  %v4067_v2 = vld [vmem:[%s19111_s5 + $0x78] sm:$0xff] }
 0x131   : > { %13118 = vmatmul.mubr.msk.bf16.gmra.mrb[128].mxu1 %vm253_vm1, %v5443_v12  ;;  %v5454_v49 = vor.u32 %v5452_v24, %v5450_v48  ;;  %v4064_v12 = vld [vmem:[%s19111_s5 + $0x60] sm:$0xff]  ;;  %v14484_v24 = vld [vmem:[%s19107_s1 + $0x118] sm:$0xff]  }
 0x132   : > { %13121 = vmatprep.mubr.msk.bf16.mxu1 %vm14593_vm0, %v19155_v3  ;;  %v5451_v26 = vsel %vm2365_vm5, %v5446_v35, %v5450_v48  ;;  %v5592_v35 = vrot.slane %v15735_v1, 1  ;;  %v4063_v48 = vld [vmem:[%s19111_s5 + $0x58] sm:$0xff]  ;;  %v2388_v7 = vor.u32 %v2386_v0, %v2384_v10  ;;  %4134 = vperm.xlu1 %14323, %v4064_v12   ;;  %v4081_v1 = vld [vmem:[%s19111_s5 + $0xe8] sm:$0xff] }
 0x133   : > { %4129 = vperm.xlu0 %14322, %v4063_v48  }
 0x134   : > { %v5595_v0 = vsel %vm3298_vm8, %v5592_v35, %v5594_v62 }
 0x136   : > { %12754 = vmatmul.mubr.msk.bf16.gmra.mrb[12].mxu0 %vm253_vm1, %v19210_v37  ;;  %v14455_v37 = vld [vmem:[%s14653_s8 + $0x2c] sm:$0xff]   ;;  %4144 = vperm.xlu1 %14323, %v4066_v56  }
 0x137   : > { %12757 = vmatprep.mubr.msk.bf16.mxu0 %vm253_vm1, %v19211_v39  ;;  %v15903_v39 = vpop.f32.mrb[0].mxu1  ;;  %v2398_v54 = vshll.u32 %v14455_v37, 16  ;;  %v2402_v53 = vshrl.u32 %v14455_v37, 16  ;;  %4139 = vperm.xlu0 %14322, %v4065_v6   ;;  %v5729_v6 = vshrl.u32 %v15814_v41, 16 }
 0x139   : > { %13122 = vmatmul.mubr.msk.bf16.gmra.mrb[132].mxu1 %vm253_vm1, %v5451_v26  ;;  %v3300_v26 = vrot.slane %v15886_v51, 1  ;;  %v2400_v42 = vrot.slane %v2398_v54, 1  ;;  %v4072_v54 = vld [vmem:[%s19111_s5 + $0xa0] sm:$0xff] }
 0x13a   : > { %13125 = vmatprep.mubr.msk.bf16.mxu1 %vm14593_vm0, %v19155_v3  ;;  %4154 = vperm.xlu1 %14323, %v4068_v33  }
 0x13b   : > { %v15921_v52 = vsel %vm3298_vm8, %v3300_v26, %v3302_v36  ;;  %v2404_v15 = vor.u32 %v2402_v53, %v2400_v42  ;;  %4149 = vperm.xlu0 %14322, %v4067_v2   ;;  %v16023_v2 = vld [vmem:[%s14653_s8 + $0x54] sm:$0xff]  }
 0x13e   : > { %12758 = vmatmul.mubr.msk.bf16.gmra.mrb[16].mxu0 %vm253_vm1, %v19212_v14  ;;  %v12943_v14 = vpop.f32.mrb[1].mxu1 }
 0x13f   : > { %12761 = vmatprep.mubr.msk.bf16.mxu0 %vm253_vm1, %v11224_v21  ;;  %v2380_v21 = vor.u32 %v2378_v55, %v2376_v32  ;;  %v15944_v58 = vpop.f32.mrb[2].mxu1  ;;  %v4070_v55 = vld [vmem:[%s19111_s5 + $0x90] sm:$0xff]  ;;  %v14474_v14 = vld [vmem:[%s19107_s1 + $0xd8] sm:$0xff]  }
 0x140   : > { %4164 = vperm.xlu1 %14323, %v4070_v55  }
 0x141   : > { %13126 = vmatmul.mubr.msk.bf16.gmra.mrb[136].mxu1 %vm253_vm1, %v5454_v49  ;;  %v2392_v49 = vrot.slane %v2390_v19, 1  ;;  %v2385_v47 = vsel %vm2365_vm5, %v2380_v21, %v2384_v10  ;;  %v4069_v19 = vld [vmem:[%s19111_s5 + $0x88] sm:$0xff] }
 0x142   : > { %13137 = vmatprep.mubr.msk.bf16.mxu1 %vm14593_vm0, %v19155_v3  ;;  %4159 = vperm.xlu0 %14322, %v4069_v19  }
 0x143   : > { %v2393_v23 = vsel %vm2365_vm5, %v2388_v7, %v2392_v49  ;;  %v2396_v17 = vor.u32 %v2394_v22, %v2392_v49  ;;  %v4071_v22 = vld [vmem:[%s19111_s5 + $0x98] sm:$0xff] }
 0x144   : > { %4174 = vperm.xlu1 %14323, %v4072_v54  }
 0x145   : > { %v2401_v10 = vsel %vm2365_vm5, %v2396_v17, %v2400_v42 }
 0x146   : > { %12762 = vmatmul.mubr.msk.bf16.gmra.mrb[20].mxu0 %vm253_vm1, %v19213_v4  ;;  %v5593_v4 = vsel %vm3298_vm8, %v5590_v50, %v5592_v35  ;;  %v12944_v50 = vpop.f32.mrb[3].mxu1  ;;  %4169 = vperm.xlu0 %14322, %v4071_v22  }
 0x147   : > { %12765 = vmatprep.mubr.msk.bf16.mxu0 %vm253_vm1, %v11226_v13  ;;  %v15912_v13 = vld [vmem:[%s14653_s8 + $0x34] sm:$0xff]  }
 0x148   : > { %v2406_v11 = vshll.u32 %v15912_v13, 16  ;;  %v2410_v37 = vshrl.u32 %v15912_v13, 16  ;;  %v16001_v13 = vld [vmem:[%s14653_s8 + $0x44] sm:$0xff]  }
 0x149   : > { %13138 = vmatmul.mubr.msk.bf16.vlgmr.msra.gmra.mrb[140].mxu1 %vm253_vm1, %v5589_v20  ;;  %v14460_v20 = vld [vmem:[%s19107_s1 + $0xc8] sm:$0xff]  }
 0x14a   : > { %13141 = vmatprep.mubr.msk.bf16.mxu1 %vm14593_vm0, %v19155_v3  ;;  %13158 = vmatpush3.bf16.msra.mxu1 %v14475_v60  ;;  %v15942_v60 = vld [vmem:[%s14653_s8 + $0x34] sm:$0xff]   ;;  %v2408_v59 = vrot.slane %v2406_v11, 1 }
 0x14b   : > { %13159 = vmatprep.subr.bf16.mxu1 %v19155_v3  ;;  %v3306_v32 = vrot.slane %v15942_v60, 1 }
 0x14c   : > { %v2409_v21 = vsel %vm2365_vm5, %v2404_v15, %v2408_v59  ;;  %v2412_v11 = vor.u32 %v2410_v37, %v2408_v59  ;;  %v4074_v59 = vld [vmem:[%s19111_s5 + $0xb0] sm:$0xff] }
 0x14d   : > { %4184 = vperm.xlu1 %14323, %v4074_v59  }
 0x14e   : > { %12766 = vmatmul.mubr.msk.bf16.gmra.mrb[24].mxu0 %vm253_vm1, %v11227_v18  ;;  %13160 = vmatpush3.bf16.msra.mxu1 %v14478_v34  ;;  %v15932_v18 = vld [vmem:[%s14653_s8 + $0x3c] sm:$0xff]   ;;  %v15958_v34 = vpop.f32.mrb[4].mxu1 }
 0x14f   : > { %12769 = vmatprep.mubr.msk.bf16.mxu0 %vm253_vm1, %v11228_v44  ;;  %13161 = vmatprep.subr.bf16.mxu1 %v19155_v3  ;;  %v15939_v44 = vld [vmem:[%s14653_s8 + $0x2c] sm:$0xff]  }
 0x150   : > { %v3304_v57 = vrot.slane %v15939_v44, 1 }
 0x151   : > { %13142 = vmatmul.mubr.msk.bf16.gmra.mrb[144].mxu1 %vm253_vm1, %v5591_v25  ;;  %v2414_v25 = vshll.u32 %v15932_v18, 16 }
 0x152   : > { %13145 = vmatprep.mubr.msk.bf16.mxu1 %vm14593_vm0, %v19155_v3  ;;  %13162 = vmatpush3.bf16.msra.mxu1 %v14479_v38  ;;  %v15975_v38 = vsel %vm3298_vm8, %v3302_v36, %v3304_v57  ;;  %v15997_v36 = vld [vmem:[%s14653_s8 + $0x3c] sm:$0xff]  }
 0x153   : > { %13163 = vmatprep.subr.bf16.mxu1 %v19155_v3  ;;  %v2416_v49 = vrot.slane %v2414_v25, 1  ;;  %v3308_v53 = vrot.slane %v15997_v36, 1  ;;  %v5731_v25 = vrot.slane %v5729_v6, 1  ;;  %v3312_v6 = vrot.slane %v16056_v45, 1 }
 0x155   : > { %v16031_v17 = vsel %vm3298_vm8, %v3306_v32, %v3308_v53  ;;  %v2417_v19 = vsel %vm2365_vm5, %v2412_v11, %v2416_v49 }
 0x156   : > { %12770 = vmatmul.mubr.msk.bf16.gmra.mrb[28].mxu0 %vm253_vm1, %v11229_v5  ;;  %13164 = vmatpush3.bf16.msra.mxu1 %v14484_v24  ;;  %v15963_v5 = vld [vmem:[%s14653_s8 + $0x44] sm:$0xff]   ;;  %v2418_v24 = vshrl.u32 %v15932_v18, 16 }
 0x157   : > { %12781 = vmatprep.mubr.msk.bf16.mxu0 %vm253_vm1, %v2377_v16  ;;  %v15978_v16 = vsel %vm3298_vm8, %v3304_v57, %v3306_v32  ;;  %v2422_v35 = vshll.u32 %v15963_v5, 16  ;;  %v5736_v57 = vrot.slane %v5428_v43, 1  ;;  %v5737_v32 = vrot.slane %v5424_v28, 2  ;;  %v4073_v43 = vld [vmem:[%s19111_s5 + $0xa8] sm:$0xff] }
 0x158   : > { %v2420_v33 = vor.u32 %v2418_v24, %v2416_v49  ;;  %v2438_v24 = vshll.u32 %v16023_v2, 16  ;;  %4179 = vperm.xlu0 %14322, %v4073_v43  }
 0x159   : > { %13146 = vmatmul.mubr.msk.bf16.gmra.mrb[148].mxu1 %vm253_vm1, %v5593_v4  ;;  %v14464_v4 = vld [vmem:[%s14653_s8 + $0x4c] sm:$0xff]   ;;  %v2424_v42 = vrot.slane %v2422_v35, 1  ;;  %v16059_v35 = vld [vmem:[%s14653_s8 + $0x5c] sm:$0xff]  }
 0x15a   : > { %13149 = vmatprep.mubr.msk.bf16.mxu1 %vm14593_vm0, %v19155_v3  ;;  %v2440_v11 = vrot.slane %v2438_v24, 1 }
 0x15b   : > { %v2425_v37 = vsel %vm2365_vm5, %v2420_v33, %v2424_v42  ;;  %v16082_v33 = vld [vmem:[%s14653_s8 + $0x64] sm:$0xff]  }
 0x15c   : > { %4189 = vperm.xlu0 %14322, %v4075_v46   ;;  %v2454_v61 = vshll.u32 %v16082_v33, 16  ;;  %v4079_v46 = vld [vmem:[%s19111_s5 + $0xd8] sm:$0xff] }
 0x15e   : > { %12782 = vmatmul.mubr.msk.bf16.vlgmr.msra.gmra.mrb[0].mxu0 %vm253_vm1, %v2385_v47  ;;  %v5732_v47 = vshll.u32 %v15814_v41, 16  ;;  %v16028_v41 = vld [vmem:[%s19107_s1 + $0xe0] sm:$0xff]  }
 0x15f   : > { %12814 = vmatpush3.bf16.msra.mxu0 %v15744_v9  ;;  %12785 = vmatprep.mubr.msk.bf16.mxu0 %vm253_vm1, %v2393_v23  ;;  %v12947_v9 = vpop.f32.mrb[5].mxu1 }
 0x160   : > { %12815 = vmatprep.subr.bf16.mxu0 %v14460_v20  ;;  %v15969_v27 = vpop.f32.mrb[6].mxu1  ;;  %v2430_v9 = vshll.u32 %v14464_v4, 16  ;;  %v5734_v55 = vrot.slane %v5732_v47, 2 }
 0x161   : > { %v12948_v12 = vpop.f32.mrb[7].mxu1  ;;  %13150 = vmatmul.mubr.msk.bf16.gmra.mrb[152].mxu1 %vm253_vm1, %v5595_v0 }
 0x162   : > { %v15988_v48 = vpop.f32.mrb[8].mxu1  ;;  %13153 = vmatprep.mubr.msk.bf16.mxu1 %vm14593_vm0, %v19155_v3  ;;  %v2426_v12 = vshrl.u32 %v15963_v5, 16  ;;  %v16065_v5 = vld [vmem:[%s14653_s8 + $0x54] sm:$0xff]   ;;  %v2432_v49 = vrot.slane %v2430_v9, 1  ;;  %v5735_v54 = vor.u32 %v5734_v55, %v5731_v25  ;;  %v2446_v9 = vshll.u32 %v16059_v35, 16 }
 0x163   : > { %12816 = vmatpush3.bf16.msra.mxu0 %v14460_v20  ;;  %v12951_v7 = vpop.f32.mrb[9].mxu1  ;;  %v3310_v20 = vrot.slane %v16001_v13, 1  ;;  %v4078_v25 = vld [vmem:[%s19111_s5 + $0xd0] sm:$0xff] }
 0x164   : > { %12817 = vmatprep.subr.bf16.mxu0 %v14469_v29  ;;  %v16003_v56 = vpop.f32.mrb[10].mxu1  ;;  %v4076_v7 = vld [vmem:[%s19111_s5 + $0xc0] sm:$0xff]  ;;  %v2428_v47 = vor.u32 %v2426_v12, %v2424_v42 }
 0x165   : > { %v12952_v23 = vpop.f32.mrb[11].mxu1  ;;  %4194 = vperm.xlu1 %14323, %v4076_v7   ;;  %v16088_v59 = vsel %vm3298_vm8, %v3310_v20, %v3312_v6  ;;  %v16125_v7 = vld [vmem:[%s14653_s8 + $0x64] sm:$0xff]  }
 0x166   : > { %12786 = vmatmul.mubr.msk.bf16.gmra.mrb[4].mxu0 %vm253_vm1, %v2401_v10  ;;  %v16019_v18 = vpop.f32.mrb[12].mxu1  ;;  %v3314_v23 = vrot.slane %v16065_v5, 1  ;;  %v2433_v12 = vsel %vm2365_vm5, %v2428_v47, %v2432_v49 }
 0x167   : > { %12789 = vmatprep.mubr.msk.bf16.mxu0 %vm253_vm1, %v2409_v21  ;;  %12818 = vmatpush3.bf16.msra.mxu0 %v14469_v29  ;;  %v12955_v50 = vpop.f32.mrb[13].mxu1  ;;  %v16041_v29 = vsel %vm3298_vm8, %v3308_v53, %v3310_v20  ;;  %v2434_v21 = vshrl.u32 %v14464_v4, 16  ;;  %v16073_v4 = vor.u32 %v5737_v32, %v5736_v57  ;;  %v5740_v20 = vrot.slane %v5436_v63, 1 }
 0x168   : > { %12819 = vmatprep.subr.bf16.mxu0 %v14474_v14  ;;  %v16035_v15 = vpop.f32.mrb[14].mxu1  ;;  %v16095_v55 = vsel %vm3298_vm8, %v3312_v6, %v3314_v23  ;;  %v5741_v32 = vrot.slane %v5432_v40, 2  ;;  %v2450_v63 = vshrl.u32 %v16059_v35, 16  ;;  %v16115_v40 = vld [vmem:[%s14653_s8 + $0x5c] sm:$0xff]  }
 0x169   : > { %v12956_v0 = vpop.f32.mrb[15].mxu1  ;;  %13154 = vmatmul.mubr.msk.bf16.gmra.mrb[156].mxu1 %vm253_vm1, %v5594_v62  ;;  %v2436_v53 = vor.u32 %v2434_v21, %v2432_v49  ;;  %4204 = vperm.xlu1 %14323, %v4078_v25   ;;  %v4080_v35 = vld [vmem:[%s19111_s5 + $0xe0] sm:$0xff]  ;;  %v2448_v49 = vrot.slane %v2446_v9, 1  ;;  %v3316_v6 = vrot.slane %v16115_v40, 1  ;;  %v2456_v9 = vrot.slane %v2454_v61, 1 }
 0x16a   : > { %v16050_v10 = vpop.f32.mrb[16].mxu1  ;;  %13165 = vmatprep.mubr.msk.bf16.mxu1 %vm14593_vm0, %v19155_v3  ;;  %v4077_v0 = vld [vmem:[%s19111_s5 + $0xc8] sm:$0xff] }
 0x16b   : > { %12820 = vmatpush3.bf16.msra.mxu0 %v14474_v14  ;;  %v12959_v28 = vpop.f32.mrb[17].mxu1  ;;  %v2441_v24 = vsel %vm2365_vm5, %v2436_v53, %v2440_v11  ;;  %4199 = vperm.xlu0 %14322, %v4077_v0   ;;  %v3318_v53 = vrot.slane %v16125_v7, 1 }
 0x16c   : > { %12853 = vmatprep.subr.bf16.mxu0 %v16028_v41  ;;  %v4547_v14 = vpop.f32.mrb[18].mxu1 }
 0x16d   : > { %v12960_v62 = vpop.f32.mrb[19].mxu1  ;;  %v16121_v14 = vld [vmem:[%s14653_s8 + $0x6c] sm:$0xff]   ;;  %4214 = vperm.xlu1 %14323, %v4080_v35  }
 0x16e   : > { %12790 = vmatmul.mubr.msk.bf16.gmra.mrb[8].mxu0 %vm253_vm1, %v2417_v19  ;;  %v4670_v22 = vpop.f32.mrb[20].mxu1 }
 0x16f   : > { %12793 = vmatprep.mubr.msk.bf16.mxu0 %vm253_vm1, %v2425_v37  ;;  %v16085_v50 = vadd.f32 %v4670_v22, %v15903_v39  ;;  %v12971_v57 = vpop.f32.mrb[21].mxu1  ;;  %v5739_v39 = vsel %vm3610_vm9, %v5735_v54, %v16073_v4  ;;  %v2442_v37 = vshrl.u32 %v16023_v2, 16  ;;  %4209 = vperm.xlu0 %14322, %v4079_v46  }
 0x170   : > { %v4673_v42 = vpop.f32.mrb[22].mxu1  ;;  %v2452_v57 = vor.u32 %v2450_v63, %v2448_v49 }
 0x171   : > { %v16104_v43 = vadd.f32 %v4673_v42, %v15944_v58  ;;  %v12972_v19 = vpop.f32.mrb[23].mxu1  ;;  %13166 = vmatmul.mubr.msk.bf16.vlgmr.msra.gmra.mrb[160].mxu1 %vm253_vm1, %v5739_v39  ;;  %v2444_v47 = vor.u32 %v2442_v37, %v2440_v11  ;;  %v16145_v42 = vld [vmem:[%s14653_s8 + $0x74] sm:$0xff]   ;;  %v16151_v39 = vsel %vm3298_vm8, %v3314_v23, %v3316_v6  ;;  %v5744_v11 = vrot.slane %v5444_v30, 1 }
 0x172   : > { %v4678_v21 = vpop.f32.mrb[24].mxu1  ;;  %13169 = vmatprep.mubr.msk.bf16.mxu1 %vm14593_vm0, %v19155_v3  ;;  %v16162_v19 = vsel %vm3298_vm8, %v3316_v6, %v3318_v53  ;;  %v2457_v61 = vsel %vm2365_vm5, %v2452_v57, %v2456_v9 }
 0x173   : > { %v16118_v58 = vadd.f32 %v4678_v21, %v15958_v34  ;;  %v12975_v28 = vpop.f32.mrb[25].mxu1  ;;  %v16133_v34 = vor.u32 %v5741_v32, %v5740_v20  ;;  %v2462_v20 = vshll.u32 %v16121_v14, 16  ;;  %v5745_v32 = vrot.slane %v5440_v8, 2  ;;  %4219 = vperm.xlu0 %14322, %v4081_v1  }
 0x174   : > { %v4681_v2 = vpop.f32.mrb[26].mxu1  ;;  %v2449_v37 = vsel %vm2365_vm5, %v2444_v47, %v2448_v49  ;;  %v2458_v21 = vshrl.u32 %v16082_v33, 16  ;;  %v16180_v28 = vld [vmem:[%s14653_s8 + $0x7c] sm:$0xff]  }
 0x175   : > { %v16136_v54 = vadd.f32 %v4681_v2, %v15969_v27  ;;  %v12976_v62 = vpop.f32.mrb[27].mxu1  ;;  %v5743_v23 = vsel %vm3610_vm9, %v16073_v4, %v16133_v34  ;;  %v2470_v4 = vshll.u32 %v16145_v42, 16  ;;  %v2464_v46 = vrot.slane %v2462_v20, 1 }
 0x176   : > { %12794 = vmatmul.mubr.msk.bf16.gmra.mrb[12].mxu0 %vm253_vm1, %v2433_v12  ;;  %v4686_v22 = vpop.f32.mrb[28].mxu1  ;;  %v14492_v12 = vld [vmem:[%s14653_s8 + $0xb4] ss:$0 sps:$4 sm:$0xff]   ;;  %v16189_v33 = vor.u32 %v5745_v32, %v5744_v11  ;;  %v4084_v62 = vld [vmem:[%s19111_s5 + $0x100] sm:$0xff]  ;;  %v2460_v20 = vor.u32 %v2458_v21, %v2456_v9 }
 0x177   : > { %12797 = vmatprep.mubr.msk.bf16.mxu0 %vm253_vm1, %v2441_v24  ;;  %v16148_v27 = vadd.f32 %v4686_v22, %v15988_v48  ;;  %v12979_v25 = vpop.f32.mrb[29].mxu1  ;;  %v4082_v48 = vld [vmem:[%s19111_s5 + $0xf0] sm:$0xff]  ;;  %v2466_v24 = vshrl.u32 %v16121_v14, 16  ;;  %v5752_v6 = vshll.u32 %v14492_v12, 16  ;;  %v4083_v22 = vld [vmem:[%s19111_s5 + $0xf8] sm:$0xff]  ;;  %v16209_v32 = vld [vmem:[%s14653_s8 + $0x84] sm:$0xff]  }
 0x178   : > { %v4689_v0 = vpop.f32.mrb[30].mxu1  ;;  %4224 = vperm.xlu1 %14323, %v4082_v48   ;;  %v16192_v14 = vld [vmem:[%s14653_s8 + $0x74] sm:$0xff]   ;;  %4229 = vperm.xlu0 %14322, %v4083_v22   ;;  %v2482_v22 = vshrl.u32 %v16180_v28, 16 }
 0x179   : > { %v16169_v30 = vadd.f32 %v4689_v0, %v16003_v56  ;;  %v12980_v8 = vpop.f32.mrb[31].mxu1  ;;  %v16183_v56 = vld [vmem:[%s14653_s8 + $0x6c] sm:$0xff]   ;;  %13170 = vmatmul.mubr.msk.bf16.gmra.mrb[164].mxu1 %vm253_vm1, %v5743_v23  ;;  %v2468_v11 = vor.u32 %v2466_v24, %v2464_v46  ;;  %v3322_v48 = vrot.slane %v16192_v14, 1  ;;  %v2478_v23 = vshll.u32 %v16180_v28, 16 }
 0x17a   : > { %v4694_v63 = vpop.f32.mrb[32].mxu1  ;;  %13173 = vmatprep.mubr.msk.bf16.mxu1 %vm14593_vm0, %v19155_v3  ;;  %v3320_v25 = vrot.slane %v16183_v56, 1  ;;  %v4086_v21 = vld [vmem:[%s19111_s5 + $0x110] sm:$0xff] }
 0x17b   : > { %v16186_v2 = vadd.f32 %v4694_v63, %v16019_v18  ;;  %v12983_v35 = vpop.f32.mrb[33].mxu1  ;;  %v5749_v18 = vshrl.u32 %v14492_v12, 16  ;;  %v16221_v63 = vld [vmem:[%s14653_s8 + $0x18] sm:$0xf] }
 0x17c   : > { %v4697_v49 = vpop.f32.mrb[34].mxu1  ;;  %4234 = vperm.xlu1 %14323, %v4084_v62   ;;  %v16217_v8 = vsel %vm3298_vm8, %v3318_v53, %v3320_v25  ;;  %v16227_v24 = vsel %vm3298_vm8, %v3320_v25, %v3322_v48  ;;  %v5754_v53 = vrot.slane %v5752_v6, 2  ;;  %v2474_v62 = vshrl.u32 %v16145_v42, 16  ;;  %v16251_v42 = vld [vmem:[%s14653_s8 + $0x84] sm:$0xff]  }
 0x17d   : > { %v16201_v47 = vadd.f32 %v4697_v49, %v16035_v15  ;;  %v12984_v57 = vpop.f32.mrb[35].mxu1  ;;  %v2472_v15 = vrot.slane %v2470_v4, 1  ;;  %v4085_v4 = vld [vmem:[%s19111_s5 + $0x108] sm:$0xff]  ;;  %v2465_v49 = vsel %vm2365_vm5, %v2460_v20, %v2464_v46  ;;  %v2480_v46 = vrot.slane %v2478_v23, 1  ;;  %v5905_v20 = vld [vmem:[%s19111_s5 + $0x120] sm:$0xff]  ;;  %v5904_v23 = vld [vmem:[%s19111_s5 + $0x118] sm:$0xff] }
 0x17e   : > { %12798 = vmatmul.mubr.msk.bf16.gmra.mrb[16].mxu0 %vm253_vm1, %v2449_v37  ;;  %v4702_v0 = vpop.f32.mrb[36].mxu1  ;;  %v2763_v37 = vld [vmem:[%s14653_s8 + $0x14] sm:$0xf]  ;;  %v2486_v57 = vshll.u32 %v16209_v32, 16  ;;  %4239 = vperm.xlu0 %14322, %v4085_v4  }
 0x17f   : > { %12801 = vmatprep.mubr.msk.bf16.mxu0 %vm253_vm1, %v2457_v61  ;;  %v16214_v12 = vadd.f32 %v4702_v0, %v16050_v10  ;;  %v12987_v1 = vpop.f32.mrb[37].mxu1  ;;  %v5747_v10 = vsel %vm3610_vm9, %v16133_v34, %v16189_v33  ;;  %v5751_v61 = vrot.slane %v5749_v18, 1  ;;  %v2473_v0 = vsel %vm2365_vm5, %v2468_v11, %v2472_v15  ;;  %v16244_v18 = vld [vmem:[%s14653_s8 + $0x7c] sm:$0xff]  }
 0x180   : > { %v4705_v9 = vpop.f32.mrb[38].mxu1  ;;  %v16241_v34 = vcombine.low %v2763_v37, %v16221_v63  ;;  %4244 = vperm.xlu1 %14323, %v4086_v21   ;;  %v2476_v21 = vor.u32 %v2474_v62, %v2472_v15  ;;  %v2488_v4 = vrot.slane %v2486_v57, 1  ;;  %v5907_v15 = vld [vmem:[%s19111_s5 + $0x130] sm:$0xff] }
 0x181   : > { %v12988_v35 = vpop.f32.mrb[39].mxu1  ;;  %13174 = vmatmul.mubr.msk.bf16.gmra.mrb[168].mxu1 %vm253_vm1, %v5747_v10  ;;  %v3324_v9 = vrot.slane %v16244_v18, 1  ;;  %v2484_v10 = vor.u32 %v2482_v22, %v2480_v46 }
 0x182   : > { %v4822_v25 = vpop.f32.mrb[40].mxu1  ;;  %13177 = vmatprep.mubr.msk.bf16.mxu1 %vm14593_vm0, %v19155_v3  ;;  %v14477_v35 = vld [vmem:[%s14653_s8 + $0x8c] ss:$0 sps:$4 sm:$0x11]   ;;  %5915 = vperm.xlu0 %14322, %v5904_v23   ;;  %v2490_v23 = vshrl.u32 %v16209_v32, 16 }
 0x183   : > { %v16247_v6 = vadd.f32 %v4822_v25, %v16085_v50  ;;  %v12999_v1 = vpop.f32.mrb[41].mxu1  ;;  %v16259_v50 = vor.u32 %v5754_v53, %v5751_v61  ;;  %v3326_v61 = vrot.slane %v16251_v42, 1  ;;  %v2891_v53 = vshll.u32 %v16241_v34, 16 }
 0x184   : > { %v4825_v28 = vpop.f32.mrb[42].mxu1  ;;  %5920 = vperm.xlu1 %14323, %v5905_v20   ;;  %v16276_v1 = vsel %vm3298_vm8, %v3322_v48, %v3324_v9  ;;  %v5906_v48 = vld [vmem:[%s19111_s5 + $0x128] sm:$0xff]  ;;  %v2489_v20 = vsel %vm2365_vm5, %v2484_v10, %v2488_v4 }
 0x185   : > { %v16262_v11 = vadd.f32 %v4825_v28, %v16104_v43  ;;  %v13000_v37 = vpop.f32.mrb[43].mxu1  ;;  %v16282_v62 = vsel %vm3298_vm8, %v3324_v9, %v3326_v61  ;;  %v5756_v22 = vsel %vm3610_vm9, %v16189_v33, %v16259_v50  ;;  %v2481_v28 = vsel %vm2365_vm5, %v2476_v21, %v2480_v46  ;;  %v16306_v46 = vld [vmem:[%s14653_s8 + $0x94] ss:$0 sps:$4 sm:$0x11]  }
 0x186   : > { %12802 = vmatmul.mubr.msk.bf16.gmra.mrb[20].mxu0 %vm253_vm1, %v2465_v49  ;;  %v4830_v49 = vpop.f32.mrb[44].mxu1  ;;  %v2494_v37 = vshll.u32 %v14477_v35, 16  ;;  %v2893_v33 = vrot.slane %v2891_v53, 1  ;;  %5925 = vperm.xlu0 %14322, %v5906_v48   ;;  %v2492_v53 = vor.u32 %v2490_v23, %v2488_v4  ;;  %v3330_v48 = vrot.slane %v16306_v46, 1 }
 0x187   : > { %12805 = vmatprep.mubr.msk.bf16.mxu0 %vm253_vm1, %v2473_v0  ;;  %v16273_v43 = vadd.f32 %v4830_v49, %v16118_v58  ;;  %v13003_v25 = vpop.f32.mrb[45].mxu1  ;;  %v2889_v49 = vshrl.u32 %v16241_v34, 16  ;;  %v5909_v34 = vld [vmem:[%s19111_s5 + $0x140] sm:$0xff] }
 0x188   : > { %v4833_v0 = vpop.f32.mrb[46].mxu1  ;;  %v16299_v25 = vld [vmem:[%s14653_s8 + $0x8c] sm:$0xff]   ;;  %5930 = vperm.xlu1 %14323, %v5907_v15   ;;  %v2496_v15 = vrot.slane %v2494_v37, 1 }
 0x189   : > { %v16288_v58 = vadd.f32 %v4833_v0, %v16136_v54  ;;  %v13004_v57 = vpop.f32.mrb[47].mxu1  ;;  %v2896_v54 = vshll.u32 %v15886_v51, 16  ;;  %13178 = vmatmul.mubr.msk.bf16.gmra.mrb[172].mxu1 %vm253_vm1, %v5756_v22  ;;  %v3328_v35 = vrot.slane %v16299_v25, 1 }
 0x18a   : > { %v4838_v9 = vpop.f32.mrb[48].mxu1  ;;  %13181 = vmatprep.mubr.msk.bf16.mxu1 %vm14593_vm0, %v19155_v3 }
 0x18b   : > { %v16302_v0 = vadd.f32 %v4838_v9, %v16148_v27  ;;  %v13007_v57 = vpop.f32.mrb[49].mxu1  ;;  %v5908_v27 = vld [vmem:[%s19111_s5 + $0x138] sm:$0xff]  ;;  %v2898_v9 = vrot.slane %v2896_v54, 1  ;;  %v16332_v4 = vsel %vm3298_vm8, %v3328_v35, %v3330_v48 }
 0x18c   : > { %v4841_v32 = vpop.f32.mrb[50].mxu1  ;;  %5940 = vperm.xlu1 %14323, %v5909_v34   ;;  %5935 = vperm.xlu0 %14322, %v5908_v27   ;;  %v19121_v27 = vshll.u32 %v15939_v44, 16 }
 0x18d   : > { %v16315_v21 = vadd.f32 %v4841_v32, %v16169_v30  ;;  %v13008_v10 = vpop.f32.mrb[51].mxu1  ;;  %v16329_v32 = vsel %vm3298_vm8, %v3326_v61, %v3328_v35  ;;  %v2908_v61 = vshrl.u32 %v15890_v31, 16 }
 0x18e   : > { %12806 = vmatmul.mubr.msk.bf16.gmra.mrb[24].mxu0 %vm253_vm1, %v2481_v28  ;;  %v4846_v22 = vpop.f32.mrb[52].mxu1  ;;  %v2894_v28 = vor.u32 %v2893_v33, %v2889_v49  ;;  %v2497_v49 = vsel %vm2365_vm5, %v2492_v53, %v2496_v15  ;;  %v5911_v53 = vld [vmem:[%s19111_s5 + $0x150] sm:$0xff]  ;;  %v5910_v15 = vld [vmem:[%s19111_s5 + $0x148] sm:$0xff] }
 0x18f   : > { %12809 = vmatprep.mubr.msk.bf16.mxu0 %vm253_vm1, %v2489_v20  ;;  %v16326_v30 = vadd.f32 %v4846_v22, %v16186_v2  ;;  %v13011_v57 = vpop.f32.mrb[53].mxu1  ;;  %v19126_v20 = vshll.u32 %v15890_v31, 16  ;;  %v2900_v2 = vshrl.u32 %v15886_v51, 16  ;;  %v3623_v51 = vrot.slane %v2908_v61, 1 }
 0x190   : > { %v4849_v10 = vpop.f32.mrb[54].mxu1  ;;  %v2899_v34 = vsel %vm2365_vm5, %v2894_v28, %v2898_v9  ;;  %5950 = vperm.xlu1 %14323, %v5911_v53   ;;  %5945 = vperm.xlu0 %14322, %v5910_v15   ;;  %v19125_v53 = vshrl.u32 %v15939_v44, 16 }
 0x191   : > { %v16336_v23 = vadd.f32 %v4849_v10, %v16201_v47  ;;  %v13012_v37 = vpop.f32.mrb[55].mxu1  ;;  %13182 = vmatmul.mubr.msk.bf16.gmra.mrb[176].mxu1 %vm253_vm1, %v16259_v50  ;;  %v2906_v48 = vrot.slane %v19126_v20, 1  ;;  %v2902_v28 = vor.u32 %v2900_v2, %v2898_v9  ;;  %v2914_v10 = vrot.slane %v19121_v27, 1 }
 0x192   : > { %v4854_v33 = vpop.f32.mrb[56].mxu1  ;;  %v19124_v27 = vshrl.u32 %v15942_v60, 16  ;;  %v19129_v20 = vshrl.u32 %v16001_v13, 16 }
 0x193   : > { %v16344_v35 = vadd.f32 %v4854_v33, %v16214_v12  ;;  %v13015_v22 = vpop.f32.mrb[57].mxu1  ;;  %v2910_v57 = vor.u32 %v2908_v61, %v2906_v48 }
 0x194   : > { %v4857_v47 = vpop.f32.mrb[58].mxu1  ;;  %v19122_v22 = vshll.u32 %v15942_v60, 16 }
 0x195   : > { %v13016_v12 = vpop.f32.mrb[59].mxu1 }
 0x196   : > { %12810 = vmatmul.mubr.msk.bf16.gmra.mrb[28].mxu0 %vm253_vm1, %v2497_v49  ;;  %v5029_v50 = vpop.f32.mrb[60].mxu1  ;;  %v2915_v12 = vsel %vm2365_vm5, %v2910_v57, %v2914_v10 }
 0x197   : > { %12821 = vmatprep.mubr.msk.bf16.mxu0 %vm253_vm1, %v2899_v34  ;;  %v16365_v37 = vadd.f32 %v5029_v50, %v16247_v6  ;;  %v13027_v49 = vpop.f32.mrb[61].mxu1  ;;  %v2907_v34 = vsel %vm2365_vm5, %v2902_v28, %v2906_v48  ;;  %v19123_v6 = vshll.u32 %v15997_v36, 16  ;;  %v14489_v50 = vld [vmem:[%s19107_s1 + $0xe8] sm:$0xff]   ;;  %v5912_v48 = vld [vmem:[%s19111_s5 + $0x158] sm:$0xf]  ;;  %v2922_v28 = vrot.slane %v19122_v22, 1 }
 0x198   : > { %v5032_v33 = vpop.f32.mrb[62].mxu1  ;;  %5955 = vperm.xlu0 %14322, %v5912_v48   ;;  %v19128_v48 = vshll.u32 %v16001_v13, 16 }
 0x199   : > { %v16369_v47 = vadd.f32 %v5032_v33, %v16262_v11  ;;  %v13028_v9 = vpop.f32.mrb[63].mxu1 }
 0x19a   : > { %v5037_v15 = vpop.f32.mrb[64].mxu1 }
 0x19b   : > { %v16380_v49 = vadd.f32 %v5037_v15, %v16273_v43  ;;  %v13031_v11 = vpop.f32.mrb[65].mxu1  ;;  %v2918_v43 = vor.u32 %v19125_v53, %v2914_v10 }
 0x19c   : > { %v5040_v33 = vpop.f32.mrb[66].mxu1  ;;  %v2926_v11 = vor.u32 %v19124_v27, %v2922_v28 }
 0x19d   : > { %v16389_v57 = vadd.f32 %v5040_v33, %v16288_v58  ;;  %v13032_v9 = vpop.f32.mrb[67].mxu1  ;;  %v14495_v58 = vld [vmem:[%s19107_s1 + $0xf0] sm:$0xff]   ;;  %v2923_v22 = vsel %vm2365_vm5, %v2918_v43, %v2922_v28 }
 0x19e   : > { %12822 = vmatmul.mubr.msk.bf16.vlgmr.msra.gmra.mrb[0].mxu0 %vm253_vm1, %v2907_v34  ;;  %v5045_v15 = vpop.f32.mrb[68].mxu1  ;;  %v2930_v34 = vrot.slane %v19123_v6, 1  ;;  %v19130_v6 = vshrl.u32 %v15997_v36, 16 }
 0x19f   : > { %12854 = vmatpush3.bf16.msra.mxu0 %v16028_v41  ;;  %12825 = vmatprep.mubr.msk.bf16.mxu0 %vm253_vm1, %v2915_v12  ;;  %v16403_v33 = vadd.f32 %v5045_v15, %v16302_v0  ;;  %v13035_v41 = vpop.f32.mrb[69].mxu1  ;;  %v19127_v0 = vshll.u32 %v16056_v45, 16  ;;  %v14500_v15 = vld [vmem:[%s19107_s1 + $0xf8] sm:$0xff]  }
 0x1a0   : > { %12855 = vmatprep.subr.bf16.mxu0 %v14489_v50  ;;  %v5048_v12 = vpop.f32.mrb[70].mxu1  ;;  %v2931_v53 = vsel %vm2365_vm5, %v2926_v11, %v2930_v34 }
 0x1a1   : > { %v16407_v10 = vadd.f32 %v5048_v12, %v16315_v21  ;;  %v13036_v9 = vpop.f32.mrb[71].mxu1  ;;  %v2934_v12 = vor.u32 %v19130_v6, %v2930_v34  ;;  %v19131_v34 = vshll.u32 %v16065_v5, 16  ;;  %v19132_v6 = vshll.u32 %v16115_v40, 16 }
 0x1a2   : > { %v5053_v27 = vpop.f32.mrb[72].mxu1 }
 0x1a3   : > { %12856 = vmatpush3.bf16.msra.mxu0 %v14489_v50  ;;  %v16418_v21 = vadd.f32 %v5053_v27, %v16326_v30  ;;  %v13039_v41 = vpop.f32.mrb[73].mxu1  ;;  %v2938_v50 = vrot.slane %v19128_v48, 1  ;;  %v2946_v27 = vrot.slane %v19127_v0, 1 }
 0x1a4   : > { %12857 = vmatprep.subr.bf16.mxu0 %v14495_v58  ;;  %v5056_v28 = vpop.f32.mrb[74].mxu1 }
 0x1a5   : > { %v16424_v43 = vadd.f32 %v5056_v28, %v16336_v23  ;;  %v13040_v11 = vpop.f32.mrb[75].mxu1  ;;  %v2942_v30 = vor.u32 %v19129_v20, %v2938_v50  ;;  %v16436_v23 = vld [vmem:[%s19107_s1 + $0x100] sm:$0xff]   ;;  %v2939_v28 = vsel %vm2365_vm5, %v2934_v12, %v2938_v50  ;;  %v19133_v20 = vshrl.u32 %v16065_v5, 16 }
 0x1a6   : > { %12826 = vmatmul.mubr.msk.bf16.gmra.mrb[4].mxu0 %vm253_vm1, %v2923_v22  ;;  %v5061_v9 = vpop.f32.mrb[76].mxu1  ;;  %v19143_v11 = vshrl.u32 %v16056_v45, 16  ;;  %v2954_v50 = vrot.slane %v19131_v34, 1 }
 0x1a7   : > { %12829 = vmatprep.mubr.msk.bf16.mxu0 %vm253_vm1, %v2931_v53  ;;  %12858 = vmatpush3.bf16.msra.mxu0 %v14495_v58  ;;  %v16439_v22 = vadd.f32 %v5061_v9, %v16344_v35  ;;  %v13043_v53 = vpop.f32.mrb[77].mxu1  ;;  %v2947_v48 = vsel %vm2365_vm5, %v2942_v30, %v2946_v27 }
 0x1a8   : > { %12859 = vmatprep.subr.bf16.mxu0 %v14500_v15  ;;  %v5064_v41 = vpop.f32.mrb[78].mxu1  ;;  %v2950_v30 = vor.u32 %v19143_v11, %v2946_v27 }
 0x1a9   : > { %v13044_v58 = vpop.f32.mrb[79].mxu1 }
 0x1aa   : > { %v5162_v0 = vpop.f32.mrb[80].mxu1 }
 0x1ab   : > { %12860 = vmatpush3.bf16.msra.mxu0 %v14500_v15  ;;  %v16449_v35 = vadd.f32 %v5162_v0, %v16365_v37  ;;  %v13055_v9 = vpop.f32.mrb[81].mxu1  ;;  %v2958_v37 = vor.u32 %v19133_v20, %v2954_v50  ;;  %v2962_v0 = vrot.slane %v19132_v6, 1  ;;  %v19135_v6 = vshrl.u32 %v16125_v7, 16 }
 0x1ac   : > { %12893 = vmatprep.subr.bf16.mxu0 %v16436_v23  ;;  %v5165_v53 = vpop.f32.mrb[82].mxu1  ;;  %v19136_v20 = vshll.u32 %v16183_v56, 16 }
 0x1ad   : > { %v16455_v15 = vadd.f32 %v5165_v53, %v16369_v47  ;;  %v13056_v12 = vpop.f32.mrb[83].mxu1  ;;  %v19134_v47 = vshll.u32 %v16125_v7, 16  ;;  %v2955_v53 = vsel %vm2365_vm5, %v2950_v30, %v2954_v50  ;;  %v2963_v34 = vsel %vm2365_vm5, %v2958_v37, %v2962_v0 }
 0x1ae   : > { %12830 = vmatmul.mubr.msk.bf16.gmra.mrb[8].mxu0 %vm253_vm1, %v2939_v28  ;;  %v5170_v41 = vpop.f32.mrb[84].mxu1  ;;  %v2978_v30 = vrot.slane %v19136_v20, 1  ;;  %v19139_v20 = vshrl.u32 %v16192_v14, 16 }
 0x1af   : > { %12833 = vmatprep.mubr.msk.bf16.mxu0 %vm253_vm1, %v2947_v48  ;;  %v16465_v58 = vadd.f32 %v5170_v41, %v16380_v49  ;;  %v13059_v28 = vpop.f32.mrb[85].mxu1  ;;  %v19137_v48 = vshrl.u32 %v16115_v40, 16  ;;  %v2970_v49 = vrot.slane %v19134_v47, 1 }
 0x1b0   : > { %v5173_v9 = vpop.f32.mrb[86].mxu1 }
 0x1b1   : > { %v16471_v27 = vadd.f32 %v5173_v9, %v16389_v57  ;;  %v13060_v12 = vpop.f32.mrb[87].mxu1  ;;  %v2966_v50 = vor.u32 %v19137_v48, %v2962_v0  ;;  %v2974_v57 = vor.u32 %v19135_v6, %v2970_v49  ;;  %v19138_v9 = vshll.u32 %v16192_v14, 16 }
 0x1b2   : > { %v19140_v48 = vshll.u32 %v16244_v18, 16 }
 0x1b3   : > { %v2971_v12 = vsel %vm2365_vm5, %v2966_v50, %v2970_v49  ;;  %v2979_v6 = vsel %vm2365_vm5, %v2974_v57, %v2978_v30 }
 0x1b4   : > { %v5178_v37 = vpop.f32.mrb[88].mxu1 }
 0x1b5   : > { %v16487_v41 = vadd.f32 %v5178_v37, %v16403_v33  ;;  %v13063_v28 = vpop.f32.mrb[89].mxu1  ;;  %v2986_v33 = vrot.slane %v19138_v9, 1 }
 0x1b6   : > { %12834 = vmatmul.mubr.msk.bf16.gmra.mrb[12].mxu0 %vm253_vm1, %v2955_v53  ;;  %v5181_v53 = vpop.f32.mrb[90].mxu1  ;;  %v19142_v28 = vshll.u32 %v16251_v42, 16 }
 0x1b7   : > { %12837 = vmatprep.mubr.msk.bf16.mxu0 %vm253_vm1, %v2963_v34  ;;  %v19141_v34 = vshrl.u32 %v16183_v56, 16  ;;  %v16493_v0 = vadd.f32 %v5181_v53, %v16407_v10  ;;  %v13064_v47 = vpop.f32.mrb[91].mxu1  ;;  %v2990_v10 = vor.u32 %v19139_v20, %v2986_v33 }
 0x1b8   : > { %v2994_v47 = vrot.slane %v19140_v48, 1  ;;  %v19144_v48 = vshrl.u32 %v16251_v42, 16 }
 0x1b9   : > { %v2982_v49 = vor.u32 %v19141_v34, %v2978_v30 }
 0x1ba   : > { %v2995_v20 = vsel %vm2365_vm5, %v2990_v10, %v2994_v47  ;;  %v3285_v10 = vld [vmem:[%s14653_s8 + $0x14] sm:$0xe] }
 0x1bc   : > { %v5186_v50 = vpop.f32.mrb[92].mxu1 }
 0x1bd   : > { %v16509_v57 = vadd.f32 %v5186_v50, %v16418_v21  ;;  %v13067_v37 = vpop.f32.mrb[93].mxu1  ;;  %v3008_v21 = vshll.u32 %v16299_v25, 16  ;;  %v3002_v50 = vrot.slane %v19142_v28, 1  ;;  %v3012_v28 = vshrl.u32 %v16299_v25, 16 }
 0x1be   : > { %12838 = vmatmul.mubr.msk.bf16.gmra.mrb[16].mxu0 %vm253_vm1, %v2971_v12  ;;  %v5189_v53 = vpop.f32.mrb[94].mxu1  ;;  %v2996_v12 = vshrl.u32 %v16244_v18, 16 }
 0x1bf   : > { %12841 = vmatprep.mubr.msk.bf16.mxu0 %vm253_vm1, %v2979_v6  ;;  %v2987_v6 = vsel %vm2365_vm5, %v2982_v49, %v2986_v33  ;;  %v16515_v30 = vadd.f32 %v5189_v53, %v16424_v43  ;;  %v13068_v9 = vpop.f32.mrb[95].mxu1  ;;  %v3006_v43 = vor.u32 %v19144_v48, %v3002_v50  ;;  %v16537_v48 = vcombine.low %v3285_v10, %v16221_v63 }
 0x1c0   : > { %v2998_v33 = vor.u32 %v2996_v12, %v2994_v47  ;;  %v3010_v9 = vrot.slane %v3008_v21, 1 }
 0x1c2   : > { %v3003_v34 = vsel %vm2365_vm5, %v2998_v33, %v3002_v50  ;;  %v3011_v47 = vsel %vm2365_vm5, %v3006_v43, %v3010_v9  ;;  %v3299_v50 = vrot.slane %v16537_v48, 1 }
 0x1c4   : > { %v5194_v49 = vpop.f32.mrb[96].mxu1 }
 0x1c5   : > { %v5208_v37 = vadd.f32 %v5194_v49, %v16439_v22  ;;  %v13071_v53 = vpop.f32.mrb[97].mxu1  ;;  %v3014_v22 = vor.u32 %v3012_v28, %v3010_v9 }
 0x1c6   : > { %12842 = vmatmul.mubr.msk.bf16.gmra.mrb[20].mxu0 %vm253_vm1, %v2987_v6  ;;  %v5197_v6 = vpop.f32.mrb[98].mxu1 }
 0x1c7   : > { %12845 = vmatprep.mubr.msk.bf16.mxu0 %vm253_vm1, %v2995_v20  ;;  %v3016_v20 = vshll.u32 %v16306_v46, 16  ;;  %v13072_v11 = vpop.f32.mrb[99].mxu1 }
 0x1c9   : > { %v3018_v49 = vrot.slane %v3016_v20, 1 }
 0x1cb   : > { %v3019_v43 = vsel %vm2365_vm5, %v3014_v22, %v3018_v49 }
 0x1cc   : > { %v5329_v33 = vpop.f32.mrb[100].mxu1 }
 0x1cd   : > { %v5367_v53 = vadd.f32 %v5329_v33, %v16449_v35  ;;  %v13083_v46 = vpop.f32.mrb[101].mxu1 }
 0x1ce   : > { %12846 = vmatmul.mubr.msk.bf16.gmra.mrb[24].mxu0 %vm253_vm1, %v3003_v34  ;;  %v5332_v11 = vpop.f32.mrb[102].mxu1  ;;  %v3301_v34 = vsel %vm3298_vm8, %v3299_v50, %v3300_v26  ;;  %v14505_v26 = vld [vmem:[%s19107_s1 + $0x110] sm:$0xff]  }
 0x1cf   : > { %12849 = vmatprep.mubr.msk.bf16.mxu0 %vm253_vm1, %v3011_v47  ;;  %v5368_v63 = vadd.f32 %v5332_v11, %v16455_v15  ;;  %v13084_v10 = vpop.f32.mrb[103].mxu1  ;;  %v14504_v15 = vld [vmem:[%s19107_s1 + $0x108] sm:$0xff]  }
 0x1d4   : > { %v5337_v9 = vpop.f32.mrb[104].mxu1 }
 0x1d5   : > { %v5369_v6 = vadd.f32 %v5337_v9, %v16465_v58  ;;  %v13087_v20 = vpop.f32.mrb[105].mxu1 }
 0x1d6   : > { %12850 = vmatmul.mubr.msk.bf16.gmra.mrb[28].mxu0 %vm253_vm1, %v3019_v43  ;;  %v5340_v35 = vpop.f32.mrb[106].mxu1 }
 0x1d7   : > { %12861 = vmatprep.mubr.msk.bf16.mxu0 %vm253_vm1, %v3301_v34  ;;  %v16554_v47 = vadd.f32 %v5340_v35, %v16471_v27  ;;  %v13088_v22 = vpop.f32.mrb[107].mxu1  ;;  %v16595_v34 = vpop.permute.xlu1 %4099  ;;  %v14509_v35 = vld [vmem:[%s19109_s3 + $0x28] sm:$0xff]  }
 0x1dc   : > { %v5345_v58 = vpop.f32.mrb[108].mxu1 }
 0x1dd   : > { %v16568_v27 = vadd.f32 %v5345_v58, %v16487_v41  ;;  %v13091_v49 = vpop.f32.mrb[109].mxu1 }
 0x1de   : > { %12862 = vmatmul.mubr.msk.bf16.vlgmr.msra.gmra.mrb[0].mxu0 %vm253_vm1, %v15921_v52  ;;  %v5348_v50 = vpop.f32.mrb[110].mxu1 }
 0x1df   : > { %12894 = vmatpush3.bf16.msra.mxu0 %v16436_v23  ;;  %12865 = vmatprep.mubr.msk.bf16.mxu0 %vm253_vm1, %v15975_v38  ;;  %v16571_v33 = vadd.f32 %v5348_v50, %v16493_v0  ;;  %v13092_v52 = vpop.f32.mrb[111].mxu1  ;;  %v14506_v38 = vld [vmem:[%s19107_s1 + $0x118] sm:$0xff]  }
 0x1e0   : > { %12895 = vmatprep.subr.bf16.mxu0 %v14504_v15 }
 0x1e3   : > { %12896 = vmatpush3.bf16.msra.mxu0 %v14504_v15 }
 0x1e4   : > { %12897 = vmatprep.subr.bf16.mxu0 %v14505_v26  ;;  %v5353_v23 = vpop.f32.mrb[112].mxu1 }
 0x1e5   : > { %v16581_v41 = vadd.f32 %v5353_v23, %v16509_v57  ;;  %v13095_v0 = vpop.f32.mrb[113].mxu1 }
 0x1e6   : > { %12866 = vmatmul.mubr.msk.bf16.gmra.mrb[4].mxu0 %vm253_vm1, %v15978_v16  ;;  %v5356_v46 = vpop.f32.mrb[114].mxu1  ;;  %v16591_v16 = vpop.permute.xlu0 %4089 }
 0x1e7   : > { %12869 = vmatprep.mubr.msk.bf16.mxu0 %vm253_vm1, %v16031_v17  ;;  %12898 = vmatpush3.bf16.msra.mxu0 %v14505_v26  ;;  %v16584_v11 = vadd.f32 %v5356_v46, %v16515_v30  ;;  %v13096_v43 = vpop.f32.mrb[115].mxu1 }
 0x1e8   : > { %12899 = vmatprep.subr.bf16.mxu0 %v14506_v38 }
 0x1ea   : > { %v16599_v20 = vpop.permute.xlu0 %4094 }
 0x1eb   : > { %12900 = vmatpush3.bf16.msra.mxu0 %v14506_v38 }
 0x1ec   : > { %13545 = vmatprep.subr.bf16.mxu0 %v19155_v3  ;;  %v5361_v17 = vpop.f32.mrb[116].mxu1 }
 0x1ed   : > { %v16593_v57 = vadd.f32 %v5361_v17, %v5208_v37  ;;  %v13099_v10 = vpop.f32.mrb[117].mxu1  ;;  %v14508_v37 = vld [vmem:[%s19109_s3 + $0x20] sm:$0xff]  }
 0x1ee   : > { %12870 = vmatmul.mubr.msk.bf16.gmra.mrb[8].mxu0 %vm253_vm1, %v16041_v29  ;;  %v5364_v9 = vpop.f32.mrb[118].mxu1  ;;  %v16603_v29 = vpop.permute.xlu1 %4104  ;;  %13185 = vmatprep.subr.bf16.mxu1 %v14508_v37 }
 0x1ef   : > { %12873 = vmatprep.mubr.msk.bf16.mxu0 %vm253_vm1, %v16088_v59  ;;  %v13100_v30 = vpop.f32.mrb[119].mxu1  ;;  %13186 = vmatpush3.bf16.msra.mxu1 %v14508_v37  ;;  %v3619_v37 = vrot.slane %v2900_v2, 1 }
 0x1f0   : > { %13187 = vmatprep.subr.bf16.mxu1 %v14509_v35 }
 0x1f2   : > { %v16619_v49 = vpop.permute.xlu1 %4114 }
 0x1f3   : > { %13188 = vmatpush3.bf16.msra.mxu1 %v14509_v35 }
 0x1f4   : > { %v5528_v59 = vpop.f32.mrb[120].mxu1 }
 0x1f5   : > { %v16611_v22 = vadd.f32 %v5528_v59, %v5367_v53  ;;  %v13111_v15 = vpop.f32.mrb[121].mxu1 }
 0x1f6   : > { %12874 = vmatmul.mubr.msk.bf16.gmra.mrb[12].mxu0 %vm253_vm1, %v16095_v55  ;;  %v5531_v55 = vpop.f32.mrb[122].mxu1  ;;  %v16630_v46 = vpop.permute.xlu1 %4124 }
 0x1f7   : > { %12877 = vmatprep.mubr.msk.bf16.mxu0 %vm253_vm1, %v16151_v39  ;;  %v16613_v26 = vadd.f32 %v5531_v55, %v5368_v63  ;;  %v13112_v58 = vpop.f32.mrb[123].mxu1  ;;  %v16615_v39 = vpop.permute.xlu0 %4109 }
 0x1fa   : > { %v16643_v10 = vpop.permute.xlu1 %4134 }
 0x1fb   : > { %v16625_v63 = vpop.permute.xlu0 %4119 }
 0x1fc   : > { %v5536_v53 = vpop.f32.mrb[124].mxu1 }
 0x1fd   : > { %v16623_v50 = vadd.f32 %v5536_v53, %v5369_v6  ;;  %v13115_v52 = vpop.f32.mrb[125].mxu1 }
 0x1fe   : > { %12878 = vmatmul.mubr.msk.bf16.gmra.mrb[16].mxu0 %vm253_vm1, %v16162_v19  ;;  %v5539_v38 = vpop.f32.mrb[126].mxu1  ;;  %v3612_v19 = vshrl.u32 %v16537_v48, 16  ;;  %v16658_v15 = vpop.permute.xlu1 %4144 }
 0x1ff   : > { %12881 = vmatprep.mubr.msk.bf16.mxu0 %vm253_vm1, %v16217_v8  ;;  %v16628_v23 = vadd.f32 %v5539_v38, %v16554_v47  ;;  %v13116_v0 = vpop.f32.mrb[127].mxu1  ;;  %v3615_v8 = vshll.u32 %v16537_v48, 16  ;;  %v16638_v6 = vpop.permute.xlu0 %4129  ;;  %v3620_v48 = vrot.slane %v2896_v54, 2 }
 0x200   : > { %v3614_v59 = vrot.slane %v3612_v19, 1  ;;  %v19215_v0 = vshrl.u32 %v15939_v44, 16 }
 0x202   : > { %v3627_v19 = vrot.slane %v19215_v0, 1  ;;  %v16679_v61 = vpop.permute.xlu1 %4154 }
 0x204   : > { %v5544_v43 = vpop.f32.mrb[128].mxu1 }
 0x205   : > { %v16641_v17 = vadd.f32 %v5544_v43, %v16568_v27  ;;  %v13119_v47 = vpop.f32.mrb[129].mxu1  ;;  %v16654_v27 = vpop.permute.xlu0 %4139 }
 0x206   : > { %12882 = vmatmul.mubr.msk.bf16.gmra.mrb[20].mxu0 %vm253_vm1, %v16227_v24  ;;  %v5547_v9 = vpop.f32.mrb[130].mxu1 }
 0x207   : > { %12885 = vmatprep.mubr.msk.bf16.mxu0 %vm253_vm1, %v16276_v1  ;;  %v16646_v30 = vadd.f32 %v5547_v9, %v16571_v33  ;;  %v13120_v24 = vpop.f32.mrb[131].mxu1  ;;  %v3617_v1 = vrot.slane %v3615_v8, 2  ;;  %v3621_v33 = vor.u32 %v3620_v48, %v3619_v37  ;;  %v19217_v37 = vshrl.u32 %v15942_v60, 16 }
 0x209   : > { %v3618_v35 = vor.u32 %v3617_v1, %v3614_v59  ;;  %v16675_v43 = vpop.permute.xlu0 %4149  ;;  %v3631_v48 = vrot.slane %v19217_v37, 1 }
 0x20b   : > { %v3622_v38 = vsel %vm3610_vm9, %v3618_v35, %v3621_v33 }
 0x20c   : > { %v5552_v55 = vpop.f32.mrb[132].mxu1 }
 0x20d   : > { %v16661_v58 = vadd.f32 %v5552_v55, %v16581_v41  ;;  %v13123_v2 = vpop.f32.mrb[133].mxu1  ;;  %v19216_v41 = vshll.u32 %v15939_v44, 16  ;;  %v16685_v59 = vpop.permute.xlu0 %4159 }
 0x20e   : > { %12886 = vmatmul.mubr.msk.bf16.gmra.mrb[24].mxu0 %vm253_vm1, %v16282_v62  ;;  %v5555_v53 = vpop.f32.mrb[134].mxu1  ;;  %v19214_v62 = vshll.u32 %v15890_v31, 16 }
 0x20f   : > { %12889 = vmatprep.mubr.msk.bf16.mxu0 %vm253_vm1, %v16329_v32  ;;  %v16668_v52 = vadd.f32 %v5555_v53, %v16584_v11  ;;  %v13124_v32 = vpop.f32.mrb[135].mxu1  ;;  %v3628_v8 = vrot.slane %v19216_v41, 2  ;;  %v19219_v53 = vshrl.u32 %v15997_v36, 16 }
 0x210   : > { %v3624_v54 = vrot.slane %v19214_v62, 2 }
 0x211   : > { %v3629_v11 = vor.u32 %v3628_v8, %v3627_v19 }
 0x212   : > { %v3625_v31 = vor.u32 %v3624_v54, %v3623_v51  ;;  %v3635_v51 = vrot.slane %v19219_v53, 1  ;;  %v16697_v54 = vpop.permute.xlu1 %4164 }
 0x214   : > { %v5560_v47 = vpop.f32.mrb[136].mxu1  ;;  %v3626_v1 = vsel %vm3610_vm9, %v3621_v33, %v3625_v31  ;;  %v3630_v2 = vsel %vm3610_vm9, %v3625_v31, %v3629_v11  ;;  %v19221_v31 = vshrl.u32 %v16001_v13, 16 }
 0x215   : > { %v16683_v9 = vadd.f32 %v5560_v47, %v16593_v57  ;;  %v13127_v24 = vpop.f32.mrb[137].mxu1  ;;  %v19220_v57 = vshll.u32 %v15997_v36, 16 }
 0x216   : > { %12890 = vmatmul.mubr.msk.bf16.gmra.mrb[28].mxu0 %vm253_vm1, %v16332_v4  ;;  %v5563_v44 = vpop.f32.mrb[138].mxu1  ;;  %v19218_v4 = vshll.u32 %v15942_v60, 16  ;;  %v16706_v41 = vpop.permute.xlu1 %4174  ;;  %v3639_v47 = vrot.slane %v19221_v31, 1  ;;  %v19222_v24 = vshll.u32 %v16001_v13, 16 }
 0x217   : > { %12901 = vmatprep.mubr.msk.bf16.mxu0 %vm253_vm1, %v3622_v38  ;;  %v13128_v55 = vpop.f32.mrb[139].mxu1  ;;  %v3636_v62 = vrot.slane %v19220_v57, 2  ;;  %v16701_v38 = vpop.permute.xlu0 %4169 }
 0x218   : > { %v3632_v35 = vrot.slane %v19218_v4, 2  ;;  %v3640_v44 = vrot.slane %v19222_v24, 2  ;;  %v19227_v24 = vshrl.u32 %v16115_v40, 16 }
 0x219   : > { %v3637_v32 = vor.u32 %v3636_v62, %v3635_v51 }
 0x21a   : > { %v3633_v33 = vor.u32 %v3632_v35, %v3631_v48  ;;  %v19224_v35 = vshll.u32 %v16056_v45, 16  ;;  %v3641_v13 = vor.u32 %v3640_v44, %v3639_v47  ;;  %v16725_v53 = vpop.permute.xlu1 %4184  ;;  %v19228_v44 = vshll.u32 %v16115_v40, 16 }
 0x21c   : > { %v5669_v60 = vpop.f32.mrb[140].mxu1  ;;  %v3634_v36 = vsel %vm3610_vm9, %v3629_v11, %v3633_v33  ;;  %v3638_v48 = vsel %vm3610_vm9, %v3633_v33, %v3637_v32  ;;  %v3644_v55 = vrot.slane %v19224_v35, 2  ;;  %v16722_v11 = vpop.permute.xlu0 %4179  ;;  %v3642_v33 = vsel %vm3610_vm9, %v3637_v32, %v3641_v13 }
 0x21d   : > { %v16704_v0 = vadd.f32 %v5669_v60, %v16611_v22  ;;  %v13139_v19 = vpop.f32.mrb[141].mxu1  ;;  %v19223_v22 = vshrl.u32 %v16056_v45, 16  ;;  %v19225_v45 = vshrl.u32 %v16065_v5, 16 }
 0x21e   : > { %12902 = vmatmul.mubr.msk.bf16.vlgmr.msra.gmra.mrb[0].mxu0 %vm253_vm1, %v3626_v1  ;;  %v5672_v8 = vpop.f32.mrb[142].mxu1  ;;  %v19226_v19 = vshll.u32 %v16065_v5, 16  ;;  %v16746_v32 = vpop.permute.xlu1 %4194 }
 0x21f   : > { %12905 = vmatprep.mubr.msk.bf16.mxu0 %vm253_vm1, %v3630_v2  ;;  %v16714_v1 = vadd.f32 %v5672_v8, %v16613_v26  ;;  %v13140_v37 = vpop.f32.mrb[143].mxu1  ;;  %v3643_v4 = vrot.slane %v19223_v22, 1  ;;  %v3647_v60 = vrot.slane %v19225_v45, 1 }
 0x220   : > { %v3648_v8 = vrot.slane %v19226_v19, 2  ;;  %v3652_v37 = vrot.slane %v19228_v44, 2 }
 0x221   : > { %v3645_v2 = vor.u32 %v3644_v55, %v3643_v4 }
 0x222   : > { %v3649_v5 = vor.u32 %v3648_v8, %v3647_v60 }
 0x223   : > { %v3646_v47 = vsel %vm3610_vm9, %v3641_v13, %v3645_v2 }
 0x224   : > { %v5677_v26 = vpop.f32.mrb[144].mxu1  ;;  %v3650_v40 = vsel %vm3610_vm9, %v3645_v2, %v3649_v5 }
 0x225   : > { %v16728_v51 = vadd.f32 %v5677_v26, %v16623_v50  ;;  %v13143_v57 = vpop.f32.mrb[145].mxu1  ;;  %v3651_v50 = vrot.slane %v19227_v24, 1  ;;  %v19229_v26 = vshrl.u32 %v16125_v7, 16  ;;  %v16767_v24 = vpop.permute.xlu1 %4204 }
 0x226   : > { %12906 = vmatmul.mubr.msk.bf16.gmra.mrb[4].mxu0 %vm253_vm1, %v3634_v36  ;;  %v5680_v62 = vpop.f32.mrb[146].mxu1 }
 0x227   : > { %12909 = vmatprep.mubr.msk.bf16.mxu0 %vm253_vm1, %v3638_v48  ;;  %v16736_v36 = vadd.f32 %v5680_v62, %v16628_v23  ;;  %v13144_v31 = vpop.f32.mrb[147].mxu1  ;;  %v16743_v48 = vpop.permute.xlu0 %4189  ;;  %v3653_v23 = vor.u32 %v3652_v37, %v3651_v50  ;;  %v3655_v57 = vrot.slane %v19229_v26, 1  ;;  %v19230_v62 = vshll.u32 %v16125_v7, 16 }
 0x228   : > { %v19232_v31 = vshll.u32 %v16183_v56, 16 }
 0x229   : > { %v3654_v19 = vsel %vm3610_vm9, %v3649_v5, %v3653_v23  ;;  %v16776_v5 = vpop.permute.xlu1 %4214 }
 0x22b   : > { %v16752_v55 = vpop.permute.xlu0 %4199 }
 0x22c   : > { %v5685_v22 = vpop.f32.mrb[148].mxu1 }
 0x22d   : > { %v16750_v4 = vadd.f32 %v5685_v22, %v16641_v17  ;;  %v13147_v35 = vpop.f32.mrb[149].mxu1  ;;  %v19231_v17 = vshrl.u32 %v16183_v56, 16 }
 0x22e   : > { %12910 = vmatmul.mubr.msk.bf16.gmra.mrb[8].mxu0 %vm253_vm1, %v3642_v33  ;;  %v5688_v13 = vpop.f32.mrb[150].mxu1  ;;  %v3656_v33 = vrot.slane %v19230_v62, 2  ;;  %v19233_v35 = vshrl.u32 %v16192_v14, 16 }
 0x22f   : > { %12913 = vmatprep.mubr.msk.bf16.mxu0 %vm253_vm1, %v3646_v47  ;;  %v16760_v45 = vadd.f32 %v5688_v13, %v16646_v30  ;;  %v13148_v60 = vpop.f32.mrb[151].mxu1  ;;  %v3659_v8 = vrot.slane %v19231_v17, 1  ;;  %v3660_v47 = vrot.slane %v19232_v31, 2  ;;  %v16771_v30 = vpop.permute.xlu0 %4209 }
 0x230   : > { %v3657_v7 = vor.u32 %v3656_v33, %v3655_v57  ;;  %v3663_v13 = vrot.slane %v19233_v35, 1  ;;  %v19235_v60 = vshll.u32 %v16244_v18, 16  ;;  %v19237_v18 = vshll.u32 %v16251_v42, 16 }
 0x231   : > { %v3661_v2 = vor.u32 %v3660_v47, %v3659_v8  ;;  %v16795_v8 = vpop.permute.xlu1 %4224 }
 0x232   : > { %v3658_v56 = vsel %vm3610_vm9, %v3653_v23, %v3657_v7 }
 0x233   : > { %v3662_v33 = vsel %vm3610_vm9, %v3657_v7, %v3661_v2  ;;  %v16792_v23 = vpop.permute.xlu0 %4219 }
 0x234   : > { %v5693_v50 = vpop.f32.mrb[152].mxu1 }
 0x235   : > { %v16774_v44 = vadd.f32 %v5693_v50, %v16661_v58  ;;  %v13151_v37 = vpop.f32.mrb[153].mxu1  ;;  %v3667_v58 = vrot.slane %v2996_v12, 1  ;;  %v19236_v12 = vshrl.u32 %v16251_v42, 16  ;;  %v3672_v50 = vrot.slane %v19237_v18, 2  ;;  %v16814_v42 = vpop.permute.xlu1 %4234 }
 0x236   : > { %12914 = vmatmul.mubr.msk.bf16.gmra.mrb[12].mxu0 %vm253_vm1, %v3650_v40  ;;  %v5696_v22 = vpop.f32.mrb[154].mxu1  ;;  %v19234_v40 = vshll.u32 %v16192_v14, 16 }
 0x237   : > { %12917 = vmatprep.mubr.msk.bf16.mxu0 %vm253_vm1, %v3654_v19  ;;  %v16784_v57 = vadd.f32 %v5696_v22, %v16668_v52  ;;  %v13152_v62 = vpop.f32.mrb[155].mxu1  ;;  %v3668_v19 = vrot.slane %v19235_v60, 2  ;;  %v3671_v7 = vrot.slane %v19236_v12, 1  ;;  %v16820_v60 = vld [vmem:[%s19108_s2] ss:$0 sm:$0xff] }
 0x238   : > { %v3664_v26 = vrot.slane %v19234_v40, 2  ;;  %v3675_v40 = vrot.slane %v3012_v28, 1 }
 0x239   : > { %v3669_v17 = vor.u32 %v3668_v19, %v3667_v58  ;;  %v3673_v62 = vor.u32 %v3672_v50, %v3671_v7 }
 0x23a   : > { %v3665_v14 = vor.u32 %v3664_v26, %v3663_v13  ;;  %v16811_v26 = vpop.permute.xlu0 %4229 }
 0x23b   : > { %v3674_v19 = vsel %vm3610_vm9, %v3669_v17, %v3673_v62 }
 0x23c   : > { %v5701_v52 = vpop.f32.mrb[156].mxu1  ;;  %v3666_v22 = vsel %vm3610_vm9, %v3661_v2, %v3665_v14  ;;  %v3670_v13 = vsel %vm3610_vm9, %v3665_v14, %v3669_v17 }
 0x23d   : > { %v16798_v31 = vadd.f32 %v5701_v52, %v16683_v9  ;;  %v13155_v47 = vpop.f32.mrb[157].mxu1  ;;  %v3676_v9 = vrot.slane %v3008_v21, 2 }
 0x23e   : > { %12918 = vmatmul.mubr.msk.bf16.gmra.mrb[16].mxu0 %vm253_vm1, %v3658_v56  ;;  %v5704_v37 = vpop.f32.mrb[158].mxu1  ;;  %v14507_v56 = vld [vmem:[%s14653_s8 + $0x94] ss:$0 sps:$4 sm:$0x33]   ;;  %v16824_v52 = vpop.permute.xlu0 %4239 }
 0x23f   : > { %12921 = vmatprep.mubr.msk.bf16.mxu0 %vm253_vm1, %v3662_v33  ;;  %v13156_v35 = vpop.f32.mrb[159].mxu1  ;;  %v3680_v2 = vshrl.u32 %v14507_v56, 16  ;;  %v3683_v33 = vshll.u32 %v14507_v56, 16  ;;  %v3677_v58 = vor.u32 %v3676_v9, %v3675_v40 }
 0x241   : > { %v3682_v47 = vrot.slane %v3680_v2, 1  ;;  %v3685_v12 = vrot.slane %v3683_v33, 2  ;;  %v3678_v37 = vsel %vm3610_vm9, %v3673_v62, %v3677_v58 }
 0x242   : > { %v5916_v9 = vpop.permute.xlu0 %5915 }
 0x243   : > { %v3686_v17 = vor.u32 %v3685_v12, %v3682_v47 }
 0x244   : > { %v5830_v28 = vpop.f32.mrb[160].mxu1 }
 0x245   : > { %v5868_v25 = vadd.f32 %v5830_v28, %v16704_v0  ;;  %v13167_v21 = vpop.f32.mrb[161].mxu1 }
 0x246   : > { %12922 = vmatmul.mubr.msk.bf16.gmra.mrb[20].mxu0 %vm253_vm1, %v3666_v22  ;;  %v5833_v14 = vpop.f32.mrb[162].mxu1  ;;  %v16829_v22 = vpop.permute.xlu1 %4244  ;;  %v3687_v21 = vsel %vm3610_vm9, %v3677_v58, %v3686_v17 }
 0x247   : > { %12925 = vmatprep.mubr.msk.bf16.mxu0 %vm253_vm1, %v3670_v13  ;;  %v5877_v7 = vadd.f32 %v16820_v60, %v5868_v25  ;;  %v5869_v18 = vadd.f32 %v5833_v14, %v16714_v1  ;;  %v13168_v50 = vpop.f32.mrb[163].mxu1 }
 0x249   : > { %v5878_v56 = vadd.f32 %v16820_v60, %v5869_v18  ;;  %v5886_v0 = vmul.f32 0.01, %v5877_v7 }
 0x24a   : > { %v5921_v25 = vpop.permute.xlu1 %5920 }
 0x24b   : > { %v5887_v35 = vmul.f32 0.01, %v5878_v56  ;;  %v5895_v13 = vmax.f32 %v5877_v7, %v5886_v0  ;;  %v5926_v0 = vpop.permute.xlu0 %5925 }
 0x24c   : > { %v5838_v40 = vpop.f32.mrb[164].mxu1 }
 0x24d   : > { %v5870_v2 = vadd.f32 %v5838_v40, %v16728_v51  ;;  %v13171_v1 = vpop.f32.mrb[165].mxu1  ;;  %v5896_v33 = vmax.f32 %v5878_v56, %v5887_v35  ;;  %v5958_v28 = vmul.f32 %v5916_v9, %v5895_v13 }
 0x24e   : > { %12926 = vmatmul.mubr.msk.bf16.gmra.mrb[24].mxu0 %vm253_vm1, %v3674_v19  ;;  %v5841_v62 = vpop.f32.mrb[166].mxu1  ;;  %v5931_v9 = vpop.permute.xlu1 %5930 }
 0x24f   : > { %12929 = vmatprep.mubr.msk.bf16.mxu0 %vm253_vm1, %v3678_v37  ;;  %v5879_v14 = vadd.f32 %v16820_v60, %v5870_v2  ;;  %v5871_v19 = vadd.f32 %v5841_v62, %v16736_v36  ;;  %v13172_v18 = vpop.f32.mrb[167].mxu1  ;;  %v5959_v50 = vmul.f32 %v5921_v25, %v5896_v33 }
 0x251   : > { %v5880_v47 = vadd.f32 %v16820_v60, %v5871_v19  ;;  %v5967_v12 = vpack.c.bf16 %v5959_v50, %v5958_v28  ;;  %v5888_v7 = vmul.f32 0.01, %v5879_v14 }
 0x253   : > { %v5977_v51 = vrot.slane %v5967_v12, 4  ;;  %v5889_v37 = vmul.f32 0.01, %v5880_v47  ;;  %v5897_v56 = vmax.f32 %v5879_v14, %v5888_v7  ;;  %v5936_v14 = vpop.permute.xlu0 %5935 }
 0x254   : > { %v5846_v58 = vpop.f32.mrb[168].mxu1 }
 0x255   : > { %v5872_v17 = vadd.f32 %v5846_v58, %v16750_v4  ;;  %v13175_v36 = vpop.f32.mrb[169].mxu1  ;;  %5991 = vst.msk [vmem:[#allocation2 + $0x88] sm:$0xf0] %vm4360_vm10, %v5977_v51  ;;  %v5898_v35 = vmax.f32 %v5880_v47, %v5889_v37  ;;  %v5960_v13 = vmul.f32 %v5926_v0, %v5897_v56  ;;  %v5941_v47 = vpop.permute.xlu1 %5940 }
 0x256   : > { %12930 = vmatmul.mubr.msk.bf16.gmra.mrb[28].mxu0 %vm253_vm1, %v3687_v21  ;;  %v5849_v40 = vpop.f32.mrb[170].mxu1 }
 0x257   : > { %13553 = vmatprep.mubr.msk.bf16.mxu0 %vm14593_vm0, %v19155_v3  ;;  %v5881_v2 = vadd.f32 %v16820_v60, %v5872_v17  ;;  %v5873_v1 = vadd.f32 %v5849_v40, %v16760_v45  ;;  %v5961_v33 = vmul.f32 %v5931_v9, %v5898_v35  ;;  %v13176_v28 = vpop.f32.mrb[171].mxu1 }
 0x259   : > { %v5882_v62 = vadd.f32 %v16820_v60, %v5873_v1  ;;  %v5968_v25 = vpack.c.bf16 %v5961_v33, %v5960_v13  ;;  %v5890_v21 = vmul.f32 0.01, %v5881_v2  ;;  %v5951_v33 = vpop.permute.xlu1 %5950 }
 0x25b   : > { %v5978_v4 = vrot.slane %v5968_v25, 4  ;;  %v5891_v19 = vmul.f32 0.01, %v5882_v62  ;;  %v5899_v18 = vmax.f32 %v5881_v2, %v5890_v21  ;;  %v5946_v2 = vpop.permute.xlu0 %5945 }
 0x25c   : > { %v5854_v50 = vpop.f32.mrb[172].mxu1 }
 0x25d   : > { %v5979_v12 = vsel %vm4311_vm11, %v5977_v51, %v5978_v4  ;;  %v5874_v7 = vadd.f32 %v5854_v50, %v16774_v44  ;;  %v13179_v37 = vpop.f32.mrb[173].mxu1  ;;  %v5900_v56 = vmax.f32 %v5882_v62, %v5891_v19  ;;  %v5962_v45 = vmul.f32 %v5936_v14, %v5899_v18 }
 0x25e   : > { %5992 = vst.msk [vmem:[#allocation2 + $0x90] sm:$0xff] %vm253_vm1, %v5979_v12  ;;  %v5857_v58 = vpop.f32.mrb[174].mxu1 }
 0x25f   : > { %v5883_v0 = vadd.f32 %v16820_v60, %v5874_v7  ;;  %v5963_v17 = vmul.f32 %v5941_v47, %v5900_v56  ;;  %v5875_v36 = vadd.f32 %v5857_v58, %v16784_v57  ;;  %v13180_v35 = vpop.f32.mrb[175].mxu1  ;;  %v5956_v37 = vpop.permute.xlu0 %5955 }
 0x261   : > { %v5969_v13 = vpack.c.bf16 %v5963_v17, %v5962_v45  ;;  %v5884_v40 = vadd.f32 %v16820_v60, %v5875_v36  ;;  %v5892_v9 = vmul.f32 0.01, %v5883_v0 }
 0x263   : > { %v5980_v51 = vrot.slane %v5969_v13, 4  ;;  %v5893_v1 = vmul.f32 0.01, %v5884_v40  ;;  %v5901_v44 = vmax.f32 %v5883_v0, %v5892_v9 }
 0x264   : > { %v5862_v28 = vpop.f32.mrb[176].mxu1 }
 0x265   : > { %v5981_v62 = vsel %vm4311_vm11, %v5978_v4, %v5980_v51  ;;  %v5902_v25 = vmax.f32 %v5884_v40, %v5893_v1  ;;  %v5964_v21 = vmul.f32 %v5946_v2, %v5901_v44  ;;  %v5876_v14 = vadd.f32 %v5862_v28, %v16798_v31  ;;  %v13183_v19 = vpop.f32.mrb[177].mxu1  ;;  %v16857_v58 = vld [vmem:[#allocation2 + $0x90] sm:$0xff] }
 0x266   : > { %5993 = vst.msk [vmem:[#allocation2 + $0x98] sm:$0xff] %vm253_vm1, %v5981_v62  ;;  %v5865_v57 = vpop.f32.mrb[178].mxu1  ;;  %19238 = vst [vmem:[#allocation3_spill] sm:$0xff] %v16857_v58  ;;  %v19150_v36 = vrot.slane %v16857_v58, 4  ;;  %v14510_v2 = vld [vmem:[%s19109_s3 + $0x30] sm:$0xff]   ;;  %v16880_v1 = vshrl.u32 %v16857_v58, 16 }
 0x267   : > { %v5965_v18 = vmul.f32 %v5951_v33, %v5902_v25  ;;  %v5885_v50 = vadd.f32 %v16820_v60, %v5876_v14  ;;  %v13184_v47 = vpop.f32.mrb[179].mxu1  ;;  %13189 = vmatprep.subr.bf16.mxu1 %v14510_v2  ;;  %v16883_v44 = vshll.u32 %v16857_v58, 16 }
 0x268   : > { %13190 = vmatpush3.bf16.msra.mxu1 %v14510_v2  ;;  %v10322_v62 = vrot.slane %v16880_v1, 4 }
 0x269   : > { %v5970_v12 = vpack.c.bf16 %v5965_v18, %v5964_v21  ;;  %v5894_v7 = vmul.f32 0.01, %v5885_v50  ;;  %v10323_v25 = vrot.slane %v16883_v44, 5 }
 0x26b   : > { %v5982_v56 = vrot.slane %v5970_v12, 4  ;;  %v5903_v45 = vmax.f32 %v5885_v50, %v5894_v7  ;;  %v16895_v57 = vor.u32 %v10323_v25, %v10322_v62 }
 0x26d   : > { %v5983_v4 = vsel %vm4311_vm11, %v5980_v51, %v5982_v56  ;;  %v5966_v0 = vmul.f32 %v5956_v37, %v5903_v45  ;;  %v16861_v31 = vld [vmem:[#allocation2 + $0x98] sm:$0xff]  ;;  %19241 = vst [vmem:[#allocation6_spill] sm:$0xff] %v16895_v57 }
 0x26e   : > { %5994 = vst.msk [vmem:[#allocation2 + $0xa0] sm:$0xff] %vm253_vm1, %v5983_v4  ;;  %19239 = vst [vmem:[#allocation4_spill] sm:$0xff] %v16861_v31  ;;  %v19149_v13 = vrot.slane %v16861_v31, 4  ;;  %v14511_v51 = vld [vmem:[%s19109_s3 + $0x38] sm:$0xff]   ;;  %v16886_v33 = vshrl.u32 %v16861_v31, 16  ;;  %v16889_v28 = vshll.u32 %v16861_v31, 16 }
 0x26f   : > { %v5971_v17 = vpack.c.bf16 %v5966_v0, %v5966_v0  ;;  %13191 = vmatprep.subr.bf16.mxu1 %v14511_v51  ;;  %v16897_v50 = vld [vmem:[#allocation2 + $0x98] sm:$0xff] }
 0x270   : > { %v16871_v9 = vsel %vm4311_vm11, %v19150_v36, %v19149_v13  ;;  %13192 = vmatpush3.bf16.msra.mxu1 %v14511_v51  ;;  %v10326_v21 = vrot.slane %v16886_v33, 4  ;;  %v10327_v14 = vrot.slane %v16889_v28, 5  ;;  %19242 = vst [vmem:[#allocation7_spill] sm:$0xff] %v16897_v50  ;;  %v19148_v37 = vshrl.u32 %v16897_v50, 16  ;;  %v16926_v51 = vld [vmem:[%s19109_s3] sm:$0xff]  }
 0x271   : > { %v5984_v35 = vrot.slane %v5971_v17, 4  ;;  %19240 = vst [vmem:[#allocation5_spill] sm:$0xff] %v16871_v9  ;;  %13225 = vmatprep.subr.bf16.mxu1 %v16926_v51 }
 0x272   : > { %v10328_v18 = vor.u32 %v10327_v14, %v10326_v21  ;;  %v10800_v17 = vrot.slane %v19148_v37, 5 }
 0x273   : > { %v5985_v40 = vsel %vm4311_vm11, %v5982_v56, %v5984_v35  ;;  %v19145_v56 = vshll.u32 %v16897_v50, 16 }
 0x274   : > { %5996 = vst.msk [vmem:[#allocation2 + $0xa8] sm:$0x3f] %vm5995_vm12, %v5985_v40  ;;  %v16905_v7 = vsel %vm7830_vm13, %v16895_v57, %v10328_v18 }
 0x275   : > { %v9988_v19 = vld [vmem:[#allocation2 + $0xa0] sm:$0xff]  ;;  %19243 = vst [vmem:[#allocation8_spill] sm:$0xff] %v16905_v7  ;;  %v10801_v35 = vrot.slane %v19145_v56, 6 }
 0x276   : > { %v16899_v47 = vshrl.u32 %v9988_v19, 16  ;;  %v16901_v12 = vshll.u32 %v9988_v19, 16 }
 0x277   : > { %v16921_v2 = vor.u32 %v10801_v35, %v10800_v17 }
 0x278   : > { %v10330_v45 = vrot.slane %v16899_v47, 4  ;;  %v10331_v4 = vrot.slane %v16901_v12, 5  ;;  %v10804_v62 = vrot.slane %v16899_v47, 5  ;;  %v10805_v21 = vrot.slane %v16901_v12, 6 }
 0x279   : > { %19246 = vst [vmem:[#allocation11_spill] sm:$0xff] %v16921_v2 }
 0x27a   : > { %v16911_v0 = vor.u32 %v10331_v4, %v10330_v45  ;;  %v10806_v14 = vor.u32 %v10805_v21, %v10804_v62  ;;  %v14515_v4 = vld [vmem:[%s19109_s3 + $0x20] sm:$0xff]   ;;  %v14516_v62 = vld [vmem:[%s19109_s3 + $0x28] sm:$0xff]  }
 0x27b   : > { %v16930_v25 = vld [vmem:[#allocation2 + $0xa8] sm:$0xff]  ;;  %13546 = vmatpush3.bf16.msra.mxu0 %v14515_v4  ;;  %v14518_v4 = vld [vmem:[%s19109_s3 + $0x30] sm:$0xff]  }
 0x27c   : > { %19244 = vst [vmem:[#allocation9_spill] sm:$0xff] %v16911_v0  ;;  %v16919_v40 = vsel %vm7830_vm13, %v10328_v18, %v16911_v0  ;;  %19247 = vst [vmem:[#allocation12_spill] sm:$0xff] %v16930_v25  ;;  %v19147_v19 = vshrl.u32 %v16930_v25, 16  ;;  %v19146_v18 = vshll.u32 %v16930_v25, 16  ;;  %v16937_v45 = vsel %vm8952_vm14, %v16921_v2, %v10806_v14  ;;  %13547 = vmatprep.subr.bf16.mxu0 %v19155_v3 }
 0x27d   : > { %19245 = vst [vmem:[#allocation10_spill] sm:$0xff] %v16919_v40  ;;  %19248 = vst [vmem:[#allocation13_spill] sm:$0xff] %v16937_v45 }
 0x27e   : > { %v10808_v17 = vrot.slane %v19147_v19, 5  ;;  %v10809_v35 = vrot.slane %v19146_v18, 6  ;;  %v14519_v18 = vld [vmem:[%s19109_s3 + $0x38] sm:$0xff]  }
 0x27f   : > { %13548 = vmatpush3.bf16.msra.mxu0 %v14516_v62 }
 0x280   : > { %v16950_v21 = vor.u32 %v10809_v35, %v10808_v17  ;;  %13549 = vmatprep.subr.bf16.mxu0 %v19155_v3 }
 0x282   : > { %19249 = vst [vmem:[#allocation14_spill] sm:$0xff] %v16950_v21  ;;  %v16954_v56 = vsel %vm8952_vm14, %v10806_v14, %v16950_v21 }
 0x283   : > { %19250 = vst [vmem:[#allocation15_spill] sm:$0xff] %v16954_v56  ;;  %13550 = vmatpush3.bf16.msra.mxu0 %v14518_v4 }
 0x284   : > { %13551 = vmatprep.subr.bf16.mxu0 %v19155_v3 }
 0x287   : > { %13552 = vmatpush3.bf16.msra.mxu0 %v14519_v18 }
 0x288   : > { %13573 = vmatprep.subr.bf16.mxu0 %v19155_v3 }
 0x2f1   : > { %v12903_v17 = vpop.f32.mrb[0].mxu0 }
 0x2f2   : > { %v3961_v14 = vadd.f32 %v12903_v17, %v16820_v60  ;;  %v3794_v35 = vpop.f32.mrb[1].mxu0 }
 0x2f3   : > { %v3959_v62 = vadd.f32 %v16820_v60, %v3794_v35  ;;  %v12904_v19 = vpop.f32.mrb[2].mxu0 }
 0x2f4   : > { %v3993_v37 = vmul.f32 0.01, %v3961_v14  ;;  %v3962_v13 = vadd.f32 %v12904_v19, %v16820_v60  ;;  %v3797_v4 = vpop.f32.mrb[3].mxu0 }
 0x2f5   : > { %v3991_v36 = vmul.f32 0.01, %v3959_v62  ;;  %v3960_v21 = vadd.f32 %v16820_v60, %v3797_v4 }
 0x2f6   : > { %v4025_v56 = vmax.f32 %v3961_v14, %v3993_v37  ;;  %v3994_v45 = vmul.f32 0.01, %v3962_v13 }
 0x2f7   : > { %v4023_v2 = vmax.f32 %v3959_v62, %v3991_v36  ;;  %v3992_v18 = vmul.f32 0.01, %v3960_v21 }
 0x2f8   : > { %v4026_v25 = vmax.f32 %v3962_v13, %v3994_v45  ;;  %v4249_v17 = vmul.f32 %v16595_v34, %v4025_v56 }
 0x2f9   : > { %v4024_v3 = vmax.f32 %v3960_v21, %v3992_v18  ;;  %v12907_v50 = vpop.f32.mrb[4].mxu0  ;;  %v4247_v19 = vmul.f32 %v16591_v16, %v4023_v2 }
 0x2fa   : > { %v4250_v0 = vmul.f32 %v16603_v29, %v4026_v25  ;;  %v3965_v35 = vadd.f32 %v12907_v50, %v16820_v60  ;;  %v3810_v40 = vpop.f32.mrb[5].mxu0 }
 0x2fb   : > { %v4248_v7 = vmul.f32 %v16599_v20, %v4024_v3  ;;  %v3963_v4 = vadd.f32 %v16820_v60, %v3810_v40  ;;  %v12908_v37 = vpop.f32.mrb[6].mxu0 }
 0x2fc   : > { %v4280_v14 = vpack.c.bf16 %v4250_v0, %v4249_v17  ;;  %v3997_v36 = vmul.f32 0.01, %v3965_v35  ;;  %v3966_v13 = vadd.f32 %v12908_v37, %v16820_v60  ;;  %v3813_v45 = vpop.f32.mrb[7].mxu0 }
 0x2fd   : > { %v4279_v21 = vpack.c.bf16 %v4248_v7, %v4247_v19  ;;  %v3995_v62 = vmul.f32 0.01, %v3963_v4  ;;  %v3964_v34 = vadd.f32 %v16820_v60, %v3813_v45 }
 0x2fe   : > { %v4313_v29 = vrot.slane %v4280_v14, 4  ;;  %v4029_v56 = vmax.f32 %v3965_v35, %v3997_v36  ;;  %v3998_v50 = vmul.f32 0.01, %v3966_v13 }
 0x2ff   : > { %v4312_v25 = vrot.slane %v4279_v21, 4  ;;  %v4027_v18 = vmax.f32 %v3963_v4, %v3995_v62  ;;  %v3996_v16 = vmul.f32 0.01, %v3964_v34 }
 0x300   : > { %v4030_v2 = vmax.f32 %v3966_v13, %v3998_v50  ;;  %v4253_v7 = vmul.f32 %v16625_v63, %v4029_v56 }
 0x301   : > { %v4314_v3 = vsel %vm4311_vm11, %v4312_v25, %v4313_v29  ;;  %4361 = vst.msk [vmem:[#allocation2 + $0x8] sm:$0xf0] %vm4360_vm10, %v4312_v25  ;;  %v4028_v20 = vmax.f32 %v3964_v34, %v3996_v16  ;;  %v12911_v0 = vpop.f32.mrb[8].mxu0  ;;  %v4251_v19 = vmul.f32 %v16615_v39, %v4027_v18 }
 0x302   : > { %4362 = vst.msk [vmem:[#allocation2 + $0x10] sm:$0xff] %vm253_vm1, %v4314_v3  ;;  %v4254_v40 = vmul.f32 %v16630_v46, %v4030_v2  ;;  %v3969_v17 = vadd.f32 %v12911_v0, %v16820_v60  ;;  %v3826_v35 = vpop.f32.mrb[9].mxu0  ;;  %v16988_v46 = vld [vmem:[#allocation2] sm:$0xf8] }
 0x303   : > { %v4252_v4 = vmul.f32 %v16619_v49, %v4028_v20  ;;  %v3967_v37 = vadd.f32 %v16820_v60, %v3826_v35  ;;  %v12912_v14 = vpop.f32.mrb[10].mxu0  ;;  %v6049_v3 = vrot.slane %v16988_v46, 3 }
 0x304   : > { %v4282_v36 = vpack.c.bf16 %v4254_v40, %v4253_v7  ;;  %v4001_v13 = vmul.f32 0.01, %v3969_v17  ;;  %v3970_v45 = vadd.f32 %v12912_v14, %v16820_v60  ;;  %v3829_v21 = vpop.f32.mrb[11].mxu0 }
 0x305   : > { %v4281_v62 = vpack.c.bf16 %v4252_v4, %v4251_v19  ;;  %v3999_v34 = vmul.f32 0.01, %v3967_v37  ;;  %v3968_v63 = vadd.f32 %v16820_v60, %v3829_v21 }
 0x306   : > { %v4317_v56 = vrot.slane %v4282_v36, 4  ;;  %v4033_v50 = vmax.f32 %v3969_v17, %v4001_v13  ;;  %v4002_v25 = vmul.f32 0.01, %v3970_v45 }
 0x307   : > { %v4315_v39 = vrot.slane %v4281_v62, 4  ;;  %v4031_v18 = vmax.f32 %v3967_v37, %v3999_v34  ;;  %v4000_v49 = vmul.f32 0.01, %v3968_v63 }
 0x308   : > { %v4034_v16 = vmax.f32 %v3970_v45, %v4002_v25  ;;  %v16990_v2 = vld [vmem:[#allocation2 + $0x8] sm:$0xff]  ;;  %v4257_v7 = vmul.f32 %v16654_v27, %v4033_v50 }
 0x309   : > { %v4316_v20 = vsel %vm4311_vm11, %v4313_v29, %v4315_v39  ;;  %v4318_v0 = vsel %vm4311_vm11, %v4315_v39, %v4317_v56  ;;  %v4032_v40 = vmax.f32 %v3968_v63, %v4000_v49  ;;  %v12915_v35 = vpop.f32.mrb[12].mxu0  ;;  %v16996_v19 = vld [vmem:[#allocation2 + $0x10] sm:$0xff]  ;;  %v6050_v14 = vrot.slane %v16990_v2, 3  ;;  %v14513_v50 = vld [vmem:[%s19109_s3 + $0x8] sm:$0xff]  }
 0x30a   : > { %4363 = vst.msk [vmem:[#allocation2 + $0x18] sm:$0xff] %vm253_vm1, %v4316_v20  ;;  %4364 = vst.msk [vmem:[#allocation2 + $0x20] sm:$0xff] %vm253_vm1, %v4318_v0  ;;  %v4258_v17 = vmul.f32 %v16658_v15, %v4034_v16  ;;  %v3973_v4 = vadd.f32 %v12915_v35, %v16820_v60  ;;  %v3842_v37 = vpop.f32.mrb[13].mxu0  ;;  %v6052_v29 = vrot.slane %v16996_v19, 3  ;;  %v4255_v36 = vmul.f32 %v16638_v6, %v4031_v18 }
 0x30b   : > { %v4256_v27 = vmul.f32 %v16643_v10, %v4032_v40  ;;  %v3971_v13 = vadd.f32 %v16820_v60, %v3842_v37  ;;  %v12916_v45 = vpop.f32.mrb[14].mxu0  ;;  %v6051_v15 = vsel %vm396_vm2, %v6049_v3, %v6050_v14  ;;  %v14514_v40 = vld [vmem:[%s19109_s3 + $0x10] sm:$0xff]  }
 0x30c   : > { %v4284_v21 = vpack.c.bf16 %v4258_v17, %v4257_v7  ;;  %v4005_v62 = vmul.f32 0.01, %v3973_v4  ;;  %v3974_v34 = vadd.f32 %v12916_v45, %v16820_v60  ;;  %v3845_v63 = vpop.f32.mrb[15].mxu0  ;;  %13193 = vmatprep.mubr.msk.bf16.mxu1 %vm253_vm1, %v6051_v15  ;;  %v6053_v10 = vsel %vm396_vm2, %v6050_v14, %v6052_v29 }
 0x30d   : > { %v4283_v25 = vpack.c.bf16 %v4256_v27, %v4255_v36  ;;  %v4003_v39 = vmul.f32 0.01, %v3971_v13  ;;  %v3972_v6 = vadd.f32 %v16820_v60, %v3845_v63  ;;  %13194 = vmatmul.mubr.msk.bf16.vlgmr.msra.gmra.mrb[180].mxu1 %vm253_vm1, %v6053_v10  ;;  %v14517_v10 = vld [vmem:[%s19109_s3 + $0x18] sm:$0xff]  }
 0x30e   : > { %v4321_v18 = vrot.slane %v4284_v21, 4  ;;  %v4037_v49 = vmax.f32 %v3973_v4, %v4005_v62  ;;  %v4006_v16 = vmul.f32 0.01, %v3974_v34  ;;  %13226 = vmatpush3.bf16.msra.mxu1 %v16926_v51 }
 0x30f   : > { %v4319_v20 = vrot.slane %v4283_v25, 4  ;;  %v4035_v0 = vmax.f32 %v3971_v13, %v4003_v39  ;;  %v4004_v3 = vmul.f32 0.01, %v3972_v6  ;;  %13227 = vmatprep.subr.bf16.mxu1 %v14513_v50 }
 0x310   : > { %v4038_v7 = vmax.f32 %v3974_v34, %v4006_v16  ;;  %v4261_v4 = vmul.f32 %v16685_v59, %v4037_v49 }
 0x311   : > { %v4320_v35 = vsel %vm4311_vm11, %v4317_v56, %v4319_v20  ;;  %v4322_v17 = vsel %vm4311_vm11, %v4319_v20, %v4321_v18  ;;  %v4036_v37 = vmax.f32 %v3972_v6, %v4004_v3  ;;  %v12919_v14 = vpop.f32.mrb[16].mxu0  ;;  %v17023_v36 = vld [vmem:[#allocation2 + $0x18] sm:$0xff]  ;;  %v17025_v27 = vld [vmem:[#allocation2 + $0x20] sm:$0xff]  ;;  %v4259_v59 = vmul.f32 %v16675_v43, %v4035_v0 }
 0x312   : > { %4365 = vst.msk [vmem:[#allocation2 + $0x28] sm:$0xff] %vm253_vm1, %v4320_v35  ;;  %4366 = vst.msk [vmem:[#allocation2 + $0x30] sm:$0xff] %vm253_vm1, %v4322_v17  ;;  %v4262_v51 = vmul.f32 %v16697_v54, %v4038_v7  ;;  %v3977_v13 = vadd.f32 %v12919_v14, %v16820_v60  ;;  %v3858_v45 = vpop.f32.mrb[17].mxu0  ;;  %v6054_v56 = vrot.slane %v17023_v36, 3  ;;  %v6056_v21 = vrot.slane %v17025_v27, 3  ;;  %13228 = vmatpush3.bf16.msra.mxu1 %v14513_v50  ;;  %v17048_v17 = vld [vmem:[%s19109_s3 + $0x40] sm:$0xff]  }
 0x313   : > { %v4260_v62 = vmul.f32 %v16679_v61, %v4036_v37  ;;  %v3975_v34 = vadd.f32 %v16820_v60, %v3858_v45  ;;  %v12920_v63 = vpop.f32.mrb[18].mxu0  ;;  %13229 = vmatprep.subr.bf16.mxu1 %v14514_v40 }
 0x314   : > { %v4286_v15 = vpack.c.bf16 %v4262_v51, %v4261_v4  ;;  %v4009_v25 = vmul.f32 0.01, %v3977_v13  ;;  %v3978_v39 = vadd.f32 %v12920_v63, %v16820_v60  ;;  %v3861_v54 = vpop.f32.mrb[19].mxu0  ;;  %v6055_v6 = vsel %vm396_vm2, %v6052_v29, %v6054_v56 }
 0x315   : > { %v4285_v49 = vpack.c.bf16 %v4260_v62, %v4259_v59  ;;  %v4007_v43 = vmul.f32 0.01, %v3975_v34  ;;  %v3976_v61 = vadd.f32 %v16820_v60, %v3861_v54  ;;  %13197 = vmatprep.mubr.msk.bf16.mxu1 %vm253_vm1, %v6055_v6  ;;  %v6057_v50 = vsel %vm396_vm2, %v6054_v56, %v6056_v21 }
 0x316   : > { %v4325_v16 = vrot.slane %v4286_v15, 4  ;;  %v4041_v20 = vmax.f32 %v3977_v13, %v4009_v25  ;;  %v4010_v0 = vmul.f32 0.01, %v3978_v39  ;;  %13198 = vmatmul.mubr.msk.bf16.gmra.mrb[184].mxu1 %vm253_vm1, %v6057_v50 }
 0x317   : > { %v4323_v3 = vrot.slane %v4285_v49, 4  ;;  %v4039_v29 = vmax.f32 %v3975_v34, %v4007_v43  ;;  %v4008_v7 = vmul.f32 0.01, %v3976_v61  ;;  %13230 = vmatpush3.bf16.msra.mxu1 %v14514_v40 }
 0x318   : > { %v4042_v35 = vmax.f32 %v3978_v39, %v4010_v0  ;;  %13231 = vmatprep.subr.bf16.mxu1 %v14517_v10  ;;  %v4265_v14 = vmul.f32 %v16722_v11, %v4041_v20 }
 0x319   : > { %v4324_v4 = vsel %vm4311_vm11, %v4321_v18, %v4323_v3  ;;  %v4326_v37 = vsel %vm4311_vm11, %v4323_v3, %v4325_v16  ;;  %v4040_v51 = vmax.f32 %v3976_v61, %v4008_v7  ;;  %v12923_v13 = vpop.f32.mrb[20].mxu0  ;;  %v17053_v45 = vld [vmem:[#allocation2 + $0x28] sm:$0xff]  ;;  %v17055_v56 = vld [vmem:[#allocation2 + $0x30] sm:$0xff]  ;;  %v4263_v11 = vmul.f32 %v16701_v38, %v4039_v29 }
 0x31a   : > { %4367 = vst.msk [vmem:[#allocation2 + $0x38] sm:$0xff] %vm253_vm1, %v4324_v4  ;;  %4368 = vst.msk [vmem:[#allocation2 + $0x40] sm:$0xff] %vm253_vm1, %v4326_v37  ;;  %v4266_v40 = vmul.f32 %v16725_v53, %v4042_v35  ;;  %v3981_v59 = vadd.f32 %v12923_v13, %v16820_v60  ;;  %v3874_v62 = vpop.f32.mrb[21].mxu0  ;;  %v6058_v18 = vrot.slane %v17053_v45, 3  ;;  %v6060_v34 = vrot.slane %v17055_v56, 3 }
 0x31b   : > { %v4264_v63 = vmul.f32 %v16706_v41, %v4040_v51  ;;  %v3979_v15 = vadd.f32 %v16820_v60, %v3874_v62  ;;  %v12924_v25 = vpop.f32.mrb[22].mxu0  ;;  %13232 = vmatpush3.bf16.msra.mxu1 %v14517_v10 }
 0x31c   : > { %v4288_v39 = vpack.c.bf16 %v4266_v40, %v4265_v14  ;;  %v4013_v54 = vmul.f32 0.01, %v3981_v59  ;;  %v3982_v6 = vadd.f32 %v12924_v25, %v16820_v60  ;;  %v3877_v53 = vpop.f32.mrb[23].mxu0  ;;  %v6059_v49 = vsel %vm396_vm2, %v6056_v21, %v6058_v18  ;;  %13265 = vmatprep.subr.bf16.mxu1 %v17048_v17 }
 0x31d   : > { %v4287_v43 = vpack.c.bf16 %v4264_v63, %v4263_v11  ;;  %v4011_v61 = vmul.f32 0.01, %v3979_v15  ;;  %v3980_v50 = vadd.f32 %v16820_v60, %v3877_v53  ;;  %13201 = vmatprep.mubr.msk.bf16.mxu1 %vm253_vm1, %v6059_v49  ;;  %v6061_v38 = vsel %vm396_vm2, %v6058_v18, %v6060_v34 }
 0x31e   : > { %v4329_v41 = vrot.slane %v4288_v39, 4  ;;  %v4045_v20 = vmax.f32 %v3981_v59, %v4013_v54  ;;  %v4014_v10 = vmul.f32 0.01, %v3982_v6  ;;  %13202 = vmatmul.mubr.msk.bf16.gmra.mrb[188].mxu1 %vm253_vm1, %v6061_v38 }
 0x31f   : > { %v4327_v0 = vrot.slane %v4287_v43, 4  ;;  %v4043_v3 = vmax.f32 %v3979_v15, %v4011_v61  ;;  %v4012_v29 = vmul.f32 0.01, %v3980_v50 }
 0x320   : > { %v4046_v7 = vmax.f32 %v3982_v6, %v4014_v10  ;;  %v4269_v4 = vmul.f32 %v16752_v55, %v4045_v20 }
 0x321   : > { %v4328_v21 = vsel %vm4311_vm11, %v4325_v16, %v4327_v0  ;;  %v4330_v35 = vsel %vm4311_vm11, %v4327_v0, %v4329_v41  ;;  %v4044_v37 = vmax.f32 %v3980_v50, %v4012_v29  ;;  %v12927_v14 = vpop.f32.mrb[24].mxu0  ;;  %v17076_v51 = vld [vmem:[#allocation2 + $0x38] sm:$0xff]  ;;  %v17078_v13 = vld [vmem:[#allocation2 + $0x40] sm:$0xff]  ;;  %v4267_v55 = vmul.f32 %v16743_v48, %v4043_v3 }
 0x322   : > { %4369 = vst.msk [vmem:[#allocation2 + $0x48] sm:$0xff] %vm253_vm1, %v4328_v21  ;;  %4370 = vst.msk [vmem:[#allocation2 + $0x50] sm:$0xff] %vm253_vm1, %v4330_v35  ;;  %v4270_v40 = vmul.f32 %v16767_v24, %v4046_v7  ;;  %v3985_v59 = vadd.f32 %v12927_v14, %v16820_v60  ;;  %v3890_v62 = vpop.f32.mrb[25].mxu0  ;;  %v6062_v16 = vrot.slane %v17076_v51, 3  ;;  %v6064_v18 = vrot.slane %v17078_v13, 3 }
 0x323   : > { %v4268_v11 = vmul.f32 %v16746_v32, %v4044_v37  ;;  %v3983_v63 = vadd.f32 %v16820_v60, %v3890_v62  ;;  %v12928_v15 = vpop.f32.mrb[26].mxu0 }
 0x324   : > { %v4290_v25 = vpack.c.bf16 %v4270_v40, %v4269_v4  ;;  %v4017_v39 = vmul.f32 0.01, %v3985_v59  ;;  %v3986_v54 = vadd.f32 %v12928_v15, %v16820_v60  ;;  %v3893_v6 = vpop.f32.mrb[27].mxu0  ;;  %v6063_v24 = vsel %vm396_vm2, %v6060_v34, %v6062_v16 }
 0x325   : > { %v4289_v53 = vpack.c.bf16 %v4268_v11, %v4267_v55  ;;  %v4015_v49 = vmul.f32 0.01, %v3983_v63  ;;  %v3984_v43 = vadd.f32 %v16820_v60, %v3893_v6  ;;  %13205 = vmatprep.mubr.msk.bf16.mxu1 %vm253_vm1, %v6063_v24  ;;  %v6065_v48 = vsel %vm396_vm2, %v6062_v16, %v6064_v18 }
 0x326   : > { %v4333_v61 = vrot.slane %v4290_v25, 4  ;;  %v4049_v32 = vmax.f32 %v3985_v59, %v4017_v39  ;;  %v4018_v50 = vmul.f32 0.01, %v3986_v54  ;;  %13206 = vmatmul.mubr.msk.bf16.gmra.mrb[192].mxu1 %vm253_vm1, %v6065_v48 }
 0x327   : > { %v4331_v38 = vrot.slane %v4289_v53, 4  ;;  %v4047_v20 = vmax.f32 %v3983_v63, %v4015_v49  ;;  %v4016_v10 = vmul.f32 0.01, %v3984_v43 }
 0x328   : > { %v4050_v0 = vmax.f32 %v3986_v54, %v4018_v50  ;;  %v4273_v29 = vmul.f32 %v16792_v23, %v4049_v32 }
 0x329   : > { %v4332_v3 = vsel %vm4311_vm11, %v4329_v41, %v4331_v38  ;;  %v4334_v34 = vsel %vm4311_vm11, %v4331_v38, %v4333_v61  ;;  %v4048_v7 = vmax.f32 %v3984_v43, %v4016_v10  ;;  %v12931_v21 = vpop.f32.mrb[28].mxu0  ;;  %v17098_v35 = vld [vmem:[#allocation2 + $0x48] sm:$0xff]  ;;  %v17100_v4 = vld [vmem:[#allocation2 + $0x50] sm:$0xff]  ;;  %v4271_v23 = vmul.f32 %v16771_v30, %v4047_v20 }
 0x32a   : > { %4371 = vst.msk [vmem:[#allocation2 + $0x58] sm:$0xff] %vm253_vm1, %v4332_v3  ;;  %4372 = vst.msk [vmem:[#allocation2 + $0x60] sm:$0xff] %vm253_vm1, %v4334_v34  ;;  %v4274_v37 = vmul.f32 %v16795_v8, %v4050_v0  ;;  %v3989_v14 = vadd.f32 %v12931_v21, %v16820_v60  ;;  %v3906_v40 = vpop.f32.mrb[29].mxu0  ;;  %v6066_v41 = vrot.slane %v17098_v35, 3  ;;  %v6068_v59 = vrot.slane %v17100_v4, 3 }
 0x32b   : > { %v4272_v62 = vmul.f32 %v16776_v5, %v4048_v7  ;;  %v3987_v16 = vadd.f32 %v16820_v60, %v3906_v40  ;;  %v12932_v55 = vpop.f32.mrb[30].mxu0  ;;  %v5997_v40 = vld [vmem:[#allocation2] sm:$0xfc] }
 0x32c   : > { %v4292_v11 = vpack.c.bf16 %v4274_v37, %v4273_v29  ;;  %v4021_v63 = vmul.f32 0.01, %v3989_v14  ;;  %v3990_v15 = vadd.f32 %v12932_v55, %v16820_v60  ;;  %v3909_v25 = vpop.f32.mrb[31].mxu0  ;;  %v6067_v8 = vsel %vm396_vm2, %v6064_v18, %v6066_v41 }
 0x32d   : > { %v4291_v39 = vpack.c.bf16 %v4272_v62, %v4271_v23  ;;  %v4019_v54 = vmul.f32 0.01, %v3987_v16  ;;  %v3988_v6 = vadd.f32 %v16820_v60, %v3909_v25  ;;  %13209 = vmatprep.mubr.msk.bf16.mxu1 %vm253_vm1, %v6067_v8  ;;  %v6069_v30 = vsel %vm396_vm2, %v6066_v41, %v6068_v59 }
 0x32e   : > { %v4337_v24 = vrot.slane %v4292_v11, 4  ;;  %v4053_v5 = vmax.f32 %v3989_v14, %v4021_v63  ;;  %v4022_v53 = vmul.f32 0.01, %v3990_v15  ;;  %13210 = vmatmul.mubr.msk.bf16.gmra.mrb[196].mxu1 %vm253_vm1, %v6069_v30  ;;  %v6316_v41 = vshrl.u32 %v5997_v40, 16 }
 0x32f   : > { %v4335_v49 = vrot.slane %v4291_v39, 4  ;;  %v4051_v43 = vmax.f32 %v3987_v16, %v4019_v54  ;;  %v4020_v48 = vmul.f32 0.01, %v3988_v6  ;;  %v6319_v23 = vshll.u32 %v5997_v40, 16 }
 0x330   : > { %v4054_v32 = vmax.f32 %v3990_v15, %v4022_v53  ;;  %v4277_v10 = vmul.f32 %v16824_v52, %v4053_v5  ;;  %v6324_v16 = vshrl.u32 %v16990_v2, 16  ;;  %v6327_v55 = vshll.u32 %v16990_v2, 16  ;;  %v14524_v2 = vld [vmem:[%s19109_s3 + $0x10] sm:$0xff]  }
 0x331   : > { %v4336_v50 = vsel %vm4311_vm11, %v4333_v61, %v4335_v49  ;;  %v4338_v18 = vsel %vm4311_vm11, %v4335_v49, %v4337_v24  ;;  %v4052_v38 = vmax.f32 %v3988_v6, %v4020_v48  ;;  %v17119_v20 = vld [vmem:[#allocation2 + $0x58] sm:$0xff]  ;;  %v17121_v60 = vld [vmem:[#allocation2 + $0x60] sm:$0xff]  ;;  %v4275_v61 = vmul.f32 %v16811_v26, %v4051_v43 }
 0x332   : > { %4373 = vst.msk [vmem:[#allocation2 + $0x68] sm:$0xff] %vm253_vm1, %v4336_v50  ;;  %4374 = vst.msk [vmem:[#allocation2 + $0x70] sm:$0xff] %vm253_vm1, %v4338_v18  ;;  %v4278_v0 = vmul.f32 %v16829_v22, %v4054_v32  ;;  %v6070_v3 = vrot.slane %v17119_v20, 3  ;;  %v6072_v34 = vrot.slane %v17121_v60, 3  ;;  %v6333_v15 = vshrl.u32 %v16996_v19, 16 }
 0x333   : > { %v4276_v29 = vmul.f32 %v16814_v42, %v4052_v38  ;;  %v6336_v25 = vshll.u32 %v16996_v19, 16  ;;  %v6342_v8 = vshrl.u32 %v17023_v36, 16  ;;  %v19165_v39 = vshll.u32 %v17023_v36, 16 }
 0x334   : > { %v4294_v7 = vpack.c.bf16 %v4278_v0, %v4277_v10  ;;  %v6071_v21 = vsel %vm396_vm2, %v6068_v59, %v6070_v3  ;;  %v6073_v37 = vsel %vm396_vm2, %v6070_v3, %v6072_v34  ;;  %v19164_v54 = vshrl.u32 %v17025_v27, 16 }
 0x335   : > { %v4293_v14 = vpack.c.bf16 %v4276_v29, %v4275_v61  ;;  %13213 = vmatprep.mubr.msk.bf16.mxu1 %vm253_vm1, %v6071_v21  ;;  %v19163_v6 = vshll.u32 %v17025_v27, 16  ;;  %v19162_v5 = vshrl.u32 %v17053_v45, 16  ;;  %v19161_v53 = vshll.u32 %v17053_v45, 16 }
 0x336   : > { %v4341_v52 = vrot.slane %v4294_v7, 4  ;;  %13214 = vmatmul.mubr.msk.bf16.gmra.mrb[200].mxu1 %vm253_vm1, %v6073_v37  ;;  %v6318_v49 = vrot.slane %v6316_v41, 2  ;;  %v6321_v43 = vrot.slane %v6319_v23, 3  ;;  %v6326_v48 = vrot.slane %v6324_v16, 2 }
 0x337   : > { %v4339_v22 = vrot.slane %v4293_v14, 4  ;;  %v6329_v32 = vrot.slane %v6327_v55, 3  ;;  %v9555_v50 = vrot.slane %v16857_v58, 3  ;;  %v6335_v18 = vrot.slane %v6333_v15, 2 }
 0x338   : > { %4377 = vst.msk [vmem:[#allocation2 + $0x88] sm:$0xf] %vm255_vm6, %v4341_v52  ;;  %v6711_v38 = vshrl.u32 %v16988_v46, 16  ;;  %v6714_v10 = vshll.u32 %v16988_v46, 16  ;;  %v6338_v3 = vrot.slane %v6336_v25, 3  ;;  %v6347_v61 = vrot.slane %v19165_v39, 3 }
 0x339   : > { %v4340_v26 = vsel %vm4311_vm11, %v4337_v24, %v4339_v22  ;;  %v4342_v42 = vsel %vm4311_vm11, %v4339_v22, %v4341_v52  ;;  %v17138_v62 = vld [vmem:[#allocation2 + $0x68] sm:$0xff]  ;;  %v17140_v59 = vld [vmem:[#allocation2 + $0x70] sm:$0xff]  ;;  %v6353_v29 = vrot.slane %v19164_v54, 2  ;;  %v6356_v7 = vrot.slane %v19163_v6, 3  ;;  %v17212_v39 = vld [vmem:[#allocation2 + $0xa0] sm:$0x1f] }
 0x33a   : > { %4375 = vst.msk [vmem:[#allocation2 + $0x78] sm:$0xff] %vm253_vm1, %v4340_v26  ;;  %4376 = vst.msk [vmem:[#allocation2 + $0x80] sm:$0xff] %vm253_vm1, %v4342_v42  ;;  %v6074_v11 = vrot.slane %v17138_v62, 3  ;;  %v6076_v63 = vrot.slane %v17140_v59, 3  ;;  %v6362_v46 = vrot.slane %v19162_v5, 2  ;;  %v6365_v21 = vrot.slane %v19161_v53, 3 }
 0x33b   : > { %v6369_v37 = vshrl.u32 %v17055_v56, 16  ;;  %v6322_v22 = vor.u32 %v6321_v43, %v6318_v49  ;;  %v6330_v41 = vor.u32 %v6329_v32, %v6326_v48  ;;  %v6372_v23 = vshll.u32 %v17055_v56, 16  ;;  %v14522_v5 = vld [vmem:[%s19109_s3] sm:$0xff]   ;;  %v14527_v56 = vld [vmem:[%s19109_s3 + $0x58] sm:$0xff]  }
 0x33c   : > { %v6075_v30 = vsel %vm396_vm2, %v6072_v34, %v6074_v11  ;;  %v6077_v24 = vsel %vm396_vm2, %v6074_v11, %v6076_v63  ;;  %v6344_v34 = vrot.slane %v6342_v8, 2  ;;  %v19166_v53 = vrot.slane %v16861_v31, 3 }
 0x33d   : > { %13217 = vmatprep.mubr.msk.bf16.mxu1 %vm253_vm1, %v6075_v30  ;;  %v17201_v6 = vrot.slane %v6711_v38, 3  ;;  %v17203_v49 = vrot.slane %v6714_v10, 4  ;;  %v6371_v38 = vrot.slane %v6369_v37, 2  ;;  %v6331_v10 = vsel %vm666_vm3, %v6322_v22, %v6330_v41 }
 0x33e   : > { %13218 = vmatmul.mubr.msk.bf16.gmra.mrb[204].mxu1 %vm253_vm1, %v6077_v24  ;;  %v6339_v24 = vor.u32 %v6338_v3, %v6335_v18  ;;  %v6348_v54 = vor.u32 %v6347_v61, %v6344_v34  ;;  %v6357_v18 = vor.u32 %v6356_v7, %v6353_v29  ;;  %v17210_v3 = vor.u32 %v6365_v21, %v6362_v46  ;;  %v14523_v46 = vld [vmem:[%s19109_s3 + $0x8] sm:$0xff]  }
 0x33f   : > { %v17169_v0 = vld [vmem:[#allocation2 + $0x88] sm:$0xff]  ;;  %v19251_v34 = vmov 0.0   ;;  %v6378_v61 = vshrl.u32 %v17076_v51, 16  ;;  %v17229_v29 = vsel %vm396_vm2, %v9555_v50, %v19166_v53  ;;  %v6381_v7 = vshll.u32 %v17076_v51, 16 }
 0x340   : > { %v9553_v11 = vrot.slane %v17169_v0, 3  ;;  %v6340_v21 = vsel %vm666_vm3, %v6330_v41, %v6339_v24  ;;  %v6349_v22 = vsel %vm666_vm3, %v6339_v24, %v6348_v54  ;;  %v6718_v41 = vrot.slane %v6324_v16, 3 }
 0x341   : > { %v17186_v14 = vld [vmem:[#allocation2 + $0x78] sm:$0xff]  ;;  %v17188_v40 = vld [vmem:[#allocation2 + $0x80] sm:$0xf8]  ;;  %v17190_v52 = vld [vmem:[#allocation2 + $0x80] sm:$0x7]  ;;  %v17254_v24 = vrot.slane %v6378_v61, 2 }
 0x342   : > { %v6078_v26 = vrot.slane %v17186_v14, 3  ;;  %v9552_v42 = vrot.slane %v17188_v40, 3  ;;  %v6080_v30 = vrot.slane %v17190_v52, 3  ;;  %v6722_v16 = vrot.slane %v6333_v15, 3 }
 0x343   : > { %v6726_v19 = vrot.slane %v6342_v8, 3  ;;  %v19252_v15 = vshll.u32 %v17023_v36, 16  ;;  %v19167_v53 = vshrl.u32 %v17119_v20, 16 }
 0x344   : > { %v6079_v43 = vsel %vm396_vm2, %v6076_v63, %v6078_v26  ;;  %v9554_v48 = vsel %vm396_vm2, %v9552_v42, %v9553_v11  ;;  %v6081_v32 = vsel %vm396_vm2, %v6078_v26, %v6080_v30  ;;  %v6374_v63 = vrot.slane %v6372_v23, 3 }
 0x345   : > { %13221 = vmatprep.mubr.msk.bf16.mxu1 %vm253_vm1, %v6079_v43  ;;  %13554 = vmatmul.mubr.msk.bf16.vlgmr.msra.gmra.mrb[32].mxu0 %vm253_vm1, %v9554_v48  ;;  %v6717_v42 = vor.u32 %v17203_v49, %v17201_v6  ;;  %v17242_v30 = vsel %vm666_vm3, %v6348_v54, %v6357_v18  ;;  %v6387_v48 = vshrl.u32 %v17078_v13, 16  ;;  %v6390_v6 = vshll.u32 %v17078_v13, 16 }
 0x346   : > { %13222 = vmatmul.mubr.msk.bf16.gmra.mrb[208].mxu1 %vm253_vm1, %v6081_v32  ;;  %13557 = vmatprep.mubr.msk.bf16.mxu0 %vm14593_vm0, %v19251_v34  ;;  %v17248_v43 = vor.u32 %v6374_v63, %v6371_v38  ;;  %v6396_v54 = vshrl.u32 %v17098_v35, 16  ;;  %v17261_v49 = vrot.slane %v6381_v7, 3  ;;  %v6719_v32 = vrot.slane %v6327_v55, 4  ;;  %v14521_v63 = vld [vmem:[%s19109_s3 + $0x48] sm:$0xff]  }
 0x347   : > { %13233 = vmatprep.mubr.msk.bf16.mxu1 %vm253_vm1, %v6331_v10  ;;  %13574 = vmatpush3.bf16.msra.mxu0 %v14522_v5  ;;  %v17246_v5 = vsel %vm666_vm3, %v6357_v18, %v17210_v3  ;;  %v6723_v18 = vrot.slane %v6336_v25, 4  ;;  %v9556_v38 = vsel %vm396_vm2, %v9553_v11, %v9555_v50  ;;  %v6399_v55 = vshll.u32 %v17098_v35, 16 }
 0x348   : > { %13575 = vmatprep.subr.bf16.mxu0 %v19251_v34  ;;  %v6727_v25 = vrot.slane %v19252_v15, 4  ;;  %v6405_v50 = vshrl.u32 %v17100_v4, 16  ;;  %v19168_v11 = vshll.u32 %v17100_v4, 16  ;;  %v6720_v10 = vor.u32 %v6719_v32, %v6718_v41 }
 0x349   : > { %v19255_v26 = vshrl.u32 %v17053_v45, 16  ;;  %v6750_v51 = vrot.slane %v6396_v54, 3  ;;  %v6398_v13 = vrot.slane %v6396_v54, 2 }
 0x34a   : > { %v6728_v15 = vor.u32 %v6727_v25, %v6726_v19  ;;  %v19254_v25 = vshll.u32 %v17025_v27, 16 }
 0x34b   : > { %13576 = vmatpush3.bf16.msra.mxu0 %v14523_v46  ;;  %v6724_v46 = vor.u32 %v6723_v18, %v6722_v16  ;;  %v14525_v16 = vld [vmem:[%s19109_s3 + $0x18] sm:$0xff]   ;;  %v6734_v41 = vrot.slane %v19255_v26, 3  ;;  %v6743_v26 = vrot.slane %v6381_v7, 4 }
 0x34c   : > { %13577 = vmatprep.subr.bf16.mxu0 %v19251_v34 }
 0x34d   : > { %13558 = vmatmul.mubr.msk.bf16.gmra.mrb[36].mxu0 %vm253_vm1, %v9556_v38  ;;  %v17301_v32 = vsel %vm1065_vm4, %v6720_v10, %v6724_v46  ;;  %v17311_v18 = vsel %vm1065_vm4, %v6724_v46, %v6728_v15  ;;  %v19256_v38 = vshll.u32 %v17053_v45, 16  ;;  %v6738_v46 = vrot.slane %v6369_v37, 3 }
 0x34e   : > { %13234 = vmatmul.mubr.msk.bf16.vlgmr.msra.gmra.mrb[180].mxu1 %vm253_vm1, %v6340_v21  ;;  %13561 = vmatprep.mubr.msk.bf16.mxu0 %vm14593_vm0, %v19251_v34  ;;  %v17298_v21 = vsel %vm1065_vm4, %v6717_v42, %v6720_v10  ;;  %v19253_v42 = vshrl.u32 %v17025_v27, 16  ;;  %v6731_v10 = vrot.slane %v19254_v25, 4  ;;  %v6739_v27 = vrot.slane %v6372_v23, 4 }
 0x34f   : > { %13237 = vmatprep.mubr.msk.bf16.mxu1 %vm253_vm1, %v6349_v22  ;;  %13266 = vmatpush3.bf16.msra.mxu1 %v17048_v17  ;;  %v14526_v17 = vld [vmem:[%s19109_s3 + $0x50] sm:$0xff]   ;;  %v6735_v36 = vrot.slane %v19256_v38, 4  ;;  %v19173_v22 = vshll.u32 %v17140_v59, 16  ;;  %v6746_v45 = vrot.slane %v6387_v48, 3  ;;  %v6747_v37 = vrot.slane %v6390_v6, 4 }
 0x350   : > { %13267 = vmatprep.subr.bf16.mxu1 %v14521_v63  ;;  %13578 = vmatpush3.bf16.msra.mxu0 %v14524_v2  ;;  %v6730_v19 = vrot.slane %v19253_v42, 3  ;;  %v19174_v2 = vshrl.u32 %v17140_v59, 16  ;;  %v6742_v42 = vrot.slane %v6378_v61, 3  ;;  %v19172_v23 = vshrl.u32 %v17186_v14, 16 }
 0x351   : > { %13579 = vmatprep.subr.bf16.mxu0 %v19251_v34  ;;  %v6736_v25 = vor.u32 %v6735_v36, %v6734_v41  ;;  %v19171_v61 = vshll.u32 %v17186_v14, 16  ;;  %v6740_v36 = vor.u32 %v6739_v27, %v6738_v46  ;;  %v6751_v41 = vrot.slane %v6399_v55, 4 }
 0x352   : > { %v6732_v8 = vor.u32 %v6731_v10, %v6730_v19  ;;  %v6744_v38 = vor.u32 %v6743_v26, %v6742_v42  ;;  %v19257_v46 = vshll.u32 %v17119_v20, 16  ;;  %v17377_v42 = vld [vmem:[%s19109_s3 + $0x60] sm:$0xff]  }
 0x353   : > { %13268 = vmatpush3.bf16.msra.mxu1 %v14521_v63  ;;  %v17367_v19 = vsel %vm1065_vm4, %v6736_v25, %v6740_v36  ;;  %v6752_v10 = vor.u32 %v6751_v41, %v6750_v51  ;;  %v19260_v41 = vshrl.u32 %v17138_v62, 16 }
 0x354   : > { %13580 = vmatpush3.bf16.msra.mxu0 %v14525_v16  ;;  %13269 = vmatprep.subr.bf16.mxu1 %v14526_v17  ;;  %v17342_v63 = vsel %vm1065_vm4, %v6728_v15, %v6732_v8  ;;  %v17350_v7 = vsel %vm1065_vm4, %v6732_v8, %v6736_v25  ;;  %v6748_v15 = vor.u32 %v6747_v37, %v6746_v45  ;;  %v6755_v16 = vrot.slane %v19168_v11, 4 }
 0x355   : > { %13562 = vmatmul.mubr.msk.bf16.gmra.mrb[40].mxu0 %vm253_vm1, %v17229_v29  ;;  %13601 = vmatprep.subr.bf16.mxu0 %v19251_v34  ;;  %v6754_v29 = vrot.slane %v6405_v50, 3  ;;  %v6758_v8 = vrot.slane %v19167_v53, 3  ;;  %v6759_v27 = vrot.slane %v19257_v46, 4  ;;  %v19259_v45 = vshll.u32 %v17121_v60, 16 }
 0x356   : > { %13238 = vmatmul.mubr.msk.bf16.gmra.mrb[184].mxu1 %vm253_vm1, %v17242_v30  ;;  %13565 = vmatprep.mubr.msk.bf16.mxu0 %vm14593_vm0, %v19251_v34  ;;  %v17370_v30 = vsel %vm1065_vm4, %v6740_v36, %v6744_v38  ;;  %v17380_v26 = vsel %vm1065_vm4, %v6744_v38, %v6748_v15  ;;  %v17387_v51 = vsel %vm1065_vm4, %v6748_v15, %v6752_v10  ;;  %v6766_v46 = vrot.slane %v19260_v41, 3 }
 0x357   : > { %13241 = vmatprep.mubr.msk.bf16.mxu1 %vm253_vm1, %v17246_v5  ;;  %13270 = vmatpush3.bf16.msra.mxu1 %v14526_v17  ;;  %v6756_v5 = vor.u32 %v6755_v16, %v6754_v29  ;;  %v19258_v17 = vshrl.u32 %v17121_v60, 16  ;;  %v6763_v37 = vrot.slane %v19259_v45, 4  ;;  %v6760_v36 = vor.u32 %v6759_v27, %v6758_v8 }
 0x358   : > { %13271 = vmatprep.subr.bf16.mxu1 %v14527_v56  ;;  %v19261_v53 = vshll.u32 %v17138_v62, 16  ;;  %v19262_v38 = vrot.slane %v17212_v39, 3  ;;  %v19263_v29 = vrot.slane %v16861_v31, 3  ;;  %v6771_v41 = vrot.slane %v19173_v22, 4 }
 0x359   : > { %v6762_v25 = vrot.slane %v19258_v17, 3  ;;  %v6384_v17 = vor.u32 %v17261_v49, %v17254_v24  ;;  %v17401_v45 = vsel %vm1065_vm4, %v6752_v10, %v6756_v5  ;;  %v17404_v8 = vsel %vm1065_vm4, %v6756_v5, %v6760_v36  ;;  %v9525_v10 = vld [vmem:[#allocation2 + $0x80] sm:$0xfc] }
 0x35a   : > { %v6767_v11 = vrot.slane %v19261_v53, 4  ;;  %v9560_v16 = vsel %vm396_vm2, %v19263_v29, %v19262_v38  ;;  %v6770_v53 = vrot.slane %v19174_v2, 3  ;;  %v6376_v38 = vsel %vm666_vm3, %v17210_v3, %v17248_v43 }
 0x35b   : > { %v6764_v15 = vor.u32 %v6763_v37, %v6762_v25  ;;  %13272 = vmatpush3.bf16.msra.mxu1 %v14527_v56  ;;  %v6389_v24 = vrot.slane %v6387_v48, 2  ;;  %v6392_v56 = vrot.slane %v6390_v6, 3  ;;  %v6775_v48 = vrot.slane %v19171_v61, 4 }
 0x35c   : > { %v6768_v27 = vor.u32 %v6767_v11, %v6766_v46  ;;  %13305 = vmatprep.subr.bf16.mxu1 %v17377_v42  ;;  %v6774_v11 = vrot.slane %v19172_v23, 3  ;;  %v6772_v3 = vor.u32 %v6771_v41, %v6770_v53  ;;  %v6385_v25 = vsel %vm666_vm3, %v17248_v43, %v6384_v17 }
 0x35d   : > { %v17417_v49 = vsel %vm1065_vm4, %v6760_v36, %v6764_v15  ;;  %13566 = vmatmul.mubr.msk.bf16.gmra.mrb[44].mxu0 %vm253_vm1, %v9560_v16  ;;  %v6401_v6 = vrot.slane %v6399_v55, 3  ;;  %v9673_v46 = vshrl.u32 %v9525_v10, 16  ;;  %v9676_v29 = vshll.u32 %v9525_v10, 16 }
 0x35e   : > { %v17425_v5 = vsel %vm1065_vm4, %v6764_v15, %v6768_v27  ;;  %13242 = vmatmul.mubr.msk.bf16.gmra.mrb[188].mxu1 %vm253_vm1, %v6376_v38  ;;  %13569 = vmatprep.mubr.msk.bf16.mxu0 %vm14593_vm0, %v19251_v34  ;;  %v17440_v37 = vsel %vm1065_vm4, %v6768_v27, %v6772_v3  ;;  %v17442_v36 = vor.u32 %v6775_v48, %v6774_v11  ;;  %v19170_v43 = vshrl.u32 %v17169_v0, 16 }
 0x35f   : > { %13245 = vmatprep.mubr.msk.bf16.mxu1 %vm253_vm1, %v6385_v25  ;;  %v6393_v16 = vor.u32 %v6392_v56, %v6389_v24  ;;  %v19169_v15 = vshll.u32 %v17169_v0, 16  ;;  %v6402_v35 = vor.u32 %v6401_v6, %v6398_v13  ;;  %v6407_v55 = vrot.slane %v6405_v50, 2 }
 0x360   : > { %v17448_v54 = vsel %vm1065_vm4, %v6772_v3, %v17442_v36  ;;  %v19264_v27 = vshll.u32 %v17100_v4, 16  ;;  %v9708_v41 = vshrl.u32 %v17212_v39, 16  ;;  %v9711_v38 = vshll.u32 %v17212_v39, 16 }
 0x361   : > { %v9675_v24 = vrot.slane %v9673_v46, 2  ;;  %v9678_v11 = vrot.slane %v9676_v29, 3  ;;  %v19265_v56 = vshrl.u32 %v17119_v20, 16  ;;  %v19266_v48 = vshll.u32 %v17119_v20, 16 }
 0x362   : > { %v6410_v53 = vrot.slane %v19264_v27, 3  ;;  %v19267_v25 = vrot.slane %v17212_v39, 3  ;;  %v6394_v50 = vsel %vm666_vm3, %v6384_v17, %v6393_v16  ;;  %v9683_v4 = vrot.slane %v19170_v43, 2 }
 0x363   : > { %v6416_v10 = vrot.slane %v19265_v56, 2  ;;  %v6419_v3 = vrot.slane %v19266_v48, 3  ;;  %v9686_v13 = vrot.slane %v19169_v15, 3  ;;  %v9692_v6 = vrot.slane %v16880_v1, 2 }
 0x364   : > { %v6403_v46 = vsel %vm666_vm3, %v6393_v16, %v6402_v35  ;;  %v9695_v20 = vrot.slane %v16883_v44, 3  ;;  %v9701_v39 = vrot.slane %v16886_v33, 2  ;;  %v9704_v17 = vrot.slane %v16889_v28, 3 }
 0x365   : > { %13570 = vmatmul.mubr.msk.bf16.gmra.mrb[48].mxu0 %vm253_vm1, %v19267_v25  ;;  %v9710_v29 = vrot.slane %v9708_v41, 2  ;;  %v9713_v27 = vrot.slane %v9711_v38, 3  ;;  %v6459_v56 = vshrl.u32 %v17190_v52, 16  ;;  %v6462_v48 = vshll.u32 %v17190_v52, 16 }
 0x366   : > { %13246 = vmatmul.mubr.msk.bf16.gmra.mrb[192].mxu1 %vm253_vm1, %v6394_v50  ;;  %13581 = vmatprep.mubr.msk.bf16.mxu0 %vm14593_vm0, %v19251_v34  ;;  %v9679_v25 = vor.u32 %v9678_v11, %v9675_v24  ;;  %v6411_v50 = vor.u32 %v6410_v53, %v6407_v55  ;;  %v6420_v16 = vor.u32 %v6419_v3, %v6416_v10  ;;  %v19268_v15 = vshrl.u32 %v17121_v60, 16 }
 0x367   : > { %13249 = vmatprep.mubr.msk.bf16.mxu1 %vm253_vm1, %v6403_v46  ;;  %v9687_v61 = vor.u32 %v9686_v13, %v9683_v4  ;;  %v19269_v23 = vshll.u32 %v17121_v60, 16  ;;  %v19270_v2 = vshrl.u32 %v17138_v62, 16  ;;  %v19271_v41 = vshll.u32 %v17138_v62, 16 }
 0x368   : > { %v6425_v43 = vrot.slane %v19268_v15, 2  ;;  %v19272_v46 = vshrl.u32 %v17140_v59, 16  ;;  %v19273_v52 = vshll.u32 %v17140_v59, 16  ;;  %v19274_v53 = vshrl.u32 %v17186_v14, 16 }
 0x369   : > { %v6428_v22 = vrot.slane %v19269_v23, 3  ;;  %v6434_v57 = vrot.slane %v19270_v2, 2  ;;  %v6437_v38 = vrot.slane %v19271_v41, 3  ;;  %v19275_v15 = vshll.u32 %v17186_v14, 16  ;;  %v14528_v2 = vld [vmem:[%s19109_s3 + $0x40] sm:$0xff]  }
 0x36a   : > { %v6443_v31 = vrot.slane %v19272_v46, 2  ;;  %v6446_v55 = vrot.slane %v19273_v52, 3  ;;  %v6452_v24 = vrot.slane %v19274_v53, 2  ;;  %v6461_v60 = vrot.slane %v6459_v56, 2 }
 0x36b   : > { %v6455_v11 = vrot.slane %v19275_v15, 3  ;;  %v6464_v23 = vrot.slane %v6462_v48, 3  ;;  %v9688_v62 = vsel %vm666_vm3, %v9679_v25, %v9687_v61  ;;  %v9696_v10 = vor.u32 %v9695_v20, %v9692_v6  ;;  %v17534_v25 = vld [vmem:[#allocation2 + $0x20] sm:$0xff]  ;;  %v17554_v15 = vld [vmem:[#allocation2 + $0x38] sm:$0xff] }
 0x36c   : > { %v9705_v3 = vor.u32 %v9704_v17, %v9701_v39  ;;  %v6412_v59 = vsel %vm666_vm3, %v6402_v35, %v6411_v50  ;;  %v6421_v4 = vsel %vm666_vm3, %v6411_v50, %v6420_v16  ;;  %v6429_v13 = vor.u32 %v6428_v22, %v6425_v43  ;;  %v14529_v35 = vld [vmem:[%s19109_s3 + $0x48] sm:$0xff]   ;;  %v17522_v39 = vld [vmem:[#allocation2 + $0x10] sm:$0xff]  ;;  %v17524_v17 = vld [vmem:[#allocation2 + $0x18] sm:$0xff] }
 0x36d   : > { %13582 = vmatmul.mubr.msk.bf16.vlgmr.msra.gmra.mrb[52].mxu0 %vm253_vm1, %v9688_v62  ;;  %v17502_v41 = vor.u32 %v9713_v27, %v9710_v29  ;;  %v6438_v14 = vor.u32 %v6437_v38, %v6434_v57  ;;  %v6447_v56 = vor.u32 %v6446_v55, %v6443_v31  ;;  %v6456_v48 = vor.u32 %v6455_v11, %v6452_v24  ;;  %v17536_v50 = vld [vmem:[#allocation2 + $0x28] sm:$0xff]  ;;  %v17552_v24 = vld [vmem:[#allocation2 + $0x30] sm:$0xff] }
 0x36e   : > { %13250 = vmatmul.mubr.msk.bf16.gmra.mrb[196].mxu1 %vm253_vm1, %v6412_v59  ;;  %13585 = vmatprep.mubr.msk.bf16.mxu0 %vm14593_vm0, %v19251_v34  ;;  %v6465_v6 = vor.u32 %v6464_v23, %v6461_v60  ;;  %v9837_v22 = vshrl.u32 %v17188_v40, 16  ;;  %v9840_v43 = vshll.u32 %v17188_v40, 16  ;;  %v9697_v20 = vsel %vm666_vm3, %v9687_v61, %v9696_v10  ;;  %v17623_v59 = vld [vmem:[#allocation2 + $0x78] sm:$0xff] }
 0x36f   : > { %13253 = vmatprep.mubr.msk.bf16.mxu1 %vm253_vm1, %v6421_v4  ;;  %13602 = vmatpush3.bf16.msra.mxu0 %v14528_v2  ;;  %v17516_v57 = vsel %vm666_vm3, %v9696_v10, %v9705_v3  ;;  %v17520_v31 = vsel %vm666_vm3, %v9705_v3, %v17502_v41  ;;  %v6430_v29 = vsel %vm666_vm3, %v6420_v16, %v6429_v13  ;;  %v14531_v16 = vld [vmem:[%s19109_s3 + $0x50] sm:$0xff]   ;;  %v19276_v55 = vshrl.u32 %v17169_v0, 16  ;;  %v17564_v10 = vld [vmem:[#allocation2 + $0x40] sm:$0xff]  ;;  %v17566_v3 = vld [vmem:[#allocation2 + $0x48] sm:$0xff] }
 0x370   : > { %13603 = vmatprep.subr.bf16.mxu0 %v19251_v34  ;;  %v6439_v27 = vsel %vm666_vm3, %v6429_v13, %v6438_v14  ;;  %v17529_v40 = vsel %vm666_vm3, %v6438_v14, %v6447_v56  ;;  %v17532_v61 = vsel %vm666_vm3, %v6447_v56, %v6456_v48  ;;  %v17539_v38 = vsel %vm666_vm3, %v6456_v48, %v6465_v6  ;;  %v17573_v14 = vld [vmem:[#allocation2 + $0x50] sm:$0xff]  ;;  %v17575_v56 = vld [vmem:[#allocation2 + $0x58] sm:$0xff]  ;;  %v17592_v6 = vld [vmem:[#allocation2 + $0x60] sm:$0xff] }
 0x371   : > { %v17544_v46 = vrot.slane %v9837_v22, 3  ;;  %v17546_v52 = vrot.slane %v9840_v43, 4  ;;  %v17550_v53 = vrot.slane %v19276_v55, 3  ;;  %v19277_v11 = vshll.u32 %v17169_v0, 16  ;;  %v14532_v43 = vld [vmem:[%s19109_s3 + $0x58] sm:$0xff]   ;;  %v17599_v48 = vld [vmem:[#allocation2 + $0x68] sm:$0xff] }
 0x372   : > { %v19177_v55 = vrot.slane %v17522_v39, 4  ;;  %v17610_v0 = vld [vmem:[#allocation2 + $0x70] sm:$0xff]  ;;  %v7533_v13 = vrot.slane %v17554_v15, 4  ;;  %v7537_v22 = vrot.slane %v17566_v3, 4  ;;  %v7539_v2 = vrot.slane %v17573_v14, 4 }
 0x373   : > { %13604 = vmatpush3.bf16.msra.mxu0 %v14529_v35  ;;  %v17559_v60 = vrot.slane %v19277_v11, 4  ;;  %v7525_v11 = vrot.slane %v17524_v17, 4  ;;  %v7545_v23 = vrot.slane %v17599_v48, 4 }
 0x374   : > { %13605 = vmatprep.subr.bf16.mxu0 %v19251_v34 }
 0x375   : > { %13586 = vmatmul.mubr.msk.bf16.gmra.mrb[56].mxu0 %vm253_vm1, %v9697_v20  ;;  %v7527_v20 = vrot.slane %v17534_v25, 4 }
 0x376   : > { %13254 = vmatmul.mubr.msk.bf16.gmra.mrb[200].mxu1 %vm253_vm1, %v6430_v29  ;;  %13589 = vmatprep.mubr.msk.bf16.mxu0 %vm14593_vm0, %v19251_v34  ;;  %v17615_v29 = vsel %vm4311_vm11, %v19177_v55, %v7525_v11  ;;  %v7535_v55 = vrot.slane %v17564_v10, 4 }
 0x377   : > { %13257 = vmatprep.mubr.msk.bf16.mxu1 %vm253_vm1, %v6439_v27  ;;  %13606 = vmatpush3.bf16.msra.mxu0 %v14531_v16  ;;  %v7529_v27 = vrot.slane %v17536_v50, 4  ;;  %v7531_v16 = vrot.slane %v17552_v24, 4  ;;  %19278 = vst [vmem:[#allocation16_spill] sm:$0xff] %v17615_v29  ;;  %v17618_v4 = vsel %vm4311_vm11, %v7525_v11, %v7527_v20  ;;  %v17634_v11 = vld [vmem:[#allocation2 + $0x80] sm:$0xff] }
 0x378   : > { %13607 = vmatprep.subr.bf16.mxu0 %v19251_v34  ;;  %19279 = vst [vmem:[#allocation17_spill] sm:$0xff] %v17618_v4 }
 0x379   : > { %v17629_v35 = vsel %vm4311_vm11, %v7529_v27, %v7531_v16  ;;  %v17637_v62 = vsel %vm4311_vm11, %v7531_v16, %v7533_v13  ;;  %v7543_v16 = vrot.slane %v17592_v6, 4 }
 0x37a   : > { %19281 = vst [vmem:[#allocation19_spill] sm:$0xff] %v17629_v35  ;;  %19282 = vst [vmem:[#allocation20_spill] sm:$0xff] %v17637_v62  ;;  %v7547_v62 = vrot.slane %v17610_v0, 4  ;;  %v17657_v35 = vsel %vm4311_vm11, %v7535_v55, %v7537_v22 }
 0x37b   : > { %13608 = vmatpush3.bf16.msra.mxu0 %v14532_v43  ;;  %v17626_v43 = vsel %vm4311_vm11, %v7527_v20, %v7529_v27  ;;  %v7541_v20 = vrot.slane %v17575_v56, 4  ;;  %v17646_v27 = vld [vmem:[#allocation2 + $0x88] sm:$0xf]  ;;  %19285 = vst [vmem:[#allocation23_spill] sm:$0xff] %v17657_v35  ;;  %v17670_v4 = vsel %vm4311_vm11, %v7543_v16, %v7545_v23 }
 0x37c   : > { %13629 = vmatprep.subr.bf16.mxu0 %v19251_v34  ;;  %19280 = vst [vmem:[#allocation18_spill] sm:$0xff] %v17626_v43  ;;  %19283 = vst [vmem:[#allocation21_spill] sm:$0xff] %v17646_v27  ;;  %v17673_v29 = vsel %vm4311_vm11, %v7545_v23, %v7547_v62  ;;  %v19294_v23 = vshll.u32 %v17522_v39, 16 }
 0x37d   : > { %13590 = vmatmul.mubr.msk.bf16.gmra.mrb[60].mxu0 %vm253_vm1, %v17516_v57  ;;  %v17649_v57 = vsel %vm4311_vm11, %v7533_v13, %v7535_v55  ;;  %v17663_v43 = vsel %vm4311_vm11, %v7539_v2, %v7541_v20  ;;  %v7549_v13 = vrot.slane %v17623_v59, 4  ;;  %19289 = vst [vmem:[#allocation27_spill] sm:$0xff] %v17670_v4  ;;  %19290 = vst [vmem:[#allocation28_spill] sm:$0xff] %v17673_v29 }
 0x37e   : > { %13258 = vmatmul.mubr.msk.bf16.gmra.mrb[204].mxu1 %vm253_vm1, %v17529_v40  ;;  %13593 = vmatprep.mubr.msk.bf16.mxu0 %vm14593_vm0, %v19251_v34  ;;  %19284 = vst [vmem:[#allocation22_spill] sm:$0xff] %v17649_v57  ;;  %v17660_v40 = vsel %vm4311_vm11, %v7537_v22, %v7539_v2  ;;  %19287 = vst [vmem:[#allocation25_spill] sm:$0xff] %v17663_v43  ;;  %v17667_v57 = vsel %vm4311_vm11, %v7541_v20, %v7543_v16  ;;  %v7553_v43 = vrot.slane %v17646_v27, 4 }
 0x37f   : > { %13261 = vmatprep.mubr.msk.bf16.mxu1 %vm253_vm1, %v17532_v61  ;;  %19286 = vst [vmem:[#allocation24_spill] sm:$0xff] %v17660_v40  ;;  %19288 = vst [vmem:[#allocation26_spill] sm:$0xff] %v17667_v57  ;;  %v7551_v61 = vrot.slane %v17634_v11, 4  ;;  %v17679_v2 = vsel %vm4311_vm11, %v7547_v62, %v7549_v13  ;;  %v19293_v16 = vshrl.u32 %v17522_v39, 16  ;;  %v7840_v29 = vrot.slane %v19294_v23, 5 }
 0x380   : > { %19291 = vst [vmem:[#allocation29_spill] sm:$0xff] %v17679_v2  ;;  %v19295_v57 = vshrl.u32 %v17524_v17, 16  ;;  %v19297_v2 = vshll.u32 %v17524_v17, 16  ;;  %v19300_v23 = vshll.u32 %v17534_v25, 16  ;;  %v19302_v22 = vshll.u32 %v17536_v50, 16 }
 0x381   : > { %v17683_v20 = vsel %vm4311_vm11, %v7549_v13, %v7551_v61  ;;  %v7839_v4 = vrot.slane %v19293_v16, 4  ;;  %v17694_v62 = vsel %vm4311_vm11, %v7551_v61, %v7553_v43  ;;  %v19299_v16 = vshrl.u32 %v17534_v25, 16 }
 0x382   : > { %19292 = vst [vmem:[#allocation30_spill] sm:$0xff] %v17683_v20  ;;  %v7843_v40 = vrot.slane %v19295_v57, 4  ;;  %19296 = vst [vmem:[#allocation31_spill] sm:$0xff] %v17694_v62  ;;  %v7844_v13 = vrot.slane %v19297_v2, 5  ;;  %v7848_v27 = vrot.slane %v19300_v23, 5  ;;  %v19301_v57 = vshrl.u32 %v17536_v50, 16 }
 0x383   : > { %v17698_v20 = vor.u32 %v7840_v29, %v7839_v4  ;;  %v7847_v35 = vrot.slane %v19299_v16, 4  ;;  %v7852_v2 = vrot.slane %v19302_v22, 5  ;;  %v19303_v4 = vshrl.u32 %v17552_v24, 16 }
 0x384   : > { %v7851_v9 = vrot.slane %v19301_v57, 4  ;;  %v7845_v61 = vor.u32 %v7844_v13, %v7843_v40  ;;  %v19304_v23 = vshll.u32 %v17552_v24, 16  ;;  %v19306_v40 = vshll.u32 %v17554_v15, 16 }
 0x385   : > { %19298 = vst [vmem:[#allocation32_spill] sm:$0xff] %v17698_v20  ;;  %13594 = vmatmul.mubr.msk.bf16.gmra.mrb[64].mxu0 %vm253_vm1, %v17520_v31  ;;  %v7855_v29 = vrot.slane %v19303_v4, 4  ;;  %v7849_v16 = vor.u32 %v7848_v27, %v7847_v35  ;;  %v19305_v31 = vshrl.u32 %v17554_v15, 16  ;;  %v19308_v35 = vshrl.u32 %v17564_v10, 16 }
 0x386   : > { %13262 = vmatmul.mubr.msk.bf16.gmra.mrb[208].mxu1 %vm253_vm1, %v17539_v38  ;;  %13597 = vmatprep.mubr.msk.bf16.mxu0 %vm14593_vm0, %v19251_v34  ;;  %v7856_v57 = vrot.slane %v19304_v23, 5  ;;  %v7860_v13 = vrot.slane %v19306_v40, 5  ;;  %v17728_v38 = vsel %vm7830_vm13, %v17698_v20, %v7845_v61  ;;  %v7853_v4 = vor.u32 %v7852_v2, %v7851_v9 }
 0x387   : > { %v7859_v43 = vrot.slane %v19305_v31, 4  ;;  %13273 = vmatprep.mubr.msk.bf16.mxu1 %vm253_vm1, %v17298_v21  ;;  %19307 = vst [vmem:[#allocation33_spill] sm:$0xff] %v17728_v38  ;;  %v7863_v27 = vrot.slane %v19308_v35, 4  ;;  %v17733_v23 = vsel %vm7830_vm13, %v7845_v61, %v7849_v16  ;;  %v19310_v40 = vshll.u32 %v17564_v10, 16 }
 0x388   : > { %19309 = vst [vmem:[#allocation34_spill] sm:$0xff] %v17733_v23  ;;  %v7857_v31 = vor.u32 %v7856_v57, %v7855_v29  ;;  %v17738_v21 = vsel %vm7830_vm13, %v7849_v16, %v7853_v4  ;;  %v19312_v22 = vshrl.u32 %v17566_v3, 16  ;;  %v19313_v38 = vshll.u32 %v17566_v3, 16 }
 0x389   : > { %v7861_v55 = vor.u32 %v7860_v13, %v7859_v43  ;;  %v7864_v62 = vrot.slane %v19310_v40, 5  ;;  %19311 = vst [vmem:[#allocation35_spill] sm:$0xff] %v17738_v21  ;;  %v19314_v2 = vshrl.u32 %v17573_v14, 16  ;;  %v19317_v57 = vshll.u32 %v17573_v14, 16 }
 0x38a   : > { %v7867_v58 = vrot.slane %v19312_v22, 4  ;;  %v7868_v9 = vrot.slane %v19313_v38, 5  ;;  %v17747_v61 = vsel %vm7830_vm13, %v7853_v4, %v7857_v31  ;;  %v19318_v40 = vshrl.u32 %v17575_v56, 16  ;;  %v14533_v4 = vld [vmem:[%s19109_s3 + $0x68] sm:$0xff]  }
 0x38b   : > { %v7871_v35 = vrot.slane %v19314_v2, 4  ;;  %19315 = vst [vmem:[#allocation36_spill] sm:$0xff] %v17747_v61  ;;  %v17750_v43 = vsel %vm7830_vm13, %v7857_v31, %v7861_v55  ;;  %v7865_v29 = vor.u32 %v7864_v62, %v7863_v27  ;;  %v7872_v16 = vrot.slane %v19317_v57, 5 }
 0x38c   : > { %19316 = vst [vmem:[#allocation37_spill] sm:$0xff] %v17750_v43  ;;  %v7869_v13 = vor.u32 %v7868_v9, %v7867_v58  ;;  %v7875_v22 = vrot.slane %v19318_v40, 4  ;;  %v19319_v21 = vshll.u32 %v17575_v56, 16  ;;  %v19320_v23 = vshrl.u32 %v17592_v6, 16 }
 0x38d   : > { %v17764_v31 = vsel %vm7830_vm13, %v7861_v55, %v7865_v29  ;;  %v7873_v62 = vor.u32 %v7872_v16, %v7871_v35  ;;  %v19322_v27 = vshll.u32 %v17592_v6, 16  ;;  %v19323_v9 = vshrl.u32 %v17599_v48, 16  ;;  %13598 = vmatmul.mubr.msk.bf16.gmra.mrb[68].mxu0 %vm253_vm1, %v17502_v41 }
 0x38e   : > { %v7876_v38 = vrot.slane %v19319_v21, 5  ;;  %v7879_v2 = vrot.slane %v19320_v23, 4  ;;  %19321 = vst [vmem:[#allocation38_spill] sm:$0xff] %v17764_v31  ;;  %v17773_v21 = vsel %vm7830_vm13, %v7865_v29, %v7869_v13  ;;  %v19325_v40 = vshll.u32 %v17599_v48, 16  ;;  %13274 = vmatmul.mubr.msk.bf16.vlgmr.msra.gmra.mrb[180].mxu1 %vm253_vm1, %v17301_v32  ;;  %13609 = vmatprep.mubr.msk.bf16.mxu0 %vm14593_vm0, %v19251_v34 }
 0x38f   : > { %v7880_v58 = vrot.slane %v19322_v27, 5  ;;  %v7883_v57 = vrot.slane %v19323_v9, 4  ;;  %19324 = vst [vmem:[#allocation39_spill] sm:$0xff] %v17773_v21  ;;  %v19326_v55 = vshrl.u32 %v17610_v0, 16  ;;  %v17784_v35 = vsel %vm7830_vm13, %v7869_v13, %v7873_v62  ;;  %13277 = vmatprep.mubr.msk.bf16.mxu1 %vm253_vm1, %v17311_v18  ;;  %13306 = vmatpush3.bf16.msra.mxu1 %v17377_v42  ;;  %v14534_v18 = vld [vmem:[%s19109_s3 + $0x70] sm:$0xff]  }
 0x390   : > { %v7877_v23 = vor.u32 %v7876_v38, %v7875_v22  ;;  %v7884_v43 = vrot.slane %v19325_v40, 5  ;;  %19327 = vst [vmem:[#allocation40_spill] sm:$0xff] %v17784_v35  ;;  %v19328_v29 = vshll.u32 %v17610_v0, 16  ;;  %v19329_v22 = vshrl.u32 %v17623_v59, 16  ;;  %13307 = vmatprep.subr.bf16.mxu1 %v14533_v4 }
 0x391   : > { %v7887_v31 = vrot.slane %v19326_v55, 4  ;;  %v7881_v41 = vor.u32 %v7880_v58, %v7879_v2  ;;  %v19331_v9 = vshll.u32 %v17623_v59, 16  ;;  %v19332_v2 = vshrl.u32 %v17634_v11, 16 }
 0x392   : > { %v7888_v16 = vrot.slane %v19328_v29, 5  ;;  %v7891_v38 = vrot.slane %v19329_v22, 4  ;;  %v17794_v32 = vsel %vm7830_vm13, %v7873_v62, %v7877_v23  ;;  %v7885_v27 = vor.u32 %v7884_v43, %v7883_v57 }
 0x393   : > { %19330 = vst [vmem:[#allocation41_spill] sm:$0xff] %v17794_v32  ;;  %v7892_v13 = vrot.slane %v19331_v9, 5  ;;  %v7895_v58 = vrot.slane %v19332_v2, 4  ;;  %v9843_v40 = vor.u32 %v17546_v52, %v17544_v46  ;;  %v17806_v42 = vsel %vm7830_vm13, %v7877_v23, %v7881_v41  ;;  %13308 = vmatpush3.bf16.msra.mxu1 %v14533_v4  ;;  %v14539_v4 = vld [vmem:[%s19109_s3 + $0x78] sm:$0xff]  }
 0x394   : > { %19333 = vst [vmem:[#allocation42_spill] sm:$0xff] %v17806_v42  ;;  %v7889_v62 = vor.u32 %v7888_v16, %v7887_v31  ;;  %v19334_v43 = vshll.u32 %v17634_v11, 16  ;;  %v17811_v55 = vsel %vm7830_vm13, %v7881_v41, %v7885_v27  ;;  %v9846_v22 = vor.u32 %v17559_v60, %v17550_v53  ;;  %v14535_v31 = vld [vmem:[%s19109_s3 + $0x60] sm:$0xff]   ;;  %13309 = vmatprep.subr.bf16.mxu1 %v14534_v18  ;;  %v9985_v60 = vld [vmem:[#allocation2 + $0x88] sm:$0xf8]  ;;  %v17961_v42 = vld [vmem:[#allocation2 + $0x70] sm:$0xff] }
 0x395   : > { %19335 = vst [vmem:[#allocation43_spill] sm:$0xff] %v17811_v55  ;;  %v7893_v29 = vor.u32 %v7892_v13, %v7891_v38  ;;  %v9827_v16 = vld [vmem:[#allocation2 + $0xa0] sm:$0x3f]  ;;  %v9848_v38 = vrot.slane %v16880_v1, 3  ;;  %v14536_v13 = vld [vmem:[%s19109_s3 + $0x68] sm:$0xff]  }
 0x396   : > { %v7896_v57 = vrot.slane %v19334_v43, 5  ;;  %v17816_v46 = vsel %vm7830_vm13, %v7885_v27, %v7889_v62  ;;  %v9847_v41 = vsel %vm1065_vm4, %v9843_v40, %v9846_v22  ;;  %13278 = vmatmul.mubr.msk.bf16.gmra.mrb[184].mxu1 %vm253_vm1, %v17342_v63  ;;  %v9849_v27 = vrot.slane %v16883_v44, 4  ;;  %v17850_v1 = vld [vmem:[%s19109_s3 + $0x80] sm:$0xff]   ;;  %v7052_v40 = vld [vmem:[#allocation2 + $0x8] sm:$0xf8] }
 0x397   : > { %19336 = vst [vmem:[#allocation44_spill] sm:$0xff] %v17816_v46  ;;  %v17824_v23 = vsel %vm7830_vm13, %v7889_v62, %v7893_v29  ;;  %13610 = vmatmul.mubr.msk.bf16.vlgmr.msra.gmra.mrb[72].mxu0 %vm253_vm1, %v9847_v41  ;;  %13281 = vmatprep.mubr.msk.bf16.mxu1 %vm253_vm1, %v17350_v7  ;;  %v9857_v9 = vshrl.u32 %v9827_v16, 16  ;;  %v9860_v2 = vshll.u32 %v9827_v16, 16  ;;  %v9999_v63 = vshrl.u32 %v9985_v60, 16  ;;  %v6700_v7 = vld [vmem:[#allocation2 + $0x80] sm:$0xf] }
 0x398   : > { %v17818_v52 = vor.u32 %v7896_v57, %v7895_v58  ;;  %19338 = vst [vmem:[#allocation46_spill] sm:$0xff] %v17824_v23  ;;  %13613 = vmatprep.mubr.msk.bf16.mxu0 %vm14593_vm0, %v19251_v34  ;;  %13630 = vmatpush3.bf16.msra.mxu0 %v14535_v31  ;;  %v10002_v58 = vshll.u32 %v9985_v60, 16  ;;  %v9850_v44 = vor.u32 %v9849_v27, %v9848_v38  ;;  %v9852_v62 = vrot.slane %v16886_v33, 3  ;;  %v17946_v23 = vld [vmem:[#allocation2 + $0x60] sm:$0xff] }
 0x399   : > { %13310 = vmatpush3.bf16.msra.mxu1 %v14534_v18  ;;  %13631 = vmatprep.subr.bf16.mxu0 %v19251_v34  ;;  %v9853_v43 = vrot.slane %v16889_v28, 4  ;;  %v9859_v57 = vrot.slane %v9857_v9, 3  ;;  %v14537_v18 = vld [vmem:[%s19109_s3 + $0x70] sm:$0xff]   ;;  %v9862_v31 = vrot.slane %v9860_v2, 4  ;;  %v10001_v41 = vrot.slane %v9999_v63, 3 }
 0x39a   : > { %19337 = vst [vmem:[#allocation45_spill] sm:$0xff] %v17818_v52  ;;  %v17829_v53 = vsel %vm7830_vm13, %v7893_v29, %v17818_v52  ;;  %13311 = vmatprep.subr.bf16.mxu1 %v14539_v4  ;;  %v9851_v29 = vsel %vm1065_vm4, %v9846_v22, %v9850_v44  ;;  %v10004_v16 = vrot.slane %v10002_v58, 4  ;;  %v6779_v60 = vshrl.u32 %v6700_v7, 16  ;;  %v14538_v22 = vld [vmem:[%s19109_s3 + $0x78] sm:$0xff]   ;;  %v17938_v52 = vld [vmem:[#allocation2 + $0x50] sm:$0xff] }
 0x39b   : > { %19339 = vst [vmem:[#allocation47_spill] sm:$0xff] %v17829_v53  ;;  %v6782_v33 = vshll.u32 %v6700_v7, 16  ;;  %v7079_v38 = vshrl.u32 %v7052_v40, 16  ;;  %v7082_v28 = vshll.u32 %v7052_v40, 16  ;;  %v17872_v27 = vor.u32 %v9862_v31, %v9859_v57  ;;  %v17885_v58 = vld [vmem:[#allocation2 + $0x18] sm:$0xff]  ;;  %v17887_v7 = vld [vmem:[#allocation2 + $0x20] sm:$0xff] }
 0x39c   : > { %13632 = vmatpush3.bf16.msra.mxu0 %v14536_v13  ;;  %v10005_v9 = vor.u32 %v10004_v16, %v10001_v41  ;;  %v17875_v13 = vrot.slane %v6779_v60, 3  ;;  %v17899_v57 = vld [vmem:[#allocation2 + $0x30] sm:$0xff]  ;;  %v19342_v16 = vshrl.u32 %v17522_v39, 16  ;;  %v17930_v41 = vld [vmem:[#allocation2 + $0x48] sm:$0xff]  ;;  %v17987_v31 = vld [vmem:[#allocation2 + $0x80] sm:$0xff]  ;;  %v8659_v35 = vrot.slane %v17938_v52, 5 }
 0x39d   : > { %13633 = vmatprep.subr.bf16.mxu0 %v19251_v34  ;;  %13312 = vmatpush3.bf16.msra.mxu1 %v14539_v4  ;;  %v17870_v4 = vor.u32 %v9853_v43, %v9852_v62  ;;  %v17879_v2 = vrot.slane %v7079_v38, 3  ;;  %v17881_v63 = vrot.slane %v7082_v28, 4  ;;  %v17897_v43 = vld [vmem:[#allocation2 + $0x28] sm:$0xff]  ;;  %19341 = vst [vmem:[#allocation49_spill] sm:$0xff] %v17899_v57  ;;  %v17917_v38 = vld [vmem:[#allocation2 + $0x40] sm:$0xff]  ;;  %v8651_v53 = vrot.slane %v17899_v57, 5 }
 0x39e   : > { %13345 = vmatprep.subr.bf16.mxu1 %v17850_v1  ;;  %13282 = vmatmul.mubr.msk.bf16.gmra.mrb[188].mxu1 %vm253_vm1, %v17367_v19  ;;  %v17877_v19 = vrot.slane %v6782_v33, 4  ;;  %19340 = vst [vmem:[#allocation48_spill] sm:$0xff] %v17897_v43  ;;  %v17913_v60 = vrot.slane %v19342_v16, 3  ;;  %v17915_v33 = vld [vmem:[#allocation2 + $0x38] sm:$0xff]  ;;  %v8655_v55 = vrot.slane %v17917_v38, 5  ;;  %v8657_v46 = vrot.slane %v17930_v41, 5 }
 0x39f   : > { %13614 = vmatmul.mubr.msk.bf16.gmra.mrb[76].mxu0 %vm253_vm1, %v9851_v29  ;;  %13285 = vmatprep.mubr.msk.bf16.mxu1 %vm253_vm1, %v17370_v30  ;;  %v17883_v30 = vld [vmem:[#allocation2 + $0x90] sm:$0x1f]  ;;  %v17891_v40 = vsel %vm1065_vm4, %v9850_v44, %v17870_v4  ;;  %v9864_v62 = vsel %vm1065_vm4, %v17870_v4, %v17872_v27  ;;  %v17905_v29 = vsel %vm1065_vm4, %v10005_v9, %v9850_v44  ;;  %v19343_v44 = vshll.u32 %v17522_v39, 16 }
 0x3a0   : > { %13617 = vmatprep.mubr.msk.bf16.mxu0 %vm14593_vm0, %v19251_v34  ;;  %13634 = vmatpush3.bf16.msra.mxu0 %v14537_v18  ;;  %v19344_v9 = vrot.slane %v17885_v58, 5  ;;  %v8653_v32 = vrot.slane %v17915_v33, 5  ;;  %v18008_v61 = vsel %vm8643_vm15, %v8657_v46, %v8659_v35 }
 0x3a1   : > { %13635 = vmatprep.subr.bf16.mxu0 %v19251_v34  ;;  %v17925_v28 = vrot.slane %v19343_v44, 4  ;;  %v8649_v44 = vrot.slane %v17897_v43, 5  ;;  %19351 = vst [vmem:[#allocation56_spill] sm:$0xff] %v18008_v61 }
 0x3a4   : > { %13636 = vmatpush3.bf16.msra.mxu0 %v14538_v22  ;;  %v17940_v22 = vld [vmem:[#allocation2 + $0x58] sm:$0xff] }
 0x3a5   : > { %13657 = vmatprep.subr.bf16.mxu0 %v19251_v34  ;;  %v8661_v21 = vrot.slane %v17940_v22, 5 }
 0x3a6   : > { %13286 = vmatmul.mubr.msk.bf16.gmra.mrb[192].mxu1 %vm253_vm1, %v17380_v26  ;;  %v17951_v26 = vld [vmem:[#allocation2 + $0x68] sm:$0xff] }
 0x3a7   : > { %13618 = vmatmul.mubr.msk.bf16.gmra.mrb[80].mxu0 %vm253_vm1, %v17891_v40  ;;  %13289 = vmatprep.mubr.msk.bf16.mxu1 %vm253_vm1, %v17387_v51  ;;  %v8647_v51 = vrot.slane %v17887_v7, 5 }
 0x3a8   : > { %13621 = vmatprep.mubr.msk.bf16.mxu0 %vm14593_vm0, %v19251_v34 }
 0x3a9   : > { %v17968_v16 = vsel %vm8643_vm15, %v19344_v9, %v8647_v51  ;;  %v17975_v18 = vsel %vm8643_vm15, %v8647_v51, %v8649_v44  ;;  %v17989_v51 = vld [vmem:[#allocation2 + $0x88] sm:$0xff]  ;;  %v18001_v9 = vsel %vm8643_vm15, %v8653_v32, %v8655_v55 }
 0x3aa   : > { %19345 = vst [vmem:[#allocation50_spill] sm:$0xff] %v17968_v16  ;;  %19346 = vst [vmem:[#allocation51_spill] sm:$0xff] %v17975_v18  ;;  %v17992_v18 = vsel %vm8643_vm15, %v8649_v44, %v8651_v53  ;;  %v18004_v16 = vsel %vm8643_vm15, %v8655_v55, %v8657_v46  ;;  %v8663_v44 = vrot.slane %v17946_v23, 5  ;;  %v8673_v55 = vrot.slane %v17989_v51, 5 }
 0x3ab   : > { %19347 = vst [vmem:[#allocation52_spill] sm:$0xff] %v17992_v18  ;;  %19349 = vst [vmem:[#allocation54_spill] sm:$0xff] %v18001_v9  ;;  %v8665_v18 = vrot.slane %v17951_v26, 5  ;;  %v8671_v9 = vrot.slane %v17987_v31, 5 }
 0x3ac   : > { %19350 = vst [vmem:[#allocation55_spill] sm:$0xff] %v18004_v16  ;;  %v18021_v46 = vsel %vm8643_vm15, %v8661_v21, %v8663_v44  ;;  %v19359_v16 = vrot.slane %v17883_v30, 5  ;;  %v19364_v30 = vshll.u32 %v17887_v7, 16 }
 0x3ad   : > { %19353 = vst [vmem:[#allocation58_spill] sm:$0xff] %v18021_v46  ;;  %v18024_v61 = vsel %vm8643_vm15, %v8663_v44, %v8665_v18  ;;  %v18036_v20 = vsel %vm8643_vm15, %v8671_v9, %v8673_v55  ;;  %v19370_v46 = vshll.u32 %v17915_v33, 16 }
 0x3ae   : > { %13290 = vmatmul.mubr.msk.bf16.gmra.mrb[196].mxu1 %vm253_vm1, %v17401_v45  ;;  %v17998_v45 = vsel %vm8643_vm15, %v8651_v53, %v8653_v32  ;;  %v18014_v53 = vsel %vm8643_vm15, %v8659_v35, %v8661_v21  ;;  %19354 = vst [vmem:[#allocation59_spill] sm:$0xff] %v18024_v61  ;;  %19358 = vst [vmem:[#allocation63_spill] sm:$0xff] %v18036_v20  ;;  %v18041_v21 = vsel %vm8643_vm15, %v8673_v55, %v19359_v16 }
 0x3af   : > { %13622 = vmatmul.mubr.msk.bf16.gmra.mrb[84].mxu0 %vm253_vm1, %v9864_v62  ;;  %v17985_v62 = vld [vmem:[#allocation2 + $0x78] sm:$0xff]  ;;  %13293 = vmatprep.mubr.msk.bf16.mxu1 %vm253_vm1, %v17404_v8  ;;  %19348 = vst [vmem:[#allocation53_spill] sm:$0xff] %v17998_v45  ;;  %v8667_v8 = vrot.slane %v17961_v42, 5  ;;  %19352 = vst [vmem:[#allocation57_spill] sm:$0xff] %v18014_v53  ;;  %v8966_v16 = vrot.slane %v19364_v30, 6  ;;  %v19365_v55 = vshrl.u32 %v17897_v43, 16 }
 0x3b0   : > { %13625 = vmatprep.mubr.msk.bf16.mxu0 %vm14593_vm0, %v19251_v34  ;;  %v8669_v32 = vrot.slane %v17985_v62, 5  ;;  %19360 = vst [vmem:[#allocation64_spill] sm:$0xff] %v18041_v21  ;;  %v19366_v61 = vshll.u32 %v17897_v43, 16  ;;  %v19368_v30 = vshll.u32 %v17899_v57, 16  ;;  %v8978_v43 = vrot.slane %v19370_v46, 6 }
 0x3b1   : > { %v18027_v45 = vsel %vm8643_vm15, %v8665_v18, %v8667_v8  ;;  %v19361_v18 = vshrl.u32 %v17885_v58, 16  ;;  %v8969_v44 = vrot.slane %v19365_v55, 5 }
 0x3b2   : > { %19355 = vst [vmem:[#allocation60_spill] sm:$0xff] %v18027_v45  ;;  %v18030_v35 = vsel %vm8643_vm15, %v8667_v8, %v8669_v32  ;;  %v18033_v53 = vsel %vm8643_vm15, %v8669_v32, %v8671_v9  ;;  %v19362_v8 = vshll.u32 %v17885_v58, 16  ;;  %v19363_v9 = vshrl.u32 %v17887_v7, 16 }
 0x3b3   : > { %19356 = vst [vmem:[#allocation61_spill] sm:$0xff] %v18030_v35  ;;  %19357 = vst [vmem:[#allocation62_spill] sm:$0xff] %v18033_v53  ;;  %v8961_v45 = vrot.slane %v19361_v18, 5  ;;  %v8970_v21 = vrot.slane %v19366_v61, 6  ;;  %v8974_v20 = vrot.slane %v19368_v30, 6 }
 0x3b4   : > { %v8962_v35 = vrot.slane %v19362_v8, 6  ;;  %v8965_v32 = vrot.slane %v19363_v9, 5  ;;  %v19367_v8 = vshrl.u32 %v17899_v57, 16  ;;  %v19372_v57 = vshll.u32 %v17917_v38, 16 }
 0x3b5   : > { %v8971_v55 = vor.u32 %v8970_v21, %v8969_v44 }
 0x3b6   : > { %13294 = vmatmul.mubr.msk.bf16.gmra.mrb[200].mxu1 %vm253_vm1, %v17417_v49  ;;  %v18064_v18 = vor.u32 %v8962_v35, %v8961_v45  ;;  %v8973_v9 = vrot.slane %v19367_v8, 5  ;;  %v8967_v61 = vor.u32 %v8966_v16, %v8965_v32  ;;  %v19369_v49 = vshrl.u32 %v17915_v33, 16 }
 0x3b7   : > { %13626 = vmatmul.mubr.msk.bf16.gmra.mrb[88].mxu0 %vm253_vm1, %v17872_v27  ;;  %13297 = vmatprep.mubr.msk.bf16.mxu1 %vm253_vm1, %v17425_v5  ;;  %v19371_v27 = vshrl.u32 %v17917_v38, 16  ;;  %v8982_v30 = vrot.slane %v19372_v57, 6  ;;  %v19375_v32 = vshrl.u32 %v17930_v41, 16 }
 0x3b8   : > { %13637 = vmatprep.mubr.msk.bf16.mxu0 %vm14593_vm0, %v19251_v34  ;;  %v8977_v53 = vrot.slane %v19369_v49, 5  ;;  %v8975_v35 = vor.u32 %v8974_v20, %v8973_v9  ;;  %v18083_v5 = vsel %vm8952_vm14, %v18064_v18, %v8967_v61  ;;  %v18086_v21 = vsel %vm8952_vm14, %v8967_v61, %v8971_v55  ;;  %v14541_v49 = vld [vmem:[%s19109_s3 + $0x80] sm:$0xff]  }
 0x3b9   : > { %v8981_v8 = vrot.slane %v19371_v27, 5  ;;  %19373 = vst [vmem:[#allocation65_spill] sm:$0xff] %v18083_v5  ;;  %19374 = vst [vmem:[#allocation66_spill] sm:$0xff] %v18086_v21  ;;  %v8985_v46 = vrot.slane %v19375_v32, 5  ;;  %v19377_v9 = vshll.u32 %v17930_v41, 16  ;;  %v19380_v32 = vshll.u32 %v17938_v52, 16 }
 0x3ba   : > { %v8979_v44 = vor.u32 %v8978_v43, %v8977_v53  ;;  %v18092_v20 = vsel %vm8952_vm14, %v8971_v55, %v8975_v35  ;;  %v19379_v43 = vshrl.u32 %v17938_v52, 16  ;;  %v19381_v55 = vshrl.u32 %v17940_v22, 16 }
 0x3bb   : > { %19376 = vst [vmem:[#allocation67_spill] sm:$0xff] %v18092_v20  ;;  %v8983_v27 = vor.u32 %v8982_v30, %v8981_v8  ;;  %v8986_v57 = vrot.slane %v19377_v9, 6  ;;  %v8990_v16 = vrot.slane %v19380_v32, 6  ;;  %v19383_v9 = vshll.u32 %v17940_v22, 16 }
 0x3bc   : > { %v18100_v61 = vsel %vm8952_vm14, %v8975_v35, %v8979_v44  ;;  %v8989_v53 = vrot.slane %v19379_v43, 5  ;;  %v8993_v45 = vrot.slane %v19381_v55, 5  ;;  %v19384_v21 = vshrl.u32 %v17946_v23, 16 }
 0x3bd   : > { %19378 = vst [vmem:[#allocation68_spill] sm:$0xff] %v18100_v61  ;;  %v18109_v8 = vsel %vm8952_vm14, %v8979_v44, %v8983_v27  ;;  %v8987_v30 = vor.u32 %v8986_v57, %v8985_v46  ;;  %v8994_v20 = vrot.slane %v19383_v9, 6  ;;  %v19385_v61 = vshll.u32 %v17946_v23, 16 }
 0x3be   : > { %19382 = vst [vmem:[#allocation69_spill] sm:$0xff] %v18109_v8  ;;  %v8997_v35 = vrot.slane %v19384_v21, 5  ;;  %v8991_v43 = vor.u32 %v8990_v16, %v8989_v53  ;;  %v19386_v5 = vshrl.u32 %v17951_v26, 16  ;;  %v19387_v44 = vshll.u32 %v17951_v26, 16  ;;  %13298 = vmatmul.mubr.msk.bf16.gmra.mrb[204].mxu1 %vm253_vm1, %v17440_v37  ;;  %v14542_v37 = vld [vmem:[%s19109_s3 + $0x88] sm:$0xff]  }
 0x3bf   : > { %13638 = vmatmul.mubr.msk.bf16.vlgmr.msra.gmra.mrb[92].mxu0 %vm253_vm1, %v17905_v29  ;;  %v8998_v32 = vrot.slane %v19385_v61, 6  ;;  %v18128_v21 = vsel %vm8952_vm14, %v8983_v27, %v8987_v30  ;;  %v8995_v29 = vor.u32 %v8994_v20, %v8993_v45  ;;  %v19388_v46 = vshrl.u32 %v17961_v42, 16  ;;  %13301 = vmatprep.mubr.msk.bf16.mxu1 %vm253_vm1, %v17448_v54 }
 0x3c0   : > { %v9001_v55 = vrot.slane %v19386_v5, 5  ;;  %v9002_v8 = vrot.slane %v19387_v44, 6  ;;  %13641 = vmatprep.mubr.msk.bf16.mxu0 %vm14593_vm0, %v19251_v34  ;;  %v19389_v57 = vshll.u32 %v17961_v42, 16  ;;  %13658 = vmatpush3.bf16.msra.mxu0 %v14541_v49  ;;  %v18140_v5 = vsel %vm8952_vm14, %v8987_v30, %v8991_v43 }
 0x3c1   : > { %v9005_v16 = vrot.slane %v19388_v46, 5  ;;  %v8999_v27 = vor.u32 %v8998_v32, %v8997_v35  ;;  %v19390_v45 = vshrl.u32 %v17985_v62, 16  ;;  %13659 = vmatprep.subr.bf16.mxu0 %v19251_v34  ;;  %v18146_v9 = vsel %vm8952_vm14, %v8991_v43, %v8995_v29 }
 0x3c2   : > { %v9006_v61 = vrot.slane %v19389_v57, 6  ;;  %v9003_v53 = vor.u32 %v9002_v8, %v9001_v55  ;;  %v19391_v54 = vshll.u32 %v17985_v62, 16  ;;  %v19392_v46 = vshrl.u32 %v17987_v31, 16 }
 0x3c3   : > { %v9009_v20 = vrot.slane %v19390_v45, 5  ;;  %v18153_v30 = vsel %vm8952_vm14, %v8995_v29, %v8999_v27  ;;  %v19393_v35 = vshll.u32 %v17987_v31, 16  ;;  %v19394_v55 = vshrl.u32 %v17989_v51, 16 }
 0x3c4   : > { %v9007_v44 = vor.u32 %v9006_v61, %v9005_v16  ;;  %v9010_v49 = vrot.slane %v19391_v54, 6  ;;  %v9013_v57 = vrot.slane %v19392_v46, 5  ;;  %v18156_v8 = vsel %vm8952_vm14, %v8999_v27, %v9003_v53  ;;  %13660 = vmatpush3.bf16.msra.mxu0 %v14542_v37  ;;  %v14544_v27 = vld [vmem:[%s19109_s3 + $0x90] sm:$0xff]  }
 0x3c5   : > { %v9014_v32 = vrot.slane %v19393_v35, 6  ;;  %v9017_v43 = vrot.slane %v19394_v55, 5  ;;  %v7093_v16 = vor.u32 %v17925_v28, %v17913_v60  ;;  %v19395_v54 = vshll.u32 %v17989_v51, 16  ;;  %13661 = vmatprep.subr.bf16.mxu0 %v19251_v34 }
 0x3c6   : > { %v18165_v61 = vsel %vm8952_vm14, %v9003_v53, %v9007_v44  ;;  %v9011_v45 = vor.u32 %v9010_v49, %v9009_v20  ;;  %v10027_v35 = vrot.slane %v16899_v47, 3  ;;  %v10030_v55 = vrot.slane %v16901_v12, 4 }
 0x3c7   : > { %v9018_v29 = vrot.slane %v19395_v54, 6  ;;  %v9015_v46 = vor.u32 %v9014_v32, %v9013_v57  ;;  %13642 = vmatmul.mubr.msk.bf16.gmra.mrb[96].mxu0 %vm253_vm1, %v17891_v40  ;;  %v19396_v37 = vor.u32 %v17877_v19, %v17875_v13  ;;  %v19397_v47 = vshrl.u32 %v17524_v17, 16  ;;  %v18191_v57 = vld [vmem:[#allocation2 + $0xa8] sm:$0x3f] }
 0x3c8   : > { %v18176_v60 = vsel %vm8952_vm14, %v9007_v44, %v9011_v45  ;;  %v19398_v12 = vshll.u32 %v17524_v17, 16  ;;  %v19399_v40 = vor.u32 %v17881_v63, %v17879_v2  ;;  %13645 = vmatprep.mubr.msk.bf16.mxu0 %vm14593_vm0, %v19251_v34  ;;  %v19401_v17 = vshll.u32 %v17534_v25, 16  ;;  %13662 = vmatpush3.bf16.msra.mxu0 %v14544_v27  ;;  %v14545_v2 = vld [vmem:[%s19109_s3 + $0x98] sm:$0xff]   ;;  %v14543_v27 = vld [vmem:[%s19109_s3 + $0x88] sm:$0xff]  }
 0x3c9   : > { %v18178_v28 = vor.u32 %v9018_v29, %v9017_v43  ;;  %v6786_v53 = vsel %vm1065_vm4, %v17442_v36, %v19396_v37  ;;  %v7098_v20 = vrot.slane %v19397_v47, 3  ;;  %v18194_v44 = vsel %vm8952_vm14, %v9011_v45, %v9015_v46  ;;  %13663 = vmatprep.subr.bf16.mxu0 %v19251_v34 }
 0x3ca   : > { %v7101_v49 = vrot.slane %v19398_v12, 4  ;;  %13302 = vmatmul.mubr.msk.bf16.gmra.mrb[208].mxu1 %vm253_vm1, %v6786_v53  ;;  %v7094_v13 = vsel %vm1065_vm4, %v19399_v40, %v7093_v16  ;;  %v19400_v36 = vshrl.u32 %v17534_v25, 16  ;;  %v7110_v32 = vrot.slane %v19401_v17, 4 }
 0x3cb   : > { %v18209_v43 = vsel %vm8952_vm14, %v9015_v46, %v18178_v28  ;;  %13313 = vmatprep.mubr.msk.bf16.mxu1 %vm253_vm1, %v7094_v13  ;;  %v10031_v63 = vor.u32 %v10030_v55, %v10027_v35  ;;  %v10034_v45 = vshrl.u32 %v18191_v57, 16  ;;  %v10037_v54 = vshll.u32 %v18191_v57, 16 }
 0x3cc   : > { %v7107_v19 = vrot.slane %v19400_v36, 3  ;;  %v7102_v25 = vor.u32 %v7101_v49, %v7098_v20  ;;  %13664 = vmatpush3.bf16.msra.mxu0 %v14545_v2  ;;  %v19402_v55 = vshrl.u32 %v17536_v50, 16  ;;  %v19403_v20 = vshll.u32 %v17536_v50, 16  ;;  %v14546_v50 = vld [vmem:[%s19109_s3 + $0x90] sm:$0xff]  }
 0x3cd   : > { %v10032_v46 = vsel %vm1065_vm4, %v17870_v4, %v10031_v63  ;;  %v10036_v37 = vrot.slane %v10034_v45, 3  ;;  %v10039_v53 = vrot.slane %v10037_v54, 4  ;;  %13685 = vmatprep.subr.bf16.mxu0 %v19251_v34  ;;  %v19404_v49 = vshrl.u32 %v17552_v24, 16 }
 0x3ce   : > { %v7111_v29 = vor.u32 %v7110_v32, %v7107_v19  ;;  %v7103_v35 = vsel %vm1065_vm4, %v7093_v16, %v7102_v25  ;;  %v7116_v47 = vrot.slane %v19402_v55, 3  ;;  %v7119_v12 = vrot.slane %v19403_v20, 4 }
 0x3cf   : > { %13646 = vmatmul.mubr.msk.bf16.gmra.mrb[100].mxu0 %vm253_vm1, %v10032_v46  ;;  %v7125_v40 = vrot.slane %v19404_v49, 3  ;;  %v19405_v13 = vshll.u32 %v17552_v24, 16  ;;  %v10040_v16 = vor.u32 %v10039_v53, %v10036_v37  ;;  %v14547_v24 = vld [vmem:[%s19109_s3 + $0x98] sm:$0xff]   ;;  %v19406_v2 = vshrl.u32 %v17554_v15, 16 }
 0x3d0   : > { %v7112_v4 = vsel %vm1065_vm4, %v7102_v25, %v7111_v29  ;;  %13649 = vmatprep.mubr.msk.bf16.mxu0 %vm14593_vm0, %v19251_v34  ;;  %v7120_v19 = vor.u32 %v7119_v12, %v7116_v47  ;;  %v19407_v54 = vshll.u32 %v17554_v15, 16  ;;  %v19409_v53 = vshll.u32 %v17564_v10, 16  ;;  %v18265_v15 = vld [vmem:[%s19109_s3 + $0xa0] sm:$0xff]  }
 0x3d1   : > { %v7128_v36 = vrot.slane %v19405_v13, 4  ;;  %v10041_v32 = vsel %vm1065_vm4, %v10031_v63, %v10040_v16  ;;  %v7134_v45 = vrot.slane %v19406_v2, 3  ;;  %v19408_v63 = vshrl.u32 %v17564_v10, 16  ;;  %v18270_v10 = vld [vmem:[#allocation2 + $0x88] sm:$0xf0] }
 0x3d2   : > { %13314 = vmatmul.mubr.msk.bf16.vlgmr.msra.gmra.mrb[180].mxu1 %vm253_vm1, %v7103_v35  ;;  %v7137_v25 = vrot.slane %v19407_v54, 4  ;;  %v19410_v47 = vshrl.u32 %v17566_v3, 16  ;;  %v19411_v12 = vshll.u32 %v17566_v3, 16  ;;  %v19417_v54 = vshll.u32 %v17575_v56, 16 }
 0x3d3   : > { %13317 = vmatprep.mubr.msk.bf16.mxu1 %vm253_vm1, %v7112_v4  ;;  %13346 = vmatpush3.bf16.msra.mxu1 %v17850_v1  ;;  %v7129_v17 = vor.u32 %v7128_v36, %v7125_v40  ;;  %v7121_v1 = vsel %vm1065_vm4, %v7111_v29, %v7120_v19  ;;  %v7143_v37 = vrot.slane %v19408_v63, 3  ;;  %v19412_v40 = vshrl.u32 %v17573_v14, 16 }
 0x3d4   : > { %13347 = vmatprep.subr.bf16.mxu1 %v14543_v27  ;;  %v7138_v29 = vor.u32 %v7137_v25, %v7134_v45  ;;  %v7152_v20 = vrot.slane %v19410_v47, 3  ;;  %v7155_v4 = vrot.slane %v19411_v12, 4  ;;  %v19413_v36 = vshll.u32 %v17573_v14, 16 }
 0x3d5   : > { %v7130_v46 = vsel %vm1065_vm4, %v7120_v19, %v7129_v17  ;;  %v7161_v13 = vrot.slane %v19412_v40, 3  ;;  %v19416_v14 = vshrl.u32 %v17575_v56, 16  ;;  %v7173_v25 = vrot.slane %v19417_v54, 4  ;;  %v14549_v56 = vld [vmem:[%s19109_s3 + $0xa8] sm:$0xff]  }
 0x3d6   : > { %v7139_v55 = vsel %vm1065_vm4, %v7129_v17, %v7138_v29  ;;  %v7156_v19 = vor.u32 %v7155_v4, %v7152_v20  ;;  %v14548_v17 = vld [vmem:[%s19109_s3 + $0xa0] sm:$0xff]   ;;  %v19418_v63 = vshrl.u32 %v17592_v6, 16  ;;  %v19421_v20 = vshrl.u32 %v17599_v48, 16 }
 0x3d7   : > { %13348 = vmatpush3.bf16.msra.mxu1 %v14543_v27  ;;  %13650 = vmatmul.mubr.msk.bf16.gmra.mrb[104].mxu0 %vm253_vm1, %v10041_v32  ;;  %v7146_v27 = vrot.slane %v19409_v53, 4  ;;  %v19414_v32 = vld [vmem:[#allocation3_spill] sm:$0xff]  ;;  %v7170_v45 = vrot.slane %v19416_v14, 3  ;;  %v19419_v53 = vshll.u32 %v17592_v6, 16  ;;  %v19420_v6 = vld [vmem:[#allocation5_spill] sm:$0xff]  ;;  %v19422_v4 = vshll.u32 %v17599_v48, 16 }
 0x3d8   : > { %13349 = vmatprep.subr.bf16.mxu1 %v14546_v50  ;;  %13653 = vmatprep.mubr.msk.bf16.mxu0 %vm14593_vm0, %v19251_v34  ;;  %v7188_v12 = vrot.slane %v19421_v20, 3  ;;  %v14551_v48 = vld [vmem:[%s19109_s3 + $0xb8] sm:$0xff]   ;;  %v19427_v14 = vshrl.u32 %v17623_v59, 16  ;;  %v19428_v54 = vshll.u32 %v17623_v59, 16 }
 0x3d9   : > { %v7147_v35 = vor.u32 %v7146_v27, %v7143_v37  ;;  %v7179_v37 = vrot.slane %v19418_v63, 3  ;;  %v7182_v27 = vrot.slane %v19419_v53, 4  ;;  %v19429_v63 = vshrl.u32 %v17634_v11, 16 }
 0x3da   : > { %13318 = vmatmul.mubr.msk.bf16.gmra.mrb[184].mxu1 %vm253_vm1, %v7121_v1  ;;  %v19430_v53 = vshll.u32 %v17634_v11, 16 }
 0x3db   : > { %13321 = vmatprep.mubr.msk.bf16.mxu1 %vm253_vm1, %v7130_v46  ;;  %13350 = vmatpush3.bf16.msra.mxu1 %v14546_v50  ;;  %v7148_v49 = vsel %vm1065_vm4, %v7138_v29, %v7147_v35  ;;  %v10176_v50 = vrot.slane %v18270_v10, 4  ;;  %v7157_v2 = vsel %vm1065_vm4, %v7147_v35, %v7156_v19  ;;  %v7174_v29 = vor.u32 %v7173_v25, %v7170_v45 }
 0x3dc   : > { %13351 = vmatprep.subr.bf16.mxu1 %v14547_v24  ;;  %v7183_v35 = vor.u32 %v7182_v27, %v7179_v37  ;;  %v7206_v45 = vrot.slane %v19427_v14, 3  ;;  %v7209_v25 = vrot.slane %v19428_v54, 4  ;;  %v7215_v37 = vrot.slane %v19429_v63, 3  ;;  %v14555_v14 = vld [vmem:[%s19109_s3 + $0xc8] sm:$0xff]   ;;  %v14557_v54 = vld [vmem:[%s19109_s3 + $0xd0] sm:$0xff]  }
 0x3dd   : > { %v7218_v27 = vrot.slane %v19430_v53, 4  ;;  %v19437_v63 = vld [vmem:[#allocation18_spill] sm:$0xff] }
 0x3de   : > { %v7184_v40 = vsel %vm1065_vm4, %v7174_v29, %v7183_v35 }
 0x3df   : > { %13352 = vmatpush3.bf16.msra.mxu1 %v14547_v24  ;;  %13654 = vmatmul.mubr.msk.bf16.gmra.mrb[108].mxu0 %vm253_vm1, %v10040_v16  ;;  %v7164_v16 = vrot.slane %v19413_v36, 4  ;;  %v19415_v24 = vrot.slane %v19414_v32, 4  ;;  %v7219_v59 = vor.u32 %v7218_v27, %v7215_v37  ;;  %v19438_v37 = vld [vmem:[#allocation19_spill] sm:$0xff] }
 0x3e0   : > { %13385 = vmatprep.subr.bf16.mxu1 %v18265_v15  ;;  %13665 = vmatprep.mubr.msk.bf16.mxu0 %vm14593_vm0, %v19251_v34 }
 0x3e1   : > { %v7165_v3 = vor.u32 %v7164_v16, %v7161_v13  ;;  %v10178_v1 = vsel %vm4311_vm11, %v10176_v50, %v19415_v24  ;;  %v19423_v13 = vshrl.u32 %v17610_v0, 16  ;;  %v19424_v16 = vshll.u32 %v17610_v0, 16  ;;  %v19425_v24 = vld [vmem:[#allocation4_spill] sm:$0xff] }
 0x3e2   : > { %13322 = vmatmul.mubr.msk.bf16.gmra.mrb[188].mxu1 %vm253_vm1, %v7139_v55  ;;  %v14550_v55 = vld [vmem:[%s19109_s3 + $0xb0] sm:$0xff]  }
 0x3e3   : > { %13325 = vmatprep.mubr.msk.bf16.mxu1 %vm253_vm1, %v7148_v49  ;;  %v7166_v46 = vsel %vm1065_vm4, %v7156_v19, %v7165_v3  ;;  %v7175_v47 = vsel %vm1065_vm4, %v7165_v3, %v7174_v29  ;;  %v7191_v49 = vrot.slane %v19422_v4, 4  ;;  %v7197_v36 = vrot.slane %v19423_v13, 3  ;;  %v18334_v19 = vld [vmem:[#allocation2 + $0xa0] sm:$0xff]  ;;  %v18368_v4 = vld [vmem:[#allocation2 + $0x8] sm:$0xf0] }
 0x3e4   : > { %v7200_v50 = vrot.slane %v19424_v16, 4  ;;  %v10181_v3 = vrot.slane %v18334_v19, 4  ;;  %v7210_v29 = vor.u32 %v7209_v25, %v7206_v45  ;;  %v7522_v13 = vrot.slane %v18368_v4, 4  ;;  %v14556_v45 = vld [vmem:[%s19109_s3 + $0xb0] sm:$0xff]   ;;  %v19436_v25 = vld [vmem:[#allocation8_spill] sm:$0xff] }
 0x3e6   : > { %v7201_v32 = vor.u32 %v7200_v50, %v7197_v36  ;;  %v7220_v11 = vsel %vm1065_vm4, %v7210_v29, %v7219_v59 }
 0x3e7   : > { %13666 = vmatmul.mubr.msk.bf16.vlgmr.msra.gmra.mrb[112].mxu0 %vm253_vm1, %v10178_v1  ;;  %v19426_v1 = vrot.slane %v19425_v24, 4 }
 0x3e8   : > { %13669 = vmatprep.mubr.msk.bf16.mxu0 %vm14593_vm0, %v19251_v34  ;;  %13686 = vmatpush3.bf16.msra.mxu0 %v14548_v17  ;;  %v7192_v17 = vor.u32 %v7191_v49, %v7188_v12  ;;  %v7211_v20 = vsel %vm1065_vm4, %v7201_v32, %v7210_v29  ;;  %v10315_v49 = vshrl.u32 %v18270_v10, 16  ;;  %v14558_v29 = vld [vmem:[%s19109_s3 + $0xd8] sm:$0xff]  }
 0x3e9   : > { %13687 = vmatprep.subr.bf16.mxu0 %v19251_v34  ;;  %v10182_v0 = vsel %vm4311_vm11, %v19426_v1, %v10181_v3  ;;  %v14553_v1 = vld [vmem:[%s19109_s3 + $0xa8] sm:$0xff]  }
 0x3ea   : > { %13326 = vmatmul.mubr.msk.bf16.gmra.mrb[192].mxu1 %vm253_vm1, %v7157_v2  ;;  %v7193_v2 = vsel %vm1065_vm4, %v7183_v35, %v7192_v17  ;;  %v19431_v35 = vld [vmem:[#allocation21_spill] sm:$0xff]  ;;  %v10317_v16 = vrot.slane %v10315_v49, 4 }
 0x3eb   : > { %13329 = vmatprep.mubr.msk.bf16.mxu1 %vm253_vm1, %v7166_v46  ;;  %v7202_v46 = vsel %vm1065_vm4, %v7192_v17, %v7201_v32  ;;  %v19433_v32 = vld [vmem:[#allocation6_spill] sm:$0xff] }
 0x3ec   : > { %13688 = vmatpush3.bf16.msra.mxu0 %v14549_v56  ;;  %v10183_v56 = vrot.slane %v18191_v57, 4 }
 0x3ed   : > { %13689 = vmatprep.subr.bf16.mxu0 %v19251_v34 }
 0x3ef   : > { %13670 = vmatmul.mubr.msk.bf16.gmra.mrb[116].mxu0 %vm253_vm1, %v19420_v6  ;;  %v7225_v6 = vshll.u32 %v19431_v35, 16 }
 0x3f0   : > { %13673 = vmatprep.mubr.msk.bf16.mxu0 %vm14593_vm0, %v19251_v34  ;;  %13690 = vmatpush3.bf16.msra.mxu0 %v14550_v55  ;;  %v7222_v55 = vshrl.u32 %v19431_v35, 16 }
 0x3f1   : > { %13691 = vmatprep.subr.bf16.mxu0 %v19251_v34  ;;  %v7227_v12 = vrot.slane %v7225_v6, 4 }
 0x3f2   : > { %13330 = vmatmul.mubr.msk.bf16.gmra.mrb[196].mxu1 %vm253_vm1, %v7175_v47  ;;  %v10184_v47 = vsel %vm4311_vm11, %v10181_v3, %v10183_v56  ;;  %v7224_v57 = vrot.slane %v7222_v55, 3  ;;  %v19432_v3 = vrot.slane %v17522_v39, 4  ;;  %v19434_v39 = vld [vmem:[#allocation16_spill] sm:$0xff] }
 0x3f3   : > { %13333 = vmatprep.mubr.msk.bf16.mxu1 %vm253_vm1, %v7184_v40  ;;  %v10318_v40 = vshll.u32 %v18270_v10, 16 }
 0x3f4   : > { %13692 = vmatpush3.bf16.msra.mxu0 %v14551_v48  ;;  %v7228_v36 = vor.u32 %v7227_v12, %v7224_v57  ;;  %v7524_v17 = vsel %vm4311_vm11, %v7522_v13, %v19432_v3  ;;  %v19440_v57 = vld [vmem:[#allocation20_spill] sm:$0xff]  ;;  %v19441_v12 = vld [vmem:[#allocation22_spill] sm:$0xff] }
 0x3f5   : > { %13713 = vmatprep.subr.bf16.mxu0 %v19251_v34  ;;  %v10320_v50 = vrot.slane %v10318_v40, 5  ;;  %v10463_v3 = vld [vmem:[#allocation2 + $0x90] sm:$0xf0] }
 0x3f6   : > { %v7229_v48 = vsel %vm1065_vm4, %v7219_v59, %v7228_v36  ;;  %v18428_v59 = vld [vmem:[%s19109_s3 + $0xc0] sm:$0xff]  }
 0x3f7   : > { %13674 = vmatmul.mubr.msk.bf16.gmra.mrb[120].mxu0 %vm253_vm1, %v10182_v0  ;;  %v10321_v10 = vor.u32 %v10320_v50, %v10317_v16  ;;  %v14554_v0 = vld [vmem:[%s19109_s3 + $0xc0] sm:$0xff]   ;;  %v19442_v50 = vld [vmem:[#allocation9_spill] sm:$0xff] }
 0x3f8   : > { %13677 = vmatprep.mubr.msk.bf16.mxu0 %vm14593_vm0, %v19251_v34 }
 0x3f9   : > { %v10325_v24 = vsel %vm7830_vm13, %v10321_v10, %v19433_v32  ;;  %v19444_v10 = vld [vmem:[#allocation24_spill] sm:$0xff] }
 0x3fa   : > { %13334 = vmatmul.mubr.msk.bf16.gmra.mrb[200].mxu1 %vm253_vm1, %v7193_v2  ;;  %v19435_v2 = vld [vmem:[#allocation17_spill] sm:$0xff] }
 0x3fb   : > { %13337 = vmatprep.mubr.msk.bf16.mxu1 %vm253_vm1, %v7202_v46  ;;  %v10305_v46 = vld [vmem:[#allocation2 + $0xa8] sm:$0x7f] }
 0x3fc   : > { %v10335_v27 = vshrl.u32 %v10305_v46, 16 }
 0x3ff   : > { %13678 = vmatmul.mubr.msk.bf16.gmra.mrb[124].mxu0 %vm253_vm1, %v10184_v47  ;;  %v10337_v47 = vrot.slane %v10335_v27, 4  ;;  %v19449_v27 = vld [vmem:[#allocation26_spill] sm:$0xff] }
 0x400   : > { %13681 = vmatprep.mubr.msk.bf16.mxu0 %vm14593_vm0, %v19251_v34 }
 0x402   : > { %13338 = vmatmul.mubr.msk.bf16.gmra.mrb[204].mxu1 %vm253_vm1, %v7211_v20 }
 0x403   : > { %13341 = vmatprep.mubr.msk.bf16.mxu1 %vm253_vm1, %v7220_v11  ;;  %v19439_v11 = vld [vmem:[#allocation10_spill] sm:$0xff] }
 0x407   : > { %13682 = vmatmul.mubr.msk.bf16.gmra.mrb[128].mxu0 %vm253_vm1, %v10183_v56  ;;  %v10338_v56 = vshll.u32 %v10305_v46, 16 }
 0x408   : > { %13693 = vmatprep.mubr.msk.bf16.mxu0 %vm14593_vm0, %v19251_v34 }
 0x409   : > { %v10340_v20 = vrot.slane %v10338_v56, 5 }
 0x40a   : > { %13342 = vmatmul.mubr.msk.bf16.gmra.mrb[208].mxu1 %vm253_vm1, %v7229_v48 }
 0x40b   : > { %13353 = vmatprep.mubr.msk.bf16.mxu1 %vm253_vm1, %v7524_v17  ;;  %v10341_v40 = vor.u32 %v10340_v20, %v10337_v47  ;;  %v19443_v17 = vld [vmem:[#allocation23_spill] sm:$0xff] }
 0x40d   : > { %v10342_v48 = vsel %vm7830_vm13, %v19442_v50, %v10341_v40 }
 0x40f   : > { %13694 = vmatmul.mubr.msk.bf16.vlgmr.msra.gmra.mrb[132].mxu0 %vm253_vm1, %v10325_v24  ;;  %v10477_v24 = vshrl.u32 %v10463_v3, 16 }
 0x410   : > { %13697 = vmatprep.mubr.msk.bf16.mxu0 %vm14593_vm0, %v19251_v34  ;;  %13714 = vmatpush3.bf16.msra.mxu0 %v14554_v0 }
 0x411   : > { %13715 = vmatprep.subr.bf16.mxu0 %v19251_v34 }
 0x412   : > { %13354 = vmatmul.mubr.msk.bf16.vlgmr.msra.gmra.mrb[180].mxu1 %vm253_vm1, %v19434_v39 }
 0x413   : > { %13357 = vmatprep.mubr.msk.bf16.mxu1 %vm253_vm1, %v19435_v2  ;;  %13386 = vmatpush3.bf16.msra.mxu1 %v18265_v15  ;;  %v14559_v15 = vld [vmem:[%s19109_s3 + $0xb8] sm:$0xff]  }
 0x414   : > { %13387 = vmatprep.subr.bf16.mxu1 %v14553_v1  ;;  %13716 = vmatpush3.bf16.msra.mxu0 %v14555_v14  ;;  %v10479_v14 = vrot.slane %v10477_v24, 4 }
 0x415   : > { %13717 = vmatprep.subr.bf16.mxu0 %v19251_v34 }
 0x417   : > { %13388 = vmatpush3.bf16.msra.mxu1 %v14553_v1  ;;  %13698 = vmatmul.mubr.msk.bf16.gmra.mrb[136].mxu0 %vm253_vm1, %v19436_v25  ;;  %v10480_v1 = vshll.u32 %v10463_v3, 16 }
 0x418   : > { %13389 = vmatprep.subr.bf16.mxu1 %v14556_v45  ;;  %13701 = vmatprep.mubr.msk.bf16.mxu0 %vm14593_vm0, %v19251_v34  ;;  %v18420_v53 = vpop.f32.mrb[32].mxu0 }
 0x419   : > { %13718 = vmatpush3.bf16.msra.mxu0 %v14557_v54  ;;  %v13555_v35 = vpop.f32.mrb[33].mxu0  ;;  %v19445_v54 = vld [vmem:[#allocation7_spill] sm:$0xff] }
 0x41a   : > { %13358 = vmatmul.mubr.msk.bf16.gmra.mrb[184].mxu1 %vm253_vm1, %v19437_v63  ;;  %13719 = vmatprep.subr.bf16.mxu0 %v19251_v34  ;;  %v18431_v55 = vpop.f32.mrb[34].mxu0  ;;  %v19447_v46 = vshll.u32 %v19445_v54, 16 }
 0x41b   : > { %13361 = vmatprep.mubr.msk.bf16.mxu1 %vm253_vm1, %v19438_v37  ;;  %13390 = vmatpush3.bf16.msra.mxu1 %v14556_v45  ;;  %v13556_v6 = vpop.f32.mrb[35].mxu0  ;;  %v10482_v45 = vrot.slane %v10480_v1, 5  ;;  %v19448_v37 = vld [vmem:[#allocation25_spill] sm:$0xff]  ;;  %v14563_v1 = vld [vmem:[%s19109_s3 + $0xf0] sm:$0xff]  }
 0x41c   : > { %13391 = vmatprep.subr.bf16.mxu1 %v14559_v15  ;;  %v10490_v63 = vrot.slane %v19447_v46, 5 }
 0x41d   : > { %13720 = vmatpush3.bf16.msra.mxu0 %v14558_v29  ;;  %v10483_v29 = vor.u32 %v10482_v45, %v10479_v14 }
 0x41e   : > { %13741 = vmatprep.subr.bf16.mxu0 %v19251_v34 }
 0x41f   : > { %13392 = vmatpush3.bf16.msra.mxu1 %v14559_v15  ;;  %13702 = vmatmul.mubr.msk.bf16.gmra.mrb[140].mxu0 %vm253_vm1, %v19439_v11  ;;  %v19446_v15 = vshrl.u32 %v19445_v54, 16  ;;  %v14561_v11 = vld [vmem:[%s19109_s3 + $0xe0] sm:$0xff]  }
 0x420   : > { %13425 = vmatprep.subr.bf16.mxu1 %v18428_v59  ;;  %13705 = vmatprep.mubr.msk.bf16.mxu0 %vm14593_vm0, %v19251_v34  ;;  %v18443_v49 = vpop.f32.mrb[36].mxu0 }
 0x421   : > { %v13559_v13 = vpop.f32.mrb[37].mxu0  ;;  %v10487_v25 = vrot.slane %v19446_v15, 4 }
 0x422   : > { %13362 = vmatmul.mubr.msk.bf16.gmra.mrb[188].mxu1 %vm253_vm1, %v19440_v57  ;;  %v18445_v36 = vpop.f32.mrb[38].mxu0  ;;  %v14562_v13 = vld [vmem:[%s19109_s3 + $0xe8] sm:$0xff]  }
 0x423   : > { %13365 = vmatprep.mubr.msk.bf16.mxu1 %vm253_vm1, %v19441_v12  ;;  %v13560_v16 = vpop.f32.mrb[39].mxu0  ;;  %v10491_v35 = vor.u32 %v10490_v63, %v10487_v25  ;;  %v19450_v12 = vld [vmem:[#allocation27_spill] sm:$0xff]  ;;  %v19455_v25 = vld [vmem:[#allocation29_spill] sm:$0xff] }
 0x425   : > { %v10492_v57 = vsel %vm7830_vm13, %v10483_v29, %v10491_v35 }
 0x427   : > { %13706 = vmatmul.mubr.msk.bf16.gmra.mrb[144].mxu0 %vm253_vm1, %v10342_v48 }
 0x428   : > { %13709 = vmatprep.mubr.msk.bf16.mxu0 %vm14593_vm0, %v19251_v34  ;;  %v18456_v32 = vpop.f32.mrb[40].mxu0 }
 0x429   : > { %v13563_v0 = vpop.f32.mrb[41].mxu0 }
 0x42a   : > { %13366 = vmatmul.mubr.msk.bf16.gmra.mrb[192].mxu1 %vm253_vm1, %v19443_v17  ;;  %v18458_v39 = vpop.f32.mrb[42].mxu0  ;;  %v7832_v17 = vshrl.u32 %v18368_v4, 16  ;;  %v10501_v0 = vsel %vm7830_vm13, %v10491_v35, %v19442_v50 }
 0x42b   : > { %13369 = vmatprep.mubr.msk.bf16.mxu1 %vm253_vm1, %v19444_v10  ;;  %v13564_v2 = vpop.f32.mrb[43].mxu0  ;;  %v7835_v10 = vshll.u32 %v18368_v4, 16  ;;  %v18505_v4 = vld [vmem:[#allocation2 + $0xb0] sm:$0x7f] }
 0x42c   : > { %v19452_v2 = vld [vmem:[#allocation12_spill] sm:$0xff]  ;;  %v7834_v46 = vrot.slane %v7832_v17, 4 }
 0x42d   : > { %v19453_v14 = vshrl.u32 %v19452_v2, 16  ;;  %v19454_v54 = vshll.u32 %v19452_v2, 16  ;;  %v7837_v63 = vrot.slane %v7835_v10, 5 }
 0x42f   : > { %13710 = vmatmul.mubr.msk.bf16.gmra.mrb[148].mxu0 %vm253_vm1, %v10341_v40  ;;  %v19451_v40 = vld [vmem:[#allocation28_spill] sm:$0xff]  ;;  %v10505_v45 = vrot.slane %v19453_v14, 4  ;;  %v10508_v15 = vrot.slane %v19454_v54, 5 }
 0x430   : > { %13721 = vmatprep.mubr.msk.bf16.mxu0 %vm14593_vm0, %v19251_v34  ;;  %v18471_v56 = vpop.f32.mrb[44].mxu0 }
 0x431   : > { %v13567_v6 = vpop.f32.mrb[45].mxu0  ;;  %v10509_v35 = vor.u32 %v10508_v15, %v10505_v45 }
 0x432   : > { %13370 = vmatmul.mubr.msk.bf16.gmra.mrb[196].mxu1 %vm253_vm1, %v19448_v37  ;;  %v18473_v47 = vpop.f32.mrb[46].mxu0  ;;  %v19456_v37 = vld [vmem:[#allocation30_spill] sm:$0xff]  ;;  %v10512_v6 = vshrl.u32 %v18505_v4, 16 }
 0x433   : > { %13373 = vmatprep.mubr.msk.bf16.mxu1 %vm253_vm1, %v19449_v27  ;;  %v13568_v20 = vpop.f32.mrb[47].mxu0  ;;  %v14564_v27 = vld [vmem:[%s19109_s3 + $0xf8] sm:$0xff]  }
 0x434   : > { %v10515_v20 = vshll.u32 %v18505_v4, 16  ;;  %v10514_v17 = vrot.slane %v10512_v6, 4 }
 0x436   : > { %v10517_v10 = vrot.slane %v10515_v20, 5  ;;  %v18567_v20 = vld [vmem:[#allocation2 + $0x90] sm:$0xe0] }
 0x437   : > { %13722 = vmatmul.mubr.msk.bf16.vlgmr.msra.gmra.mrb[152].mxu0 %vm253_vm1, %v10492_v57 }
 0x438   : > { %13725 = vmatprep.mubr.msk.bf16.mxu0 %vm14593_vm0, %v19251_v34  ;;  %13742 = vmatpush3.bf16.msra.mxu0 %v14561_v11  ;;  %v18489_v16 = vpop.f32.mrb[48].mxu0 }
 0x439   : > { %13743 = vmatprep.subr.bf16.mxu0 %v19251_v34  ;;  %v13571_v48 = vpop.f32.mrb[49].mxu0 }
 0x43a   : > { %13374 = vmatmul.mubr.msk.bf16.gmra.mrb[200].mxu1 %vm253_vm1, %v19450_v12  ;;  %v9669_v3 = vpop.f32.mrb[50].mxu0 }
 0x43b   : > { %13377 = vmatprep.mubr.msk.bf16.mxu1 %vm253_vm1, %v19451_v40  ;;  %v13572_v24 = vpop.f32.mrb[51].mxu0  ;;  %v7838_v40 = vor.u32 %v7837_v63, %v7834_v46  ;;  %v10510_v3 = vsel %vm7830_vm13, %v19442_v50, %v10509_v35  ;;  %v19459_v46 = vld [vmem:[#allocation33_spill] sm:$0xff]  ;;  %v14566_v63 = vld [vmem:[%s19109_s3 + $0xd0] sm:$0xff]  }
 0x43c   : > { %13744 = vmatpush3.bf16.msra.mxu0 %v14562_v13  ;;  %v19457_v24 = vld [vmem:[#allocation31_spill] sm:$0xff] }
 0x43d   : > { %13745 = vmatprep.subr.bf16.mxu0 %v19251_v34 }
 0x43f   : > { %13726 = vmatmul.mubr.msk.bf16.gmra.mrb[156].mxu0 %vm253_vm1, %v10501_v0  ;;  %v10518_v0 = vor.u32 %v10517_v10, %v10514_v17 }
 0x440   : > { %13729 = vmatprep.mubr.msk.bf16.mxu0 %vm14593_vm0, %v19251_v34  ;;  %13746 = vmatpush3.bf16.msra.mxu0 %v14563_v1  ;;  %v9789_v29 = vpop.f32.mrb[52].mxu0 }
 0x441   : > { %13747 = vmatprep.subr.bf16.mxu0 %v19251_v34  ;;  %v18520_v11 = vadd.f32 %v9789_v29, %v18420_v53  ;;  %v13583_v57 = vpop.f32.mrb[53].mxu0  ;;  %v19458_v53 = vld [vmem:[#allocation32_spill] sm:$0xff]  ;;  %v10519_v15 = vsel %vm7830_vm13, %v10509_v35, %v10518_v0 }
 0x442   : > { %13378 = vmatmul.mubr.msk.bf16.gmra.mrb[204].mxu1 %vm253_vm1, %v19455_v25  ;;  %v9792_v12 = vpop.f32.mrb[54].mxu0  ;;  %v7842_v1 = vsel %vm7830_vm13, %v7838_v40, %v19458_v53  ;;  %v14565_v25 = vld [vmem:[%s19109_s3 + $0xc8] sm:$0xff]   ;;  %v19461_v57 = vld [vmem:[#allocation35_spill] sm:$0xff] }
 0x443   : > { %13381 = vmatprep.mubr.msk.bf16.mxu1 %vm253_vm1, %v19456_v37  ;;  %v18523_v13 = vadd.f32 %v9792_v12, %v18431_v55  ;;  %v13584_v48 = vpop.f32.mrb[55].mxu0  ;;  %v10654_v12 = vrot.slane %v18567_v20, 5  ;;  %v14581_v40 = vld [vmem:[#allocation2 + $0x98] sm:$0xff] }
 0x444   : > { %13748 = vmatpush3.bf16.msra.mxu0 %v14564_v27  ;;  %v10655_v48 = vrot.slane %v14581_v40, 5 }
 0x445   : > { %13769 = vmatprep.subr.bf16.mxu0 %v19251_v34 }
 0x447   : > { %13730 = vmatmul.mubr.msk.bf16.gmra.mrb[160].mxu0 %vm253_vm1, %v10510_v3  ;;  %v18579_v3 = vld [vmem:[%s19109_s3 + $0xe0] sm:$0xff]  }
 0x448   : > { %13733 = vmatprep.mubr.msk.bf16.mxu0 %vm14593_vm0, %v19251_v34  ;;  %v9797_v55 = vpop.f32.mrb[56].mxu0 }
 0x449   : > { %v18537_v50 = vadd.f32 %v9797_v55, %v18443_v49  ;;  %v13587_v2 = vpop.f32.mrb[57].mxu0  ;;  %v19460_v49 = vld [vmem:[#allocation34_spill] sm:$0xff]  ;;  %v14567_v55 = vld [vmem:[%s19109_s3 + $0x100] sm:$0xff]  }
 0x44a   : > { %13382 = vmatmul.mubr.msk.bf16.gmra.mrb[208].mxu1 %vm253_vm1, %v19457_v24  ;;  %v9800_v14 = vpop.f32.mrb[58].mxu0  ;;  %v19463_v2 = vld [vmem:[#allocation37_spill] sm:$0xff] }
 0x44b   : > { %13393 = vmatprep.mubr.msk.bf16.mxu1 %vm253_vm1, %v7842_v1  ;;  %v18540_v45 = vadd.f32 %v9800_v14, %v18445_v36  ;;  %v13588_v54 = vpop.f32.mrb[59].mxu0 }
 0x44c   : > { %v10657_v54 = vrot.slane %v18334_v19, 5  ;;  %v19465_v19 = vld [vmem:[#allocation39_spill] sm:$0xff] }
 0x44f   : > { %13734 = vmatmul.mubr.msk.bf16.gmra.mrb[164].mxu0 %vm253_vm1, %v10519_v15 }
 0x450   : > { %13737 = vmatprep.mubr.msk.bf16.mxu0 %vm14593_vm0, %v19251_v34  ;;  %v9805_v36 = vpop.f32.mrb[60].mxu0 }
 0x451   : > { %v18558_v37 = vadd.f32 %v9805_v36, %v18456_v32  ;;  %v13591_v27 = vpop.f32.mrb[61].mxu0  ;;  %v19462_v32 = vld [vmem:[#allocation36_spill] sm:$0xff]  ;;  %v14570_v36 = vld [vmem:[%s19109_s3 + $0x110] sm:$0xff]  }
 0x452   : > { %13394 = vmatmul.mubr.msk.bf16.vlgmr.msra.gmra.mrb[180].mxu1 %vm253_vm1, %v19459_v46  ;;  %v9808_v29 = vpop.f32.mrb[62].mxu0  ;;  %v14571_v27 = vld [vmem:[%s19109_s3 + $0x118] sm:$0xff]  }
 0x453   : > { %13397 = vmatprep.mubr.msk.bf16.mxu1 %vm253_vm1, %v19460_v49  ;;  %13426 = vmatpush3.bf16.msra.mxu1 %v18428_v59  ;;  %v18561_v35 = vadd.f32 %v9808_v29, %v18458_v39  ;;  %v13592_v6 = vpop.f32.mrb[63].mxu0  ;;  %v14569_v59 = vld [vmem:[%s19109_s3 + $0xd8] sm:$0xff]  }
 0x454   : > { %13427 = vmatprep.subr.bf16.mxu1 %v14565_v25  ;;  %v14582_v6 = vld [vmem:[#allocation2 + $0xa8] sm:$0xff] }
 0x457   : > { %13428 = vmatpush3.bf16.msra.mxu1 %v14565_v25  ;;  %13738 = vmatmul.mubr.msk.bf16.gmra.mrb[168].mxu0 %vm253_vm1, %v10518_v0  ;;  %v10656_v0 = vsel %vm8643_vm15, %v10654_v12, %v10655_v48 }
 0x458   : > { %13429 = vmatprep.subr.bf16.mxu1 %v14566_v63  ;;  %13749 = vmatprep.mubr.msk.bf16.mxu0 %vm14593_vm0, %v19251_v34  ;;  %v9813_v39 = vpop.f32.mrb[64].mxu0 }
 0x459   : > { %v18582_v17 = vadd.f32 %v9813_v39, %v18471_v56  ;;  %v13595_v10 = vpop.f32.mrb[65].mxu0  ;;  %v19464_v56 = vld [vmem:[#allocation38_spill] sm:$0xff] }
 0x45a   : > { %13398 = vmatmul.mubr.msk.bf16.gmra.mrb[184].mxu1 %vm253_vm1, %v19461_v57  ;;  %v9816_v24 = vpop.f32.mrb[66].mxu0  ;;  %v19467_v10 = vld [vmem:[#allocation41_spill] sm:$0xff] }
 0x45b   : > { %13401 = vmatprep.mubr.msk.bf16.mxu1 %vm253_vm1, %v19462_v32  ;;  %13430 = vmatpush3.bf16.msra.mxu1 %v14566_v63  ;;  %v18585_v53 = vadd.f32 %v9816_v24, %v18473_v47  ;;  %v13596_v1 = vpop.f32.mrb[67].mxu0  ;;  %v14568_v47 = vld [vmem:[%s19109_s3 + $0x108] sm:$0xff]   ;;  %v10658_v63 = vsel %vm8643_vm15, %v10655_v48, %v10657_v54  ;;  %v19468_v24 = vld [vmem:[#allocation42_spill] sm:$0xff] }
 0x45c   : > { %13431 = vmatprep.subr.bf16.mxu1 %v14569_v59  ;;  %v10661_v1 = vrot.slane %v18505_v4, 5  ;;  %v19470_v4 = vld [vmem:[#allocation44_spill] sm:$0xff] }
 0x45f   : > { %13432 = vmatpush3.bf16.msra.mxu1 %v14569_v59  ;;  %13750 = vmatmul.mubr.msk.bf16.vlgmr.msra.gmra.mrb[172].mxu0 %vm253_vm1, %v10656_v0  ;;  %v10659_v59 = vrot.slane %v14582_v6, 5 }
 0x460   : > { %13465 = vmatprep.subr.bf16.mxu1 %v18579_v3  ;;  %13753 = vmatprep.mubr.msk.bf16.mxu0 %vm14593_vm0, %v19251_v34  ;;  %v9821_v14 = vpop.f32.mrb[68].mxu0 }
 0x461   : > { %13770 = vmatpush3.bf16.msra.mxu0 %v14567_v55  ;;  %v18605_v15 = vadd.f32 %v9821_v14, %v18489_v16  ;;  %v13599_v25 = vpop.f32.mrb[69].mxu0  ;;  %v19466_v16 = vld [vmem:[#allocation40_spill] sm:$0xff]  ;;  %v10660_v48 = vsel %vm8643_vm15, %v10657_v54, %v10659_v59  ;;  %v19469_v14 = vld [vmem:[#allocation43_spill] sm:$0xff]  ;;  %v10793_v54 = vshrl.u32 %v18567_v20, 16 }
 0x462   : > { %13402 = vmatmul.mubr.msk.bf16.gmra.mrb[188].mxu1 %vm253_vm1, %v19463_v2  ;;  %13771 = vmatprep.subr.bf16.mxu0 %v19251_v34  ;;  %v9824_v46 = vpop.f32.mrb[70].mxu0  ;;  %v7820_v25 = vld [vmem:[#allocation2 + $0x88] sm:$0x1f] }
 0x463   : > { %13405 = vmatprep.mubr.msk.bf16.mxu1 %vm253_vm1, %v19464_v56  ;;  %v13600_v49 = vpop.f32.mrb[71].mxu0  ;;  %v10795_v6 = vrot.slane %v10793_v54, 5 }
 0x465   : > { %13772 = vmatpush3.bf16.msra.mxu0 %v14568_v47  ;;  %v10662_v47 = vsel %vm8643_vm15, %v10659_v59, %v10661_v1 }
 0x466   : > { %13773 = vmatprep.subr.bf16.mxu0 %v19251_v34 }
 0x467   : > { %13754 = vmatmul.mubr.msk.bf16.gmra.mrb[176].mxu0 %vm253_vm1, %v10658_v63 }
 0x468   : > { %13757 = vmatprep.mubr.msk.bf16.mxu0 %vm14593_vm0, %v19251_v34 }
 0x469   : > { %13774 = vmatpush3.bf16.msra.mxu0 %v14570_v36  ;;  %v8173_v36 = vld [vmem:[#allocation2 + $0x10] sm:$0xf0] }
 0x46a   : > { %13406 = vmatmul.mubr.msk.bf16.gmra.mrb[192].mxu1 %vm253_vm1, %v19465_v19  ;;  %v9938_v29 = vpop.f32.mrb[72].mxu0  ;;  %13775 = vmatprep.subr.bf16.mxu0 %v19251_v34 }
 0x46b   : > { %13409 = vmatprep.mubr.msk.bf16.mxu1 %vm253_vm1, %v19466_v16  ;;  %v18624_v57 = vadd.f32 %v9938_v29, %v18520_v11  ;;  %v13611_v32 = vpop.f32.mrb[73].mxu0  ;;  %v7903_v29 = vshll.u32 %v7820_v25, 16 }
 0x46c   : > { %v9941_v39 = vpop.f32.mrb[74].mxu0  ;;  %v8200_v32 = vshrl.u32 %v8173_v36, 16 }
 0x46d   : > { %v18627_v12 = vadd.f32 %v9941_v39, %v18523_v13  ;;  %v13612_v40 = vpop.f32.mrb[75].mxu0  ;;  %13776 = vmatpush3.bf16.msra.mxu0 %v14571_v27  ;;  %v7900_v27 = vshrl.u32 %v7820_v25, 16  ;;  %v8203_v39 = vshll.u32 %v8173_v36, 16 }
 0x46f   : > { %13758 = vmatmul.mubr.msk.bf16.gmra.mrb[180].mxu0 %vm253_vm1, %v10660_v48 }
 0x470   : > { %13761 = vmatprep.mubr.msk.bf16.mxu0 %vm14593_vm0, %v19251_v34 }
 0x472   : > { %13410 = vmatmul.mubr.msk.bf16.gmra.mrb[196].mxu1 %vm253_vm1, %v19467_v10  ;;  %v9946_v11 = vpop.f32.mrb[76].mxu0  ;;  %v19474_v10 = vld [vmem:[#allocation47_spill] sm:$0xff] }
 0x473   : > { %13413 = vmatprep.mubr.msk.bf16.mxu1 %vm253_vm1, %v19468_v24  ;;  %v18639_v13 = vadd.f32 %v9946_v11, %v18537_v50  ;;  %v13615_v55 = vpop.f32.mrb[77].mxu0  ;;  %v7902_v24 = vrot.slane %v7900_v27, 4  ;;  %v7905_v11 = vrot.slane %v7903_v29, 5 }
 0x474   : > { %v9949_v0 = vpop.f32.mrb[78].mxu0 }
 0x475   : > { %v18642_v2 = vadd.f32 %v9949_v0, %v18540_v45  ;;  %v13616_v56 = vpop.f32.mrb[79].mxu0  ;;  %v10796_v45 = vshll.u32 %v18567_v20, 16  ;;  %v19471_v20 = vld [vmem:[#allocation46_spill] sm:$0xff]  ;;  %v7906_v25 = vor.u32 %v7905_v11, %v7902_v24 }
 0x476   : > { %v8205_v56 = vrot.slane %v8203_v39, 5 }
 0x477   : > { %13762 = vmatmul.mubr.msk.bf16.gmra.mrb[184].mxu0 %vm253_vm1, %v10662_v47  ;;  %v10798_v59 = vrot.slane %v10796_v45, 6 }
 0x478   : > { %13765 = vmatprep.mubr.msk.bf16.mxu0 %vm14593_vm0, %v19251_v34 }
 0x479   : > { %v10799_v0 = vor.u32 %v10798_v59, %v10795_v6  ;;  %v19478_v6 = vshll.u32 %v17887_v7, 16 }
 0x47a   : > { %13414 = vmatmul.mubr.msk.bf16.gmra.mrb[200].mxu1 %vm253_vm1, %v19469_v14  ;;  %v9954_v50 = vpop.f32.mrb[80].mxu0 }
 0x47b   : > { %13417 = vmatprep.mubr.msk.bf16.mxu1 %vm253_vm1, %v19470_v4  ;;  %v18655_v46 = vadd.f32 %v9954_v50, %v18558_v37  ;;  %v13619_v49 = vpop.f32.mrb[81].mxu0  ;;  %v19472_v37 = vshrl.u32 %v17885_v58, 16  ;;  %v8222_v59 = vrot.slane %v19478_v6, 5 }
 0x47c   : > { %v9957_v63 = vpop.f32.mrb[82].mxu0  ;;  %v19475_v49 = vld [vmem:[#allocation11_spill] sm:$0xff] }
 0x47d   : > { %v18658_v19 = vadd.f32 %v9957_v63, %v18561_v35  ;;  %v13620_v16 = vpop.f32.mrb[83].mxu0  ;;  %v8210_v40 = vrot.slane %v19472_v37, 4  ;;  %v19473_v35 = vshll.u32 %v17885_v58, 16  ;;  %v10803_v36 = vsel %vm8952_vm14, %v10799_v0, %v19475_v49  ;;  %v14573_v0 = vld [vmem:[%s19109_s3 + $0xe8] sm:$0xff]   ;;  %v10783_v49 = vld [vmem:[#allocation2 + $0xb0] sm:$0xff] }
 0x47e   : > { %v19476_v16 = vld [vmem:[#allocation45_spill] sm:$0xff]  ;;  %v10816_v6 = vshll.u32 %v10783_v49, 16 }
 0x47f   : > { %13766 = vmatmul.mubr.msk.bf16.gmra.mrb[188].mxu0 %vm253_vm1, %v10661_v1  ;;  %v8213_v48 = vrot.slane %v19473_v35, 5  ;;  %v8202_v1 = vrot.slane %v8200_v32, 4  ;;  %v7907_v27 = vsel %vm7830_vm13, %v19476_v16, %v7906_v25  ;;  %v19479_v32 = vld [vmem:[#allocation48_spill] sm:$0xff] }
 0x480   : > { %13777 = vmatprep.mubr.msk.bf16.mxu0 %vm14593_vm0, %v19251_v34  ;;  %v19480_v39 = vshrl.u32 %v19479_v32, 16  ;;  %v19481_v37 = vshll.u32 %v19479_v32, 16 }
 0x481   : > { %v8214_v50 = vor.u32 %v8213_v48, %v8210_v40  ;;  %v8206_v63 = vor.u32 %v8205_v56, %v8202_v1  ;;  %v19482_v1 = vld [vmem:[#allocation13_spill] sm:$0xff] }
 0x482   : > { %13418 = vmatmul.mubr.msk.bf16.gmra.mrb[204].mxu1 %vm253_vm1, %v19471_v20  ;;  %v9962_v55 = vpop.f32.mrb[84].mxu0  ;;  %v8228_v20 = vrot.slane %v19480_v39, 4  ;;  %v8231_v40 = vrot.slane %v19481_v37, 5 }
 0x483   : > { %13421 = vmatprep.mubr.msk.bf16.mxu1 %vm253_vm1, %v19474_v10  ;;  %v18672_v47 = vadd.f32 %v9962_v55, %v18582_v17  ;;  %v13623_v14 = vpop.f32.mrb[85].mxu0  ;;  %v19477_v17 = vshrl.u32 %v17887_v7, 16 }
 0x484   : > { %v9965_v4 = vpop.f32.mrb[86].mxu0  ;;  %v8232_v11 = vor.u32 %v8231_v40, %v8228_v20  ;;  %v19483_v14 = vld [vmem:[#allocation49_spill] sm:$0xff] }
 0x485   : > { %v18675_v54 = vadd.f32 %v9965_v4, %v18585_v53  ;;  %v13624_v45 = vpop.f32.mrb[87].mxu0  ;;  %v8219_v29 = vrot.slane %v19477_v17, 4  ;;  %v8215_v53 = vsel %vm7830_vm13, %v8206_v63, %v8214_v50  ;;  %v19484_v4 = vshrl.u32 %v19483_v14, 16 }
 0x486   : > { %v19486_v63 = vshrl.u32 %v17915_v33, 16 }
 0x487   : > { %13778 = vmatmul.mubr.msk.bf16.vlgmr.msra.gmra.mrb[192].mxu0 %vm253_vm1, %v10803_v36  ;;  %v8223_v10 = vor.u32 %v8222_v59, %v8219_v29  ;;  %v8237_v45 = vrot.slane %v19484_v4, 4  ;;  %v10813_v29 = vshrl.u32 %v10783_v49, 16  ;;  %v14574_v59 = vld [vmem:[%s19109_s3 + $0xf0] sm:$0xff]   ;;  %v19492_v4 = vshll.u32 %v17930_v41, 16 }
 0x488   : > { %13781 = vmatprep.mubr.msk.bf16.mxu0 %vm14593_vm0, %v19251_v34  ;;  %v8246_v16 = vrot.slane %v19486_v63, 4 }
 0x489   : > { %v8224_v56 = vsel %vm7830_vm13, %v8214_v50, %v8223_v10  ;;  %v8233_v36 = vsel %vm7830_vm13, %v8223_v10, %v8232_v11  ;;  %v19488_v10 = vld [vmem:[#allocation15_spill] sm:$0xff] }
 0x48a   : > { %13422 = vmatmul.mubr.msk.bf16.gmra.mrb[208].mxu1 %vm253_vm1, %v7907_v27  ;;  %v9970_v35 = vpop.f32.mrb[88].mxu0  ;;  %v19487_v27 = vshll.u32 %v17915_v33, 16 }
 0x48b   : > { %13433 = vmatprep.mubr.msk.bf16.mxu1 %vm253_vm1, %v8215_v53  ;;  %v18696_v48 = vadd.f32 %v9970_v35, %v18605_v15  ;;  %v13627_v7 = vpop.f32.mrb[89].mxu0  ;;  %v19485_v15 = vshll.u32 %v19483_v14, 16  ;;  %v10818_v35 = vrot.slane %v10816_v6, 6 }
 0x48c   : > { %v9973_v24 = vpop.f32.mrb[90].mxu0  ;;  %v8249_v50 = vrot.slane %v19487_v27, 5  ;;  %v14575_v7 = vld [vmem:[%s19109_s3 + $0xf8] sm:$0xff]  }
 0x48d   : > { %v13628_v55 = vpop.f32.mrb[91].mxu0  ;;  %v8240_v25 = vrot.slane %v19485_v15, 5  ;;  %v19489_v24 = vshrl.u32 %v17917_v38, 16 }
 0x48e   : > { %v8250_v33 = vor.u32 %v8249_v50, %v8246_v16  ;;  %v19493_v50 = vld [vmem:[#allocation14_spill] sm:$0xff] }
 0x48f   : > { %13782 = vmatmul.mubr.msk.bf16.gmra.mrb[196].mxu0 %vm253_vm1, %v19482_v1  ;;  %v8241_v39 = vor.u32 %v8240_v25, %v8237_v45  ;;  %v8255_v55 = vrot.slane %v19489_v24, 4  ;;  %v8267_v45 = vrot.slane %v19492_v4, 5 }
 0x490   : > { %13785 = vmatprep.mubr.msk.bf16.mxu0 %vm14593_vm0, %v19251_v34 }
 0x492   : > { %13434 = vmatmul.mubr.msk.bf16.vlgmr.msra.gmra.mrb[180].mxu1 %vm253_vm1, %v8224_v56  ;;  %v10115_v17 = vpop.f32.mrb[92].mxu0  ;;  %v19491_v56 = vshrl.u32 %v17930_v41, 16 }
 0x493   : > { %13437 = vmatprep.mubr.msk.bf16.mxu1 %vm253_vm1, %v8233_v36  ;;  %13466 = vmatpush3.bf16.msra.mxu1 %v18579_v3  ;;  %v18722_v53 = vadd.f32 %v10115_v17, %v18624_v57  ;;  %v13639_v32 = vpop.f32.mrb[93].mxu0  ;;  %v10815_v3 = vrot.slane %v10813_v29, 5  ;;  %v8242_v57 = vsel %vm7830_vm13, %v8232_v11, %v8241_v39 }
 0x494   : > { %13467 = vmatprep.subr.bf16.mxu1 %v14573_v0  ;;  %v10118_v20 = vpop.f32.mrb[94].mxu0  ;;  %v8264_v14 = vrot.slane %v19491_v56, 4  ;;  %v19500_v56 = vshrl.u32 %v17951_v26, 16 }
 0x495   : > { %v18725_v37 = vadd.f32 %v10118_v20, %v18627_v12  ;;  %v13640_v40 = vpop.f32.mrb[95].mxu0  ;;  %v19490_v12 = vshll.u32 %v17917_v38, 16  ;;  %v10819_v15 = vor.u32 %v10818_v35, %v10815_v3  ;;  %v18749_v38 = vld [vmem:[%s19109_s3 + $0x100] sm:$0xff]  }
 0x496   : > { %v8268_v16 = vor.u32 %v8267_v45, %v8264_v14  ;;  %v19497_v40 = vshll.u32 %v17940_v22, 16  ;;  %v8300_v14 = vrot.slane %v19500_v56, 4 }
 0x497   : > { %13468 = vmatpush3.bf16.msra.mxu1 %v14573_v0  ;;  %13786 = vmatmul.mubr.msk.bf16.gmra.mrb[200].mxu0 %vm253_vm1, %v19488_v10  ;;  %v8258_v1 = vrot.slane %v19490_v12, 5  ;;  %v8251_v0 = vsel %vm7830_vm13, %v8241_v39, %v8250_v33  ;;  %v10820_v17 = vsel %vm8952_vm14, %v19493_v50, %v10819_v15  ;;  %v19496_v39 = vshrl.u32 %v17940_v22, 16 }
 0x498   : > { %13469 = vmatprep.subr.bf16.mxu1 %v14574_v59  ;;  %13789 = vmatprep.mubr.msk.bf16.mxu0 %vm14593_vm0, %v19251_v34  ;;  %v8285_v3 = vrot.slane %v19497_v40, 5  ;;  %v19498_v22 = vshrl.u32 %v17946_v23, 16  ;;  %v19502_v50 = vshrl.u32 %v17961_v42, 16 }
 0x499   : > { %v8259_v36 = vor.u32 %v8258_v1, %v8255_v55  ;;  %v8282_v20 = vrot.slane %v19496_v39, 4  ;;  %v19499_v1 = vshll.u32 %v17946_v23, 16 }
 0x49a   : > { %13438 = vmatmul.mubr.msk.bf16.gmra.mrb[184].mxu1 %vm253_vm1, %v8242_v57  ;;  %v10123_v11 = vpop.f32.mrb[96].mxu0  ;;  %v8291_v12 = vrot.slane %v19498_v22, 4  ;;  %v19509_v22 = vshll.u32 %v17989_v51, 16 }
 0x49b   : > { %13441 = vmatprep.mubr.msk.bf16.mxu1 %vm253_vm1, %v8251_v0  ;;  %13470 = vmatpush3.bf16.msra.mxu1 %v14574_v59  ;;  %v18752_v25 = vadd.f32 %v10123_v11, %v18639_v13  ;;  %v13643_v49 = vpop.f32.mrb[97].mxu0  ;;  %v8260_v29 = vsel %vm7830_vm13, %v8250_v33, %v8259_v36  ;;  %v19494_v13 = vshrl.u32 %v17938_v52, 16  ;;  %v19495_v59 = vshll.u32 %v17938_v52, 16 }
 0x49c   : > { %13471 = vmatprep.subr.bf16.mxu1 %v14575_v7  ;;  %v10126_v63 = vpop.f32.mrb[98].mxu0  ;;  %v8286_v57 = vor.u32 %v8285_v3, %v8282_v20  ;;  %v8294_v0 = vrot.slane %v19499_v1, 5 }
 0x49d   : > { %v18755_v41 = vadd.f32 %v10126_v63, %v18642_v2  ;;  %v13644_v27 = vpop.f32.mrb[99].mxu0  ;;  %v8273_v6 = vrot.slane %v19494_v13, 4  ;;  %v8276_v32 = vrot.slane %v19495_v59, 5  ;;  %v8269_v2 = vsel %vm7830_vm13, %v8259_v36, %v8268_v16 }
 0x49e   : > { %v8295_v49 = vor.u32 %v8294_v0, %v8291_v12  ;;  %v19504_v13 = vshrl.u32 %v17985_v62, 16  ;;  %v19505_v59 = vshll.u32 %v17985_v62, 16  ;;  %v8339_v12 = vrot.slane %v19509_v22, 5  ;;  %v19515_v22 = vld [vmem:[#allocation54_spill] sm:$0xff] }
 0x49f   : > { %13472 = vmatpush3.bf16.msra.mxu1 %v14575_v7  ;;  %13790 = vmatmul.mubr.msk.bf16.gmra.mrb[204].mxu0 %vm253_vm1, %v10820_v17  ;;  %v8277_v7 = vor.u32 %v8276_v32, %v8273_v6  ;;  %v19503_v17 = vshll.u32 %v17961_v42, 16 }
 0x4a0   : > { %13505 = vmatprep.subr.bf16.mxu1 %v18749_v38  ;;  %13793 = vmatprep.mubr.msk.bf16.mxu0 %vm14593_vm0, %v19251_v34  ;;  %v8296_v27 = vsel %vm7830_vm13, %v8286_v57, %v8295_v49  ;;  %v8318_v6 = vrot.slane %v19504_v13, 4 }
 0x4a1   : > { %v8278_v55 = vsel %vm7830_vm13, %v8268_v16, %v8277_v7 }
 0x4a2   : > { %13442 = vmatmul.mubr.msk.bf16.gmra.mrb[188].mxu1 %vm253_vm1, %v8260_v29  ;;  %v10131_v33 = vpop.f32.mrb[100].mxu0  ;;  %v8312_v29 = vrot.slane %v19503_v17, 5 }
 0x4a3   : > { %13445 = vmatprep.mubr.msk.bf16.mxu1 %vm253_vm1, %v8269_v2  ;;  %v18776_v35 = vadd.f32 %v10131_v33, %v18655_v46  ;;  %v13647_v52 = vpop.f32.mrb[101].mxu0  ;;  %v8287_v46 = vsel %vm7830_vm13, %v8277_v7, %v8286_v57 }
 0x4a4   : > { %v10134_v10 = vpop.f32.mrb[102].mxu0  ;;  %v19506_v52 = vshrl.u32 %v17987_v31, 16 }
 0x4a5   : > { %v18779_v24 = vadd.f32 %v10134_v10, %v18658_v19  ;;  %v13648_v34 = vpop.f32.mrb[103].mxu0  ;;  %v19501_v19 = vshll.u32 %v17951_v26, 16  ;;  %v8309_v26 = vrot.slane %v19502_v50, 4  ;;  %v19507_v10 = vshll.u32 %v17987_v31, 16 }
 0x4a6   : > { %v8327_v7 = vrot.slane %v19506_v52, 4  ;;  %v19508_v34 = vshrl.u32 %v17989_v51, 16 }
 0x4a7   : > { %13794 = vmatmul.mubr.msk.bf16.gmra.mrb[208].mxu0 %vm253_vm1, %v10819_v15  ;;  %v8303_v4 = vrot.slane %v19501_v19, 5  ;;  %v8313_v20 = vor.u32 %v8312_v29, %v8309_v26  ;;  %v8330_v62 = vrot.slane %v19507_v10, 5  ;;  %v14583_v19 = vld [vmem:[#allocation2 + $0x90] sm:$0x1f] }
 0x4a9   : > { %v8304_v36 = vor.u32 %v8303_v4, %v8300_v14  ;;  %v8343_v4 = vshrl.u32 %v14583_v19, 16 }
 0x4aa   : > { %13446 = vmatmul.mubr.msk.bf16.gmra.mrb[192].mxu1 %vm253_vm1, %v8278_v55  ;;  %v10139_v45 = vpop.f32.mrb[104].mxu0  ;;  %v8336_v55 = vrot.slane %v19508_v34, 4 }
 0x4ab   : > { %13449 = vmatprep.mubr.msk.bf16.mxu1 %vm253_vm1, %v8287_v46  ;;  %v18795_v11 = vadd.f32 %v10139_v45, %v18672_v47  ;;  %v13651_v15 = vpop.f32.mrb[105].mxu0  ;;  %v8305_v47 = vsel %vm7830_vm13, %v8295_v49, %v8304_v36  ;;  %v8314_v33 = vsel %vm7830_vm13, %v8304_v36, %v8313_v20  ;;  %v8331_v46 = vor.u32 %v8330_v62, %v8327_v7  ;;  %v14579_v62 = vld [vmem:[%s19109_s3 + $0x118] sm:$0xff]  }
 0x4ac   : > { %v10142_v23 = vpop.f32.mrb[106].mxu0  ;;  %v8346_v45 = vshll.u32 %v14583_v19, 16  ;;  %v8340_v15 = vor.u32 %v8339_v12, %v8336_v55  ;;  %v19516_v12 = vld [vmem:[#allocation55_spill] sm:$0xff] }
 0x4ad   : > { %v18798_v63 = vadd.f32 %v10142_v23, %v18675_v54  ;;  %v13652_v16 = vpop.f32.mrb[107].mxu0  ;;  %v8321_v54 = vrot.slane %v19505_v59, 5 }
 0x4ae   : > { %v8341_v51 = vsel %vm7830_vm13, %v8331_v46, %v8340_v15  ;;  %v8348_v23 = vrot.slane %v8346_v45, 5  ;;  %v19517_v45 = vld [vmem:[#allocation56_spill] sm:$0xff] }
 0x4af   : > { %v8322_v40 = vor.u32 %v8321_v54, %v8318_v6  ;;  %v19510_v6 = vrot.slane %v17885_v58, 5  ;;  %v19512_v58 = vld [vmem:[#allocation51_spill] sm:$0xff] }
 0x4b1   : > { %v8323_v57 = vsel %vm7830_vm13, %v8313_v20, %v8322_v40  ;;  %v8332_v49 = vsel %vm7830_vm13, %v8322_v40, %v8331_v46  ;;  %v19511_v40 = vld [vmem:[#allocation50_spill] sm:$0xff] }
 0x4b2   : > { %13450 = vmatmul.mubr.msk.bf16.gmra.mrb[196].mxu1 %vm253_vm1, %v8296_v27  ;;  %v10147_v32 = vpop.f32.mrb[108].mxu0 }
 0x4b3   : > { %13453 = vmatprep.mubr.msk.bf16.mxu1 %vm253_vm1, %v8305_v47  ;;  %v18813_v2 = vadd.f32 %v10147_v32, %v18696_v48  ;;  %v13655_v39 = vpop.f32.mrb[109].mxu0 }
 0x4b4   : > { %v10150_v42 = vpop.f32.mrb[110].mxu0 }
 0x4b5   : > { %v13656_v3 = vpop.f32.mrb[111].mxu0  ;;  %v14577_v42 = vld [vmem:[%s19109_s3 + $0x108] sm:$0xff]  }
 0x4ba   : > { %13454 = vmatmul.mubr.msk.bf16.gmra.mrb[200].mxu1 %vm253_vm1, %v8314_v33  ;;  %v10258_v48 = vpop.f32.mrb[112].mxu0 }
 0x4bb   : > { %13457 = vmatprep.mubr.msk.bf16.mxu1 %vm253_vm1, %v8323_v57  ;;  %v18828_v1 = vadd.f32 %v10258_v48, %v18722_v53  ;;  %v13667_v0 = vpop.f32.mrb[113].mxu0  ;;  %v8345_v53 = vrot.slane %v8343_v4, 4  ;;  %v19514_v57 = vld [vmem:[#allocation53_spill] sm:$0xff] }
 0x4bc   : > { %v10261_v31 = vpop.f32.mrb[114].mxu0 }
 0x4bd   : > { %v10297_v56 = vadd.f32 %v10261_v31, %v18725_v37  ;;  %v13668_v14 = vpop.f32.mrb[115].mxu0  ;;  %v18836_v37 = vld [vmem:[#allocation2 + $0x10] sm:$0xe0]  ;;  %v8349_v29 = vor.u32 %v8348_v23, %v8345_v53 }
 0x4be   : > { %v8644_v47 = vrot.slane %v18836_v37, 5 }
 0x4bf   : > { %v8350_v13 = vsel %vm7830_vm13, %v8340_v15, %v8349_v29 }
 0x4c0   : > { %v8646_v59 = vsel %vm8643_vm15, %v8644_v47, %v19510_v6  ;;  %v19521_v6 = vld [vmem:[#allocation60_spill] sm:$0xff] }
 0x4c2   : > { %13458 = vmatmul.mubr.msk.bf16.gmra.mrb[204].mxu1 %vm253_vm1, %v8332_v49  ;;  %v10266_v36 = vpop.f32.mrb[116].mxu0 }
 0x4c3   : > { %13461 = vmatprep.mubr.msk.bf16.mxu1 %vm253_vm1, %v8341_v51  ;;  %v10298_v16 = vadd.f32 %v10266_v36, %v18752_v25  ;;  %v13671_v27 = vpop.f32.mrb[117].mxu0 }
 0x4c4   : > { %v10269_v50 = vpop.f32.mrb[118].mxu0  ;;  %v19519_v27 = vld [vmem:[#allocation58_spill] sm:$0xff] }
 0x4c5   : > { %v10299_v26 = vadd.f32 %v10269_v50, %v18755_v41  ;;  %v13672_v17 = vpop.f32.mrb[119].mxu0 }
 0x4ca   : > { %13462 = vmatmul.mubr.msk.bf16.gmra.mrb[208].mxu1 %vm253_vm1, %v8350_v13  ;;  %v10274_v25 = vpop.f32.mrb[120].mxu0 }
 0x4cb   : > { %13473 = vmatprep.mubr.msk.bf16.mxu1 %vm253_vm1, %v8646_v59  ;;  %v10300_v54 = vadd.f32 %v10274_v25, %v18776_v35  ;;  %v13675_v32 = vpop.f32.mrb[121].mxu0  ;;  %v14578_v35 = vld [vmem:[%s19109_s3 + $0x110] sm:$0xff]  }
 0x4cc   : > { %v10277_v39 = vpop.f32.mrb[122].mxu0 }
 0x4cd   : > { %v10301_v41 = vadd.f32 %v10277_v39, %v18779_v24  ;;  %v13676_v20 = vpop.f32.mrb[123].mxu0 }
 0x4d2   : > { %13474 = vmatmul.mubr.msk.bf16.vlgmr.msra.gmra.mrb[180].mxu1 %vm253_vm1, %v19511_v40  ;;  %v10282_v3 = vpop.f32.mrb[124].mxu0  ;;  %v19523_v40 = vld [vmem:[#allocation62_spill] sm:$0xff] }
 0x4d3   : > { %13477 = vmatprep.mubr.msk.bf16.mxu1 %vm253_vm1, %v19512_v58  ;;  %13506 = vmatpush3.bf16.msra.mxu1 %v18749_v38  ;;  %v10302_v24 = vadd.f32 %v10282_v3, %v18795_v11  ;;  %v13679_v33 = vpop.f32.mrb[125].mxu0  ;;  %v19513_v38 = vld [vmem:[#allocation52_spill] sm:$0xff] }
 0x4d4   : > { %13507 = vmatprep.subr.bf16.mxu1 %v14577_v42  ;;  %v10285_v52 = vpop.f32.mrb[126].mxu0 }
 0x4d5   : > { %v10303_v7 = vadd.f32 %v10285_v52, %v18798_v63  ;;  %v13680_v10 = vpop.f32.mrb[127].mxu0 }
 0x4d7   : > { %13508 = vmatpush3.bf16.msra.mxu1 %v14577_v42  ;;  %v8954_v42 = vshrl.u32 %v18836_v37, 16 }
 0x4d8   : > { %13509 = vmatprep.subr.bf16.mxu1 %v14578_v35 }
 0x4d9   : > { %v8956_v3 = vrot.slane %v8954_v42, 5 }
 0x4da   : > { %13478 = vmatmul.mubr.msk.bf16.gmra.mrb[184].mxu1 %vm253_vm1, %v19513_v38  ;;  %v10290_v48 = vpop.f32.mrb[128].mxu0 }
 0x4db   : > { %13481 = vmatprep.mubr.msk.bf16.mxu1 %vm253_vm1, %v19514_v57  ;;  %13510 = vmatpush3.bf16.msra.mxu1 %v14578_v35  ;;  %v10304_v11 = vadd.f32 %v10290_v48, %v18813_v2  ;;  %v13683_v34 = vpop.f32.mrb[129].mxu0  ;;  %v19518_v2 = vld [vmem:[#allocation57_spill] sm:$0xff] }
 0x4dc   : > { %13511 = vmatprep.subr.bf16.mxu1 %v14579_v62  ;;  %v10293_v63 = vpop.f32.mrb[130].mxu0 }
 0x4dd   : > { %v13684_v55 = vpop.f32.mrb[131].mxu0 }
 0x4df   : > { %13512 = vmatpush3.bf16.msra.mxu1 %v14579_v62 }
 0x4e2   : > { %13482 = vmatmul.mubr.msk.bf16.gmra.mrb[188].mxu1 %vm253_vm1, %v19515_v22  ;;  %v10416_v0 = vpop.f32.mrb[132].mxu0  ;;  %v19526_v22 = vld [vmem:[#allocation65_spill] sm:$0xff] }
 0x4e3   : > { %13485 = vmatprep.mubr.msk.bf16.mxu1 %vm253_vm1, %v19516_v12  ;;  %v10454_v46 = vadd.f32 %v10416_v0, %v18828_v1  ;;  %v13695_v31 = vpop.f32.mrb[133].mxu0  ;;  %v19520_v1 = vld [vmem:[#allocation59_spill] sm:$0xff] }
 0x4e4   : > { %v10419_v14 = vpop.f32.mrb[134].mxu0 }
 0x4e5   : > { %v10455_v19 = vadd.f32 %v10419_v14, %v10297_v56  ;;  %v13696_v4 = vpop.f32.mrb[135].mxu0 }
 0x4ea   : > { %13486 = vmatmul.mubr.msk.bf16.gmra.mrb[192].mxu1 %vm253_vm1, %v19517_v45  ;;  %v10424_v15 = vpop.f32.mrb[136].mxu0  ;;  %v19528_v45 = vld [vmem:[#allocation67_spill] sm:$0xff] }
 0x4eb   : > { %13489 = vmatprep.mubr.msk.bf16.mxu1 %vm253_vm1, %v19518_v2  ;;  %v10456_v49 = vadd.f32 %v10424_v15, %v10298_v16  ;;  %v13699_v51 = vpop.f32.mrb[137].mxu0  ;;  %v19522_v16 = vld [vmem:[#allocation61_spill] sm:$0xff] }
 0x4ec   : > { %v10427_v53 = vpop.f32.mrb[138].mxu0 }
 0x4ed   : > { %v10457_v23 = vadd.f32 %v10427_v53, %v10299_v26  ;;  %v13700_v36 = vpop.f32.mrb[139].mxu0 }
 0x4f2   : > { %13490 = vmatmul.mubr.msk.bf16.gmra.mrb[196].mxu1 %vm253_vm1, %v19519_v27  ;;  %v10432_v56 = vpop.f32.mrb[140].mxu0  ;;  %v19530_v27 = vld [vmem:[#allocation69_spill] sm:$0xff] }
 0x4f3   : > { %13493 = vmatprep.mubr.msk.bf16.mxu1 %vm253_vm1, %v19520_v1  ;;  %v10458_v50 = vadd.f32 %v10432_v56, %v10300_v54  ;;  %v13703_v17 = vpop.f32.mrb[141].mxu0  ;;  %v8957_v54 = vshll.u32 %v18836_v37, 16 }
 0x4f4   : > { %v10435_v29 = vpop.f32.mrb[142].mxu0 }
 0x4f5   : > { %v10459_v47 = vadd.f32 %v10435_v29, %v10301_v41  ;;  %v13704_v13 = vpop.f32.mrb[143].mxu0  ;;  %v19524_v41 = vld [vmem:[#allocation63_spill] sm:$0xff]  ;;  %v8959_v35 = vrot.slane %v8957_v54, 6 }
 0x4f7   : > { %v8960_v62 = vor.u32 %v8959_v35, %v8956_v3 }
 0x4f9   : > { %v8964_v37 = vsel %vm8952_vm14, %v8960_v62, %v18064_v18 }
 0x4fa   : > { %13494 = vmatmul.mubr.msk.bf16.gmra.mrb[200].mxu1 %vm253_vm1, %v19521_v6  ;;  %v10440_v26 = vpop.f32.mrb[144].mxu0 }
 0x4fb   : > { %13497 = vmatprep.mubr.msk.bf16.mxu1 %vm253_vm1, %v19522_v16  ;;  %v10460_v59 = vadd.f32 %v10440_v26, %v10302_v24  ;;  %v13707_v25 = vpop.f32.mrb[145].mxu0 }
 0x4fc   : > { %v10443_v32 = vpop.f32.mrb[146].mxu0 }
 0x4fd   : > { %v10461_v39 = vadd.f32 %v10443_v32, %v10303_v7  ;;  %v13708_v20 = vpop.f32.mrb[147].mxu0  ;;  %v19525_v7 = vld [vmem:[#allocation64_spill] sm:$0xff] }
 0x502   : > { %13498 = vmatmul.mubr.msk.bf16.gmra.mrb[204].mxu1 %vm253_vm1, %v19523_v40  ;;  %v10448_v58 = vpop.f32.mrb[148].mxu0 }
 0x503   : > { %13501 = vmatprep.mubr.msk.bf16.mxu1 %vm253_vm1, %v19524_v41  ;;  %v10462_v33 = vadd.f32 %v10448_v58, %v10304_v11  ;;  %v13711_v52 = vpop.f32.mrb[149].mxu0  ;;  %v19527_v11 = vld [vmem:[#allocation66_spill] sm:$0xff] }
 0x504   : > { %v10451_v24 = vpop.f32.mrb[150].mxu0 }
 0x505   : > { %v13712_v10 = vpop.f32.mrb[151].mxu0 }
 0x50a   : > { %13502 = vmatmul.mubr.msk.bf16.gmra.mrb[208].mxu1 %vm253_vm1, %v19525_v7  ;;  %v10593_v38 = vpop.f32.mrb[152].mxu0 }
 0x50b   : > { %13513 = vmatprep.mubr.msk.bf16.mxu1 %vm253_vm1, %v8964_v37  ;;  %v10631_v57 = vadd.f32 %v10593_v38, %v10454_v46  ;;  %v13723_v48 = vpop.f32.mrb[153].mxu0  ;;  %v19529_v46 = vld [vmem:[#allocation68_spill] sm:$0xff] }
 0x50c   : > { %v10596_v34 = vpop.f32.mrb[154].mxu0 }
 0x50d   : > { %v10632_v63 = vadd.f32 %v10596_v34, %v10455_v19  ;;  %v13724_v55 = vpop.f32.mrb[155].mxu0 }
 0x512   : > { %13514 = vmatmul.mubr.msk.bf16.vlgmr.msra.gmra.mrb[180].mxu1 %vm253_vm1, %v19526_v22  ;;  %v10601_v12 = vpop.f32.mrb[156].mxu0 }
 0x513   : > { %13517 = vmatprep.mubr.msk.bf16.mxu1 %vm253_vm1, %v19527_v11  ;;  %v10633_v0 = vadd.f32 %v10601_v12, %v10456_v49  ;;  %v13727_v31 = vpop.f32.mrb[157].mxu0  ;;  %v18937_v11 = vld [vmem:[%s14653_s8 + $0x8c] ss:$28 sps:$4 sm:$0xff]  }
 0x514   : > { %v10604_v14 = vpop.f32.mrb[158].mxu0 }
 0x515   : > { %v10634_v4 = vadd.f32 %v10604_v14, %v10457_v23  ;;  %v13728_v18 = vpop.f32.mrb[159].mxu0  ;;  %v10959_v14 = vunpack.c.l.bf16 %v18937_v11 }
 0x51a   : > { %13518 = vmatmul.mubr.msk.bf16.gmra.mrb[184].mxu1 %vm253_vm1, %v19528_v45  ;;  %v10609_v19 = vpop.f32.mrb[160].mxu0 }
 0x51b   : > { %13521 = vmatprep.mubr.msk.bf16.mxu1 %vm253_vm1, %v19529_v46  ;;  %v10635_v2 = vadd.f32 %v10609_v19, %v10458_v50  ;;  %v13731_v15 = vpop.f32.mrb[161].mxu0 }
 0x51c   : > { %v10612_v51 = vpop.f32.mrb[162].mxu0 }
 0x51d   : > { %v10636_v53 = vadd.f32 %v10612_v51, %v10459_v47  ;;  %v13732_v36 = vpop.f32.mrb[163].mxu0 }
 0x522   : > { %13522 = vmatmul.mubr.msk.bf16.gmra.mrb[188].mxu1 %vm253_vm1, %v19530_v27  ;;  %v10617_v49 = vpop.f32.mrb[164].mxu0 }
 0x523   : > { %13525 = vmatprep.mubr.msk.bf16.mxu1 %vm253_vm1, %v18128_v21  ;;  %v10637_v23 = vadd.f32 %v10617_v49, %v10460_v59  ;;  %v13735_v1 = vpop.f32.mrb[165].mxu0  ;;  %v12049_v49 = vld [vmem:[%s14653_s8 + $0x98] sm:$0xff]  }
 0x524   : > { %v10620_v56 = vpop.f32.mrb[166].mxu0 }
 0x525   : > { %v10638_v17 = vadd.f32 %v10620_v56, %v10461_v39  ;;  %v13736_v29 = vpop.f32.mrb[167].mxu0  ;;  %v8942_v39 = vld [vmem:[#allocation2 + $0x90] sm:$0x3f] }
 0x526   : > { %v9025_v41 = vshll.u32 %v8942_v39, 16 }
 0x52a   : > { %13526 = vmatmul.mubr.msk.bf16.gmra.mrb[192].mxu1 %vm253_vm1, %v18140_v5  ;;  %v10625_v50 = vpop.f32.mrb[168].mxu0 }
 0x52b   : > { %13529 = vmatprep.mubr.msk.bf16.mxu1 %vm253_vm1, %v18146_v9  ;;  %v10639_v47 = vadd.f32 %v10625_v50, %v10462_v33  ;;  %v13739_v13 = vpop.f32.mrb[169].mxu0 }
 0x52c   : > { %v10628_v6 = vpop.f32.mrb[170].mxu0 }
 0x52d   : > { %v13740_v16 = vpop.f32.mrb[171].mxu0 }
 0x52e   : > { %v12027_v16 = vunpack.c.l.bf16 %v12049_v49 }
 0x532   : > { %13530 = vmatmul.mubr.msk.bf16.gmra.mrb[196].mxu1 %vm253_vm1, %v18153_v30  ;;  %v10736_v21 = vpop.f32.mrb[172].mxu0 }
 0x533   : > { %13533 = vmatprep.mubr.msk.bf16.mxu1 %vm253_vm1, %v18156_v8  ;;  %v10774_v26 = vadd.f32 %v10736_v21, %v10631_v57  ;;  %v13751_v59 = vpop.f32.mrb[173].mxu0  ;;  %v9022_v8 = vshrl.u32 %v8942_v39, 16 }
 0x534   : > { %v10739_v25 = vpop.f32.mrb[174].mxu0 }
 0x535   : > { %v10775_v32 = vadd.f32 %v10739_v25, %v10632_v63  ;;  %v13752_v5 = vpop.f32.mrb[175].mxu0  ;;  %v9024_v58 = vrot.slane %v9022_v8, 5 }
 0x53a   : > { %13534 = vmatmul.mubr.msk.bf16.gmra.mrb[200].mxu1 %vm253_vm1, %v18165_v61  ;;  %v10744_v9 = vpop.f32.mrb[176].mxu0  ;;  %v9027_v61 = vrot.slane %v9025_v41, 6 }
 0x53b   : > { %13537 = vmatprep.mubr.msk.bf16.mxu1 %vm253_vm1, %v18176_v60  ;;  %v10776_v20 = vadd.f32 %v10744_v9, %v10633_v0  ;;  %v13755_v42 = vpop.f32.mrb[177].mxu0  ;;  %v12048_v0 = vld [vmem:[%s14653_s8 + $0x90] sm:$0xff]   ;;  %v12050_v9 = vld [vmem:[%s14653_s8 + $0xa0] sm:$0xff]  }
 0x53c   : > { %v10747_v30 = vpop.f32.mrb[178].mxu0  ;;  %v9028_v10 = vor.u32 %v9027_v61, %v9024_v58  ;;  %v12023_v19 = vunpack.c.l.bf16 %v12048_v0  ;;  %v12031_v61 = vunpack.c.l.bf16 %v12050_v9 }
 0x53d   : > { %v10777_v54 = vadd.f32 %v10747_v30, %v10634_v4  ;;  %v13756_v40 = vpop.f32.mrb[179].mxu0  ;;  %v12028_v30 = vunpack.c.h.bf16 %v12049_v49 }
 0x53e   : > { %v9029_v62 = vsel %vm8952_vm14, %v18178_v28, %v9028_v10  ;;  %v18942_v28 = vld [vmem:[%s19110_s4] ss:$0 sm:$0xff] }
 0x542   : > { %13538 = vmatmul.mubr.msk.bf16.gmra.mrb[204].mxu1 %vm253_vm1, %v18194_v44  ;;  %v10752_v3 = vpop.f32.mrb[180].mxu0 }
 0x543   : > { %13541 = vmatprep.mubr.msk.bf16.mxu1 %vm253_vm1, %v18209_v43  ;;  %v10778_v35 = vadd.f32 %v10752_v3, %v10635_v2  ;;  %v13759_v60 = vpop.f32.mrb[181].mxu0 }
 0x544   : > { %v10755_v33 = vpop.f32.mrb[182].mxu0 }
 0x545   : > { %v18925_v52 = vadd.f32 %v10755_v33, %v10636_v53  ;;  %v13760_v24 = vpop.f32.mrb[183].mxu0 }
 0x54a   : > { %13542 = vmatmul.mubr.msk.bf16.gmra.mrb[208].mxu1 %vm253_vm1, %v9029_v62  ;;  %v10760_v44 = vpop.f32.mrb[184].mxu0 }
 0x54b   : > { %v18930_v7 = vadd.f32 %v10760_v44, %v10637_v23  ;;  %v13763_v43 = vpop.f32.mrb[185].mxu0 }
 0x54c   : > { %v10763_v37 = vpop.f32.mrb[186].mxu0 }
 0x54d   : > { %v18932_v38 = vadd.f32 %v10763_v37, %v10638_v17  ;;  %v13764_v57 = vpop.f32.mrb[187].mxu0  ;;  %v12024_v17 = vunpack.c.h.bf16 %v12048_v0  ;;  %v12032_v37 = vunpack.c.h.bf16 %v12050_v9  ;;  %v12035_v9 = vld [vmem:[%s14653_s8 + $0x20] sm:$0xff]  }
 0x552   : > { %v10768_v48 = vpop.f32.mrb[188].mxu0 }
 0x553   : > { %v18934_v34 = vadd.f32 %v10768_v48, %v10639_v47  ;;  %v13767_v63 = vpop.f32.mrb[189].mxu0 }
 0x554   : > { %v10771_v55 = vpop.f32.mrb[190].mxu0 }
 0x555   : > { %v13768_v22 = vpop.f32.mrb[191].mxu0 }
 0x556   : > { %v10966_v22 = vunpack.c.h.bf16 %v18937_v11 }
 0x55a   : > { %v10894_v12 = vpop.f32.mrb[192].mxu0 }
 0x55b   : > { %v10932_v31 = vadd.f32 %v10894_v12, %v10774_v26  ;;  %v13779_v4 = vpop.f32.mrb[193].mxu0 }
 0x55c   : > { %v10897_v18 = vpop.f32.mrb[194].mxu0 }
 0x55d   : > { %v10941_v45 = vadd.f32 %v18942_v28, %v10932_v31  ;;  %v10933_v46 = vadd.f32 %v10897_v18, %v10775_v32  ;;  %v13780_v2 = vpop.f32.mrb[195].mxu0  ;;  %v10958_v31 = vld [vmem:[%s14653_s8 + $0xac] sm:$0x3] }
 0x55e   : > { %v10967_v11 = vunpack.c.l.bf16 %v10958_v31 }
 0x55f   : > { %v10968_v15 = vadd.f32 %v10959_v14, %v10941_v45  ;;  %v10942_v51 = vadd.f32 %v18942_v28, %v10933_v46 }
 0x561   : > { %v10977_v53 = vmul.f32 0.01, %v10968_v15  ;;  %v10969_v36 = vadd.f32 %v12023_v19, %v10942_v51 }
 0x562   : > { %v10902_v27 = vpop.f32.mrb[196].mxu0 }
 0x563   : > { %v10986_v23 = vmax.f32 %v10968_v15, %v10977_v53  ;;  %v10978_v1 = vmul.f32 0.01, %v10969_v36  ;;  %v10934_v56 = vadd.f32 %v10902_v27, %v10776_v20  ;;  %v13783_v29 = vpop.f32.mrb[197].mxu0 }
 0x564   : > { %v10905_v50 = vpop.f32.mrb[198].mxu0 }
 0x565   : > { %10995 = vst.msk [vmem:[%s18952_s25 + $0x100] sm:$0xff] %vm253_vm1, %v10986_v23  ;;  %v10987_v47 = vmax.f32 %v10969_v36, %v10978_v1  ;;  %v10943_v13 = vadd.f32 %v18942_v28, %v10934_v56  ;;  %v10935_v6 = vadd.f32 %v10905_v50, %v10777_v54  ;;  %v13784_v21 = vpop.f32.mrb[199].mxu0  ;;  %v12033_v23 = vld [vmem:[%s14653_s8 + $0x10] sm:$0xff]   ;;  %v18989_v1 = vld [vmem:[%s14653_s8 + $0xc] ss:$124 sps:$4 sm:$0xff]  }
 0x566   : > { %v11964_v56 = vunpack.c.h.bf16 %v12033_v23  ;;  %v9365_v29 = vunpack.c.l.bf16 %v18989_v1  ;;  %v11963_v21 = vunpack.c.l.bf16 %v12033_v23 }
 0x567   : > { %10996 = vst.msk [vmem:[%s18952_s25 + $0x108] sm:$0xff] %vm253_vm1, %v10987_v47  ;;  %v10970_v26 = vadd.f32 %v12024_v17, %v10943_v13  ;;  %v10944_v59 = vadd.f32 %v18942_v28, %v10935_v6 }
 0x569   : > { %v10979_v25 = vmul.f32 0.01, %v10970_v26  ;;  %v10971_v32 = vadd.f32 %v12027_v16, %v10944_v59 }
 0x56a   : > { %v10910_v5 = vpop.f32.mrb[200].mxu0 }
 0x56b   : > { %v10988_v39 = vmax.f32 %v10970_v26, %v10979_v25  ;;  %v10980_v20 = vmul.f32 0.01, %v10971_v32  ;;  %v10936_v42 = vadd.f32 %v10910_v5, %v10778_v35  ;;  %v13787_v40 = vpop.f32.mrb[201].mxu0 }
 0x56c   : > { %v10913_v8 = vpop.f32.mrb[202].mxu0  ;;  %v12036_v40 = vld [vmem:[%s14653_s8 + $0x28] sm:$0xff]  }
 0x56d   : > { %10997 = vst.msk [vmem:[%s18952_s25 + $0x110] sm:$0xff] %vm253_vm1, %v10988_v39  ;;  %v10989_v54 = vmax.f32 %v10971_v32, %v10980_v20  ;;  %v10945_v41 = vadd.f32 %v18942_v28, %v10936_v42  ;;  %v10937_v58 = vadd.f32 %v10913_v8, %v18925_v52  ;;  %v13788_v3 = vpop.f32.mrb[203].mxu0 }
 0x56f   : > { %10998 = vst.msk [vmem:[%s18952_s25 + $0x118] sm:$0xff] %vm253_vm1, %v10989_v54  ;;  %v10972_v60 = vadd.f32 %v12028_v30, %v10945_v41  ;;  %v10946_v33 = vadd.f32 %v18942_v28, %v10937_v58  ;;  %v11972_v41 = vunpack.c.h.bf16 %v12035_v9 }
 0x571   : > { %v10981_v35 = vmul.f32 0.01, %v10972_v60  ;;  %v10973_v24 = vadd.f32 %v12031_v61, %v10946_v33 }
 0x572   : > { %v10918_v10 = vpop.f32.mrb[204].mxu0 }
 0x573   : > { %v10990_v62 = vmax.f32 %v10972_v60, %v10981_v35  ;;  %v10982_v44 = vmul.f32 0.01, %v10973_v24  ;;  %v10938_v43 = vadd.f32 %v10918_v10, %v18930_v7  ;;  %v13791_v57 = vpop.f32.mrb[205].mxu0  ;;  %v11975_v10 = vunpack.c.l.bf16 %v12036_v40 }
 0x574   : > { %v10921_v48 = vpop.f32.mrb[206].mxu0 }
 0x575   : > { %10999 = vst.msk [vmem:[%s18952_s25 + $0x120] sm:$0xff] %vm253_vm1, %v10990_v62  ;;  %v10991_v52 = vmax.f32 %v10973_v24, %v10982_v44  ;;  %v10947_v63 = vadd.f32 %v18942_v28, %v10938_v43  ;;  %v10939_v55 = vadd.f32 %v10921_v48, %v18932_v38  ;;  %v13792_v12 = vpop.f32.mrb[207].mxu0 }
 0x577   : > { %11000 = vst.msk [vmem:[%s18952_s25 + $0x128] sm:$0xff] %vm253_vm1, %v10991_v52  ;;  %v10974_v0 = vadd.f32 %v12032_v37, %v10947_v63  ;;  %v10948_v7 = vadd.f32 %v18942_v28, %v10939_v55  ;;  %v11971_v37 = vunpack.c.l.bf16 %v12035_v9 }
 0x579   : > { %v10983_v14 = vmul.f32 0.01, %v10974_v0  ;;  %v10975_v4 = vadd.f32 %v10966_v22, %v10948_v7  ;;  %v12037_v22 = vld [vmem:[%s14653_s8 + $0x30] sm:$0xff]  }
 0x57a   : > { %v10926_v18 = vpop.f32.mrb[208].mxu0  ;;  %v11979_v23 = vunpack.c.l.bf16 %v12037_v22 }
 0x57b   : > { %v10992_v45 = vmax.f32 %v10974_v0, %v10983_v14  ;;  %v10984_v46 = vmul.f32 0.01, %v10975_v4  ;;  %v10940_v38 = vadd.f32 %v10926_v18, %v18934_v34  ;;  %v13795_v19 = vpop.f32.mrb[209].mxu0  ;;  %v12034_v34 = vld [vmem:[%s14653_s8 + $0x18] sm:$0xff]  }
 0x57c   : > { %v10929_v2 = vpop.f32.mrb[210].mxu0  ;;  %v11967_v13 = vunpack.c.l.bf16 %v12034_v34  ;;  %v11968_v60 = vunpack.c.h.bf16 %v12034_v34  ;;  %v12038_v14 = vld [vmem:[%s14653_s8 + $0x38] sm:$0xff]   ;;  %v11976_v19 = vunpack.c.h.bf16 %v12036_v40 }
 0x57d   : > { %11001 = vst.msk [vmem:[%s18952_s25 + $0x130] sm:$0xff] %vm253_vm1, %v10992_v45  ;;  %v10993_v15 = vmax.f32 %v10975_v4, %v10984_v46  ;;  %v10949_v51 = vadd.f32 %v18942_v28, %v10940_v38  ;;  %v13796_v53 = vpop.f32.mrb[211].mxu0  ;;  %v11980_v45 = vunpack.c.h.bf16 %v12037_v22 }
 0x57e   : > { %v11983_v53 = vunpack.c.l.bf16 %v12038_v14 }
 0x57f   : > { %11002 = vst.msk [vmem:[%s18952_s25 + $0x138] sm:$0xff] %vm253_vm1, %v10993_v15  ;;  %v10976_v36 = vadd.f32 %v10967_v11, %v10949_v51 }
 0x581   : > { %v10985_v27 = vmul.f32 0.01, %v10976_v36 }
 0x583   : > { %v10994_v49 = vmax.f32 %v10976_v36, %v10985_v27 }
 0x585   : > { %11003 = vst.msk [vmem:[%s18952_s25 + $0x140] sm:$0xf] %vm255_vm6, %v10994_v49 }
 0x5e5   : > { %v13515_v17 = vpop.f32.mrb[180].mxu1 }
 0x5e6   : > { %v9303_v50 = vadd.f32 %v13515_v17, %v18942_v28  ;;  %v9136_v47 = vpop.f32.mrb[181].mxu1 }
 0x5e7   : > { %v9301_v6 = vadd.f32 %v18942_v28, %v9136_v47  ;;  %v13516_v16 = vpop.f32.mrb[182].mxu1  ;;  %v12039_v47 = vld [vmem:[%s14653_s8 + $0x40] sm:$0xff]  }
 0x5e8   : > { %v9399_v26 = vadd.f32 %v11964_v56, %v9303_v50  ;;  %v9304_v59 = vadd.f32 %v13516_v16, %v18942_v28  ;;  %v9139_v25 = vpop.f32.mrb[183].mxu1 }
 0x5e9   : > { %v9397_v32 = vadd.f32 %v9365_v29, %v9301_v6  ;;  %v9302_v5 = vadd.f32 %v18942_v28, %v9139_v25 }
 0x5ea   : > { %v9431_v39 = vmul.f32 0.01, %v9399_v26  ;;  %v9400_v20 = vadd.f32 %v11967_v13, %v9304_v59 }
 0x5eb   : > { %v9429_v42 = vmul.f32 0.01, %v9397_v32  ;;  %v9398_v30 = vadd.f32 %v11963_v21, %v9302_v5 }
 0x5ec   : > { %v9463_v8 = vmax.f32 %v9399_v26, %v9431_v39  ;;  %v9432_v54 = vmul.f32 0.01, %v9400_v20  ;;  %v12040_v26 = vld [vmem:[%s14653_s8 + $0x48] sm:$0xff]  }
 0x5ed   : > { %v9461_v58 = vmax.f32 %v9397_v32, %v9429_v42  ;;  %v9430_v61 = vmul.f32 0.01, %v9398_v30  ;;  %v13519_v3 = vpop.f32.mrb[184].mxu1  ;;  %v11988_v32 = vunpack.c.h.bf16 %v12039_v47 }
 0x5ee   : > { %9495 = vst.msk [vmem:[%s18952_s25 + $0x10] sm:$0xff] %vm253_vm1, %v9463_v8  ;;  %v9464_v33 = vmax.f32 %v9400_v20, %v9432_v54  ;;  %v9307_v35 = vadd.f32 %v13519_v3, %v18942_v28  ;;  %v9152_v24 = vpop.f32.mrb[185].mxu1  ;;  %v11984_v20 = vunpack.c.h.bf16 %v12038_v14  ;;  %v11991_v8 = vunpack.c.l.bf16 %v12040_v26 }
 0x5ef   : > { %9493 = vst.msk [vmem:[%s18952_s25] sm:$0xff] %vm253_vm1, %v9461_v58  ;;  %v9462_v62 = vmax.f32 %v9398_v30, %v9430_v61  ;;  %v9305_v44 = vadd.f32 %v18942_v28, %v9152_v24  ;;  %v13520_v43 = vpop.f32.mrb[186].mxu1  ;;  %v11987_v61 = vunpack.c.l.bf16 %v12039_v47 }
 0x5f0   : > { %9496 = vst.msk [vmem:[%s18952_s25 + $0x18] sm:$0xff] %vm253_vm1, %v9464_v33  ;;  %v9403_v57 = vadd.f32 %v11972_v41, %v9307_v35  ;;  %v9308_v48 = vadd.f32 %v13520_v43, %v18942_v28  ;;  %v9155_v52 = vpop.f32.mrb[187].mxu1 }
 0x5f1   : > { %9494 = vst.msk [vmem:[%s18952_s25 + $0x8] sm:$0xff] %vm253_vm1, %v9462_v62  ;;  %v9401_v63 = vadd.f32 %v11968_v60, %v9305_v44  ;;  %v9306_v55 = vadd.f32 %v18942_v28, %v9155_v52 }
 0x5f2   : > { %v9435_v12 = vmul.f32 0.01, %v9403_v57  ;;  %v9404_v0 = vadd.f32 %v11975_v10, %v9308_v48  ;;  %v12041_v10 = vld [vmem:[%s14653_s8 + $0x50] sm:$0xff]  }
 0x5f3   : > { %v9433_v7 = vmul.f32 0.01, %v9401_v63  ;;  %v9402_v31 = vadd.f32 %v11971_v37, %v9306_v55 }
 0x5f4   : > { %v9467_v4 = vmax.f32 %v9403_v57, %v9435_v12  ;;  %v9436_v18 = vmul.f32 0.01, %v9404_v0  ;;  %v12042_v57 = vld [vmem:[%s14653_s8 + $0x58] sm:$0xff]  }
 0x5f5   : > { %v9465_v46 = vmax.f32 %v9401_v63, %v9433_v7  ;;  %v9434_v38 = vmul.f32 0.01, %v9402_v31  ;;  %v13523_v11 = vpop.f32.mrb[188].mxu1  ;;  %v11996_v63 = vunpack.c.h.bf16 %v12041_v10 }
 0x5f6   : > { %9499 = vst.msk [vmem:[%s18952_s25 + $0x30] sm:$0xff] %vm253_vm1, %v9467_v4  ;;  %v9468_v2 = vmax.f32 %v9404_v0, %v9436_v18  ;;  %v9311_v15 = vadd.f32 %v13523_v11, %v18942_v28  ;;  %v9168_v51 = vpop.f32.mrb[189].mxu1  ;;  %v11992_v0 = vunpack.c.h.bf16 %v12040_v26  ;;  %v11999_v4 = vunpack.c.l.bf16 %v12042_v57 }
 0x5f7   : > { %9497 = vst.msk [vmem:[%s18952_s25 + $0x20] sm:$0xff] %vm253_vm1, %v9465_v46  ;;  %v9466_v36 = vmax.f32 %v9402_v31, %v9434_v38  ;;  %v9309_v27 = vadd.f32 %v18942_v28, %v9168_v51  ;;  %v13524_v49 = vpop.f32.mrb[190].mxu1  ;;  %v11995_v38 = vunpack.c.l.bf16 %v12041_v10 }
 0x5f8   : > { %9500 = vst.msk [vmem:[%s18952_s25 + $0x38] sm:$0xff] %vm253_vm1, %v9468_v2  ;;  %v9407_v34 = vadd.f32 %v11980_v45, %v9311_v15  ;;  %v9312_v56 = vadd.f32 %v13524_v49, %v18942_v28  ;;  %v9171_v17 = vpop.f32.mrb[191].mxu1 }
 0x5f9   : > { %9498 = vst.msk [vmem:[%s18952_s25 + $0x28] sm:$0xff] %vm253_vm1, %v9466_v36  ;;  %v9405_v29 = vadd.f32 %v11976_v19, %v9309_v27  ;;  %v9310_v50 = vadd.f32 %v18942_v28, %v9171_v17 }
 0x5fa   : > { %v9439_v13 = vmul.f32 0.01, %v9407_v34  ;;  %v9408_v6 = vadd.f32 %v11983_v53, %v9312_v56  ;;  %v12043_v53 = vld [vmem:[%s14653_s8 + $0x60] sm:$0xff]  }
 0x5fb   : > { %v9437_v16 = vmul.f32 0.01, %v9405_v29  ;;  %v9406_v21 = vadd.f32 %v11979_v23, %v9310_v50 }
 0x5fc   : > { %v9471_v59 = vmax.f32 %v9407_v34, %v9439_v13  ;;  %v9440_v25 = vmul.f32 0.01, %v9408_v6  ;;  %v12044_v34 = vld [vmem:[%s14653_s8 + $0x68] sm:$0xff]  }
 0x5fd   : > { %v9469_v5 = vmax.f32 %v9405_v29, %v9437_v16  ;;  %v9438_v9 = vmul.f32 0.01, %v9406_v21  ;;  %v13527_v39 = vpop.f32.mrb[192].mxu1  ;;  %v12004_v29 = vunpack.c.h.bf16 %v12043_v53 }
 0x5fe   : > { %9503 = vst.msk [vmem:[%s18952_s25 + $0x50] sm:$0xff] %vm253_vm1, %v9471_v59  ;;  %v9472_v42 = vmax.f32 %v9408_v6, %v9440_v25  ;;  %v9315_v30 = vadd.f32 %v13527_v39, %v18942_v28  ;;  %v9184_v40 = vpop.f32.mrb[193].mxu1  ;;  %v12000_v6 = vunpack.c.h.bf16 %v12042_v57  ;;  %v12007_v59 = vunpack.c.l.bf16 %v12044_v34 }
 0x5ff   : > { %9501 = vst.msk [vmem:[%s18952_s25 + $0x40] sm:$0xff] %vm253_vm1, %v9469_v5  ;;  %v9470_v54 = vmax.f32 %v9406_v21, %v9438_v9  ;;  %v9313_v41 = vadd.f32 %v18942_v28, %v9184_v40  ;;  %v13528_v58 = vpop.f32.mrb[194].mxu1  ;;  %v12003_v9 = vunpack.c.l.bf16 %v12043_v53 }
 0x600   : > { %9504 = vst.msk [vmem:[%s18952_s25 + $0x58] sm:$0xff] %vm253_vm1, %v9472_v42  ;;  %v9411_v3 = vadd.f32 %v11988_v32, %v9315_v30  ;;  %v9316_v60 = vadd.f32 %v13528_v58, %v18942_v28  ;;  %v9187_v33 = vpop.f32.mrb[195].mxu1 }
 0x601   : > { %9502 = vst.msk [vmem:[%s18952_s25 + $0x48] sm:$0xff] %vm253_vm1, %v9470_v54  ;;  %v9409_v35 = vadd.f32 %v11984_v20, %v9313_v41  ;;  %v9314_v24 = vadd.f32 %v18942_v28, %v9187_v33 }
 0x602   : > { %v9443_v62 = vmul.f32 0.01, %v9411_v3  ;;  %v9412_v44 = vadd.f32 %v11991_v8, %v9316_v60  ;;  %v12045_v8 = vld [vmem:[%s14653_s8 + $0x70] sm:$0xff]  }
 0x603   : > { %v9441_v43 = vmul.f32 0.01, %v9409_v35  ;;  %v9410_v37 = vadd.f32 %v11987_v61, %v9314_v24 }
 0x604   : > { %v9475_v48 = vmax.f32 %v9411_v3, %v9443_v62  ;;  %v9444_v52 = vmul.f32 0.01, %v9412_v44  ;;  %v12046_v3 = vld [vmem:[%s14653_s8 + $0x78] sm:$0xff]  }
 0x605   : > { %v9473_v55 = vmax.f32 %v9409_v35, %v9441_v43  ;;  %v9442_v22 = vmul.f32 0.01, %v9410_v37  ;;  %v13531_v12 = vpop.f32.mrb[196].mxu1  ;;  %v12012_v35 = vunpack.c.h.bf16 %v12045_v8 }
 0x606   : > { %9507 = vst.msk [vmem:[%s18952_s25 + $0x70] sm:$0xff] %vm253_vm1, %v9475_v48  ;;  %v9476_v7 = vmax.f32 %v9412_v44, %v9444_v52  ;;  %v9319_v31 = vadd.f32 %v13531_v12, %v18942_v28  ;;  %v9200_v14 = vpop.f32.mrb[197].mxu1  ;;  %v12008_v44 = vunpack.c.h.bf16 %v12044_v34  ;;  %v12015_v48 = vunpack.c.l.bf16 %v12046_v3 }
 0x607   : > { %9505 = vst.msk [vmem:[%s18952_s25 + $0x60] sm:$0xff] %vm253_vm1, %v9473_v55  ;;  %v9474_v18 = vmax.f32 %v9410_v37, %v9442_v22  ;;  %v9317_v45 = vadd.f32 %v18942_v28, %v9200_v14  ;;  %v13532_v46 = vpop.f32.mrb[198].mxu1  ;;  %v12011_v22 = vunpack.c.l.bf16 %v12045_v8  ;;  %v9396_v34 = vunpack.c.h.bf16 %v18989_v1 }
 0x608   : > { %9508 = vst.msk [vmem:[%s18952_s25 + $0x78] sm:$0xff] %vm253_vm1, %v9476_v7  ;;  %v9415_v11 = vadd.f32 %v11996_v63, %v9319_v31  ;;  %v9320_v19 = vadd.f32 %v13532_v46, %v18942_v28  ;;  %v9203_v2 = vpop.f32.mrb[199].mxu1 }
 0x609   : > { %9506 = vst.msk [vmem:[%s18952_s25 + $0x68] sm:$0xff] %vm253_vm1, %v9474_v18  ;;  %v9413_v15 = vadd.f32 %v11992_v0, %v9317_v45  ;;  %v9318_v51 = vadd.f32 %v18942_v28, %v9203_v2 }
 0x60a   : > { %v9447_v36 = vmul.f32 0.01, %v9415_v11  ;;  %v9416_v27 = vadd.f32 %v11999_v4, %v9320_v19  ;;  %v12047_v4 = vld [vmem:[%s14653_s8 + $0x80] sm:$0xff]  }
 0x60b   : > { %v9445_v49 = vmul.f32 0.01, %v9413_v15  ;;  %v9414_v23 = vadd.f32 %v11995_v38, %v9318_v51  ;;  %v12020_v2 = vunpack.c.h.bf16 %v12047_v4 }
 0x60c   : > { %v9479_v56 = vmax.f32 %v9415_v11, %v9447_v36  ;;  %v9448_v17 = vmul.f32 0.01, %v9416_v27  ;;  %v12016_v36 = vunpack.c.h.bf16 %v12046_v3 }
 0x60d   : > { %v9477_v50 = vmax.f32 %v9413_v15, %v9445_v49  ;;  %v9446_v47 = vmul.f32 0.01, %v9414_v23  ;;  %v13535_v13 = vpop.f32.mrb[200].mxu1 }
 0x60e   : > { %9511 = vst.msk [vmem:[%s18952_s25 + $0x90] sm:$0xff] %vm253_vm1, %v9479_v56  ;;  %v9480_v16 = vmax.f32 %v9416_v27, %v9448_v17  ;;  %v9323_v21 = vadd.f32 %v13535_v13, %v18942_v28  ;;  %v9216_v26 = vpop.f32.mrb[201].mxu1 }
 0x60f   : > { %9509 = vst.msk [vmem:[%s18952_s25 + $0x80] sm:$0xff] %vm253_vm1, %v9477_v50  ;;  %v9478_v25 = vmax.f32 %v9414_v23, %v9446_v47  ;;  %v9321_v32 = vadd.f32 %v18942_v28, %v9216_v26  ;;  %v13536_v5 = vpop.f32.mrb[202].mxu1  ;;  %v12019_v50 = vunpack.c.l.bf16 %v12047_v4 }
 0x610   : > { %9512 = vst.msk [vmem:[%s18952_s25 + $0x98] sm:$0xff] %vm253_vm1, %v9480_v16  ;;  %v9419_v39 = vadd.f32 %v12004_v29, %v9323_v21  ;;  %v9324_v20 = vadd.f32 %v13536_v5, %v18942_v28  ;;  %v9219_v42 = vpop.f32.mrb[203].mxu1 }
 0x611   : > { %9510 = vst.msk [vmem:[%s18952_s25 + $0x88] sm:$0xff] %vm253_vm1, %v9478_v25  ;;  %v9417_v30 = vadd.f32 %v12000_v6, %v9321_v32  ;;  %v9322_v40 = vadd.f32 %v18942_v28, %v9219_v42 }
 0x612   : > { %v9451_v54 = vmul.f32 0.01, %v9419_v39  ;;  %v9420_v41 = vadd.f32 %v12007_v59, %v9324_v20 }
 0x613   : > { %v9449_v58 = vmul.f32 0.01, %v9417_v30  ;;  %v9418_v61 = vadd.f32 %v12003_v9, %v9322_v40 }
 0x614   : > { %v9483_v60 = vmax.f32 %v9419_v39, %v9451_v54  ;;  %v9452_v33 = vmul.f32 0.01, %v9420_v41 }
 0x615   : > { %v9481_v24 = vmax.f32 %v9417_v30, %v9449_v58  ;;  %v9450_v10 = vmul.f32 0.01, %v9418_v61  ;;  %v13539_v62 = vpop.f32.mrb[204].mxu1 }
 0x616   : > { %9515 = vst.msk [vmem:[%s18952_s25 + $0xb0] sm:$0xff] %vm253_vm1, %v9483_v60  ;;  %v9484_v43 = vmax.f32 %v9420_v41, %v9452_v33  ;;  %v9327_v37 = vadd.f32 %v13539_v62, %v18942_v28  ;;  %v9232_v57 = vpop.f32.mrb[205].mxu1 }
 0x617   : > { %9513 = vst.msk [vmem:[%s18952_s25 + $0xa0] sm:$0xff] %vm253_vm1, %v9481_v24  ;;  %v9482_v52 = vmax.f32 %v9418_v61, %v9450_v10  ;;  %v9325_v63 = vadd.f32 %v18942_v28, %v9232_v57  ;;  %v13540_v55 = vpop.f32.mrb[206].mxu1 }
 0x618   : > { %9516 = vst.msk [vmem:[%s18952_s25 + $0xb8] sm:$0xff] %vm253_vm1, %v9484_v43  ;;  %v9423_v12 = vadd.f32 %v12012_v35, %v9327_v37  ;;  %v9328_v0 = vadd.f32 %v13540_v55, %v18942_v28  ;;  %v9235_v7 = vpop.f32.mrb[207].mxu1 }
 0x619   : > { %9514 = vst.msk [vmem:[%s18952_s25 + $0xa8] sm:$0xff] %vm253_vm1, %v9482_v52  ;;  %v9421_v31 = vadd.f32 %v12008_v44, %v9325_v63  ;;  %v9326_v14 = vadd.f32 %v18942_v28, %v9235_v7 }
 0x61a   : > { %v9455_v18 = vmul.f32 0.01, %v9423_v12  ;;  %v9424_v45 = vadd.f32 %v12015_v48, %v9328_v0 }
 0x61b   : > { %v9453_v46 = vmul.f32 0.01, %v9421_v31  ;;  %v9422_v38 = vadd.f32 %v12011_v22, %v9326_v14 }
 0x61c   : > { %v9487_v11 = vmax.f32 %v9423_v12, %v9455_v18  ;;  %v9456_v19 = vmul.f32 0.01, %v9424_v45 }
 0x61d   : > { %v9485_v15 = vmax.f32 %v9421_v31, %v9453_v46  ;;  %v9454_v51 = vmul.f32 0.01, %v9422_v38  ;;  %v13543_v53 = vpop.f32.mrb[208].mxu1 }
 0x61e   : > { %9519 = vst.msk [vmem:[%s18952_s25 + $0xd0] sm:$0xff] %vm253_vm1, %v9487_v11  ;;  %v9488_v27 = vmax.f32 %v9424_v45, %v9456_v19  ;;  %v9331_v49 = vadd.f32 %v13543_v53, %v18942_v28  ;;  %v9248_v23 = vpop.f32.mrb[209].mxu1 }
 0x61f   : > { %9517 = vst.msk [vmem:[%s18952_s25 + $0xc0] sm:$0xff] %vm253_vm1, %v9485_v15  ;;  %v9486_v56 = vmax.f32 %v9422_v38, %v9454_v51  ;;  %v9329_v17 = vadd.f32 %v18942_v28, %v9248_v23  ;;  %v13544_v29 = vpop.f32.mrb[210].mxu1 }
 0x620   : > { %9520 = vst.msk [vmem:[%s18952_s25 + $0xd8] sm:$0xff] %vm253_vm1, %v9488_v27  ;;  %v9427_v47 = vadd.f32 %v12020_v2, %v9331_v49  ;;  %v9332_v13 = vadd.f32 %v13544_v29, %v18942_v28  ;;  %v9251_v6 = vpop.f32.mrb[211].mxu1 }
 0x621   : > { %9518 = vst.msk [vmem:[%s18952_s25 + $0xc8] sm:$0xff] %vm253_vm1, %v9486_v56  ;;  %v9425_v1 = vadd.f32 %v12016_v36, %v9329_v17  ;;  %v9330_v16 = vadd.f32 %v18942_v28, %v9251_v6 }
 0x622   : > { %v9459_v21 = vmul.f32 0.01, %v9427_v47  ;;  %v9428_v26 = vadd.f32 %v9396_v34, %v9332_v13 }
 0x623   : > { %v9457_v59 = vmul.f32 0.01, %v9425_v1  ;;  %v9426_v25 = vadd.f32 %v12019_v50, %v9330_v16 }
 0x624   : > { %v9491_v32 = vmax.f32 %v9427_v47, %v9459_v21  ;;  %v9460_v5 = vmul.f32 0.01, %v9428_v26 }
 0x625   : > { %v9489_v9 = vmax.f32 %v9425_v1, %v9457_v59  ;;  %v9458_v39 = vmul.f32 0.01, %v9426_v25 }
 0x626   : > { %9523 = vst.msk [vmem:[%s18952_s25 + $0xf0] sm:$0xff] %vm253_vm1, %v9491_v32  ;;  %v9492_v20 = vmax.f32 %v9428_v26, %v9460_v5 }
 0x627   : > { %9521 = vst.msk [vmem:[%s18952_s25 + $0xe0] sm:$0xff] %vm253_vm1, %v9489_v9  ;;  %v9490_v42 = vmax.f32 %v9426_v25, %v9458_v39 }
 0x628   : > { %9524 = vst.msk [vmem:[%s18952_s25 + $0xf8] sm:$0xff] %vm253_vm1, %v9492_v20 }
 0x629   : > { %9522 = vst.msk [vmem:[%s18952_s25 + $0xe8] sm:$0xff] %vm253_vm1, %v9490_v42 }
 0x62a PF: > { %s16_s21 = sadd.s32 1, %s14590_s21  }
 0x62b   : > { %p13_p4 = scmp.ge.s32.totalorder %s16_s21, 4  }
 0x62d   :  { %15 = sbr.rel (!%p13_p4) target bundleno = 1 (0x1), region = 90 }

</bundles_post_ra>
